<compile_context>
chip_gen: v7x
topology: tpu7x:2x2x1
jax: 0.10.0
libtpu: 0.0.40
codegen_flags: <defaults>
</compile_context>

<pallas_src>
import jax
import jax.numpy as jnp
from jax import lax
from jax.experimental import pallas as pl
from jax.experimental.pallas import tpu as pltpu

# ---- small, module-consistent sizes (2048/512/256 scaled down) --------------
NB = 2          # batch
CIN = 128       # "2048"
C1 = 64         # "512"
C2 = 32         # "256"
COUT = 64       # head output "256"
H = W = 16      # spatial
CCAT = 2 * (C1 + C2)     # 192: concat width [x1_1 | x1_2 | x2_1 | x2_2]
NOUT = 3 * COUT          # 192: fused head output lanes [small | big | all]
M = NB * H * W           # batch folded -> one big MXU M dimension

# dilated 3x3 branches: (dilation, out_channels) in concat order x1_2, x2_1, x2_2
BRANCHES = ((6, C2), (12, C1), (18, C2))
# An off-centre tap of a "same"-padded 3x3 conv with dilation d reads only the zero
# halo when d >= H and d >= W, so that branch degenerates to its centre (1x1)
# contribution and its off-centre matmuls can be skipped statically. (The skip
# condition is monotone in d, so the active branches always form a prefix.)
ACTIVE = tuple((d, c) for d, c in BRANCHES if not (d >= H and d >= W))
_MAXD = max((d for d, _ in ACTIVE), default=0)
PAD = ((_MAXD + 7) // 8) * 8        # sublane-aligned halo (16 for max dilation 12)
HP, WP = H + 2 * PAD, W + 2 * PAD
OFF = tuple((dy, dx) for dy in range(3) for dx in range(3) if (dy, dx) != (1, 1))


def _dot(a, b):
    # default precision: one bf16 MXU pass with f32 accumulation.
    return jnp.dot(a, b, preferred_element_type=jnp.float32)


def hasp_kernel(x_ref, wc_ref, bc_ref, *rest):
    """Whole (folded-batch) problem in one grid step.

    rest = (*branch_w_refs, wh_ref, bh_ref, out_ref[, xp_scratch])
    """
    nbr = len(ACTIVE)
    branch_w_refs = rest[:nbr]
    wh_ref, bh_ref, out_ref = rest[nbr], rest[nbr + 1], rest[nbr + 2]

    x = x_ref[...]                                      # (NB, H, W, CIN)
    xc = x.reshape(M, CIN)

    # Fused centre matmul: [x1_1 | centre taps of the three dilated 3x3 branches].
    acc = _dot(xc, wc_ref[...])                         # (M, CCAT)

    if nbr:
        xp = rest[nbr + 3]                              # VMEM scratch (NB, HP, WP, CIN)
        # Build the zero-padded slab on chip; the halo never crosses HBM.
        xp[...] = jnp.zeros_like(xp)
        xp[:, PAD:PAD + H, PAD:PAD + W, :] = x

        def tap(dy, dx, d):
            oy = PAD + (dy - 1) * d
            ox = PAD + (dx - 1) * d
            return xp[:, oy:oy + H, ox:ox + W, :].reshape(M, CIN)

        # Off-centre taps: one im2col matmul per active branch (K = 8*CIN).
        parts = [jnp.zeros((M, C1), jnp.float32)]       # x1_1 has no 3x3 term
        for (d, _), w_ref in zip(ACTIVE, branch_w_refs):
            taps = jnp.concatenate([tap(dy, dx, d) for dy, dx in OFF], axis=-1)
            parts.append(_dot(taps, w_ref[...]))
        trailing = CCAT - sum(p.shape[-1] for p in parts)
        if trailing:                                    # skipped-branch columns
            parts.append(jnp.zeros((M, trailing), jnp.float32))
        acc = acc + jnp.concatenate(parts, axis=-1)

    feat = jnp.maximum(acc + bc_ref[...], 0.0)          # ReLU'd [x1_1|x1_2|x2_1|x2_2]

    # Fused head: conv_small / conv_big / conv_all as one lane-dense matmul.
    out = jnp.maximum(_dot(feat, wh_ref[...]) + bh_ref[...], 0.0)   # (M, NOUT)
    out_ref[...] = out.reshape(NB, H, W, NOUT)
    # Dropout(0.5) is identity at inference; intentionally omitted.


def _fuse_params(p):
    """Fold the branch/concat structure into three fused weight matrices (glue)."""
    # Centre 1x1 weights, columns ordered [x1_1 | x1_2 | x2_1 | x2_2].
    wc = jnp.concatenate(
        [p["w11"], p["w12"][1, 1], p["w21"][1, 1], p["w22"][1, 1]], axis=1)  # (CIN, CCAT)
    bc = jnp.concatenate([p["b11"], p["b12"], p["b21"], p["b22"]], axis=1)   # (1, CCAT)

    branch_ws = []
    name = {6: "w12", 12: "w21", 18: "w22"}
    for d, _ in ACTIVE:
        w3 = p[name[d]]                                                      # (3,3,CIN,Cd)
        branch_ws.append(
            jnp.concatenate([w3[dy, dx] for dy, dx in OFF], axis=0))         # (8*CIN, Cd)

    # Fused head weight: rows [x1_1|x1_2|x2_1|x2_2], cols [small | big | all].
    z = jnp.zeros((C1 + C2, COUT), jnp.float32)
    wh = jnp.concatenate([
        jnp.concatenate([p["ws"], z], axis=0),     # small reads only (x1_1, x1_2)
        jnp.concatenate([z, p["wb"]], axis=0),     # big   reads only (x2_1, x2_2)
        p["wa"],                                   # all reads everything
    ], axis=1)                                     # (CCAT, NOUT)
    bh = jnp.concatenate([p["bs"], p["bb"], p["ba"]], axis=1)                # (1, NOUT)
    return [wc, bc, *branch_ws, wh, bh]


def _full_spec(shape):
    nd = len(shape)
    return pl.BlockSpec(shape, lambda i, _nd=nd: (0,) * _nd)


@jax.jit
def hasp_forward(x_nchw, params):
    """x_nchw: (NB, CIN, H, W) float32 -> (small, big, all), each (NB, COUT, H, W)."""
    x = jnp.transpose(x_nchw, (0, 2, 3, 1)).astype(jnp.float32)   # NHWC, lanes = channels
    fused = _fuse_params(params)

    in_specs = [_full_spec((NB, H, W, CIN))] + [_full_spec(t.shape) for t in fused]
    scratch = [pltpu.VMEM((NB, HP, WP, CIN), jnp.float32)] if ACTIVE else []

    out = pl.pallas_call(
        hasp_kernel,
        out_shape=jax.ShapeDtypeStruct((NB, H, W, NOUT), jnp.float32),
        grid=(1,),
        in_specs=in_specs,
        out_specs=_full_spec((NB, H, W, NOUT)),
        scratch_shapes=scratch,
        compiler_params=pltpu.CompilerParams(
            dimension_semantics=("arbitrary",),
            vmem_limit_bytes=32 << 20),
    )(x, *fused)

    to_nchw = lambda t: jnp.transpose(t, (0, 3, 1, 2))
    return (to_nchw(out[..., :COUT]),
            to_nchw(out[..., COUT:2 * COUT]),
            to_nchw(out[..., 2 * COUT:]))


def init_params(key):
    """Deterministic parameter init mirroring the module's _init_weight():
    kaiming_normal_ conv weights, BN gamma=1/beta=0. Eval-mode BN
    (running_mean=0, running_var=1, eps=1e-5) is folded into the weights."""
    eps = 1e-5
    bn_scale = 1.0 / jnp.sqrt(jnp.float32(1.0 + eps))

    def kaiming(k, shape, fan_in):
        return jax.random.normal(k, shape, jnp.float32) * jnp.sqrt(2.0 / fan_in)

    ks = jax.random.split(key, 7)
    zero = lambda c: jnp.zeros((1, c), jnp.float32)
    return {
        "w11": kaiming(ks[0], (CIN, C1), CIN) * bn_scale,
        "b11": zero(C1),
        "w12": kaiming(ks[1], (3, 3, CIN, C2), CIN * 9) * bn_scale,
        "b12": zero(C2),
        "w21": kaiming(ks[2], (3, 3, CIN, C1), CIN * 9) * bn_scale,
        "b21": zero(C1),
        "w22": kaiming(ks[3], (3, 3, CIN, C2), CIN * 9) * bn_scale,
        "b22": zero(C2),
        "ws": kaiming(ks[4], (C1 + C2, COUT), C1 + C2) * bn_scale,
        "bs": zero(COUT),
        "wb": kaiming(ks[5], (C1 + C2, COUT), C1 + C2) * bn_scale,
        "bb": zero(COUT),
        "wa": kaiming(ks[6], (2 * (C1 + C2), COUT), 2 * (C1 + C2)) * bn_scale,
        "ba": zero(COUT),
    }


def reference_forward(x_nchw, params):
    """Pure-JAX reference (lax.conv_general_dilated) with the same folded BN.
    Uses DEFAULT precision so both sides share the standard TPU bf16 matmul path."""
    x = jnp.transpose(x_nchw, (0, 2, 3, 1)).astype(jnp.float32)
    relu = lambda t: jnp.maximum(t, 0.0)

    def conv(inp, w, d, p):
        if w.ndim == 2:
            w = w.reshape(1, 1, *w.shape)
        return lax.conv_general_dilated(
            inp, w, (1, 1), [(p, p), (p, p)], rhs_dilation=(d, d),
            dimension_numbers=("NHWC", "HWIO", "NHWC"),
            precision=lax.Precision.DEFAULT)

    x11 = relu(conv(x, params["w11"], 1, 0) + params["b11"])
    x12 = relu(conv(x, params["w12"], 6, 6) + params["b12"])
    x21 = relu(conv(x, params["w21"], 12, 12) + params["b21"])
    x22 = relu(conv(x, params["w22"], 18, 18) + params["b22"])

    xs = jnp.concatenate([x11, x12], -1)
    xb = jnp.concatenate([x21, x22], -1)
    xa = jnp.concatenate([x11, x12, x21, x22], -1)

    small = relu(conv(xs, params["ws"], 1, 0) + params["bs"])
    big = relu(conv(xb, params["wb"], 1, 0) + params["bb"])
    alla = relu(conv(xa, params["wa"], 1, 0) + params["ba"])

    to_nchw = lambda t: jnp.transpose(t, (0, 3, 1, 2))
    return to_nchw(small), to_nchw(big), to_nchw(alla)


if __name__ == "__main__":
    key = jax.random.PRNGKey(0)
    pkey, xkey = jax.random.split(key)
    params = init_params(pkey)
    x = jax.random.normal(xkey, (NB, CIN, H, W), jnp.float32)   # NCHW, like PyTorch

    outs = jax.block_until_ready(hasp_forward(x, params))
    refs = reference_forward(x, params)
    for o, r in zip(outs, refs):
        assert o.shape == (NB, COUT, H, W), o.shape
        assert jnp.allclose(o, r, rtol=2e-2, atol=3e-2), float(jnp.abs(o - r).max())

    print("KERNEL_OK")
</pallas_src>

<mosaic_0001>
module attributes {stable_mosaic.version = 11 : i64} {
  func.func @hasp_kernel(%arg0: i32, %arg1: memref<2x16x16x128xf32, #tpu.memory_space<vmem>>, %arg2: memref<128x192xf32, #tpu.memory_space<vmem>>, %arg3: memref<1x192xf32, #tpu.memory_space<vmem>>, %arg4: memref<1024x32xf32, #tpu.memory_space<vmem>>, %arg5: memref<1024x64xf32, #tpu.memory_space<vmem>>, %arg6: memref<192x192xf32, #tpu.memory_space<vmem>>, %arg7: memref<1x192xf32, #tpu.memory_space<vmem>>, %arg8: memref<2x16x16x192xf32, #tpu.memory_space<vmem>>, %arg9: memref<2x48x48x128xf32, #tpu.memory_space<vmem>>) attributes {dimension_semantics = [#tpu.dimension_semantics<arbitrary>], iteration_bounds = array<i64: 1>, scalar_prefetch = 0 : i64, scratch_operands = 1 : i64, tpu.core_type = #tpu.core_type<tc>, window_params = [{pipeline_mode = #tpu.pipeline_mode<synchronous>, transform_indices = @transform_0, window_bounds = array<i64: 2, 16, 16, 128>}, {pipeline_mode = #tpu.pipeline_mode<synchronous>, transform_indices = @transform_1, window_bounds = array<i64: 128, 192>}, {pipeline_mode = #tpu.pipeline_mode<synchronous>, transform_indices = @transform_2, window_bounds = array<i64: 1, 192>}, {pipeline_mode = #tpu.pipeline_mode<synchronous>, transform_indices = @transform_3, window_bounds = array<i64: 1024, 32>}, {pipeline_mode = #tpu.pipeline_mode<synchronous>, transform_indices = @transform_4, window_bounds = array<i64: 1024, 64>}, {pipeline_mode = #tpu.pipeline_mode<synchronous>, transform_indices = @transform_5, window_bounds = array<i64: 192, 192>}, {pipeline_mode = #tpu.pipeline_mode<synchronous>, transform_indices = @transform_6, window_bounds = array<i64: 1, 192>}, {pipeline_mode = #tpu.pipeline_mode<synchronous>, transform_indices = @transform_7, window_bounds = array<i64: 2, 16, 16, 192>}]} {
    %c0 = arith.constant 0 : index
    %c0_0 = arith.constant 0 : index
    %c0_1 = arith.constant 0 : index
    %c0_2 = arith.constant 0 : index
    %0 = vector.load %arg1[%c0, %c0_0, %c0_1, %c0_2] : memref<2x16x16x128xf32, #tpu.memory_space<vmem>>, vector<2x16x16x128xf32>
    %1 = vector.shape_cast %0 : vector<2x16x16x128xf32> to vector<512x128xf32>
    %c0_3 = arith.constant 0 : index
    %c0_4 = arith.constant 0 : index
    %2 = vector.load %arg2[%c0_3, %c0_4] : memref<128x192xf32, #tpu.memory_space<vmem>>, vector<128x192xf32>
    %cst = arith.constant dense<0.000000e+00> : vector<512x192xf32>
    %3 = tpu.matmul %1, %2, %cst {dimension_numbers = #tpu.dot_dimension_numbers<[1], [0], [0], [1], [0, 0, 1, 1], [], []>} : vector<512x128xf32>, vector<128x192xf32>, vector<512x192xf32> -> vector<512x192xf32>
    %cst_5 = arith.constant 0.000000e+00 : f32
    %4 = vector.broadcast %cst_5 : f32 to vector<2x48x48x128xf32>
    %c0_6 = arith.constant 0 : index
    %c0_7 = arith.constant 0 : index
    %c0_8 = arith.constant 0 : index
    %c0_9 = arith.constant 0 : index
    %5 = vector.load %arg9[%c0_6, %c0_7, %c0_8, %c0_9] : memref<2x48x48x128xf32, #tpu.memory_space<vmem>>, vector<2x48x48x128xf32>
    tpu.vector_store %arg9[%c0_6, %c0_7, %c0_8, %c0_9], %4 {strides = array<i32>} : memref<2x48x48x128xf32, #tpu.memory_space<vmem>>, vector<2x48x48x128xf32>,
    %c0_10 = arith.constant 0 : index
    %c16 = arith.constant 16 : index
    %c16_11 = arith.constant 16 : index
    %c0_12 = arith.constant 0 : index
    %6 = vector.load %arg9[%c0_10, %c16, %c16_11, %c0_12] : memref<2x48x48x128xf32, #tpu.memory_space<vmem>>, vector<2x16x16x128xf32>
    tpu.vector_store %arg9[%c0_10, %c16, %c16_11, %c0_12], %0 {strides = array<i32>} : memref<2x48x48x128xf32, #tpu.memory_space<vmem>>, vector<2x16x16x128xf32>,
    %cst_13 = arith.constant 0.000000e+00 : f32
    %7 = vector.broadcast %cst_13 : f32 to vector<512x64xf32>
    %c0_14 = arith.constant 0 : index
    %c10 = arith.constant 10 : index
    %c10_15 = arith.constant 10 : index
    %c0_16 = arith.constant 0 : index
    %8 = vector.load %arg9[%c0_14, %c10, %c10_15, %c0_16] : memref<2x48x48x128xf32, #tpu.memory_space<vmem>>, vector<2x16x16x128xf32>
    %9 = vector.shape_cast %8 : vector<2x16x16x128xf32> to vector<512x128xf32>
    %c0_17 = arith.constant 0 : index
    %c10_18 = arith.constant 10 : index
    %c16_19 = arith.constant 16 : index
    %c0_20 = arith.constant 0 : index
    %10 = vector.load %arg9[%c0_17, %c10_18, %c16_19, %c0_20] : memref<2x48x48x128xf32, #tpu.memory_space<vmem>>, vector<2x16x16x128xf32>
    %11 = vector.shape_cast %10 : vector<2x16x16x128xf32> to vector<512x128xf32>
    %c0_21 = arith.constant 0 : index
    %c10_22 = arith.constant 10 : index
    %c22 = arith.constant 22 : index
    %c0_23 = arith.constant 0 : index
    %12 = vector.load %arg9[%c0_21, %c10_22, %c22, %c0_23] : memref<2x48x48x128xf32, #tpu.memory_space<vmem>>, vector<2x16x16x128xf32>
    %13 = vector.shape_cast %12 : vector<2x16x16x128xf32> to vector<512x128xf32>
    %c0_24 = arith.constant 0 : index
    %c16_25 = arith.constant 16 : index
    %c10_26 = arith.constant 10 : index
    %c0_27 = arith.constant 0 : index
    %14 = vector.load %arg9[%c0_24, %c16_25, %c10_26, %c0_27] : memref<2x48x48x128xf32, #tpu.memory_space<vmem>>, vector<2x16x16x128xf32>
    %15 = vector.shape_cast %14 : vector<2x16x16x128xf32> to vector<512x128xf32>
    %c0_28 = arith.constant 0 : index
    %c16_29 = arith.constant 16 : index
    %c22_30 = arith.constant 22 : index
    %c0_31 = arith.constant 0 : index
    %16 = vector.load %arg9[%c0_28, %c16_29, %c22_30, %c0_31] : memref<2x48x48x128xf32, #tpu.memory_space<vmem>>, vector<2x16x16x128xf32>
    %17 = vector.shape_cast %16 : vector<2x16x16x128xf32> to vector<512x128xf32>
    %c0_32 = arith.constant 0 : index
    %c22_33 = arith.constant 22 : index
    %c10_34 = arith.constant 10 : index
    %c0_35 = arith.constant 0 : index
    %18 = vector.load %arg9[%c0_32, %c22_33, %c10_34, %c0_35] : memref<2x48x48x128xf32, #tpu.memory_space<vmem>>, vector<2x16x16x128xf32>
    %19 = vector.shape_cast %18 : vector<2x16x16x128xf32> to vector<512x128xf32>
    %c0_36 = arith.constant 0 : index
    %c22_37 = arith.constant 22 : index
    %c16_38 = arith.constant 16 : index
    %c0_39 = arith.constant 0 : index
    %20 = vector.load %arg9[%c0_36, %c22_37, %c16_38, %c0_39] : memref<2x48x48x128xf32, #tpu.memory_space<vmem>>, vector<2x16x16x128xf32>
    %21 = vector.shape_cast %20 : vector<2x16x16x128xf32> to vector<512x128xf32>
    %c0_40 = arith.constant 0 : index
    %c22_41 = arith.constant 22 : index
    %c22_42 = arith.constant 22 : index
    %c0_43 = arith.constant 0 : index
    %22 = vector.load %arg9[%c0_40, %c22_41, %c22_42, %c0_43] : memref<2x48x48x128xf32, #tpu.memory_space<vmem>>, vector<2x16x16x128xf32>
    %23 = vector.shape_cast %22 : vector<2x16x16x128xf32> to vector<512x128xf32>
    %24 = tpu.concatenate %9, %11, %13, %15, %17, %19, %21, %23 in 1 : vector<512x128xf32>, vector<512x128xf32>, vector<512x128xf32>, vector<512x128xf32>, vector<512x128xf32>, vector<512x128xf32>, vector<512x128xf32>, vector<512x128xf32> -> vector<512x1024xf32>
    %c0_44 = arith.constant 0 : index
    %c0_45 = arith.constant 0 : index
    %25 = vector.load %arg4[%c0_44, %c0_45] : memref<1024x32xf32, #tpu.memory_space<vmem>>, vector<1024x32xf32>
    %cst_46 = arith.constant dense<0.000000e+00> : vector<512x32xf32>
    %26 = tpu.matmul %24, %25, %cst_46 {dimension_numbers = #tpu.dot_dimension_numbers<[1], [0], [0], [1], [0, 0, 1, 1], [], []>} : vector<512x1024xf32>, vector<1024x32xf32>, vector<512x32xf32> -> vector<512x32xf32>
    %c0_47 = arith.constant 0 : index
    %c4 = arith.constant 4 : index
    %c4_48 = arith.constant 4 : index
    %c0_49 = arith.constant 0 : index
    %27 = vector.load %arg9[%c0_47, %c4, %c4_48, %c0_49] : memref<2x48x48x128xf32, #tpu.memory_space<vmem>>, vector<2x16x16x128xf32>
    %28 = vector.shape_cast %27 : vector<2x16x16x128xf32> to vector<512x128xf32>
    %c0_50 = arith.constant 0 : index
    %c4_51 = arith.constant 4 : index
    %c16_52 = arith.constant 16 : index
    %c0_53 = arith.constant 0 : index
    %29 = vector.load %arg9[%c0_50, %c4_51, %c16_52, %c0_53] : memref<2x48x48x128xf32, #tpu.memory_space<vmem>>, vector<2x16x16x128xf32>
    %30 = vector.shape_cast %29 : vector<2x16x16x128xf32> to vector<512x128xf32>
    %c0_54 = arith.constant 0 : index
    %c4_55 = arith.constant 4 : index
    %c28 = arith.constant 28 : index
    %c0_56 = arith.constant 0 : index
    %31 = vector.load %arg9[%c0_54, %c4_55, %c28, %c0_56] : memref<2x48x48x128xf32, #tpu.memory_space<vmem>>, vector<2x16x16x128xf32>
    %32 = vector.shape_cast %31 : vector<2x16x16x128xf32> to vector<512x128xf32>
    %c0_57 = arith.constant 0 : index
    %c16_58 = arith.constant 16 : index
    %c4_59 = arith.constant 4 : index
    %c0_60 = arith.constant 0 : index
    %33 = vector.load %arg9[%c0_57, %c16_58, %c4_59, %c0_60] : memref<2x48x48x128xf32, #tpu.memory_space<vmem>>, vector<2x16x16x128xf32>
    %34 = vector.shape_cast %33 : vector<2x16x16x128xf32> to vector<512x128xf32>
    %c0_61 = arith.constant 0 : index
    %c16_62 = arith.constant 16 : index
    %c28_63 = arith.constant 28 : index
    %c0_64 = arith.constant 0 : index
    %35 = vector.load %arg9[%c0_61, %c16_62, %c28_63, %c0_64] : memref<2x48x48x128xf32, #tpu.memory_space<vmem>>, vector<2x16x16x128xf32>
    %36 = vector.shape_cast %35 : vector<2x16x16x128xf32> to vector<512x128xf32>
    %c0_65 = arith.constant 0 : index
    %c28_66 = arith.constant 28 : index
    %c4_67 = arith.constant 4 : index
    %c0_68 = arith.constant 0 : index
    %37 = vector.load %arg9[%c0_65, %c28_66, %c4_67, %c0_68] : memref<2x48x48x128xf32, #tpu.memory_space<vmem>>, vector<2x16x16x128xf32>
    %38 = vector.shape_cast %37 : vector<2x16x16x128xf32> to vector<512x128xf32>
    %c0_69 = arith.constant 0 : index
    %c28_70 = arith.constant 28 : index
    %c16_71 = arith.constant 16 : index
    %c0_72 = arith.constant 0 : index
    %39 = vector.load %arg9[%c0_69, %c28_70, %c16_71, %c0_72] : memref<2x48x48x128xf32, #tpu.memory_space<vmem>>, vector<2x16x16x128xf32>
    %40 = vector.shape_cast %39 : vector<2x16x16x128xf32> to vector<512x128xf32>
    %c0_73 = arith.constant 0 : index
    %c28_74 = arith.constant 28 : index
    %c28_75 = arith.constant 28 : index
    %c0_76 = arith.constant 0 : index
    %41 = vector.load %arg9[%c0_73, %c28_74, %c28_75, %c0_76] : memref<2x48x48x128xf32, #tpu.memory_space<vmem>>, vector<2x16x16x128xf32>
    %42 = vector.shape_cast %41 : vector<2x16x16x128xf32> to vector<512x128xf32>
    %43 = tpu.concatenate %28, %30, %32, %34, %36, %38, %40, %42 in 1 : vector<512x128xf32>, vector<512x128xf32>, vector<512x128xf32>, vector<512x128xf32>, vector<512x128xf32>, vector<512x128xf32>, vector<512x128xf32>, vector<512x128xf32> -> vector<512x1024xf32>
    %c0_77 = arith.constant 0 : index
    %c0_78 = arith.constant 0 : index
    %44 = vector.load %arg5[%c0_77, %c0_78] : memref<1024x64xf32, #tpu.memory_space<vmem>>, vector<1024x64xf32>
    %cst_79 = arith.constant dense<0.000000e+00> : vector<512x64xf32>
    %45 = tpu.matmul %43, %44, %cst_79 {dimension_numbers = #tpu.dot_dimension_numbers<[1], [0], [0], [1], [0, 0, 1, 1], [], []>} : vector<512x1024xf32>, vector<1024x64xf32>, vector<512x64xf32> -> vector<512x64xf32>
    %cst_80 = arith.constant 0.000000e+00 : f32
    %46 = vector.broadcast %cst_80 : f32 to vector<512x32xf32>
    %47 = tpu.concatenate %7, %26, %45, %46 in 1 : vector<512x64xf32>, vector<512x32xf32>, vector<512x64xf32>, vector<512x32xf32> -> vector<512x192xf32>
    %48 = arith.addf %3, %47 : vector<512x192xf32>
    %c0_81 = arith.constant 0 : index
    %c0_82 = arith.constant 0 : index
    %49 = vector.load %arg3[%c0_81, %c0_82] : memref<1x192xf32, #tpu.memory_space<vmem>>, vector<1x192xf32>
    %50 = vector.broadcast %49 : vector<1x192xf32> to vector<512x192xf32>
    %51 = arith.addf %48, %50 : vector<512x192xf32>
    %cst_83 = arith.constant 0.000000e+00 : f32
    %52 = vector.broadcast %cst_83 : f32 to vector<512x192xf32>
    %53 = arith.maximumf %51, %52 : vector<512x192xf32>
    %c0_84 = arith.constant 0 : index
    %c0_85 = arith.constant 0 : index
    %54 = vector.load %arg6[%c0_84, %c0_85] : memref<192x192xf32, #tpu.memory_space<vmem>>, vector<192x192xf32>
    %cst_86 = arith.constant dense<0.000000e+00> : vector<512x192xf32>
    %55 = tpu.matmul %53, %54, %cst_86 {dimension_numbers = #tpu.dot_dimension_numbers<[1], [0], [0], [1], [0, 0, 1, 1], [], []>} : vector<512x192xf32>, vector<192x192xf32>, vector<512x192xf32> -> vector<512x192xf32>
    %c0_87 = arith.constant 0 : index
    %c0_88 = arith.constant 0 : index
    %56 = vector.load %arg7[%c0_87, %c0_88] : memref<1x192xf32, #tpu.memory_space<vmem>>, vector<1x192xf32>
    %57 = vector.broadcast %56 : vector<1x192xf32> to vector<512x192xf32>
    %58 = arith.addf %55, %57 : vector<512x192xf32>
    %cst_89 = arith.constant 0.000000e+00 : f32
    %59 = vector.broadcast %cst_89 : f32 to vector<512x192xf32>
    %60 = arith.maximumf %58, %59 : vector<512x192xf32>
    %61 = vector.shape_cast %60 : vector<512x192xf32> to vector<2x16x16x192xf32>
    %c0_90 = arith.constant 0 : index
    %c0_91 = arith.constant 0 : index
    %c0_92 = arith.constant 0 : index
    %c0_93 = arith.constant 0 : index
    %62 = vector.load %arg8[%c0_90, %c0_91, %c0_92, %c0_93] : memref<2x16x16x192xf32, #tpu.memory_space<vmem>>, vector<2x16x16x192xf32>
    tpu.vector_store %arg8[%c0_90, %c0_91, %c0_92, %c0_93], %61 {strides = array<i32>} : memref<2x16x16x192xf32, #tpu.memory_space<vmem>>, vector<2x16x16x192xf32>,
    return
  }
  func.func @transform_0(%arg0: i32) -> (i32, i32, i32, i32) {
    %c0_i32 = arith.constant 0 : i32
    %c0_i32_0 = arith.constant 0 : i32
    %c0_i32_1 = arith.constant 0 : i32
    %c0_i32_2 = arith.constant 0 : i32
    %c0_i32_3 = arith.constant 0 : i32
    return %c0_i32, %c0_i32_0, %c0_i32_1, %c0_i32_2 : i32, i32, i32, i32
  }
  func.func @transform_1(%arg0: i32) -> (i32, i32) {
    %c0_i32 = arith.constant 0 : i32
    %c0_i32_0 = arith.constant 0 : i32
    %c0_i32_1 = arith.constant 0 : i32
    return %c0_i32, %c0_i32_0 : i32, i32
  }
  func.func @transform_2(%arg0: i32) -> (i32, i32) {
    %c0_i32 = arith.constant 0 : i32
    %c0_i32_0 = arith.constant 0 : i32
    %c0_i32_1 = arith.constant 0 : i32
    return %c0_i32, %c0_i32_0 : i32, i32
  }
  func.func @transform_3(%arg0: i32) -> (i32, i32) {
    %c0_i32 = arith.constant 0 : i32
    %c0_i32_0 = arith.constant 0 : i32
    %c0_i32_1 = arith.constant 0 : i32
    return %c0_i32, %c0_i32_0 : i32, i32
  }
  func.func @transform_4(%arg0: i32) -> (i32, i32) {
    %c0_i32 = arith.constant 0 : i32
    %c0_i32_0 = arith.constant 0 : i32
    %c0_i32_1 = arith.constant 0 : i32
    return %c0_i32, %c0_i32_0 : i32, i32
  }
  func.func @transform_5(%arg0: i32) -> (i32, i32) {
    %c0_i32 = arith.constant 0 : i32
    %c0_i32_0 = arith.constant 0 : i32
    %c0_i32_1 = arith.constant 0 : i32
    return %c0_i32, %c0_i32_0 : i32, i32
  }
  func.func @transform_6(%arg0: i32) -> (i32, i32) {
    %c0_i32 = arith.constant 0 : i32
    %c0_i32_0 = arith.constant 0 : i32
    %c0_i32_1 = arith.constant 0 : i32
    return %c0_i32, %c0_i32_0 : i32, i32
  }
  func.func @transform_7(%arg0: i32) -> (i32, i32, i32, i32) {
    %c0_i32 = arith.constant 0 : i32
    %c0_i32_0 = arith.constant 0 : i32
    %c0_i32_1 = arith.constant 0 : i32
    %c0_i32_2 = arith.constant 0 : i32
    %c0_i32_3 = arith.constant 0 : i32
    return %c0_i32, %c0_i32_0, %c0_i32_1, %c0_i32_2 : i32, i32, i32, i32
  }
}

</mosaic_0001>

<bundles_post_ra>
// kernel: hasp_forward.1
= control target key start
LH: loop header
LB: loop body
LE: loop exit
PB: predicated region body
PF: predicated region fallthrough
CT: control target
= control target key end

     0   :  { %v8886_v0 = vmov 0.0|0.0   ;;  %v8887_v1 = vmov 0.0   ;;  %s8888_s18 = smov 64   ;;  %s8889_s19 = smov 96   ;;  %vm5639_vm0 = vcmask 523264   ;;  %vm5704_vm1 = vcmask 785408   ;;  %s12969_s3 = inlined_call_operand.vmem [shape: f32[1024,32], index: 3, kind: input, shape index: {}]   ;;  %s12970_s4 = inlined_call_operand.vmem [shape: f32[1024,64], index: 4, kind: input, shape index: {}]   ;;  %s12971_s0 = inlined_call_operand.vmem [shape: f32[2,16,16,128], index: 0, kind: input, shape index: {}]   ;;  %s12972_s1 = inlined_call_operand.vmem [shape: f32[128,192], index: 1, kind: input, shape index: {}]   ;;  %s12973_s5 = inlined_call_operand.vmem [shape: f32[192,192], index: 5, kind: input, shape index: {}]   ;;  %s12974_s2 = inlined_call_operand.vmem [shape: f32[1,192], index: 2, kind: input, shape index: {}]   ;;  %s12975_s6 = inlined_call_operand.vmem [shape: f32[1,192], index: 6, kind: input, shape index: {}]   ;;  %s12976_s7 = inlined_call_operand.vmem [shape: f32[2,16,16,192], index: 7, kind: output, shape index: {}]  }
   0x1   :  { %7576 = vmatprep.subr.bf16.mxu0 %v8886_v0  ;;  %7768 = vmatprep.subr.bf16.mxu1 %v8886_v0  ;;  %122 = vst [vmem:[#allocation2] sm:$0xff] %v8887_v1  ;;  %184 = vst [vmem:[#allocation2 + $0x1f0] sm:$0xff] %v8887_v1  ;;  %v8812_v2 = vld [vmem:[%s12969_s3] sm:$0xff]  ;;  %v8813_v3 = vld [vmem:[%s12969_s3 + $0x8] sm:$0xff]  ;;  %vm5769_vm2 = vcmask 261120  }
   0x2   :  { %146 = vst [vmem:[#allocation2 + $0xc0] sm:$0xff] %v8887_v1  ;;  %147 = vst [vmem:[#allocation2 + $0xc8] sm:$0xff] %v8887_v1  ;;  %v7577_v4 = vpack.c.bf16 %v8813_v3, %v8812_v2  ;;  %v3460_v5 = vld [vmem:[%s12970_s4 + $0x8] sm:$0xff]  ;;  %v1279_v6 = vld [vmem:[%s12969_s3 + $0x10] sm:$0xff] }
   0x3   :  { %148 = vst [vmem:[#allocation2 + $0xd0] sm:$0xff] %v8887_v1  ;;  %149 = vst [vmem:[#allocation2 + $0xd8] sm:$0xff] %v8887_v1  ;;  %v1280_v7 = vld [vmem:[%s12969_s3 + $0x18] sm:$0xff]  ;;  %v8815_v9 = vld [vmem:[%s12970_s4] sm:$0xff] }
   0x4   :  { %150 = vst [vmem:[#allocation2 + $0xe0] sm:$0xff] %v8887_v1  ;;  %151 = vst [vmem:[#allocation2 + $0xe8] sm:$0xff] %v8887_v1  ;;  %v7769_v10 = vpack.c.bf16 %v3460_v5, %v8815_v9  ;;  %v3461_v11 = vld [vmem:[%s12970_s4 + $0x10] sm:$0xff]  ;;  %v3462_v12 = vld [vmem:[%s12970_s4 + $0x18] sm:$0xff]  ;;  %7578 = vmatpush1.bf16.msra.mxu0 %v7577_v4  ;;  %v7580_v13 = vpack.c.bf16 %v1280_v7, %v1279_v6 }
   0x5   :  { %152 = vst [vmem:[#allocation2 + $0xf0] sm:$0xff] %v8887_v1  ;;  %153 = vst [vmem:[#allocation2 + $0xf8] sm:$0xff] %v8887_v1  ;;  %7579 = vmatprep.subr.bf16.mxu0 %v8886_v0  ;;  %v7772_v14 = vpack.c.bf16 %v3462_v12, %v3461_v11  ;;  %v1281_v15 = vld [vmem:[%s12969_s3 + $0x20] sm:$0xff]  ;;  %v1282_v16 = vld [vmem:[%s12969_s3 + $0x28] sm:$0xff] }
   0x6   :  { %154 = vst [vmem:[#allocation2 + $0x100] sm:$0xff] %v8887_v1  ;;  %155 = vst [vmem:[#allocation2 + $0x108] sm:$0xff] %v8887_v1  ;;  %7770 = vmatpush1.bf16.msra.mxu1 %v7769_v10  ;;  %v3463_v17 = vld [vmem:[%s12970_s4 + $0x20] sm:$0xff]  ;;  %v3464_v18 = vld [vmem:[%s12970_s4 + $0x28] sm:$0xff]  ;;  %v7583_v19 = vpack.c.bf16 %v1282_v16, %v1281_v15 }
   0x7   :  { %156 = vst [vmem:[#allocation2 + $0x110] sm:$0xff] %v8887_v1  ;;  %157 = vst [vmem:[#allocation2 + $0x118] sm:$0xff] %v8887_v1  ;;  %7771 = vmatprep.subr.bf16.mxu1 %v8886_v0  ;;  %v7775_v20 = vpack.c.bf16 %v3464_v18, %v3463_v17  ;;  %v1283_v21 = vld [vmem:[%s12969_s3 + $0x30] sm:$0xff]  ;;  %v1284_v22 = vld [vmem:[%s12969_s3 + $0x38] sm:$0xff] }
   0x8   :  { %158 = vst [vmem:[#allocation2 + $0x120] sm:$0xff] %v8887_v1  ;;  %159 = vst [vmem:[#allocation2 + $0x128] sm:$0xff] %v8887_v1  ;;  %v9364_v8 = vld [vmem:[#allocation2] sm:$0xff]  ;;  %7581 = vmatpush1.bf16.msra.mxu0 %v7580_v13  ;;  %v3465_v23 = vld [vmem:[%s12970_s4 + $0x30] sm:$0xff]  ;;  %v7586_v25 = vpack.c.bf16 %v1284_v22, %v1283_v21 }
   0x9   :  { %160 = vst [vmem:[#allocation2 + $0x130] sm:$0xff] %v8887_v1  ;;  %161 = vst [vmem:[#allocation2 + $0x138] sm:$0xff] %v8887_v1  ;;  %1469 = vmatprep.mubr.f32.mxu0 %v9364_v8  ;;  %3651 = vmatprep.mubr.f32.mxu1 %v9364_v8  ;;  %v3466_v24 = vld [vmem:[%s12970_s4 + $0x38] sm:$0xff]  ;;  %v1285_v27 = vld [vmem:[%s12969_s3 + $0x40] sm:$0xff] }
   0xa   :  { %162 = vst [vmem:[#allocation2 + $0x140] sm:$0xff] %v8887_v1  ;;  %163 = vst [vmem:[#allocation2 + $0x148] sm:$0xff] %v8887_v1  ;;  %7773 = vmatpush1.bf16.msra.mxu1 %v7772_v14  ;;  %7582 = vmatprep.subr.bf16.mxu0 %v8886_v0  ;;  %v7778_v26 = vpack.c.bf16 %v3466_v24, %v3465_v23  ;;  %v1286_v28 = vld [vmem:[%s12969_s3 + $0x48] sm:$0xff]  ;;  %v3467_v29 = vld [vmem:[%s12970_s4 + $0x40] sm:$0xff] }
   0xb   :  { %164 = vst [vmem:[#allocation2 + $0x150] sm:$0xff] %v8887_v1  ;;  %165 = vst [vmem:[#allocation2 + $0x158] sm:$0xff] %v8887_v1  ;;  %7774 = vmatprep.subr.bf16.mxu1 %v8886_v0  ;;  %v3468_v30 = vld [vmem:[%s12970_s4 + $0x48] sm:$0xff]  ;;  %v7589_v31 = vpack.c.bf16 %v1286_v28, %v1285_v27  ;;  %v1287_v33 = vld [vmem:[%s12969_s3 + $0x50] sm:$0xff] }
   0xc   :  { %166 = vst [vmem:[#allocation2 + $0x160] sm:$0xff] %v8887_v1  ;;  %167 = vst [vmem:[#allocation2 + $0x168] sm:$0xff] %v8887_v1  ;;  %7584 = vmatpush1.bf16.msra.mxu0 %v7583_v19  ;;  %v7781_v32 = vpack.c.bf16 %v3468_v30, %v3467_v29  ;;  %v1288_v34 = vld [vmem:[%s12969_s3 + $0x58] sm:$0xff]  ;;  %v3469_v35 = vld [vmem:[%s12970_s4 + $0x50] sm:$0xff] }
   0xd   :  { %168 = vst [vmem:[#allocation2 + $0x170] sm:$0xff] %v8887_v1  ;;  %169 = vst [vmem:[#allocation2 + $0x178] sm:$0xff] %v8887_v1  ;;  %7585 = vmatprep.subr.bf16.mxu0 %v8886_v0  ;;  %v3470_v36 = vld [vmem:[%s12970_s4 + $0x58] sm:$0xff]  ;;  %v7592_v37 = vpack.c.bf16 %v1288_v34, %v1287_v33  ;;  %v1289_v39 = vld [vmem:[%s12969_s3 + $0x60] sm:$0xff] }
   0xe   :  { %170 = vst [vmem:[#allocation2 + $0x180] sm:$0xff] %v8887_v1  ;;  %171 = vst [vmem:[#allocation2 + $0x188] sm:$0xff] %v8887_v1  ;;  %7776 = vmatpush1.bf16.msra.mxu1 %v7775_v20  ;;  %v7784_v38 = vpack.c.bf16 %v3470_v36, %v3469_v35  ;;  %v1290_v40 = vld [vmem:[%s12969_s3 + $0x68] sm:$0xff]  ;;  %v3471_v41 = vld [vmem:[%s12970_s4 + $0x60] sm:$0xff] }
   0xf   :  { %172 = vst [vmem:[#allocation2 + $0x190] sm:$0xff] %v8887_v1  ;;  %173 = vst [vmem:[#allocation2 + $0x198] sm:$0xff] %v8887_v1  ;;  %7777 = vmatprep.subr.bf16.mxu1 %v8886_v0  ;;  %v3472_v42 = vld [vmem:[%s12970_s4 + $0x68] sm:$0xff]  ;;  %v7595_v43 = vpack.c.bf16 %v1290_v40, %v1289_v39  ;;  %v1291_v45 = vld [vmem:[%s12969_s3 + $0x70] sm:$0xff] }
  0x10   :  { %174 = vst [vmem:[#allocation2 + $0x1a0] sm:$0xff] %v8887_v1  ;;  %175 = vst [vmem:[#allocation2 + $0x1a8] sm:$0xff] %v8887_v1  ;;  %7587 = vmatpush1.bf16.msra.mxu0 %v7586_v25  ;;  %v7787_v44 = vpack.c.bf16 %v3472_v42, %v3471_v41  ;;  %v1292_v46 = vld [vmem:[%s12969_s3 + $0x78] sm:$0xff]  ;;  %v3473_v47 = vld [vmem:[%s12970_s4 + $0x70] sm:$0xff] }
  0x11   :  { %176 = vst [vmem:[#allocation2 + $0x1b0] sm:$0xff] %v8887_v1  ;;  %177 = vst [vmem:[#allocation2 + $0x1b8] sm:$0xff] %v8887_v1  ;;  %7588 = vmatprep.subr.bf16.mxu0 %v8886_v0  ;;  %v3474_v48 = vld [vmem:[%s12970_s4 + $0x78] sm:$0xff]  ;;  %v7598_v49 = vpack.c.bf16 %v1292_v46, %v1291_v45  ;;  %v1293_v51 = vld [vmem:[%s12969_s3 + $0x80] sm:$0xff] }
  0x12   :  { %178 = vst [vmem:[#allocation2 + $0x1c0] sm:$0xff] %v8887_v1  ;;  %179 = vst [vmem:[#allocation2 + $0x1c8] sm:$0xff] %v8887_v1  ;;  %7779 = vmatpush1.bf16.msra.mxu1 %v7778_v26  ;;  %v7790_v50 = vpack.c.bf16 %v3474_v48, %v3473_v47  ;;  %v1294_v52 = vld [vmem:[%s12969_s3 + $0x88] sm:$0xff]  ;;  %v3475_v53 = vld [vmem:[%s12970_s4 + $0x80] sm:$0xff] }
  0x13   :  { %180 = vst [vmem:[#allocation2 + $0x1d0] sm:$0xff] %v8887_v1  ;;  %181 = vst [vmem:[#allocation2 + $0x1d8] sm:$0xff] %v8887_v1  ;;  %7780 = vmatprep.subr.bf16.mxu1 %v8886_v0  ;;  %v3476_v54 = vld [vmem:[%s12970_s4 + $0x88] sm:$0xff]  ;;  %v7601_v55 = vpack.c.bf16 %v1294_v52, %v1293_v51  ;;  %v9478_v56 = vld [vmem:[%s12971_s0] sm:$0xff] }
  0x14   :  { %182 = vst [vmem:[#allocation2 + $0x1e0] sm:$0xff] %v8887_v1  ;;  %183 = vst [vmem:[#allocation2 + $0x1e8] sm:$0xff] %v8887_v1  ;;  %7590 = vmatpush1.bf16.msra.mxu0 %v7589_v31  ;;  %v7793_v57 = vpack.c.bf16 %v3476_v54, %v3475_v53  ;;  %v1295_v58 = vld [vmem:[%s12969_s3 + $0x90] sm:$0xff]  ;;  %v1296_v59 = vld [vmem:[%s12969_s3 + $0x98] sm:$0xff] }
  0x15   :  { %185 = vst [vmem:[#allocation2 + $0x1f8] sm:$0xff] %v8887_v1  ;;  %186 = vst [vmem:[#allocation2 + $0x200] sm:$0xff] %v8887_v1  ;;  %7591 = vmatprep.subr.bf16.mxu0 %v8886_v0  ;;  %v9491_v60 = vld [vmem:[%s12971_s0 + $0x8] sm:$0xff]  ;;  %v3477_v61 = vld [vmem:[%s12970_s4 + $0x90] sm:$0xff]  ;;  %v7604_v3 = vpack.c.bf16 %v1296_v59, %v1295_v58 }
  0x16   :  { %187 = vst [vmem:[#allocation2 + $0x208] sm:$0xff] %v8887_v1  ;;  %188 = vst [vmem:[#allocation2 + $0x210] sm:$0xff] %v8887_v1  ;;  %7782 = vmatpush1.bf16.msra.mxu1 %v7781_v32  ;;  %v3478_v62 = vld [vmem:[%s12970_s4 + $0x98] sm:$0xff]  ;;  %v9504_v63 = vld [vmem:[%s12971_s0 + $0x10] sm:$0xff] }
  0x17   :  { %189 = vst [vmem:[#allocation2 + $0x218] sm:$0xff] %v8887_v1  ;;  %190 = vst [vmem:[#allocation2 + $0x220] sm:$0xff] %v8887_v1  ;;  %7783 = vmatprep.subr.bf16.mxu1 %v8886_v0  ;;  %v9515_v2 = vld [vmem:[%s12971_s0 + $0x20] sm:$0xff]  ;;  %v7796_v5 = vpack.c.bf16 %v3478_v62, %v3477_v61  ;;  %v1298_v6 = vld [vmem:[%s12969_s3 + $0xa8] sm:$0xff] }
  0x18   :  { %191 = vst [vmem:[#allocation2 + $0x228] sm:$0xff] %v8887_v1  ;;  %192 = vst [vmem:[#allocation2 + $0x230] sm:$0xff] %v8887_v1  ;;  %7593 = vmatpush1.bf16.msra.mxu0 %v7592_v37  ;;  %v1297_v4 = vld [vmem:[%s12969_s3 + $0xa0] sm:$0xff]  ;;  %v9529_v7 = vld [vmem:[%s12971_s0 + $0x28] sm:$0xff] }
  0x19   :  { %193 = vst [vmem:[#allocation2 + $0x238] sm:$0xff] %v8887_v1  ;;  %194 = vst [vmem:[#allocation2 + $0x240] sm:$0xff] %v8887_v1  ;;  %7594 = vmatprep.subr.bf16.mxu0 %v8886_v0  ;;  %v9534_v9 = vld [vmem:[%s12971_s0 + $0x30] sm:$0xff]  ;;  %v3479_v10 = vld [vmem:[%s12970_s4 + $0xa0] sm:$0xff]  ;;  %v7607_v14 = vpack.c.bf16 %v1298_v6, %v1297_v4 }
  0x1a   :  { %195 = vst [vmem:[#allocation2 + $0x248] sm:$0xff] %v8887_v1  ;;  %196 = vst [vmem:[#allocation2 + $0x250] sm:$0xff] %v8887_v1  ;;  %7785 = vmatpush1.bf16.msra.mxu1 %v7784_v38  ;;  %v3480_v11 = vld [vmem:[%s12970_s4 + $0xa8] sm:$0xff]  ;;  %v9548_v12 = vld [vmem:[%s12971_s0 + $0x38] sm:$0xff] }
  0x1b   :  { %197 = vst [vmem:[#allocation2 + $0x258] sm:$0xff] %v8887_v1  ;;  %198 = vst [vmem:[#allocation2 + $0x260] sm:$0xff] %v8887_v1  ;;  %7786 = vmatprep.subr.bf16.mxu1 %v8886_v0  ;;  %v9554_v13 = vld [vmem:[%s12971_s0 + $0x40] sm:$0xff]  ;;  %v9560_v15 = vld [vmem:[%s12971_s0 + $0x48] sm:$0xff]  ;;  %v7799_v16 = vpack.c.bf16 %v3480_v11, %v3479_v10 }
  0x1c   :  { %199 = vst [vmem:[#allocation2 + $0x268] sm:$0xff] %v8887_v1  ;;  %200 = vst [vmem:[#allocation2 + $0x270] sm:$0xff] %v8887_v1  ;;  %7596 = vmatpush1.bf16.msra.mxu0 %v7595_v43  ;;  %v1299_v17 = vld [vmem:[%s12969_s3 + $0xb0] sm:$0xff]  ;;  %v1300_v18 = vld [vmem:[%s12969_s3 + $0xb8] sm:$0xff] }
  0x1d   :  { %201 = vst [vmem:[#allocation2 + $0x278] sm:$0xff] %v8887_v1  ;;  %202 = vst [vmem:[#allocation2 + $0x280] sm:$0xff] %v8887_v1  ;;  %7597 = vmatprep.subr.bf16.mxu0 %v8886_v0  ;;  %v9573_v19 = vld [vmem:[%s12971_s0 + $0x50] sm:$0xff]  ;;  %v3482_v21 = vld [vmem:[%s12970_s4 + $0xb8] sm:$0xff]  ;;  %v7610_v23 = vpack.c.bf16 %v1300_v18, %v1299_v17 }
  0x1e   :  { %203 = vst [vmem:[#allocation2 + $0x288] sm:$0xff] %v8887_v1  ;;  %204 = vst [vmem:[#allocation2 + $0x290] sm:$0xff] %v8887_v1  ;;  %7788 = vmatpush1.bf16.msra.mxu1 %v7787_v44  ;;  %v3481_v20 = vld [vmem:[%s12970_s4 + $0xb0] sm:$0xff]  ;;  %v9586_v22 = vld [vmem:[%s12971_s0 + $0x58] sm:$0xff] }
  0x1f   :  { %205 = vst [vmem:[#allocation2 + $0x298] sm:$0xff] %v8887_v1  ;;  %206 = vst [vmem:[#allocation2 + $0x2a0] sm:$0xff] %v8887_v1  ;;  %7789 = vmatprep.subr.bf16.mxu1 %v8886_v0  ;;  %v9592_v24 = vld [vmem:[%s12971_s0 + $0x60] sm:$0xff]  ;;  %v7802_v25 = vpack.c.bf16 %v3482_v21, %v3481_v20  ;;  %v1302_v27 = vld [vmem:[%s12969_s3 + $0xc8] sm:$0xff] }
  0x20   :  { %207 = vst [vmem:[#allocation2 + $0x2a8] sm:$0xff] %v8887_v1  ;;  %208 = vst [vmem:[#allocation2 + $0x2b0] sm:$0xff] %v8887_v1  ;;  %7599 = vmatpush1.bf16.msra.mxu0 %v7598_v49  ;;  %v1301_v26 = vld [vmem:[%s12969_s3 + $0xc0] sm:$0xff]  ;;  %v3484_v29 = vld [vmem:[%s12970_s4 + $0xc8] sm:$0xff] }
  0x21   :  { %209 = vst [vmem:[#allocation2 + $0x2b8] sm:$0xff] %v8887_v1  ;;  %210 = vst [vmem:[#allocation2 + $0x2c0] sm:$0xff] %v8887_v1  ;;  %7600 = vmatprep.subr.bf16.mxu0 %v8886_v0  ;;  %v3483_v28 = vld [vmem:[%s12970_s4 + $0xc0] sm:$0xff]  ;;  %v9612_v30 = vld [vmem:[%s12971_s0 + $0x68] sm:$0xff]  ;;  %v7613_v32 = vpack.c.bf16 %v1302_v27, %v1301_v26 }
  0x22   :  { %211 = vst [vmem:[#allocation2 + $0x2c8] sm:$0xff] %v8887_v1  ;;  %212 = vst [vmem:[#allocation2 + $0x2d0] sm:$0xff] %v8887_v1  ;;  %7791 = vmatpush1.bf16.msra.mxu1 %v7790_v50  ;;  %v9618_v31 = vld [vmem:[%s12971_s0 + $0x70] sm:$0xff]  ;;  %v9627_v34 = vld [vmem:[%s12971_s0 + $0x78] sm:$0xff]  ;;  %v7805_v35 = vpack.c.bf16 %v3484_v29, %v3483_v28 }
  0x23   :  { %213 = vst [vmem:[#allocation2 + $0x2d8] sm:$0xff] %v8887_v1  ;;  %214 = vst [vmem:[#allocation2 + $0x2e0] sm:$0xff] %v8887_v1  ;;  %7792 = vmatprep.subr.bf16.mxu1 %v8886_v0  ;;  %v1303_v33 = vld [vmem:[%s12969_s3 + $0xd0] sm:$0xff]  ;;  %v1304_v36 = vld [vmem:[%s12969_s3 + $0xd8] sm:$0xff] }
  0x24   :  { %215 = vst [vmem:[#allocation2 + $0x2e8] sm:$0xff] %v8887_v1  ;;  %216 = vst [vmem:[#allocation2 + $0x2f0] sm:$0xff] %v8887_v1  ;;  %7602 = vmatpush1.bf16.msra.mxu0 %v7601_v55  ;;  %v9637_v37 = vld [vmem:[%s12971_s0 + $0x80] sm:$0xff]  ;;  %v9642_v38 = vld [vmem:[%s12971_s0 + $0x88] sm:$0xff]  ;;  %v7616_v42 = vpack.c.bf16 %v1304_v36, %v1303_v33 }
  0x25   :  { %217 = vst [vmem:[#allocation2 + $0x2f8] sm:$0xff] %v8887_v1  ;;  %218 = vst [vmem:[#allocation2 + $0x300] sm:$0xff] %v8887_v1  ;;  %7603 = vmatprep.subr.bf16.mxu0 %v8886_v0  ;;  %v3485_v39 = vld [vmem:[%s12970_s4 + $0xd0] sm:$0xff]  ;;  %v3486_v40 = vld [vmem:[%s12970_s4 + $0xd8] sm:$0xff] }
  0x26   :  { %219 = vst [vmem:[#allocation2 + $0x308] sm:$0xff] %v8887_v1  ;;  %222 = vst [vmem:[#allocation2 + $0x320] sm:$0xff] %v8887_v1  ;;  %7794 = vmatpush1.bf16.msra.mxu1 %v7793_v57  ;;  %v9656_v41 = vld [vmem:[%s12971_s0 + $0x90] sm:$0xff]  ;;  %v7808_v43 = vpack.c.bf16 %v3486_v40, %v3485_v39  ;;  %v1305_v44 = vld [vmem:[%s12969_s3 + $0xe0] sm:$0xff] }
  0x27   :  { %223 = vst [vmem:[#allocation2 + $0x328] sm:$0xff] %v8887_v1  ;;  %224 = vst [vmem:[#allocation2 + $0x330] sm:$0xff] %v8887_v1  ;;  %7795 = vmatprep.subr.bf16.mxu1 %v8886_v0  ;;  %v1306_v45 = vld [vmem:[%s12969_s3 + $0xe8] sm:$0xff]  ;;  %v3487_v46 = vld [vmem:[%s12970_s4 + $0xe0] sm:$0xff] }
  0x28   :  { %225 = vst [vmem:[#allocation2 + $0x338] sm:$0xff] %v8887_v1  ;;  %228 = vst [vmem:[#allocation2 + $0x350] sm:$0xff] %v8887_v1  ;;  %7605 = vmatpush1.bf16.msra.mxu0 %v7604_v3  ;;  %v3488_v47 = vld [vmem:[%s12970_s4 + $0xe8] sm:$0xff]  ;;  %v9676_v48 = vld [vmem:[%s12971_s0 + $0x98] sm:$0xff]  ;;  %v7619_v49 = vpack.c.bf16 %v1306_v45, %v1305_v44 }
  0x29   :  { %229 = vst [vmem:[#allocation2 + $0x358] sm:$0xff] %v8887_v1  ;;  %230 = vst [vmem:[#allocation2 + $0x360] sm:$0xff] %v8887_v1  ;;  %7606 = vmatprep.subr.bf16.mxu0 %v8886_v0  ;;  %v7811_v50 = vpack.c.bf16 %v3488_v47, %v3487_v46  ;;  %v1307_v51 = vld [vmem:[%s12969_s3 + $0xf0] sm:$0xff]  ;;  %v1308_v52 = vld [vmem:[%s12969_s3 + $0xf8] sm:$0xff] }
  0x2a   :  { %231 = vst [vmem:[#allocation2 + $0x368] sm:$0xff] %v8887_v1  ;;  %234 = vst [vmem:[#allocation2 + $0x380] sm:$0xff] %v8887_v1  ;;  %7797 = vmatpush1.bf16.msra.mxu1 %v7796_v5  ;;  %v3489_v53 = vld [vmem:[%s12970_s4 + $0xf0] sm:$0xff]  ;;  %v3490_v54 = vld [vmem:[%s12970_s4 + $0xf8] sm:$0xff]  ;;  %v7622_v55 = vpack.c.bf16 %v1308_v52, %v1307_v51 }
  0x2b   :  { %235 = vst [vmem:[#allocation2 + $0x388] sm:$0xff] %v8887_v1  ;;  %236 = vst [vmem:[#allocation2 + $0x390] sm:$0xff] %v8887_v1  ;;  %7798 = vmatprep.subr.bf16.mxu1 %v8886_v0  ;;  %v7814_v57 = vpack.c.bf16 %v3490_v54, %v3489_v53  ;;  %v1309_v58 = vld [vmem:[%s12969_s3 + $0x100] sm:$0xff]  ;;  %v1310_v59 = vld [vmem:[%s12969_s3 + $0x108] sm:$0xff] }
  0x2c   :  { %237 = vst [vmem:[#allocation2 + $0x398] sm:$0xff] %v8887_v1  ;;  %240 = vst [vmem:[#allocation2 + $0x3b0] sm:$0xff] %v8887_v1  ;;  %7608 = vmatpush1.bf16.msra.mxu0 %v7607_v14  ;;  %v764_v61 = vld [vmem:[#allocation2 + $0x1ea] sm:$0xff]  ;;  %v7625_v62 = vpack.c.bf16 %v1310_v59, %v1309_v58  ;;  %v1312_v5 = vld [vmem:[%s12969_s3 + $0x118] sm:$0xff] }
  0x2d   :  { %241 = vst [vmem:[#allocation2 + $0x3b8] sm:$0xff] %v8887_v1  ;;  %242 = vst [vmem:[#allocation2 + $0x3c0] sm:$0xff] %v8887_v1  ;;  %7609 = vmatprep.subr.bf16.mxu0 %v8886_v0  ;;  %v2946_v3 = vld [vmem:[#allocation2 + $0xc4] sm:$0xff]  ;;  %v1311_v4 = vld [vmem:[%s12969_s3 + $0x110] sm:$0xff] }
  0x2e   :  { %243 = vst [vmem:[#allocation2 + $0x3c8] sm:$0xff] %v8887_v1  ;;  %246 = vst [vmem:[#allocation2 + $0x3e0] sm:$0xff] %v8887_v1  ;;  %7800 = vmatpush1.bf16.msra.mxu1 %v7799_v16  ;;  %v765_v6 = vld [vmem:[#allocation2 + $0x1f2] sm:$0xff]  ;;  %v7628_v11 = vpack.c.bf16 %v1312_v5, %v1311_v4  ;;  %v1313_v14 = vld [vmem:[%s12969_s3 + $0x120] sm:$0xff] }
  0x2f   :  { %247 = vst [vmem:[#allocation2 + $0x3e8] sm:$0xff] %v8887_v1  ;;  %248 = vst [vmem:[#allocation2 + $0x3f0] sm:$0xff] %v8887_v1  ;;  %7801 = vmatprep.subr.bf16.mxu1 %v8886_v0  ;;  %v2947_v10 = vld [vmem:[#allocation2 + $0xcc] sm:$0xff]  ;;  %v766_v17 = vld [vmem:[#allocation2 + $0x21a] sm:$0xff] }
  0x30   :  { %249 = vst [vmem:[#allocation2 + $0x3f8] sm:$0xff] %v8887_v1  ;;  %252 = vst [vmem:[#allocation2 + $0x410] sm:$0xff] %v8887_v1  ;;  %7611 = vmatpush1.bf16.msra.mxu0 %v7610_v23  ;;  %v1314_v16 = vld [vmem:[%s12969_s3 + $0x128] sm:$0xff]  ;;  %v2948_v18 = vld [vmem:[#allocation2 + $0xf4] sm:$0xff] }
  0x31   :  { %253 = vst [vmem:[#allocation2 + $0x418] sm:$0xff] %v8887_v1  ;;  %254 = vst [vmem:[#allocation2 + $0x420] sm:$0xff] %v8887_v1  ;;  %7612 = vmatprep.subr.bf16.mxu0 %v8886_v0  ;;  %v7631_v20 = vpack.c.bf16 %v1314_v16, %v1313_v14  ;;  %v1315_v21 = vld [vmem:[%s12969_s3 + $0x130] sm:$0xff]  ;;  %v1316_v23 = vld [vmem:[%s12969_s3 + $0x138] sm:$0xff] }
  0x32   :  { %255 = vst [vmem:[#allocation2 + $0x428] sm:$0xff] %v8887_v1  ;;  %258 = vst [vmem:[#allocation2 + $0x440] sm:$0xff] %v8887_v1  ;;  %7803 = vmatpush1.bf16.msra.mxu1 %v7802_v25  ;;  %v767_v25 = vld [vmem:[#allocation2 + $0x222] sm:$0xff]  ;;  %v7634_v27 = vpack.c.bf16 %v1316_v23, %v1315_v21  ;;  %v769_v44 = vld [vmem:[#allocation2 + $0x252] sm:$0xff] }
  0x33   :  { %259 = vst [vmem:[#allocation2 + $0x448] sm:$0xff] %v8887_v1  ;;  %260 = vst [vmem:[#allocation2 + $0x450] sm:$0xff] %v8887_v1  ;;  %7804 = vmatprep.subr.bf16.mxu1 %v8886_v0  ;;  %v2949_v26 = vld [vmem:[#allocation2 + $0xfc] sm:$0xff]  ;;  %v1318_v29 = vld [vmem:[%s12969_s3 + $0x148] sm:$0xff] }
  0x34   :  { %261 = vst [vmem:[#allocation2 + $0x458] sm:$0xff] %v8887_v1  ;;  %264 = vst [vmem:[#allocation2 + $0x470] sm:$0xff] %v8887_v1  ;;  %7614 = vmatpush1.bf16.msra.mxu0 %v7613_v32  ;;  %v1317_v28 = vld [vmem:[%s12969_s3 + $0x140] sm:$0xff]  ;;  %v768_v32 = vld [vmem:[#allocation2 + $0x24a] sm:$0xff] }
  0x35   :  { %265 = vst [vmem:[#allocation2 + $0x478] sm:$0xff] %v8887_v1  ;;  %266 = vst [vmem:[#allocation2 + $0x480] sm:$0xff] %v8887_v1  ;;  %7615 = vmatprep.subr.bf16.mxu0 %v8886_v0  ;;  %v3491_v33 = vld [vmem:[%s12970_s4 + $0x100] sm:$0xff]  ;;  %v7637_v39 = vpack.c.bf16 %v1318_v29, %v1317_v28  ;;  %v2951_v45 = vld [vmem:[#allocation2 + $0x12c] sm:$0xff] }
  0x36   :  { %267 = vst [vmem:[#allocation2 + $0x488] sm:$0xff] %v8887_v1  ;;  %270 = vst [vmem:[#allocation2 + $0x4a0] sm:$0xff] %v8887_v1  ;;  %7806 = vmatpush1.bf16.msra.mxu1 %v7805_v35  ;;  %v3492_v35 = vld [vmem:[%s12970_s4 + $0x108] sm:$0xff]  ;;  %v1321_v47 = vld [vmem:[%s12969_s3 + $0x160] sm:$0xff] }
  0x37   :  { %271 = vst [vmem:[#allocation2 + $0x4a8] sm:$0xff] %v8887_v1  ;;  %272 = vst [vmem:[#allocation2 + $0x4b0] sm:$0xff] %v8887_v1  ;;  %7807 = vmatprep.subr.bf16.mxu1 %v8886_v0  ;;  %v2950_v36 = vld [vmem:[#allocation2 + $0x124] sm:$0xff]  ;;  %v7817_v40 = vpack.c.bf16 %v3492_v35, %v3491_v33  ;;  %v2952_v51 = vld [vmem:[#allocation2 + $0x154] sm:$0xff] }
  0x38   :  { %273 = vst [vmem:[#allocation2 + $0x4b8] sm:$0xff] %v8887_v1  ;;  %276 = vst [vmem:[#allocation2 + $0x4d0] sm:$0xff] %v8887_v1  ;;  %7617 = vmatpush1.bf16.msra.mxu0 %v7616_v42  ;;  %v1319_v42 = vld [vmem:[%s12969_s3 + $0x150] sm:$0xff]  ;;  %v1324_v54 = vld [vmem:[%s12969_s3 + $0x178] sm:$0xff] }
  0x39   :  { %277 = vst [vmem:[#allocation2 + $0x4d8] sm:$0xff] %v8887_v1  ;;  %278 = vst [vmem:[#allocation2 + $0x4e0] sm:$0xff] %v8887_v1  ;;  %7618 = vmatprep.subr.bf16.mxu0 %v8886_v0  ;;  %v1323_v53 = vld [vmem:[%s12969_s3 + $0x170] sm:$0xff]  ;;  %v1325_v59 = vld [vmem:[%s12969_s3 + $0x180] sm:$0xff] }
  0x3a   :  { %279 = vst [vmem:[#allocation2 + $0x4e8] sm:$0xff] %v8887_v1  ;;  %282 = vst [vmem:[#allocation2 + $0x500] sm:$0xff] %v8887_v1  ;;  %7809 = vmatpush1.bf16.msra.mxu1 %v7808_v43  ;;  %v1320_v43 = vld [vmem:[%s12969_s3 + $0x158] sm:$0xff]  ;;  %v7646_v58 = vpack.c.bf16 %v1324_v54, %v1323_v53  ;;  %v2954_v5 = vld [vmem:[#allocation2 + $0x184] sm:$0xff] }
  0x3b   :  { %283 = vst [vmem:[#allocation2 + $0x508] sm:$0xff] %v8887_v1  ;;  %284 = vst [vmem:[#allocation2 + $0x510] sm:$0xff] %v8887_v1  ;;  %7810 = vmatprep.subr.bf16.mxu1 %v8886_v0  ;;  %v7640_v46 = vpack.c.bf16 %v1320_v43, %v1319_v42  ;;  %v3494_v4 = vld [vmem:[%s12970_s4 + $0x118] sm:$0xff]  ;;  %v1330_v21 = vld [vmem:[%s12969_s3 + $0x1a8] sm:$0xff] }
  0x3c   :  { %285 = vst [vmem:[#allocation2 + $0x518] sm:$0xff] %v8887_v1  ;;  %288 = vst [vmem:[#allocation2 + $0x530] sm:$0xff] %v8887_v1  ;;  %7620 = vmatpush1.bf16.msra.mxu0 %v7619_v49  ;;  %v1322_v49 = vld [vmem:[%s12969_s3 + $0x168] sm:$0xff]  ;;  %v1328_v14 = vld [vmem:[%s12969_s3 + $0x198] sm:$0xff] }
  0x3d   :  { %289 = vst [vmem:[#allocation2 + $0x538] sm:$0xff] %v8887_v1  ;;  %290 = vst [vmem:[#allocation2 + $0x540] sm:$0xff] %v8887_v1  ;;  %7621 = vmatprep.subr.bf16.mxu0 %v8886_v0  ;;  %v7643_v52 = vpack.c.bf16 %v1322_v49, %v1321_v47  ;;  %v773_v16 = vld [vmem:[#allocation2 + $0x2b2] sm:$0xff]  ;;  %v774_v23 = vld [vmem:[#allocation2 + $0x2da] sm:$0xff] }
  0x3e   :  { %291 = vst [vmem:[#allocation2 + $0x548] sm:$0xff] %v8887_v1  ;;  %294 = vst [vmem:[#allocation2 + $0x560] sm:$0xff] %v8887_v1  ;;  %7812 = vmatpush1.bf16.msra.mxu1 %v7811_v50  ;;  %v770_v50 = vld [vmem:[#allocation2 + $0x27a] sm:$0xff]  ;;  %v775_v28 = vld [vmem:[#allocation2 + $0x2e2] sm:$0xff] }
  0x3f   :  { %295 = vst [vmem:[#allocation2 + $0x568] sm:$0xff] %v8887_v1  ;;  %296 = vst [vmem:[#allocation2 + $0x570] sm:$0xff] %v8887_v1  ;;  %7813 = vmatprep.subr.bf16.mxu1 %v8886_v0  ;;  %v2957_v29 = vld [vmem:[#allocation2 + $0x1bc] sm:$0xff]  ;;  %v9833_v42 = vld [vmem:[%s12971_s0 + $0x110] sm:$0xff] }
  0x40   :  { %297 = vst [vmem:[#allocation2 + $0x578] sm:$0xff] %v8887_v1  ;;  %300 = vst [vmem:[#allocation2 + $0x590] sm:$0xff] %v8887_v1  ;;  %7623 = vmatpush1.bf16.msra.mxu0 %v7622_v55  ;;  %v771_v55 = vld [vmem:[#allocation2 + $0x282] sm:$0xff]  ;;  %v9848_v49 = vld [vmem:[%s12971_s0 + $0x118] sm:$0xff] }
  0x41   :  { %301 = vst [vmem:[#allocation2 + $0x598] sm:$0xff] %v8887_v1  ;;  %302 = vst [vmem:[#allocation2 + $0x5a0] sm:$0xff] %v8887_v1  ;;  %7624 = vmatprep.subr.bf16.mxu0 %v8886_v0  ;;  %v3495_v35 = vld [vmem:[%s12970_s4 + $0x120] sm:$0xff] }
  0x42   :  { %303 = vst [vmem:[#allocation2 + $0x5a8] sm:$0xff] %v8887_v1  ;;  %306 = vst [vmem:[#allocation2 + $0x5c0] sm:$0xff] %v8887_v1  ;;  %7815 = vmatpush1.bf16.msra.mxu1 %v7814_v57  ;;  %v2953_v57 = vld [vmem:[#allocation2 + $0x15c] sm:$0xff] }
  0x43   :  { %307 = vst [vmem:[#allocation2 + $0x5c8] sm:$0xff] %v8887_v1  ;;  %308 = vst [vmem:[#allocation2 + $0x5d0] sm:$0xff] %v8887_v1  ;;  %7816 = vmatprep.subr.bf16.mxu1 %v8886_v0  ;;  %1470 = vmatmul.mubr.f32.vlgmr.msra.gmra.mrb[0].mxu0 %v764_v61  ;;  %v1326_v61 = vld [vmem:[%s12969_s3 + $0x188] sm:$0xff]  ;;  %v2961_v54 = vld [vmem:[#allocation2 + $0x21c] sm:$0xff] }
  0x44   :  { %309 = vst [vmem:[#allocation2 + $0x5d8] sm:$0xff] %v8887_v1  ;;  %312 = vst [vmem:[#allocation2 + $0x5f0] sm:$0xff] %v8887_v1  ;;  %7626 = vmatpush1.bf16.msra.mxu0 %v7625_v62  ;;  %1474 = vmatprep.mubr.f32.mxu0 %v9364_v8  ;;  %v772_v62 = vld [vmem:[#allocation2 + $0x2aa] sm:$0xff] }
  0x45   :  { %313 = vst [vmem:[#allocation2 + $0x5f8] sm:$0xff] %v8887_v1  ;;  %314 = vst [vmem:[#allocation2 + $0x600] sm:$0xff] %v8887_v1  ;;  %3652 = vmatmul.mubr.f32.vlgmr.msra.gmra.mrb[0].mxu1 %v2946_v3  ;;  %7627 = vmatprep.subr.bf16.mxu0 %v8886_v0  ;;  %v3493_v3 = vld [vmem:[%s12970_s4 + $0x110] sm:$0xff] }
  0x46   :  { %315 = vst [vmem:[#allocation2 + $0x608] sm:$0xff] %v8887_v1  ;;  %316 = vst [vmem:[#allocation2 + $0x610] sm:$0xff] %v8887_v1  ;;  %3656 = vmatprep.mubr.f32.mxu1 %v9364_v8  ;;  %7818 = vmatpush1.bf16.msra.mxu1 %v7817_v40 }
  0x47   :  { %317 = vst [vmem:[#allocation2 + $0x618] sm:$0xff] %v8887_v1  ;;  %318 = vst [vmem:[#allocation2 + $0x620] sm:$0xff] %v8887_v1  ;;  %1475 = vmatmul.mubr.f32.gmra.mrb[2].mxu0 %v765_v6  ;;  %7819 = vmatprep.subr.bf16.mxu1 %v8886_v0  ;;  %v7649_v6 = vpack.c.bf16 %v1326_v61, %v1325_v59  ;;  %v3498_v59 = vld [vmem:[%s12970_s4 + $0x138] sm:$0xff]  ;;  %v2962_v61 = vld [vmem:[#allocation2 + $0x244] sm:$0xff] }
  0x48   :  { %319 = vst [vmem:[#allocation2 + $0x628] sm:$0xff] %v8887_v1  ;;  %320 = vst [vmem:[#allocation2 + $0x630] sm:$0xff] %v8887_v1  ;;  %1479 = vmatprep.mubr.f32.mxu0 %v9364_v8  ;;  %7629 = vmatpush1.bf16.msra.mxu0 %v7628_v11  ;;  %v1327_v11 = vld [vmem:[%s12969_s3 + $0x190] sm:$0xff] }
  0x49   :  { %321 = vst [vmem:[#allocation2 + $0x638] sm:$0xff] %v8887_v1  ;;  %322 = vst [vmem:[#allocation2 + $0x640] sm:$0xff] %v8887_v1  ;;  %3657 = vmatmul.mubr.f32.gmra.mrb[2].mxu1 %v2947_v10  ;;  %7630 = vmatprep.subr.bf16.mxu0 %v8886_v0  ;;  %v7820_v10 = vpack.c.bf16 %v3494_v4, %v3493_v3  ;;  %v9879_v3 = vld [vmem:[%s12971_s0 + $0x130] sm:$0xff] }
  0x4a   :  { %323 = vst [vmem:[#allocation2 + $0x648] sm:$0xff] %v8887_v1  ;;  %324 = vst [vmem:[#allocation2 + $0x650] sm:$0xff] %v8887_v1  ;;  %3661 = vmatprep.mubr.f32.mxu1 %v9364_v8 }
  0x4b   :  { %325 = vst [vmem:[#allocation2 + $0x658] sm:$0xff] %v8887_v1  ;;  %326 = vst [vmem:[#allocation2 + $0x660] sm:$0xff] %v8887_v1  ;;  %1480 = vmatmul.mubr.f32.gmra.mrb[4].mxu0 %v766_v17  ;;  %7821 = vmatpush1.bf16.msra.mxu1 %v7820_v10  ;;  %v2955_v17 = vld [vmem:[#allocation2 + $0x18c] sm:$0xff] }
  0x4c   :  { %327 = vst [vmem:[#allocation2 + $0x668] sm:$0xff] %v8887_v1  ;;  %328 = vst [vmem:[#allocation2 + $0x670] sm:$0xff] %v8887_v1  ;;  %1484 = vmatprep.mubr.f32.mxu0 %v9364_v8  ;;  %7632 = vmatpush1.bf16.msra.mxu0 %v7631_v20  ;;  %v1329_v20 = vld [vmem:[%s12969_s3 + $0x1a0] sm:$0xff]  ;;  %v2963_v10 = vld [vmem:[#allocation2 + $0x24c] sm:$0xff] }
  0x4d   :  { %329 = vst [vmem:[#allocation2 + $0x678] sm:$0xff] %v8887_v1  ;;  %330 = vst [vmem:[#allocation2 + $0x680] sm:$0xff] %v8887_v1  ;;  %3662 = vmatmul.mubr.f32.gmra.mrb[4].mxu1 %v2948_v18  ;;  %7633 = vmatprep.subr.bf16.mxu0 %v8886_v0  ;;  %v7652_v18 = vpack.c.bf16 %v1328_v14, %v1327_v11  ;;  %v9894_v14 = vld [vmem:[%s12971_s0 + $0x138] sm:$0xff] }
  0x4e   :  { %331 = vst [vmem:[#allocation2 + $0x688] sm:$0xff] %v8887_v1  ;;  %332 = vst [vmem:[#allocation2 + $0x690] sm:$0xff] %v8887_v1  ;;  %3666 = vmatprep.mubr.f32.mxu1 %v9364_v8  ;;  %7822 = vmatprep.subr.bf16.mxu1 %v8886_v0 }
  0x4f   :  { %333 = vst [vmem:[#allocation2 + $0x698] sm:$0xff] %v8887_v1  ;;  %334 = vst [vmem:[#allocation2 + $0x6a0] sm:$0xff] %v8887_v1  ;;  %1485 = vmatmul.mubr.f32.gmra.mrb[6].mxu0 %v767_v25  ;;  %v2956_v25 = vld [vmem:[#allocation2 + $0x1b4] sm:$0xff] }
  0x50   :  { %335 = vst [vmem:[#allocation2 + $0x6a8] sm:$0xff] %v8887_v1  ;;  %336 = vst [vmem:[#allocation2 + $0x6b0] sm:$0xff] %v8887_v1  ;;  %1489 = vmatprep.mubr.f32.mxu0 %v9364_v8  ;;  %7635 = vmatpush1.bf16.msra.mxu0 %v7634_v27  ;;  %v9810_v27 = vld [vmem:[%s12971_s0 + $0x100] sm:$0xff] }
  0x51   :  { %337 = vst [vmem:[#allocation2 + $0x6b8] sm:$0xff] %v8887_v1  ;;  %338 = vst [vmem:[#allocation2 + $0x6c0] sm:$0xff] %v8887_v1  ;;  %3667 = vmatmul.mubr.f32.gmra.mrb[6].mxu1 %v2949_v26  ;;  %7636 = vmatprep.subr.bf16.mxu0 %v8886_v0  ;;  %v7655_v26 = vpack.c.bf16 %v1330_v21, %v1329_v20  ;;  %v2965_v21 = vld [vmem:[#allocation2 + $0x27c] sm:$0xff] }
  0x52   :  { %339 = vst [vmem:[#allocation2 + $0x6c8] sm:$0xff] %v8887_v1  ;;  %340 = vst [vmem:[#allocation2 + $0x6d0] sm:$0xff] %v8887_v1  ;;  %3671 = vmatprep.mubr.f32.mxu1 %v9364_v8 }
  0x53   :  { %341 = vst [vmem:[#allocation2 + $0x6d8] sm:$0xff] %v8887_v1  ;;  %342 = vst [vmem:[#allocation2 + $0x6e0] sm:$0xff] %v8887_v1  ;;  %1490 = vmatmul.mubr.f32.gmra.mrb[8].mxu0 %v768_v32  ;;  %v9819_v32 = vld [vmem:[%s12971_s0 + $0x108] sm:$0xff] }
  0x54   :  { %343 = vst [vmem:[#allocation2 + $0x6e8] sm:$0xff] %v8887_v1  ;;  %344 = vst [vmem:[#allocation2 + $0x6f0] sm:$0xff] %v8887_v1  ;;  %1494 = vmatprep.mubr.f32.mxu0 %v9364_v8  ;;  %7638 = vmatpush1.bf16.msra.mxu0 %v7637_v39  ;;  %v2958_v39 = vld [vmem:[#allocation2 + $0x1e4] sm:$0xff] }
  0x55   :  { %345 = vst [vmem:[#allocation2 + $0x6f8] sm:$0xff] %v8887_v1  ;;  %346 = vst [vmem:[#allocation2 + $0x700] sm:$0xff] %v8887_v1  ;;  %3672 = vmatmul.mubr.f32.gmra.mrb[8].mxu1 %v2950_v36  ;;  %7639 = vmatprep.subr.bf16.mxu0 %v8886_v0  ;;  %v3496_v36 = vld [vmem:[%s12970_s4 + $0x128] sm:$0xff] }
  0x56   :  { %347 = vst [vmem:[#allocation2 + $0x708] sm:$0xff] %v8887_v1  ;;  %348 = vst [vmem:[#allocation2 + $0x710] sm:$0xff] %v8887_v1  ;;  %3676 = vmatprep.mubr.f32.mxu1 %v9364_v8  ;;  %v7823_v40 = vpack.c.bf16 %v3496_v36, %v3495_v35  ;;  %v1335_v36 = vld [vmem:[%s12969_s3 + $0x1d0] sm:$0xff] }
  0x57   :  { %349 = vst [vmem:[#allocation2 + $0x718] sm:$0xff] %v8887_v1  ;;  %350 = vst [vmem:[#allocation2 + $0x720] sm:$0xff] %v8887_v1  ;;  %1495 = vmatmul.mubr.f32.gmra.mrb[10].mxu0 %v769_v44  ;;  %v1331_v44 = vld [vmem:[%s12969_s3 + $0x1b0] sm:$0xff] }
  0x58   :  { %351 = vst [vmem:[#allocation2 + $0x728] sm:$0xff] %v8887_v1  ;;  %352 = vst [vmem:[#allocation2 + $0x730] sm:$0xff] %v8887_v1  ;;  %1499 = vmatprep.mubr.f32.mxu0 %v9364_v8  ;;  %7641 = vmatpush1.bf16.msra.mxu0 %v7640_v46  ;;  %v2959_v46 = vld [vmem:[#allocation2 + $0x1ec] sm:$0xff] }
  0x59   :  { %353 = vst [vmem:[#allocation2 + $0x738] sm:$0xff] %v8887_v1  ;;  %354 = vst [vmem:[#allocation2 + $0x740] sm:$0xff] %v8887_v1  ;;  %3677 = vmatmul.mubr.f32.gmra.mrb[10].mxu1 %v2951_v45  ;;  %7642 = vmatprep.subr.bf16.mxu0 %v8886_v0  ;;  %v1332_v45 = vld [vmem:[%s12969_s3 + $0x1b8] sm:$0xff] }
  0x5a   :  { %355 = vst [vmem:[#allocation2 + $0x748] sm:$0xff] %v8887_v1  ;;  %356 = vst [vmem:[#allocation2 + $0x750] sm:$0xff] %v8887_v1  ;;  %3681 = vmatprep.mubr.f32.mxu1 %v9364_v8  ;;  %7824 = vmatpush1.bf16.msra.mxu1 %v7823_v40  ;;  %v7658_v47 = vpack.c.bf16 %v1332_v45, %v1331_v44  ;;  %v2967_v40 = vld [vmem:[#allocation2 + $0x2ac] sm:$0xff]  ;;  %v3502_v44 = vld [vmem:[%s12970_s4 + $0x158] sm:$0xff] }
  0x5b   :  { %357 = vst [vmem:[#allocation2 + $0x758] sm:$0xff] %v8887_v1  ;;  %358 = vst [vmem:[#allocation2 + $0x760] sm:$0xff] %v8887_v1  ;;  %1500 = vmatmul.mubr.f32.gmra.mrb[12].mxu0 %v770_v50  ;;  %7825 = vmatprep.subr.bf16.mxu1 %v8886_v0 }
  0x5c   :  { %359 = vst [vmem:[#allocation2 + $0x768] sm:$0xff] %v8887_v1  ;;  %360 = vst [vmem:[#allocation2 + $0x770] sm:$0xff] %v8887_v1  ;;  %1504 = vmatprep.mubr.f32.mxu0 %v9364_v8  ;;  %7644 = vmatpush1.bf16.msra.mxu0 %v7643_v52  ;;  %v9857_v52 = vld [vmem:[%s12971_s0 + $0x120] sm:$0xff] }
  0x5d   :  { %361 = vst [vmem:[#allocation2 + $0x778] sm:$0xff] %v8887_v1  ;;  %362 = vst [vmem:[#allocation2 + $0x780] sm:$0xff] %v8887_v1  ;;  %3682 = vmatmul.mubr.f32.gmra.mrb[12].mxu1 %v2952_v51  ;;  %7645 = vmatprep.subr.bf16.mxu0 %v8886_v0  ;;  %v2960_v51 = vld [vmem:[#allocation2 + $0x214] sm:$0xff] }
  0x5e   :  { %363 = vst [vmem:[#allocation2 + $0x788] sm:$0xff] %v8887_v1  ;;  %364 = vst [vmem:[#allocation2 + $0x790] sm:$0xff] %v8887_v1  ;;  %3686 = vmatprep.mubr.f32.mxu1 %v9364_v8 }
  0x5f   :  { %365 = vst [vmem:[#allocation2 + $0x798] sm:$0xff] %v8887_v1  ;;  %366 = vst [vmem:[#allocation2 + $0x7a0] sm:$0xff] %v8887_v1  ;;  %1505 = vmatmul.mubr.f32.gmra.mrb[14].mxu0 %v771_v55  ;;  %v9865_v55 = vld [vmem:[%s12971_s0 + $0x128] sm:$0xff] }
  0x60   :  { %367 = vst [vmem:[#allocation2 + $0x7a8] sm:$0xff] %v8887_v1  ;;  %368 = vst [vmem:[#allocation2 + $0x7b0] sm:$0xff] %v8887_v1  ;;  %1509 = vmatprep.mubr.f32.mxu0 %v9364_v8  ;;  %7647 = vmatpush1.bf16.msra.mxu0 %v7646_v58  ;;  %v3497_v58 = vld [vmem:[%s12970_s4 + $0x130] sm:$0xff] }
  0x61   :  { %369 = vst [vmem:[#allocation2 + $0x7b8] sm:$0xff] %v8887_v1  ;;  %370 = vst [vmem:[#allocation2 + $0x7c0] sm:$0xff] %v8887_v1  ;;  %3687 = vmatmul.mubr.f32.gmra.mrb[14].mxu1 %v2953_v57  ;;  %7648 = vmatprep.subr.bf16.mxu0 %v8886_v0 }
  0x62   :  { %371 = vst [vmem:[#allocation2 + $0x7c8] sm:$0xff] %v8887_v1  ;;  %372 = vst [vmem:[#allocation2 + $0x7d0] sm:$0xff] %v8887_v1  ;;  %3691 = vmatprep.mubr.f32.mxu1 %v9364_v8 }
  0x63   :  { %373 = vst [vmem:[#allocation2 + $0x7d8] sm:$0xff] %v8887_v1  ;;  %374 = vst [vmem:[#allocation2 + $0x7e0] sm:$0xff] %v8887_v1  ;;  %1510 = vmatmul.mubr.f32.gmra.mrb[16].mxu0 %v772_v62  ;;  %v7826_v62 = vpack.c.bf16 %v3498_v59, %v3497_v58  ;;  %v2969_v58 = vld [vmem:[#allocation2 + $0x2dc] sm:$0xff]  ;;  %v3505_v59 = vld [vmem:[%s12970_s4 + $0x170] sm:$0xff] }
  0x64   :  { %375 = vst [vmem:[#allocation2 + $0x7e8] sm:$0xff] %v8887_v1  ;;  %376 = vst [vmem:[#allocation2 + $0x7f0] sm:$0xff] %v8887_v1  ;;  %1514 = vmatprep.mubr.f32.mxu0 %v9364_v8  ;;  %7650 = vmatpush1.bf16.msra.mxu0 %v7649_v6  ;;  %v1334_v6 = vld [vmem:[%s12969_s3 + $0x1c8] sm:$0xff] }
  0x65   :  { %377 = vst [vmem:[#allocation2 + $0x7f8] sm:$0xff] %v8887_v1  ;;  %378 = vst [vmem:[#allocation2 + $0x800] sm:$0xff] %v8887_v1  ;;  %3692 = vmatmul.mubr.f32.gmra.mrb[16].mxu1 %v2954_v5  ;;  %7651 = vmatprep.subr.bf16.mxu0 %v8886_v0  ;;  %v1333_v5 = vld [vmem:[%s12969_s3 + $0x1c0] sm:$0xff] }
  0x66   :  { %379 = vst [vmem:[#allocation2 + $0x808] sm:$0xff] %v8887_v1  ;;  %380 = vst [vmem:[#allocation2 + $0x810] sm:$0xff] %v8887_v1  ;;  %3696 = vmatprep.mubr.f32.mxu1 %v9364_v8  ;;  %7827 = vmatpush1.bf16.msra.mxu1 %v7826_v62  ;;  %v7661_v11 = vpack.c.bf16 %v1334_v6, %v1333_v5  ;;  %v3507_v5 = vld [vmem:[%s12970_s4 + $0x180] sm:$0xff]  ;;  %v3508_v6 = vld [vmem:[%s12970_s4 + $0x188] sm:$0xff] }
  0x67   :  { %381 = vst [vmem:[#allocation2 + $0x818] sm:$0xff] %v8887_v1  ;;  %382 = vst [vmem:[#allocation2 + $0x820] sm:$0xff] %v8887_v1  ;;  %1515 = vmatmul.mubr.f32.gmra.mrb[18].mxu0 %v773_v16  ;;  %7828 = vmatprep.subr.bf16.mxu1 %v8886_v0 }
  0x68   :  { %383 = vst [vmem:[#allocation2 + $0x828] sm:$0xff] %v8887_v1  ;;  %384 = vst [vmem:[#allocation2 + $0x830] sm:$0xff] %v8887_v1  ;;  %1519 = vmatprep.mubr.f32.mxu0 %v9364_v8  ;;  %7653 = vmatpush1.bf16.msra.mxu0 %v7652_v18  ;;  %v9903_v18 = vld [vmem:[%s12971_s0 + $0x140] sm:$0xff] }
  0x69   :  { %385 = vst [vmem:[#allocation2 + $0x838] sm:$0xff] %v8887_v1  ;;  %434 = vst [vmem:[#allocation2 + $0x9c0] sm:$0xff] %v8887_v1  ;;  %3697 = vmatmul.mubr.f32.gmra.mrb[18].mxu1 %v2955_v17  ;;  %7654 = vmatprep.subr.bf16.mxu0 %v8886_v0  ;;  %v2964_v17 = vld [vmem:[#allocation2 + $0x274] sm:$0xff] }
  0x6a   :  { %435 = vst [vmem:[#allocation2 + $0x9c8] sm:$0xff] %v8887_v1  ;;  %436 = vst [vmem:[#allocation2 + $0x9d0] sm:$0xff] %v8887_v1  ;;  %3701 = vmatprep.mubr.f32.mxu1 %v9364_v8 }
  0x6b   :  { %437 = vst [vmem:[#allocation2 + $0x9d8] sm:$0xff] %v8887_v1  ;;  %438 = vst [vmem:[#allocation2 + $0x9e0] sm:$0xff] %v8887_v1  ;;  %1520 = vmatmul.mubr.f32.gmra.mrb[20].mxu0 %v774_v23  ;;  %v9911_v23 = vld [vmem:[%s12971_s0 + $0x148] sm:$0xff] }
  0x6c   :  { %439 = vst [vmem:[#allocation2 + $0x9e8] sm:$0xff] %v8887_v1  ;;  %440 = vst [vmem:[#allocation2 + $0x9f0] sm:$0xff] %v8887_v1  ;;  %1524 = vmatprep.mubr.f32.mxu0 %v9364_v8  ;;  %7656 = vmatpush1.bf16.msra.mxu0 %v7655_v26  ;;  %v3499_v26 = vld [vmem:[%s12970_s4 + $0x140] sm:$0xff] }
  0x6d   :  { %441 = vst [vmem:[#allocation2 + $0x9f8] sm:$0xff] %v8887_v1  ;;  %442 = vst [vmem:[#allocation2 + $0xa00] sm:$0xff] %v8887_v1  ;;  %3702 = vmatmul.mubr.f32.gmra.mrb[20].mxu1 %v2956_v25  ;;  %7657 = vmatprep.subr.bf16.mxu0 %v8886_v0 }
  0x6e   :  { %443 = vst [vmem:[#allocation2 + $0xa08] sm:$0xff] %v8887_v1  ;;  %444 = vst [vmem:[#allocation2 + $0xa10] sm:$0xff] %v8887_v1  ;;  %3706 = vmatprep.mubr.f32.mxu1 %v9364_v8 }
  0x6f   :  { %445 = vst [vmem:[#allocation2 + $0xa18] sm:$0xff] %v8887_v1  ;;  %446 = vst [vmem:[#allocation2 + $0xa20] sm:$0xff] %v8887_v1  ;;  %1525 = vmatmul.mubr.f32.gmra.mrb[22].mxu0 %v775_v28  ;;  %v3500_v28 = vld [vmem:[%s12970_s4 + $0x148] sm:$0xff] }
  0x70   :  { %447 = vst [vmem:[#allocation2 + $0xa28] sm:$0xff] %v8887_v1  ;;  %448 = vst [vmem:[#allocation2 + $0xa30] sm:$0xff] %v8887_v1  ;;  %1529 = vmatprep.mubr.f32.mxu0 %v9478_v56  ;;  %7659 = vmatpush1.bf16.msra.mxu0 %v7658_v47 }
  0x71   :  { %449 = vst [vmem:[#allocation2 + $0xa38] sm:$0xff] %v8887_v1  ;;  %450 = vst [vmem:[#allocation2 + $0xa40] sm:$0xff] %v8887_v1  ;;  %3707 = vmatmul.mubr.f32.gmra.mrb[22].mxu1 %v2957_v29  ;;  %7660 = vmatprep.subr.bf16.mxu0 %v8886_v0  ;;  %v2966_v29 = vld [vmem:[#allocation2 + $0x2a4] sm:$0xff] }
  0x72   :  { %451 = vst [vmem:[#allocation2 + $0xa48] sm:$0xff] %v8887_v1  ;;  %452 = vst [vmem:[#allocation2 + $0xa50] sm:$0xff] %v8887_v1  ;;  %3711 = vmatprep.mubr.f32.mxu1 %v9364_v8 }
  0x73   :  { %453 = vst [vmem:[#allocation2 + $0xa58] sm:$0xff] %v8887_v1  ;;  %454 = vst [vmem:[#allocation2 + $0xa60] sm:$0xff] %v8887_v1 }
  0x74   :  { %455 = vst [vmem:[#allocation2 + $0xa68] sm:$0xff] %v8887_v1  ;;  %456 = vst [vmem:[#allocation2 + $0xa70] sm:$0xff] %v8887_v1  ;;  %7662 = vmatpush1.bf16.msra.mxu0 %v7661_v11  ;;  %v1337_v11 = vld [vmem:[%s12969_s3 + $0x1e0] sm:$0xff] }
  0x75   :  { %457 = vst [vmem:[#allocation2 + $0xa78] sm:$0xff] %v8887_v1  ;;  %458 = vst [vmem:[#allocation2 + $0xa80] sm:$0xff] %v8887_v1  ;;  %3712 = vmatmul.mubr.f32.gmra.mrb[24].mxu1 %v2958_v39  ;;  %7663 = vmatprep.subr.bf16.mxu0 %v8886_v0  ;;  %v1336_v39 = vld [vmem:[%s12969_s3 + $0x1d8] sm:$0xff] }
  0x76   :  { %459 = vst [vmem:[#allocation2 + $0xa88] sm:$0xff] %v8887_v1  ;;  %460 = vst [vmem:[#allocation2 + $0xa90] sm:$0xff] %v8887_v1  ;;  %3716 = vmatprep.mubr.f32.mxu1 %v9364_v8 }
  0x77   :  { %461 = vst [vmem:[#allocation2 + $0xa98] sm:$0xff] %v8887_v1  ;;  %462 = vst [vmem:[#allocation2 + $0xaa0] sm:$0xff] %v8887_v1 }
  0x78   :  { %463 = vst [vmem:[#allocation2 + $0xaa8] sm:$0xff] %v8887_v1  ;;  %464 = vst [vmem:[#allocation2 + $0xab0] sm:$0xff] %v8887_v1 }
  0x79   :  { %465 = vst [vmem:[#allocation2 + $0xab8] sm:$0xff] %v8887_v1  ;;  %466 = vst [vmem:[#allocation2 + $0xac0] sm:$0xff] %v8887_v1  ;;  %3717 = vmatmul.mubr.f32.gmra.mrb[26].mxu1 %v2959_v46  ;;  %v9946_v46 = vld [vmem:[%s12971_s0 + $0x158] sm:$0xff] }
  0x7a   :  { %467 = vst [vmem:[#allocation2 + $0xac8] sm:$0xff] %v8887_v1  ;;  %468 = vst [vmem:[#allocation2 + $0xad0] sm:$0xff] %v8887_v1  ;;  %3721 = vmatprep.mubr.f32.mxu1 %v9364_v8 }
  0x7b   :  { %469 = vst [vmem:[#allocation2 + $0xad8] sm:$0xff] %v8887_v1  ;;  %470 = vst [vmem:[#allocation2 + $0xae0] sm:$0xff] %v8887_v1 }
  0x7c   :  { %471 = vst [vmem:[#allocation2 + $0xae8] sm:$0xff] %v8887_v1  ;;  %472 = vst [vmem:[#allocation2 + $0xaf0] sm:$0xff] %v8887_v1 }
  0x7d   :  { %473 = vst [vmem:[#allocation2 + $0xaf8] sm:$0xff] %v8887_v1  ;;  %474 = vst [vmem:[#allocation2 + $0xb00] sm:$0xff] %v8887_v1  ;;  %3722 = vmatmul.mubr.f32.gmra.mrb[28].mxu1 %v2960_v51  ;;  %v3503_v51 = vld [vmem:[%s12970_s4 + $0x160] sm:$0xff] }
  0x7e   :  { %475 = vst [vmem:[#allocation2 + $0xb08] sm:$0xff] %v8887_v1  ;;  %476 = vst [vmem:[#allocation2 + $0xb10] sm:$0xff] %v8887_v1  ;;  %3726 = vmatprep.mubr.f32.mxu1 %v9364_v8 }
  0x7f   :  { %477 = vst [vmem:[#allocation2 + $0xb18] sm:$0xff] %v8887_v1  ;;  %478 = vst [vmem:[#allocation2 + $0xb20] sm:$0xff] %v8887_v1 }
  0x80   :  { %479 = vst [vmem:[#allocation2 + $0xb28] sm:$0xff] %v8887_v1  ;;  %480 = vst [vmem:[#allocation2 + $0xb30] sm:$0xff] %v8887_v1 }
  0x81   :  { %481 = vst [vmem:[#allocation2 + $0xb38] sm:$0xff] %v8887_v1  ;;  %482 = vst [vmem:[#allocation2 + $0xb40] sm:$0xff] %v8887_v1  ;;  %3727 = vmatmul.mubr.f32.gmra.mrb[30].mxu1 %v2961_v54  ;;  %v9962_v54 = vld [vmem:[%s12971_s0 + $0x160] sm:$0xff] }
  0x82   :  { %483 = vst [vmem:[#allocation2 + $0xb48] sm:$0xff] %v8887_v1  ;;  %484 = vst [vmem:[#allocation2 + $0xb50] sm:$0xff] %v8887_v1  ;;  %3731 = vmatprep.mubr.f32.mxu1 %v9364_v8 }
  0x83   :  { %485 = vst [vmem:[#allocation2 + $0xb58] sm:$0xff] %v8887_v1  ;;  %486 = vst [vmem:[#allocation2 + $0xb60] sm:$0xff] %v8887_v1 }
  0x84   :  { %487 = vst [vmem:[#allocation2 + $0xb68] sm:$0xff] %v8887_v1  ;;  %488 = vst [vmem:[#allocation2 + $0xb70] sm:$0xff] %v8887_v1 }
  0x85   :  { %489 = vst [vmem:[#allocation2 + $0xb78] sm:$0xff] %v8887_v1  ;;  %490 = vst [vmem:[#allocation2 + $0xb80] sm:$0xff] %v8887_v1  ;;  %3732 = vmatmul.mubr.f32.gmra.mrb[32].mxu1 %v2962_v61  ;;  %v3506_v61 = vld [vmem:[%s12970_s4 + $0x178] sm:$0xff] }
  0x86   :  { %491 = vst [vmem:[#allocation2 + $0xb88] sm:$0xff] %v8887_v1  ;;  %492 = vst [vmem:[#allocation2 + $0xb90] sm:$0xff] %v8887_v1  ;;  %3736 = vmatprep.mubr.f32.mxu1 %v9364_v8  ;;  %v7838_v62 = vpack.c.bf16 %v3506_v61, %v3505_v59  ;;  %v10103_v61 = vld [vmem:[#allocation2 + $0x394] sm:$0xff] }
  0x87   :  { %493 = vst [vmem:[#allocation2 + $0xb98] sm:$0xff] %v8887_v1  ;;  %494 = vst [vmem:[#allocation2 + $0xba0] sm:$0xff] %v8887_v1 }
  0x88   :  { %495 = vst [vmem:[#allocation2 + $0xba8] sm:$0xff] %v8887_v1  ;;  %496 = vst [vmem:[#allocation2 + $0xbb0] sm:$0xff] %v8887_v1 }
  0x89   :  { %497 = vst [vmem:[#allocation2 + $0xbb8] sm:$0xff] %v8887_v1  ;;  %498 = vst [vmem:[#allocation2 + $0xbc0] sm:$0xff] %v8887_v1  ;;  %3737 = vmatmul.mubr.f32.gmra.mrb[34].mxu1 %v2963_v10  ;;  %v9994_v10 = vld [vmem:[%s12971_s0 + $0x170] sm:$0xff] }
  0x8a   :  { %499 = vst [vmem:[#allocation2 + $0xbc8] sm:$0xff] %v8887_v1  ;;  %500 = vst [vmem:[#allocation2 + $0xbd0] sm:$0xff] %v8887_v1  ;;  %3741 = vmatprep.mubr.f32.mxu1 %v9364_v8 }
  0x8b   :  { %501 = vst [vmem:[#allocation2 + $0xbd8] sm:$0xff] %v8887_v1  ;;  %502 = vst [vmem:[#allocation2 + $0xbe0] sm:$0xff] %v8887_v1 }
  0x8c   :  { %503 = vst [vmem:[#allocation2 + $0xbe8] sm:$0xff] %v8887_v1  ;;  %504 = vst [vmem:[#allocation2 + $0xbf0] sm:$0xff] %v8887_v1 }
  0x8d   :  { %505 = vst [vmem:[#allocation2 + $0xbf8] sm:$0xff] %v8887_v1  ;;  %506 = vst [vmem:[#allocation2 + $0xc00] sm:$0xff] %v8887_v1  ;;  %3742 = vmatmul.mubr.f32.gmra.mrb[36].mxu1 %v2964_v17 }
  0x8e   :  { %507 = vst [vmem:[#allocation2 + $0xc08] sm:$0xff] %v8887_v1  ;;  %510 = vst [vmem:[#allocation2 + $0xc20] sm:$0xff] %v8887_v1  ;;  %3746 = vmatprep.mubr.f32.mxu1 %v9364_v8 }
  0x8f   :  { %511 = vst [vmem:[#allocation2 + $0xc28] sm:$0xff] %v8887_v1  ;;  %512 = vst [vmem:[#allocation2 + $0xc30] sm:$0xff] %v8887_v1 }
  0x90   :  { %513 = vst [vmem:[#allocation2 + $0xc38] sm:$0xff] %v8887_v1  ;;  %516 = vst [vmem:[#allocation2 + $0xc50] sm:$0xff] %v8887_v1 }
  0x91   :  { %517 = vst [vmem:[#allocation2 + $0xc58] sm:$0xff] %v8887_v1  ;;  %518 = vst [vmem:[#allocation2 + $0xc60] sm:$0xff] %v8887_v1  ;;  %3747 = vmatmul.mubr.f32.gmra.mrb[38].mxu1 %v2965_v21  ;;  %v3510_v21 = vld [vmem:[%s12970_s4 + $0x198] sm:$0xff] }
  0x92   :  { %519 = vst [vmem:[#allocation2 + $0xc68] sm:$0xff] %v8887_v1  ;;  %522 = vst [vmem:[#allocation2 + $0xc80] sm:$0xff] %v8887_v1  ;;  %3751 = vmatprep.mubr.f32.mxu1 %v9364_v8 }
  0x93   :  { %523 = vst [vmem:[#allocation2 + $0xc88] sm:$0xff] %v8887_v1  ;;  %524 = vst [vmem:[#allocation2 + $0xc90] sm:$0xff] %v8887_v1 }
  0x94   :  { %525 = vst [vmem:[#allocation2 + $0xc98] sm:$0xff] %v8887_v1  ;;  %528 = vst [vmem:[#allocation2 + $0xcb0] sm:$0xff] %v8887_v1 }
  0x95   :  { %529 = vst [vmem:[#allocation2 + $0xcb8] sm:$0xff] %v8887_v1  ;;  %530 = vst [vmem:[#allocation2 + $0xcc0] sm:$0xff] %v8887_v1  ;;  %3752 = vmatmul.mubr.f32.gmra.mrb[40].mxu1 %v2966_v29  ;;  %v3511_v29 = vld [vmem:[%s12970_s4 + $0x1a0] sm:$0xff] }
  0x96   :  { %531 = vst [vmem:[#allocation2 + $0xcc8] sm:$0xff] %v8887_v1  ;;  %534 = vst [vmem:[#allocation2 + $0xce0] sm:$0xff] %v8887_v1  ;;  %3756 = vmatprep.mubr.f32.mxu1 %v9364_v8 }
  0x97   :  { %535 = vst [vmem:[#allocation2 + $0xce8] sm:$0xff] %v8887_v1  ;;  %536 = vst [vmem:[#allocation2 + $0xcf0] sm:$0xff] %v8887_v1 }
  0x98   :  { %537 = vst [vmem:[#allocation2 + $0xcf8] sm:$0xff] %v8887_v1  ;;  %540 = vst [vmem:[#allocation2 + $0xd10] sm:$0xff] %v8887_v1 }
  0x99   :  { %541 = vst [vmem:[#allocation2 + $0xd18] sm:$0xff] %v8887_v1  ;;  %542 = vst [vmem:[#allocation2 + $0xd20] sm:$0xff] %v8887_v1  ;;  %3757 = vmatmul.mubr.f32.gmra.mrb[42].mxu1 %v2967_v40  ;;  %v3514_v40 = vld [vmem:[%s12970_s4 + $0x1b8] sm:$0xff] }
  0x9a   :  { %543 = vst [vmem:[#allocation2 + $0xd28] sm:$0xff] %v8887_v1  ;;  %546 = vst [vmem:[#allocation2 + $0xd40] sm:$0xff] %v8887_v1  ;;  %3761 = vmatprep.mubr.f32.mxu1 %v9364_v8 }
  0x9b   :  { %547 = vst [vmem:[#allocation2 + $0xd48] sm:$0xff] %v8887_v1  ;;  %548 = vst [vmem:[#allocation2 + $0xd50] sm:$0xff] %v8887_v1 }
  0x9c   :  { %549 = vst [vmem:[#allocation2 + $0xd58] sm:$0xff] %v8887_v1  ;;  %552 = vst [vmem:[#allocation2 + $0xd70] sm:$0xff] %v8887_v1 }
  0x9d   :  { %553 = vst [vmem:[#allocation2 + $0xd78] sm:$0xff] %v8887_v1  ;;  %554 = vst [vmem:[#allocation2 + $0xd80] sm:$0xff] %v8887_v1 }
  0x9e   :  { %555 = vst [vmem:[#allocation2 + $0xd88] sm:$0xff] %v8887_v1  ;;  %558 = vst [vmem:[#allocation2 + $0xda0] sm:$0xff] %v8887_v1 }
  0x9f   :  { %559 = vst [vmem:[#allocation2 + $0xda8] sm:$0xff] %v8887_v1  ;;  %560 = vst [vmem:[#allocation2 + $0xdb0] sm:$0xff] %v8887_v1 }
  0xa0   :  { %561 = vst [vmem:[#allocation2 + $0xdb8] sm:$0xff] %v8887_v1  ;;  %564 = vst [vmem:[#allocation2 + $0xdd0] sm:$0xff] %v8887_v1 }
  0xa1   :  { %565 = vst [vmem:[#allocation2 + $0xdd8] sm:$0xff] %v8887_v1  ;;  %566 = vst [vmem:[#allocation2 + $0xde0] sm:$0xff] %v8887_v1 }
  0xa2   :  { %567 = vst [vmem:[#allocation2 + $0xde8] sm:$0xff] %v8887_v1  ;;  %570 = vst [vmem:[#allocation2 + $0xe00] sm:$0xff] %v8887_v1 }
  0xa3   :  { %571 = vst [vmem:[#allocation2 + $0xe08] sm:$0xff] %v8887_v1  ;;  %572 = vst [vmem:[#allocation2 + $0xe10] sm:$0xff] %v8887_v1 }
  0xa4   :  { %573 = vst [vmem:[#allocation2 + $0xe18] sm:$0xff] %v8887_v1  ;;  %576 = vst [vmem:[#allocation2 + $0xe30] sm:$0xff] %v8887_v1 }
  0xa5   :  { %577 = vst [vmem:[#allocation2 + $0xe38] sm:$0xff] %v8887_v1  ;;  %578 = vst [vmem:[#allocation2 + $0xe40] sm:$0xff] %v8887_v1 }
  0xa6   :  { %579 = vst [vmem:[#allocation2 + $0xe48] sm:$0xff] %v8887_v1  ;;  %582 = vst [vmem:[#allocation2 + $0xe60] sm:$0xff] %v8887_v1 }
  0xa7   :  { %583 = vst [vmem:[#allocation2 + $0xe68] sm:$0xff] %v8887_v1  ;;  %584 = vst [vmem:[#allocation2 + $0xe70] sm:$0xff] %v8887_v1 }
  0xa8   :  { %585 = vst [vmem:[#allocation2 + $0xe78] sm:$0xff] %v8887_v1  ;;  %588 = vst [vmem:[#allocation2 + $0xe90] sm:$0xff] %v8887_v1 }
  0xa9   :  { %589 = vst [vmem:[#allocation2 + $0xe98] sm:$0xff] %v8887_v1  ;;  %590 = vst [vmem:[#allocation2 + $0xea0] sm:$0xff] %v8887_v1 }
  0xaa   :  { %591 = vst [vmem:[#allocation2 + $0xea8] sm:$0xff] %v8887_v1  ;;  %594 = vst [vmem:[#allocation2 + $0xec0] sm:$0xff] %v8887_v1 }
  0xab   :  { %595 = vst [vmem:[#allocation2 + $0xec8] sm:$0xff] %v8887_v1  ;;  %596 = vst [vmem:[#allocation2 + $0xed0] sm:$0xff] %v8887_v1 }
  0xac   :  { %597 = vst [vmem:[#allocation2 + $0xed8] sm:$0xff] %v8887_v1  ;;  %600 = vst [vmem:[#allocation2 + $0xef0] sm:$0xff] %v8887_v1 }
  0xad   :  { %601 = vst [vmem:[#allocation2 + $0xef8] sm:$0xff] %v8887_v1  ;;  %602 = vst [vmem:[#allocation2 + $0xf00] sm:$0xff] %v8887_v1 }
  0xae   :  { %603 = vst [vmem:[#allocation2 + $0xf08] sm:$0xff] %v8887_v1  ;;  %604 = vst [vmem:[#allocation2 + $0xf10] sm:$0xff] %v8887_v1 }
  0xaf   :  { %605 = vst [vmem:[#allocation2 + $0xf18] sm:$0xff] %v8887_v1  ;;  %606 = vst [vmem:[#allocation2 + $0xf20] sm:$0xff] %v8887_v1 }
  0xb0   :  { %607 = vst [vmem:[#allocation2 + $0xf28] sm:$0xff] %v8887_v1  ;;  %608 = vst [vmem:[#allocation2 + $0xf30] sm:$0xff] %v8887_v1 }
  0xb1   :  { %609 = vst [vmem:[#allocation2 + $0xf38] sm:$0xff] %v8887_v1  ;;  %610 = vst [vmem:[#allocation2 + $0xf40] sm:$0xff] %v8887_v1 }
  0xb2   :  { %611 = vst [vmem:[#allocation2 + $0xf48] sm:$0xff] %v8887_v1  ;;  %612 = vst [vmem:[#allocation2 + $0xf50] sm:$0xff] %v8887_v1 }
  0xb3   :  { %613 = vst [vmem:[#allocation2 + $0xf58] sm:$0xff] %v8887_v1  ;;  %614 = vst [vmem:[#allocation2 + $0xf60] sm:$0xff] %v8887_v1 }
  0xb4   :  { %615 = vst [vmem:[#allocation2 + $0xf68] sm:$0xff] %v8887_v1  ;;  %616 = vst [vmem:[#allocation2 + $0xf70] sm:$0xff] %v8887_v1 }
  0xb5   :  { %617 = vst [vmem:[#allocation2 + $0xf78] sm:$0xff] %v8887_v1  ;;  %618 = vst [vmem:[#allocation2 + $0xf80] sm:$0xff] %v8887_v1 }
  0xb6   :  { %619 = vst [vmem:[#allocation2 + $0xf88] sm:$0xff] %v8887_v1  ;;  %620 = vst [vmem:[#allocation2 + $0xf90] sm:$0xff] %v8887_v1 }
  0xb7   :  { %621 = vst [vmem:[#allocation2 + $0xf98] sm:$0xff] %v8887_v1  ;;  %622 = vst [vmem:[#allocation2 + $0xfa0] sm:$0xff] %v8887_v1 }
  0xb8   :  { %623 = vst [vmem:[#allocation2 + $0xfa8] sm:$0xff] %v8887_v1  ;;  %624 = vst [vmem:[#allocation2 + $0xfb0] sm:$0xff] %v8887_v1 }
  0xb9   :  { %625 = vst [vmem:[#allocation2 + $0xfb8] sm:$0xff] %v8887_v1  ;;  %626 = vst [vmem:[#allocation2 + $0xfc0] sm:$0xff] %v8887_v1 }
  0xba   :  { %627 = vst [vmem:[#allocation2 + $0xfc8] sm:$0xff] %v8887_v1  ;;  %628 = vst [vmem:[#allocation2 + $0xfd0] sm:$0xff] %v8887_v1 }
  0xbb   :  { %629 = vst [vmem:[#allocation2 + $0xfd8] sm:$0xff] %v8887_v1  ;;  %630 = vst [vmem:[#allocation2 + $0xfe0] sm:$0xff] %v8887_v1 }
  0xbc   :  { %631 = vst [vmem:[#allocation2 + $0xfe8] sm:$0xff] %v8887_v1  ;;  %632 = vst [vmem:[#allocation2 + $0xff0] sm:$0xff] %v8887_v1 }
  0xbd   :  { %633 = vst [vmem:[#allocation2 + $0xff8] sm:$0xff] %v8887_v1  ;;  %634 = vst [vmem:[#allocation2 + $0x1000] sm:$0xff] %v8887_v1 }
  0xbe   :  { %635 = vst [vmem:[#allocation2 + $0x1008] sm:$0xff] %v8887_v1  ;;  %636 = vst [vmem:[#allocation2 + $0x1010] sm:$0xff] %v8887_v1 }
  0xbf   :  { %637 = vst [vmem:[#allocation2 + $0x1018] sm:$0xff] %v8887_v1  ;;  %638 = vst [vmem:[#allocation2 + $0x1020] sm:$0xff] %v8887_v1 }
  0xc0   :  { %639 = vst [vmem:[#allocation2 + $0x1028] sm:$0xff] %v8887_v1  ;;  %640 = vst [vmem:[#allocation2 + $0x1030] sm:$0xff] %v8887_v1 }
  0xc1   :  { %641 = vst [vmem:[#allocation2 + $0x1038] sm:$0xff] %v8887_v1  ;;  %642 = vst [vmem:[#allocation2 + $0x1040] sm:$0xff] %v8887_v1 }
  0xc2   :  { %643 = vst [vmem:[#allocation2 + $0x1048] sm:$0xff] %v8887_v1  ;;  %644 = vst [vmem:[#allocation2 + $0x1050] sm:$0xff] %v8887_v1 }
  0xc3   :  { %645 = vst [vmem:[#allocation2 + $0x1058] sm:$0xff] %v8887_v1  ;;  %646 = vst [vmem:[#allocation2 + $0x1060] sm:$0xff] %v8887_v1 }
  0xc4   :  { %647 = vst [vmem:[#allocation2 + $0x1068] sm:$0xff] %v8887_v1  ;;  %648 = vst [vmem:[#allocation2 + $0x1070] sm:$0xff] %v8887_v1 }
  0xc5   :  { %649 = vst [vmem:[#allocation2 + $0x1078] sm:$0xff] %v8887_v1  ;;  %650 = vst [vmem:[#allocation2 + $0x1080] sm:$0xff] %v8887_v1 }
  0xc6   :  { %651 = vst [vmem:[#allocation2 + $0x1088] sm:$0xff] %v8887_v1  ;;  %652 = vst [vmem:[#allocation2 + $0x1090] sm:$0xff] %v8887_v1 }
  0xc7   :  { %653 = vst [vmem:[#allocation2 + $0x1098] sm:$0xff] %v8887_v1  ;;  %654 = vst [vmem:[#allocation2 + $0x10a0] sm:$0xff] %v8887_v1 }
  0xc8   :  { %655 = vst [vmem:[#allocation2 + $0x10a8] sm:$0xff] %v8887_v1  ;;  %656 = vst [vmem:[#allocation2 + $0x10b0] sm:$0xff] %v8887_v1 }
  0xc9   :  { %657 = vst [vmem:[#allocation2 + $0x10b8] sm:$0xff] %v8887_v1  ;;  %658 = vst [vmem:[#allocation2 + $0x10c0] sm:$0xff] %v8887_v1 }
  0xca   :  { %659 = vst [vmem:[#allocation2 + $0x10c8] sm:$0xff] %v8887_v1  ;;  %660 = vst [vmem:[#allocation2 + $0x10d0] sm:$0xff] %v8887_v1 }
  0xcb   :  { %661 = vst [vmem:[#allocation2 + $0x10d8] sm:$0xff] %v8887_v1  ;;  %662 = vst [vmem:[#allocation2 + $0x10e0] sm:$0xff] %v8887_v1 }
  0xcc   :  { %663 = vst [vmem:[#allocation2 + $0x10e8] sm:$0xff] %v8887_v1  ;;  %664 = vst [vmem:[#allocation2 + $0x10f0] sm:$0xff] %v8887_v1 }
  0xcd   :  { %665 = vst [vmem:[#allocation2 + $0x10f8] sm:$0xff] %v8887_v1  ;;  %666 = vst [vmem:[#allocation2 + $0x1100] sm:$0xff] %v8887_v1 }
  0xce   :  { %667 = vst [vmem:[#allocation2 + $0x1108] sm:$0xff] %v8887_v1  ;;  %668 = vst [vmem:[#allocation2 + $0x1110] sm:$0xff] %v8887_v1 }
  0xcf   :  { %669 = vst [vmem:[#allocation2 + $0x1118] sm:$0xff] %v8887_v1  ;;  %670 = vst [vmem:[#allocation2 + $0x1120] sm:$0xff] %v8887_v1 }
  0xd0   :  { %671 = vst [vmem:[#allocation2 + $0x1128] sm:$0xff] %v8887_v1  ;;  %672 = vst [vmem:[#allocation2 + $0x1130] sm:$0xff] %v8887_v1 }
  0xd1   :  { %673 = vst [vmem:[#allocation2 + $0x1138] sm:$0xff] %v8887_v1  ;;  %699 = vst [vmem:[#allocation2 + $0x310] sm:$0xff] %v9478_v56  ;;  %v9510_v1 = vld [vmem:[%s12971_s0 + $0x18] sm:$0xff] }
  0xd2   :  { %700 = vst [vmem:[#allocation2 + $0x318] sm:$0xff] %v9491_v60  ;;  %701 = vst [vmem:[#allocation2 + $0x340] sm:$0xff] %v9504_v63 }
  0xd3   :  { %702 = vst [vmem:[#allocation2 + $0x348] sm:$0xff] %v9510_v1  ;;  %703 = vst [vmem:[#allocation2 + $0x370] sm:$0xff] %v9515_v2 }
  0xd4   :  { %704 = vst [vmem:[#allocation2 + $0x378] sm:$0xff] %v9529_v7  ;;  %705 = vst [vmem:[#allocation2 + $0x3a0] sm:$0xff] %v9534_v9 }
  0xd5   :  { %706 = vst [vmem:[#allocation2 + $0x3a8] sm:$0xff] %v9548_v12  ;;  %707 = vst [vmem:[#allocation2 + $0x3d0] sm:$0xff] %v9554_v13 }
  0xd6   :  { %708 = vst [vmem:[#allocation2 + $0x3d8] sm:$0xff] %v9560_v15  ;;  %709 = vst [vmem:[#allocation2 + $0x400] sm:$0xff] %v9573_v19 }
  0xd7   :  { %710 = vst [vmem:[#allocation2 + $0x408] sm:$0xff] %v9586_v22  ;;  %711 = vst [vmem:[#allocation2 + $0x430] sm:$0xff] %v9592_v24 }
  0xd8   :  { %712 = vst [vmem:[#allocation2 + $0x438] sm:$0xff] %v9612_v30  ;;  %713 = vst [vmem:[#allocation2 + $0x460] sm:$0xff] %v9618_v31  ;;  %v776_v33 = vld [vmem:[#allocation2 + $0x30a] sm:$0xff] }
  0xd9   :  { %714 = vst [vmem:[#allocation2 + $0x468] sm:$0xff] %v9627_v34  ;;  %715 = vst [vmem:[#allocation2 + $0x490] sm:$0xff] %v9637_v37  ;;  %1530 = vmatmul.mubr.f32.gmra.mrb[24].mxu0 %v776_v33  ;;  %v777_v43 = vld [vmem:[#allocation2 + $0x312] sm:$0xff]  ;;  %v778_v50 = vld [vmem:[#allocation2 + $0x33a] sm:$0xff]  ;;  %v7829_v33 = vpack.c.bf16 %v3500_v28, %v3499_v26 }
  0xda   :  { %716 = vst [vmem:[#allocation2 + $0x498] sm:$0xff] %v9642_v38  ;;  %717 = vst [vmem:[#allocation2 + $0x4c0] sm:$0xff] %v9656_v41  ;;  %1534 = vmatprep.mubr.f32.mxu0 %v9491_v60  ;;  %v779_v53 = vld [vmem:[#allocation2 + $0x342] sm:$0xff]  ;;  %v780_v57 = vld [vmem:[#allocation2 + $0x36a] sm:$0xff] }
  0xdb   :  { %718 = vst [vmem:[#allocation2 + $0x4c8] sm:$0xff] %v9676_v48  ;;  %731 = vst [vmem:[#allocation2 + $0xc10] sm:$0xff] %v9810_v27  ;;  %v781_v4 = vld [vmem:[#allocation2 + $0x372] sm:$0xff]  ;;  %v782_v16 = vld [vmem:[#allocation2 + $0x39a] sm:$0xff]  ;;  %7830 = vmatpush1.bf16.msra.mxu1 %v7829_v33 }
  0xdc   :  { %732 = vst [vmem:[#allocation2 + $0xc18] sm:$0xff] %v9819_v32  ;;  %733 = vst [vmem:[#allocation2 + $0xc40] sm:$0xff] %v9833_v42  ;;  %v783_v20 = vld [vmem:[#allocation2 + $0x3a2] sm:$0xff]  ;;  %v784_v25 = vld [vmem:[#allocation2 + $0x3ca] sm:$0xff]  ;;  %7831 = vmatprep.subr.bf16.mxu1 %v8886_v0 }
  0xdd   :  { %1535 = vmatmul.mubr.f32.gmra.mrb[26].mxu0 %v777_v43  ;;  %734 = vst [vmem:[#allocation2 + $0xc48] sm:$0xff] %v9848_v49  ;;  %735 = vst [vmem:[#allocation2 + $0xc70] sm:$0xff] %v9857_v52  ;;  %v785_v35 = vld [vmem:[#allocation2 + $0x3d2] sm:$0xff]  ;;  %v7664_v43 = vpack.c.bf16 %v1336_v39, %v1335_v36  ;;  %v786_v47 = vld [vmem:[#allocation2 + $0x3fa] sm:$0xff] }
  0xde   :  { %1539 = vmatprep.mubr.f32.mxu0 %v9504_v63  ;;  %736 = vst [vmem:[#allocation2 + $0xc78] sm:$0xff] %v9865_v55  ;;  %737 = vst [vmem:[#allocation2 + $0xca0] sm:$0xff] %v9879_v3  ;;  %v10006_v17 = vld [vmem:[#allocation2 + $0x30c] sm:$0xff]  ;;  %v10024_v28 = vld [vmem:[#allocation2 + $0x334] sm:$0xff] }
  0xdf   :  { %738 = vst [vmem:[#allocation2 + $0xca8] sm:$0xff] %v9894_v14  ;;  %739 = vst [vmem:[#allocation2 + $0xcd0] sm:$0xff] %v9903_v18  ;;  %7665 = vmatpush1.bf16.msra.mxu0 %v7664_v43  ;;  %v790_v26 = vld [vmem:[#allocation2 + $0x45a] sm:$0xff]  ;;  %v3512_v33 = vld [vmem:[%s12970_s4 + $0x1a8] sm:$0xff] }
  0xe0   :  { %740 = vst [vmem:[#allocation2 + $0xcd8] sm:$0xff] %v9911_v23  ;;  %742 = vst [vmem:[#allocation2 + $0xd08] sm:$0xff] %v9946_v46  ;;  %7666 = vmatprep.subr.bf16.mxu0 %v8886_v0  ;;  %v10043_v36 = vld [vmem:[#allocation2 + $0x33c] sm:$0xff]  ;;  %v3513_v39 = vld [vmem:[%s12970_s4 + $0x1b0] sm:$0xff] }
  0xe1   :  { %1540 = vmatmul.mubr.f32.gmra.mrb[28].mxu0 %v778_v50  ;;  %v2968_v50 = vld [vmem:[#allocation2 + $0x2d4] sm:$0xff]  ;;  %743 = vst [vmem:[#allocation2 + $0xd30] sm:$0xff] %v9962_v54  ;;  %745 = vst [vmem:[#allocation2 + $0xd60] sm:$0xff] %v9994_v10  ;;  %v10055_v43 = vld [vmem:[%s12971_s0 + $0x188] sm:$0xff] }
  0xe2   :  { %1544 = vmatprep.mubr.f32.mxu0 %v9510_v1  ;;  %3762 = vmatmul.mubr.f32.gmra.mrb[44].mxu1 %v2968_v50  ;;  %748 = vst [vmem:[#allocation2 + $0xd98] sm:$0xff] %v10055_v43  ;;  %v1339_v50 = vld [vmem:[%s12969_s3 + $0x1f0] sm:$0xff]  ;;  %v794_v59 = vld [vmem:[#allocation2 + $0x4ba] sm:$0xff] }
  0xe3   :  { %3766 = vmatprep.mubr.f32.mxu1 %v9364_v8  ;;  %v788_v8 = vld [vmem:[#allocation2 + $0x42a] sm:$0xff] }
  0xe5   :  { %1545 = vmatmul.mubr.f32.gmra.mrb[30].mxu0 %v779_v53  ;;  %v3504_v53 = vld [vmem:[%s12970_s4 + $0x168] sm:$0xff] }
  0xe6   :  { %1549 = vmatprep.mubr.f32.mxu0 %v9515_v2  ;;  %3767 = vmatmul.mubr.f32.gmra.mrb[46].mxu1 %v2969_v58 }
  0xe7   :  { %3771 = vmatprep.mubr.f32.mxu1 %v9478_v56  ;;  %v789_v56 = vld [vmem:[#allocation2 + $0x432] sm:$0xff] }
  0xe9   :  { %1550 = vmatmul.mubr.f32.gmra.mrb[32].mxu0 %v780_v57  ;;  %v787_v57 = vld [vmem:[#allocation2 + $0x402] sm:$0xff] }
  0xea   :  { %1554 = vmatprep.mubr.f32.mxu0 %v9529_v7 }
  0xed   :  { %1555 = vmatmul.mubr.f32.gmra.mrb[34].mxu0 %v781_v4  ;;  %v9982_v4 = vld [vmem:[#allocation2 + $0x304] sm:$0xff] }
  0xee   :  { %1559 = vmatprep.mubr.f32.mxu0 %v9534_v9  ;;  %3772 = vmatmul.mubr.f32.gmra.mrb[48].mxu1 %v9982_v4 }
  0xef   :  { %3776 = vmatprep.mubr.f32.mxu1 %v9491_v60  ;;  %v10018_v60 = vld [vmem:[%s12971_s0 + $0x178] sm:$0xff] }
  0xf0   :  { %746 = vst [vmem:[#allocation2 + $0xd68] sm:$0xff] %v10018_v60 }
  0xf1   :  { %1560 = vmatmul.mubr.f32.gmra.mrb[36].mxu0 %v782_v16  ;;  %v1338_v16 = vld [vmem:[%s12969_s3 + $0x1e8] sm:$0xff] }
  0xf2   :  { %1564 = vmatprep.mubr.f32.mxu0 %v9548_v12  ;;  %3777 = vmatmul.mubr.f32.gmra.mrb[50].mxu1 %v10006_v17 }
  0xf3   :  { %3781 = vmatprep.mubr.f32.mxu1 %v9504_v63  ;;  %v10037_v63 = vld [vmem:[%s12971_s0 + $0x180] sm:$0xff] }
  0xf4   :  { %747 = vst [vmem:[#allocation2 + $0xd90] sm:$0xff] %v10037_v63 }
  0xf5   :  { %1565 = vmatmul.mubr.f32.gmra.mrb[38].mxu0 %v783_v20  ;;  %v7667_v20 = vpack.c.bf16 %v1338_v16, %v1337_v11  ;;  %v2978_v11 = vld [vmem:[#allocation2 + $0x9c4] sm:$0xff]  ;;  %v797_v16 = vld [vmem:[#allocation2 + $0xaf2] sm:$0xff] }
  0xf6   :  { %1569 = vmatprep.mubr.f32.mxu0 %v9554_v13  ;;  %v9925_v13 = vld [vmem:[%s12971_s0 + $0x150] sm:$0xff]  ;;  %3782 = vmatmul.mubr.f32.gmra.mrb[52].mxu1 %v10024_v28 }
  0xf7   :  { %741 = vst [vmem:[#allocation2 + $0xd00] sm:$0xff] %v9925_v13  ;;  %7668 = vmatpush1.bf16.msra.mxu0 %v7667_v20  ;;  %3786 = vmatprep.mubr.f32.mxu1 %v9510_v1  ;;  %v792_v1 = vld [vmem:[#allocation2 + $0x48a] sm:$0xff] }
  0xf8   :  { %7669 = vmatprep.subr.bf16.mxu0 %v8886_v0  ;;  %v2979_v20 = vld [vmem:[#allocation2 + $0x9cc] sm:$0xff] }
  0xf9   :  { %1570 = vmatmul.mubr.f32.gmra.mrb[40].mxu0 %v784_v25 }
  0xfa   :  { %1574 = vmatprep.mubr.f32.mxu0 %v9560_v15  ;;  %v3501_v15 = vld [vmem:[%s12970_s4 + $0x150] sm:$0xff]  ;;  %3787 = vmatmul.mubr.f32.gmra.mrb[54].mxu1 %v10043_v36 }
  0xfb   :  { %v7832_v45 = vpack.c.bf16 %v3502_v44, %v3501_v15  ;;  %3791 = vmatprep.mubr.f32.mxu1 %v9515_v2  ;;  %v10061_v15 = vld [vmem:[#allocation2 + $0x364] sm:$0xff]  ;;  %v793_v2 = vld [vmem:[#allocation2 + $0x492] sm:$0xff] }
  0xfc   :  { %v3515_v44 = vld [vmem:[%s12970_s4 + $0x1c0] sm:$0xff] }
  0xfd   :  { %1575 = vmatmul.mubr.f32.gmra.mrb[42].mxu0 %v785_v35  ;;  %7833 = vmatpush1.bf16.msra.mxu1 %v7832_v45  ;;  %v791_v35 = vld [vmem:[#allocation2 + $0x462] sm:$0xff] }
  0xfe   :  { %1579 = vmatprep.mubr.f32.mxu0 %v9573_v19  ;;  %7834 = vmatprep.subr.bf16.mxu1 %v8886_v0  ;;  %v7835_v19 = vpack.c.bf16 %v3504_v53, %v3503_v51  ;;  %v3516_v45 = vld [vmem:[%s12970_s4 + $0x1c8] sm:$0xff]  ;;  %v1340_v51 = vld [vmem:[%s12969_s3 + $0x1f8] sm:$0xff] }
  0xff   :  { %3792 = vmatmul.mubr.f32.gmra.mrb[56].mxu1 %v10061_v15  ;;  %v10085_v53 = vld [vmem:[#allocation2 + $0x36c] sm:$0xff] }
 0x100   :  { %3796 = vmatprep.mubr.f32.mxu1 %v9529_v7  ;;  %v10097_v7 = vld [vmem:[%s12971_s0 + $0x198] sm:$0xff] }
 0x101   :  { %1580 = vmatmul.mubr.f32.gmra.mrb[44].mxu0 %v786_v47  ;;  %7836 = vmatpush1.bf16.msra.mxu1 %v7835_v19  ;;  %v10073_v47 = vld [vmem:[%s12971_s0 + $0x190] sm:$0xff]  ;;  %v7670_v19 = vpack.c.bf16 %v1340_v51, %v1339_v50  ;;  %750 = vst [vmem:[#allocation2 + $0xdc8] sm:$0xff] %v10097_v7  ;;  %v806_v50 = vld [vmem:[#allocation2 + $0xbda] sm:$0xff] }
 0x102   :  { %1584 = vmatprep.mubr.f32.mxu0 %v9586_v22  ;;  %7837 = vmatprep.subr.bf16.mxu1 %v8886_v0  ;;  %v9977_v22 = vld [vmem:[%s12971_s0 + $0x168] sm:$0xff]  ;;  %749 = vst [vmem:[#allocation2 + $0xdc0] sm:$0xff] %v10073_v47  ;;  %v2988_v51 = vld [vmem:[#allocation2 + $0xab4] sm:$0xff] }
 0x103   :  { %744 = vst [vmem:[#allocation2 + $0xd38] sm:$0xff] %v9977_v22  ;;  %3797 = vmatmul.mubr.f32.gmra.mrb[58].mxu1 %v10085_v53  ;;  %7671 = vmatpush1.bf16.msra.mxu0 %v7670_v19  ;;  %v807_v19 = vld [vmem:[#allocation2 + $0xbe2] sm:$0xff] }
 0x104   :  { %3801 = vmatprep.mubr.f32.mxu1 %v9534_v9  ;;  %7672 = vmatprep.subr.bf16.mxu0 %v8886_v0  ;;  %v795_v9 = vld [vmem:[#allocation2 + $0x4c2] sm:$0xff] }
 0x105   :  { %1585 = vmatmul.mubr.f32.gmra.mrb[46].mxu0 %v787_v57  ;;  %7839 = vmatpush1.bf16.msra.mxu1 %v7838_v62  ;;  %v3518_v57 = vld [vmem:[%s12970_s4 + $0x1d8] sm:$0xff]  ;;  %v3519_v62 = vld [vmem:[%s12970_s4 + $0x1e0] sm:$0xff] }
 0x106   :  { %1589 = vmatprep.mubr.f32.mxu0 %v9592_v24  ;;  %7840 = vmatprep.subr.bf16.mxu1 %v8886_v0  ;;  %v7841_v24 = vpack.c.bf16 %v3508_v6, %v3507_v5  ;;  %v10116_v5 = vld [vmem:[#allocation2 + $0x39c] sm:$0xff]  ;;  %v3521_v6 = vld [vmem:[%s12970_s4 + $0x1f0] sm:$0xff] }
 0x107   :  { %3802 = vmatmul.mubr.f32.gmra.mrb[60].mxu1 %v10103_v61 }
 0x108   :  { %3806 = vmatprep.mubr.f32.mxu1 %v9548_v12  ;;  %v796_v12 = vld [vmem:[#allocation2 + $0xaea] sm:$0xff] }
 0x109   :  { %1590 = vmatmul.mubr.f32.gmra.mrb[48].mxu0 %v788_v8  ;;  %7842 = vmatpush1.bf16.msra.mxu1 %v7841_v24  ;;  %v3520_v8 = vld [vmem:[%s12970_s4 + $0x1e8] sm:$0xff]  ;;  %v3522_v24 = vld [vmem:[%s12970_s4 + $0x1f8] sm:$0xff] }
 0x10a   :  { %1594 = vmatprep.mubr.f32.mxu0 %v9612_v30  ;;  %v3509_v30 = vld [vmem:[%s12970_s4 + $0x190] sm:$0xff]  ;;  %7843 = vmatprep.subr.bf16.mxu1 %v8886_v0 }
 0x10b   :  { %v7844_v25 = vpack.c.bf16 %v3510_v21, %v3509_v30  ;;  %3807 = vmatmul.mubr.f32.gmra.mrb[62].mxu1 %v10116_v5  ;;  %v798_v30 = vld [vmem:[#allocation2 + $0xb1a] sm:$0xff] }
 0x10c   :  { %v2980_v21 = vld [vmem:[#allocation2 + $0x9f4] sm:$0xff] }
 0x10d   :  { %1595 = vmatmul.mubr.f32.gmra.mrb[50].mxu0 %v789_v56  ;;  %7845 = vmatpush1.bf16.msra.mxu1 %v7844_v25  ;;  %v7862_v56 = vpack.c.bf16 %v3522_v24, %v3521_v6  ;;  %v799_v25 = vld [vmem:[#allocation2 + $0xb22] sm:$0xff]  ;;  %v812_v24 = vld [vmem:[#allocation2 + $0xc6a] sm:$0xff] }
 0x10e   :  { %1599 = vmatprep.mubr.f32.mxu0 %v9618_v31  ;;  %7846 = vmatprep.subr.bf16.mxu1 %v8886_v0  ;;  %v7847_v31 = vpack.c.bf16 %v3512_v33, %v3511_v29  ;;  %v800_v29 = vld [vmem:[#allocation2 + $0xb4a] sm:$0xff]  ;;  %v2993_v6 = vld [vmem:[#allocation2 + $0xb1c] sm:$0xff] }
 0x10f   :  { %v2982_v33 = vld [vmem:[#allocation2 + $0xa24] sm:$0xff] }
 0x111   :  { %1600 = vmatmul.mubr.f32.gmra.mrb[52].mxu0 %v790_v26  ;;  %7848 = vmatpush1.bf16.msra.mxu1 %v7847_v31  ;;  %v2981_v26 = vld [vmem:[#allocation2 + $0x9fc] sm:$0xff]  ;;  %v801_v31 = vld [vmem:[#allocation2 + $0xb52] sm:$0xff] }
 0x112   :  { %1604 = vmatprep.mubr.f32.mxu0 %v9627_v34  ;;  %7849 = vmatprep.subr.bf16.mxu1 %v8886_v0  ;;  %v7850_v34 = vpack.c.bf16 %v3514_v40, %v3513_v39  ;;  %v802_v39 = vld [vmem:[#allocation2 + $0xb7a] sm:$0xff] }
 0x113   :  { %v2984_v40 = vld [vmem:[#allocation2 + $0xa54] sm:$0xff] }
 0x115   :  { %1605 = vmatmul.mubr.f32.gmra.mrb[54].mxu0 %v791_v35  ;;  %7851 = vmatpush1.bf16.msra.mxu1 %v7850_v34  ;;  %v2983_v35 = vld [vmem:[#allocation2 + $0xa2c] sm:$0xff]  ;;  %v803_v34 = vld [vmem:[#allocation2 + $0xb82] sm:$0xff] }
 0x116   :  { %1609 = vmatprep.mubr.f32.mxu0 %v9637_v37  ;;  %7852 = vmatprep.subr.bf16.mxu1 %v8886_v0  ;;  %v7853_v37 = vpack.c.bf16 %v3516_v45, %v3515_v44  ;;  %v804_v44 = vld [vmem:[#allocation2 + $0xbaa] sm:$0xff] }
 0x117   :  { %v2986_v45 = vld [vmem:[#allocation2 + $0xa84] sm:$0xff] }
 0x119   :  { %1610 = vmatmul.mubr.f32.gmra.mrb[56].mxu0 %v792_v1  ;;  %7854 = vmatpush1.bf16.msra.mxu1 %v7853_v37  ;;  %v2985_v1 = vld [vmem:[#allocation2 + $0xa5c] sm:$0xff]  ;;  %v805_v37 = vld [vmem:[#allocation2 + $0xbb2] sm:$0xff] }
 0x11a   :  { %1614 = vmatprep.mubr.f32.mxu0 %v9642_v38  ;;  %v3517_v38 = vld [vmem:[%s12970_s4 + $0x1d0] sm:$0xff]  ;;  %7855 = vmatprep.subr.bf16.mxu1 %v8886_v0 }
 0x11b   :  { %v7856_v58 = vpack.c.bf16 %v3518_v57, %v3517_v38  ;;  %v2989_v38 = vld [vmem:[#allocation2 + $0xabc] sm:$0xff]  ;;  %v808_v57 = vld [vmem:[#allocation2 + $0xc0a] sm:$0xff] }
 0x11d   :  { %1615 = vmatmul.mubr.f32.gmra.mrb[58].mxu0 %v793_v2  ;;  %7857 = vmatpush1.bf16.msra.mxu1 %v7856_v58  ;;  %v2987_v2 = vld [vmem:[#allocation2 + $0xa8c] sm:$0xff]  ;;  %v2990_v58 = vld [vmem:[#allocation2 + $0xae4] sm:$0xff] }
 0x11e   :  { %1619 = vmatprep.mubr.f32.mxu0 %v9656_v41  ;;  %7858 = vmatprep.subr.bf16.mxu1 %v8886_v0  ;;  %v7859_v41 = vpack.c.bf16 %v3520_v8, %v3519_v62  ;;  %v2991_v62 = vld [vmem:[#allocation2 + $0xaec] sm:$0xff]  ;;  %v810_v8 = vld [vmem:[#allocation2 + $0xc3a] sm:$0xff] }
 0x121   :  { %1620 = vmatmul.mubr.f32.gmra.mrb[60].mxu0 %v794_v59  ;;  %7860 = vmatpush1.bf16.msra.mxu1 %v7859_v41  ;;  %v809_v59 = vld [vmem:[#allocation2 + $0xc12] sm:$0xff] }
 0x122   :  { %1624 = vmatprep.mubr.f32.mxu0 %v9676_v48  ;;  %7861 = vmatprep.subr.bf16.mxu1 %v8886_v0  ;;  %v10126_v48 = vld [vmem:[#allocation2] sm:$0xff]  ;;  %v2992_v41 = vld [vmem:[#allocation2 + $0xb14] sm:$0xff] }
 0x123   :  { %3811 = vmatprep.mubr.f32.mxu1 %v10126_v48 }
 0x124   :  { %3812 = vmatmul.mubr.f32.gmra.mrb[64].mxu1 %v2978_v11  ;;  %v2995_v11 = vld [vmem:[#allocation2 + $0xb4c] sm:$0xff] }
 0x125   :  { %1625 = vmatmul.mubr.f32.gmra.mrb[62].mxu0 %v795_v9  ;;  %7863 = vmatpush1.bf16.msra.mxu1 %v7862_v56  ;;  %v811_v9 = vld [vmem:[#allocation2 + $0xc42] sm:$0xff] }
 0x126   :  { %1629 = vmatprep.mubr.f32.mxu0 %v10126_v48  ;;  %7864 = vmatprep.subr.bf16.mxu1 %v8886_v0  ;;  %v2994_v56 = vld [vmem:[#allocation2 + $0xb44] sm:$0xff] }
 0x127   :  { %3816 = vmatprep.mubr.f32.mxu1 %v10126_v48 }
 0x128   :  { %3817 = vmatmul.mubr.f32.gmra.mrb[66].mxu1 %v2979_v20  ;;  %v2996_v20 = vld [vmem:[#allocation2 + $0xb74] sm:$0xff] }
 0x129   :  { %1630 = vmatmul.mubr.f32.gmra.mrb[64].mxu0 %v796_v12  ;;  %3821 = vmatprep.mubr.f32.mxu1 %v10126_v48  ;;  %v813_v12 = vld [vmem:[#allocation2 + $0xc72] sm:$0xff] }
 0x12a   :  { %1634 = vmatprep.mubr.f32.mxu0 %v10126_v48 }
 0x12c   :  { %3822 = vmatmul.mubr.f32.gmra.mrb[68].mxu1 %v2980_v21  ;;  %v815_v21 = vld [vmem:[#allocation2 + $0xca2] sm:$0xff] }
 0x12d   :  { %1635 = vmatmul.mubr.f32.gmra.mrb[66].mxu0 %v797_v16  ;;  %3826 = vmatprep.mubr.f32.mxu1 %v10126_v48  ;;  %v814_v16 = vld [vmem:[#allocation2 + $0xc9a] sm:$0xff] }
 0x12e   :  { %1639 = vmatprep.mubr.f32.mxu0 %v10126_v48 }
 0x130   :  { %3827 = vmatmul.mubr.f32.gmra.mrb[70].mxu1 %v2981_v26  ;;  %v47_v26 = vld [vmem:[%s12971_s0 + $0xa8] sm:$0xff] }
 0x131   :  { %1640 = vmatmul.mubr.f32.gmra.mrb[68].mxu0 %v798_v30  ;;  %3831 = vmatprep.mubr.f32.mxu1 %v10126_v48  ;;  %v46_v30 = vld [vmem:[%s12971_s0 + $0xa0] sm:$0xff]  ;;  %720 = vst [vmem:[#allocation2 + $0x4f8] sm:$0xff] %v47_v26  ;;  %v960_v26 = vld [vmem:[#allocation2 + $0x36a] sm:$0xff] }
 0x132   :  { %1644 = vmatprep.mubr.f32.mxu0 %v10126_v48  ;;  %719 = vst [vmem:[#allocation2 + $0x4f0] sm:$0xff] %v46_v30  ;;  %v1347_v30 = vld [vmem:[%s12969_s3 + $0x230] sm:$0xff] }
 0x134   :  { %3832 = vmatmul.mubr.f32.gmra.mrb[72].mxu1 %v2982_v33  ;;  %v2998_v33 = vld [vmem:[#allocation2 + $0xba4] sm:$0xff] }
 0x135   :  { %1645 = vmatmul.mubr.f32.gmra.mrb[70].mxu0 %v799_v25  ;;  %3836 = vmatprep.mubr.f32.mxu1 %v10126_v48  ;;  %v2997_v25 = vld [vmem:[#allocation2 + $0xb7c] sm:$0xff] }
 0x136   :  { %1649 = vmatprep.mubr.f32.mxu0 %v10126_v48 }
 0x138   :  { %3837 = vmatmul.mubr.f32.gmra.mrb[74].mxu1 %v2983_v35  ;;  %v817_v35 = vld [vmem:[#allocation2 + $0xcd2] sm:$0xff] }
 0x139   :  { %1650 = vmatmul.mubr.f32.gmra.mrb[72].mxu0 %v800_v29  ;;  %3841 = vmatprep.mubr.f32.mxu1 %v10126_v48  ;;  %v816_v29 = vld [vmem:[#allocation2 + $0xcca] sm:$0xff] }
 0x13a   :  { %1654 = vmatprep.mubr.f32.mxu0 %v10126_v48 }
 0x13c   :  { %3842 = vmatmul.mubr.f32.gmra.mrb[76].mxu1 %v2984_v40  ;;  %v818_v40 = vld [vmem:[#allocation2 + $0xcfa] sm:$0xff] }
 0x13d   :  { %1655 = vmatmul.mubr.f32.gmra.mrb[74].mxu0 %v801_v31  ;;  %3846 = vmatprep.mubr.f32.mxu1 %v10126_v48  ;;  %v48_v31 = vld [vmem:[%s12971_s0 + $0xb0] sm:$0xff] }
 0x13e   :  { %1659 = vmatprep.mubr.f32.mxu0 %v10126_v48  ;;  %721 = vst [vmem:[#allocation2 + $0x520] sm:$0xff] %v48_v31  ;;  %v1350_v31 = vld [vmem:[%s12969_s3 + $0x248] sm:$0xff] }
 0x140   :  { %3847 = vmatmul.mubr.f32.gmra.mrb[78].mxu1 %v2985_v1  ;;  %v819_v1 = vld [vmem:[#allocation2 + $0xd02] sm:$0xff] }
 0x141   :  { %1660 = vmatmul.mubr.f32.gmra.mrb[76].mxu0 %v802_v39  ;;  %3851 = vmatprep.mubr.f32.mxu1 %v10126_v48  ;;  %v2999_v39 = vld [vmem:[#allocation2 + $0xbac] sm:$0xff] }
 0x142   :  { %1664 = vmatprep.mubr.f32.mxu0 %v10126_v48 }
 0x144   :  { %3852 = vmatmul.mubr.f32.gmra.mrb[80].mxu1 %v2986_v45  ;;  %v820_v45 = vld [vmem:[#allocation2 + $0xd2a] sm:$0xff] }
 0x145   :  { %1665 = vmatmul.mubr.f32.gmra.mrb[78].mxu0 %v803_v34  ;;  %3856 = vmatprep.mubr.f32.mxu1 %v10126_v48  ;;  %v3000_v34 = vld [vmem:[#allocation2 + $0xbd4] sm:$0xff] }
 0x146   :  { %1669 = vmatprep.mubr.f32.mxu0 %v10126_v48 }
 0x148   :  { %3857 = vmatmul.mubr.f32.gmra.mrb[82].mxu1 %v2987_v2  ;;  %v10205_v2 = vld [vmem:[#allocation2 + $0xc0c] sm:$0xff] }
 0x149   :  { %1670 = vmatmul.mubr.f32.gmra.mrb[80].mxu0 %v804_v44  ;;  %3861 = vmatprep.mubr.f32.mxu1 %v10126_v48  ;;  %v3001_v44 = vld [vmem:[#allocation2 + $0xbdc] sm:$0xff] }
 0x14a   :  { %1674 = vmatprep.mubr.f32.mxu0 %v10126_v48 }
 0x14c   :  { %3862 = vmatmul.mubr.f32.gmra.mrb[84].mxu1 %v2988_v51  ;;  %v10221_v51 = vld [vmem:[#allocation2 + $0xc3c] sm:$0xff] }
 0x14d   :  { %1675 = vmatmul.mubr.f32.gmra.mrb[82].mxu0 %v805_v37  ;;  %3866 = vmatprep.mubr.f32.mxu1 %v10126_v48  ;;  %v10197_v37 = vld [vmem:[#allocation2 + $0xc04] sm:$0xff] }
 0x14e   :  { %1679 = vmatprep.mubr.f32.mxu0 %v10126_v48 }
 0x150   :  { %3867 = vmatmul.mubr.f32.gmra.mrb[86].mxu1 %v2989_v38  ;;  %v10237_v38 = vld [vmem:[#allocation2 + $0xc6c] sm:$0xff] }
 0x151   :  { %1680 = vmatmul.mubr.f32.gmra.mrb[84].mxu0 %v806_v50  ;;  %3871 = vmatprep.mubr.f32.mxu1 %v10126_v48  ;;  %v10213_v50 = vld [vmem:[#allocation2 + $0xc34] sm:$0xff] }
 0x152   :  { %1684 = vmatprep.mubr.f32.mxu0 %v10126_v48 }
 0x154   :  { %3872 = vmatmul.mubr.f32.gmra.mrb[88].mxu1 %v2990_v58  ;;  %v956_v58 = vld [vmem:[#allocation2 + $0x30a] sm:$0xff] }
 0x155   :  { %1685 = vmatmul.mubr.f32.gmra.mrb[86].mxu0 %v807_v19  ;;  %3876 = vmatprep.mubr.f32.mxu1 %v10126_v48  ;;  %v10229_v19 = vld [vmem:[#allocation2 + $0xc64] sm:$0xff] }
 0x156   :  { %1689 = vmatprep.mubr.f32.mxu0 %v9810_v27 }
 0x158   :  { %3877 = vmatmul.mubr.f32.gmra.mrb[90].mxu1 %v2991_v62  ;;  %v3074_v62 = vld [vmem:[#allocation2 + $0xdc] sm:$0xff] }
 0x159   :  { %1690 = vmatmul.mubr.f32.gmra.mrb[88].mxu0 %v808_v57  ;;  %3881 = vmatprep.mubr.f32.mxu1 %v10126_v48  ;;  %v10245_v57 = vld [vmem:[#allocation2 + $0xc94] sm:$0xff] }
 0x15a   :  { %1694 = vmatprep.mubr.f32.mxu0 %v9819_v32 }
 0x15c   :  { %3882 = vmatmul.mubr.f32.gmra.mrb[92].mxu1 %v2992_v41  ;;  %v1344_v41 = vld [vmem:[%s12969_s3 + $0x218] sm:$0xff] }
 0x15d   :  { %1695 = vmatmul.mubr.f32.gmra.mrb[90].mxu0 %v809_v59  ;;  %3886 = vmatprep.mubr.f32.mxu1 %v10126_v48  ;;  %v892_v59 = vld [vmem:[#allocation2 + $0x1f6] sm:$0xff] }
 0x15e   :  { %1699 = vmatprep.mubr.f32.mxu0 %v9833_v42 }
 0x160   :  { %3887 = vmatmul.mubr.f32.gmra.mrb[94].mxu1 %v2993_v6  ;;  %v3075_v6 = vld [vmem:[#allocation2 + $0xe4] sm:$0xff] }
 0x161   :  { %1700 = vmatmul.mubr.f32.gmra.mrb[92].mxu0 %v810_v8  ;;  %3891 = vmatprep.mubr.f32.mxu1 %v10126_v48  ;;  %v957_v8 = vld [vmem:[#allocation2 + $0x312] sm:$0xff] }
 0x162   :  { %1704 = vmatprep.mubr.f32.mxu0 %v9848_v49 }
 0x164   :  { %3892 = vmatmul.mubr.f32.gmra.mrb[96].mxu1 %v2994_v56  ;;  %v1345_v56 = vld [vmem:[%s12969_s3 + $0x220] sm:$0xff] }
 0x165   :  { %1705 = vmatmul.mubr.f32.gmra.mrb[94].mxu0 %v811_v9  ;;  %3896 = vmatprep.mubr.f32.mxu1 %v10126_v48  ;;  %v893_v9 = vld [vmem:[#allocation2 + $0x1fe] sm:$0xff] }
 0x166   :  { %1709 = vmatprep.mubr.f32.mxu0 %v9857_v52 }
 0x168   :  { %3897 = vmatmul.mubr.f32.gmra.mrb[98].mxu1 %v2995_v11  ;;  %v894_v11 = vld [vmem:[#allocation2 + $0x226] sm:$0xff] }
 0x169   :  { %1710 = vmatmul.mubr.f32.gmra.mrb[96].mxu0 %v812_v24  ;;  %3901 = vmatprep.mubr.f32.mxu1 %v10126_v48  ;;  %v958_v24 = vld [vmem:[#allocation2 + $0x33a] sm:$0xff] }
 0x16a   :  { %1714 = vmatprep.mubr.f32.mxu0 %v9865_v55 }
 0x16c   :  { %3902 = vmatmul.mubr.f32.gmra.mrb[100].mxu1 %v2996_v20 }
 0x16d   :  { %1715 = vmatmul.mubr.f32.gmra.mrb[98].mxu0 %v813_v12  ;;  %3906 = vmatprep.mubr.f32.mxu1 %v10126_v48  ;;  %v1346_v12 = vld [vmem:[%s12969_s3 + $0x228] sm:$0xff] }
 0x16e   :  { %1719 = vmatprep.mubr.f32.mxu0 %v9879_v3  ;;  %v7679_v20 = vpack.c.bf16 %v1346_v12, %v1345_v56  ;;  %v3148_v12 = vld [vmem:[#allocation2 + $0x3f4] sm:$0xff] }
 0x170   :  { %3907 = vmatmul.mubr.f32.gmra.mrb[102].mxu1 %v2997_v25  ;;  %v895_v25 = vld [vmem:[#allocation2 + $0x22e] sm:$0xff] }
 0x171   :  { %1720 = vmatmul.mubr.f32.gmra.mrb[100].mxu0 %v814_v16  ;;  %3911 = vmatprep.mubr.f32.mxu1 %v10126_v48  ;;  %v959_v16 = vld [vmem:[#allocation2 + $0x342] sm:$0xff] }
 0x172   :  { %1724 = vmatprep.mubr.f32.mxu0 %v9894_v14 }
 0x174   :  { %3912 = vmatmul.mubr.f32.gmra.mrb[104].mxu1 %v2998_v33  ;;  %v1349_v33 = vld [vmem:[%s12969_s3 + $0x240] sm:$0xff] }
 0x175   :  { %1725 = vmatmul.mubr.f32.gmra.mrb[102].mxu0 %v815_v21  ;;  %3916 = vmatprep.mubr.f32.mxu1 %v10126_v48  ;;  %v1348_v21 = vld [vmem:[%s12969_s3 + $0x238] sm:$0xff] }
 0x176   :  { %1729 = vmatprep.mubr.f32.mxu0 %v9903_v18  ;;  %v49_v18 = vld [vmem:[%s12971_s0 + $0xb8] sm:$0xff] }
 0x177   :  { %722 = vst [vmem:[#allocation2 + $0x528] sm:$0xff] %v49_v18  ;;  %v3078_v18 = vld [vmem:[#allocation2 + $0x13c] sm:$0xff] }
 0x178   :  { %3917 = vmatmul.mubr.f32.gmra.mrb[106].mxu1 %v2999_v39  ;;  %v3524_v39 = vld [vmem:[%s12970_s4 + $0x208] sm:$0xff] }
 0x179   :  { %1730 = vmatmul.mubr.f32.gmra.mrb[104].mxu0 %v816_v29  ;;  %3921 = vmatprep.mubr.f32.mxu1 %v10126_v48  ;;  %v7682_v29 = vpack.c.bf16 %v1348_v21, %v1347_v30  ;;  %v967_v30 = vld [vmem:[#allocation2 + $0x402] sm:$0xff] }
 0x17a   :  { %1734 = vmatprep.mubr.f32.mxu0 %v9911_v23  ;;  %v50_v23 = vld [vmem:[%s12971_s0 + $0xc0] sm:$0xff] }
 0x17b   :  { %723 = vst [vmem:[#allocation2 + $0x550] sm:$0xff] %v50_v23 }
 0x17c   :  { %3922 = vmatmul.mubr.f32.gmra.mrb[108].mxu1 %v3000_v34  ;;  %v7685_v34 = vpack.c.bf16 %v1350_v31, %v1349_v33  ;;  %v3150_v33 = vld [vmem:[#allocation2 + $0x424] sm:$0xff]  ;;  %v904_v31 = vld [vmem:[#allocation2 + $0x316] sm:$0xff] }
 0x17d   :  { %1735 = vmatmul.mubr.f32.gmra.mrb[106].mxu0 %v817_v35  ;;  %3926 = vmatprep.mubr.f32.mxu1 %v10126_v48  ;;  %v821_v48 = vld [vmem:[#allocation2 + $0xd32] sm:$0xff] }
 0x17e   :  { %1739 = vmatprep.mubr.f32.mxu0 %v9925_v13  ;;  %v51_v13 = vld [vmem:[%s12971_s0 + $0xc8] sm:$0xff]  ;;  %v896_v35 = vld [vmem:[#allocation2 + $0x256] sm:$0xff] }
 0x17f   :  { %724 = vst [vmem:[#allocation2 + $0x558] sm:$0xff] %v51_v13  ;;  %v3079_v13 = vld [vmem:[#allocation2 + $0x144] sm:$0xff] }
 0x180   :  { %3927 = vmatmul.mubr.f32.gmra.mrb[110].mxu1 %v3001_v44  ;;  %v1352_v44 = vld [vmem:[%s12969_s3 + $0x258] sm:$0xff] }
 0x181   :  { %1740 = vmatmul.mubr.f32.gmra.mrb[108].mxu0 %v818_v40  ;;  %3931 = vmatprep.mubr.f32.mxu1 %v9810_v27  ;;  %v53_v27 = vld [vmem:[%s12971_s0 + $0xd8] sm:$0xff] }
 0x182   :  { %1744 = vmatprep.mubr.f32.mxu0 %v9946_v46  ;;  %v52_v46 = vld [vmem:[%s12971_s0 + $0xd0] sm:$0xff]  ;;  %726 = vst [vmem:[#allocation2 + $0x588] sm:$0xff] %v53_v27  ;;  %v1354_v27 = vld [vmem:[%s12969_s3 + $0x268] sm:$0xff] }
 0x183   :  { %725 = vst [vmem:[#allocation2 + $0x580] sm:$0xff] %v52_v46  ;;  %v961_v40 = vld [vmem:[#allocation2 + $0x372] sm:$0xff] }
 0x184   :  { %3932 = vmatmul.mubr.f32.gmra.mrb[112].mxu1 %v10197_v37 }
 0x185   :  { %1745 = vmatmul.mubr.f32.gmra.mrb[110].mxu0 %v819_v1  ;;  %3936 = vmatprep.mubr.f32.mxu1 %v9819_v32  ;;  %v54_v32 = vld [vmem:[%s12971_s0 + $0xe0] sm:$0xff]  ;;  %v1351_v1 = vld [vmem:[%s12969_s3 + $0x250] sm:$0xff] }
 0x186   :  { %1749 = vmatprep.mubr.f32.mxu0 %v9962_v54  ;;  %v822_v54 = vld [vmem:[#allocation2 + $0xd5a] sm:$0xff]  ;;  %727 = vst [vmem:[#allocation2 + $0x5b0] sm:$0xff] %v54_v32  ;;  %v7688_v46 = vpack.c.bf16 %v1352_v44, %v1351_v1  ;;  %v963_v32 = vld [vmem:[#allocation2 + $0x3a2] sm:$0xff]  ;;  %v1363_v1 = vld [vmem:[%s12969_s3 + $0x2b0] sm:$0xff] }
 0x187   :  { %v1364_v44 = vld [vmem:[%s12969_s3 + $0x2b8] sm:$0xff] }
 0x188   :  { %3937 = vmatmul.mubr.f32.gmra.mrb[114].mxu1 %v10205_v2 }
 0x189   :  { %1750 = vmatmul.mubr.f32.gmra.mrb[112].mxu0 %v820_v45  ;;  %3941 = vmatprep.mubr.f32.mxu1 %v9833_v42  ;;  %v55_v42 = vld [vmem:[%s12971_s0 + $0xe8] sm:$0xff]  ;;  %v962_v45 = vld [vmem:[#allocation2 + $0x39a] sm:$0xff] }
 0x18a   :  { %1754 = vmatprep.mubr.f32.mxu0 %v9977_v22  ;;  %v823_v22 = vld [vmem:[#allocation2 + $0xd62] sm:$0xff]  ;;  %728 = vst [vmem:[#allocation2 + $0x5b8] sm:$0xff] %v55_v42  ;;  %v1355_v42 = vld [vmem:[%s12969_s3 + $0x270] sm:$0xff] }
 0x18c   :  { %3942 = vmatmul.mubr.f32.gmra.mrb[116].mxu1 %v10213_v50 }
 0x18d   :  { %1755 = vmatmul.mubr.f32.gmra.mrb[114].mxu0 %v821_v48  ;;  %3946 = vmatprep.mubr.f32.mxu1 %v9848_v49  ;;  %v56_v49 = vld [vmem:[%s12971_s0 + $0xf0] sm:$0xff]  ;;  %v1353_v48 = vld [vmem:[%s12969_s3 + $0x260] sm:$0xff] }
 0x18e   :  { %1759 = vmatprep.mubr.f32.mxu0 %v9994_v10  ;;  %v824_v10 = vld [vmem:[#allocation2 + $0xd8a] sm:$0xff]  ;;  %729 = vst [vmem:[#allocation2 + $0x5e0] sm:$0xff] %v56_v49 }
 0x18f   :  { %v899_v49 = vld [vmem:[#allocation2 + $0x28e] sm:$0xff] }
 0x190   :  { %3947 = vmatmul.mubr.f32.gmra.mrb[118].mxu1 %v10221_v51 }
 0x191   :  { %1760 = vmatmul.mubr.f32.gmra.mrb[116].mxu0 %v822_v54  ;;  %3951 = vmatprep.mubr.f32.mxu1 %v9857_v52  ;;  %v57_v52 = vld [vmem:[%s12971_s0 + $0xf8] sm:$0xff]  ;;  %v3080_v54 = vld [vmem:[#allocation2 + $0x16c] sm:$0xff] }
 0x192   :  { %1764 = vmatprep.mubr.f32.mxu0 %v10018_v60  ;;  %v825_v60 = vld [vmem:[#allocation2 + $0xd92] sm:$0xff]  ;;  %730 = vst [vmem:[#allocation2 + $0x5e8] sm:$0xff] %v57_v52 }
 0x194   :  { %3952 = vmatmul.mubr.f32.gmra.mrb[120].mxu1 %v10229_v19 }
 0x195   :  { %1765 = vmatmul.mubr.f32.gmra.mrb[118].mxu0 %v823_v22  ;;  %3956 = vmatprep.mubr.f32.mxu1 %v9865_v55  ;;  %v827_v55 = vld [vmem:[#allocation2 + $0xdc2] sm:$0xff]  ;;  %v7691_v22 = vpack.c.bf16 %v1354_v27, %v1353_v48  ;;  %v3088_v27 = vld [vmem:[#allocation2 + $0x22c] sm:$0xff] }
 0x196   :  { %1769 = vmatprep.mubr.f32.mxu0 %v10037_v63  ;;  %v826_v63 = vld [vmem:[#allocation2 + $0xdba] sm:$0xff]  ;;  %v906_v48 = vld [vmem:[#allocation2 + $0x346] sm:$0xff] }
 0x198   :  { %3957 = vmatmul.mubr.f32.gmra.mrb[122].mxu1 %v10237_v38 }
 0x199   :  { %1770 = vmatmul.mubr.f32.gmra.mrb[120].mxu0 %v824_v10  ;;  %3961 = vmatprep.mubr.f32.mxu1 %v9879_v3  ;;  %v1342_v3 = vld [vmem:[%s12969_s3 + $0x208] sm:$0xff]  ;;  %v1356_v10 = vld [vmem:[%s12969_s3 + $0x278] sm:$0xff] }
 0x19a   :  { %1774 = vmatprep.mubr.f32.mxu0 %v10055_v43  ;;  %v10249_v43 = vld [vmem:[#allocation2 + $0xc9c] sm:$0xff]  ;;  %v7694_v52 = vpack.c.bf16 %v1356_v10, %v1355_v42  ;;  %v972_v42 = vld [vmem:[#allocation2 + $0x48a] sm:$0xff] }
 0x19b   :  { %v3154_v10 = vld [vmem:[#allocation2 + $0x484] sm:$0xff] }
 0x19c   :  { %3962 = vmatmul.mubr.f32.gmra.mrb[124].mxu1 %v10245_v57 }
 0x19d   :  { %1775 = vmatmul.mubr.f32.gmra.mrb[122].mxu0 %v825_v60  ;;  %3966 = vmatprep.mubr.f32.mxu1 %v9894_v14  ;;  %v1343_v14 = vld [vmem:[%s12969_s3 + $0x210] sm:$0xff] }
 0x19e   :  { %1779 = vmatprep.mubr.f32.mxu0 %v10073_v47  ;;  %v1341_v47 = vld [vmem:[%s12969_s3 + $0x200] sm:$0xff]  ;;  %v964_v60 = vld [vmem:[#allocation2 + $0x3ca] sm:$0xff] }
 0x1a0   :  { %3967 = vmatmul.mubr.f32.gmra.mrb[126].mxu1 %v10249_v43 }
 0x1a1   :  { %1780 = vmatmul.mubr.f32.gmra.mrb[124].mxu0 %v826_v63  ;;  %4036 = vmatprep.mubr.f32.mxu1 %v9982_v4  ;;  %v7676_v4 = vpack.c.bf16 %v1344_v41, %v1343_v14  ;;  %v3146_v63 = vld [vmem:[#allocation2 + $0x3c4] sm:$0xff]  ;;  %v3147_v14 = vld [vmem:[#allocation2 + $0x3cc] sm:$0xff] }
 0x1a2   :  { %1784 = vmatprep.mubr.f32.mxu0 %v10097_v7  ;;  %v7673_v7 = vpack.c.bf16 %v1342_v3, %v1341_v47  ;;  %v900_v47 = vld [vmem:[#allocation2 + $0x2b6] sm:$0xff] }
 0x1a3   :  { %v3526_v3 = vld [vmem:[%s12970_s4 + $0x218] sm:$0xff]  ;;  %v1359_v41 = vld [vmem:[%s12969_s3 + $0x290] sm:$0xff] }
 0x1a4   :  { %4037 = vmatmul.mubr.f32.vlgmr.msra.gmra.mrb[0].mxu1 %v3074_v62 }
 0x1a5   :  { %1785 = vmatmul.mubr.f32.gmra.mrb[126].mxu0 %v827_v55  ;;  %4041 = vmatprep.mubr.f32.mxu1 %v10006_v17  ;;  %v3076_v17 = vld [vmem:[#allocation2 + $0x10c] sm:$0xff]  ;;  %v1357_v55 = vld [vmem:[%s12969_s3 + $0x280] sm:$0xff] }
 0x1a6   :  { %1854 = vmatprep.mubr.f32.mxu0 %v956_v58  ;;  %v1358_v58 = vld [vmem:[%s12969_s3 + $0x288] sm:$0xff] }
 0x1a7   :  { %v7697_v62 = vpack.c.bf16 %v1358_v58, %v1357_v55  ;;  %v3155_v58 = vld [vmem:[#allocation2 + $0x48c] sm:$0xff] }
 0x1a8   :  { %4042 = vmatmul.mubr.f32.gmra.mrb[2].mxu1 %v3075_v6  ;;  %v901_v6 = vld [vmem:[#allocation2 + $0x2be] sm:$0xff] }
 0x1a9   :  { %1855 = vmatmul.mubr.f32.vlgmr.msra.gmra.mrb[0].mxu0 %v892_v59  ;;  %4046 = vmatprep.mubr.f32.mxu1 %v10024_v28  ;;  %v3077_v28 = vld [vmem:[#allocation2 + $0x114] sm:$0xff]  ;;  %v3082_v59 = vld [vmem:[#allocation2 + $0x19c] sm:$0xff] }
 0x1aa   :  { %7674 = vmatpush1.bf16.msra.mxu0 %v7673_v7  ;;  %1859 = vmatprep.mubr.f32.mxu0 %v957_v8  ;;  %v965_v7 = vld [vmem:[#allocation2 + $0x3d2] sm:$0xff] }
 0x1ab   :  { %7675 = vmatprep.subr.bf16.mxu0 %v8886_v0 }
 0x1ac   :  { %4047 = vmatmul.mubr.f32.gmra.mrb[4].mxu1 %v3076_v17  ;;  %v1362_v17 = vld [vmem:[%s12969_s3 + $0x2a8] sm:$0xff] }
 0x1ad   :  { %1860 = vmatmul.mubr.f32.gmra.mrb[2].mxu0 %v893_v9  ;;  %4051 = vmatprep.mubr.f32.mxu1 %v10043_v36  ;;  %v3523_v36 = vld [vmem:[%s12970_s4 + $0x200] sm:$0xff]  ;;  %v1360_v9 = vld [vmem:[%s12969_s3 + $0x298] sm:$0xff] }
 0x1ae   :  { %1864 = vmatprep.mubr.f32.mxu0 %v958_v24  ;;  %7677 = vmatpush1.bf16.msra.mxu0 %v7676_v4  ;;  %v7865_v23 = vpack.c.bf16 %v3524_v39, %v3523_v36  ;;  %v3083_v24 = vld [vmem:[#allocation2 + $0x1a4] sm:$0xff]  ;;  %v966_v4 = vld [vmem:[#allocation2 + $0x3fa] sm:$0xff]  ;;  %v7700_v56 = vpack.c.bf16 %v1360_v9, %v1359_v41  ;;  %v3092_v41 = vld [vmem:[#allocation2 + $0x28c] sm:$0xff] }
 0x1af   :  { %7678 = vmatprep.subr.bf16.mxu0 %v8886_v0  ;;  %v3528_v36 = vld [vmem:[%s12970_s4 + $0x228] sm:$0xff]  ;;  %v3086_v39 = vld [vmem:[#allocation2 + $0x1fc] sm:$0xff] }
 0x1b0   :  { %4052 = vmatmul.mubr.f32.gmra.mrb[6].mxu1 %v3077_v28  ;;  %v903_v28 = vld [vmem:[#allocation2 + $0x2ee] sm:$0xff]  ;;  %v975_v9 = vld [vmem:[#allocation2 + $0x4c2] sm:$0xff] }
 0x1b1   :  { %1865 = vmatmul.mubr.f32.gmra.mrb[4].mxu0 %v894_v11  ;;  %4056 = vmatprep.mubr.f32.mxu1 %v10061_v15  ;;  %v897_v15 = vld [vmem:[#allocation2 + $0x25e] sm:$0xff] }
 0x1b2   :  { %1869 = vmatprep.mubr.f32.mxu0 %v959_v16  ;;  %7680 = vmatpush1.bf16.msra.mxu0 %v7679_v20  ;;  %v1361_v11 = vld [vmem:[%s12969_s3 + $0x2a0] sm:$0xff]  ;;  %v3084_v20 = vld [vmem:[#allocation2 + $0x1cc] sm:$0xff] }
 0x1b3   :  { %7681 = vmatprep.subr.bf16.mxu0 %v8886_v0  ;;  %7866 = vmatpush1.bf16.msra.mxu1 %v7865_v23  ;;  %v902_v16 = vld [vmem:[#allocation2 + $0x2e6] sm:$0xff]  ;;  %v7703_v21 = vpack.c.bf16 %v1362_v17, %v1361_v11  ;;  %v905_v23 = vld [vmem:[#allocation2 + $0x31e] sm:$0xff] }
 0x1b4   :  { %4057 = vmatmul.mubr.f32.gmra.mrb[8].mxu1 %v3078_v18  ;;  %7867 = vmatprep.subr.bf16.mxu1 %v8886_v0  ;;  %v969_v18 = vld [vmem:[#allocation2 + $0x432] sm:$0xff]  ;;  %v3158_v11 = vld [vmem:[#allocation2 + $0x4e4] sm:$0xff] }
 0x1b5   :  { %1870 = vmatmul.mubr.f32.gmra.mrb[6].mxu0 %v895_v25  ;;  %4061 = vmatprep.mubr.f32.mxu1 %v10085_v53  ;;  %v898_v53 = vld [vmem:[#allocation2 + $0x286] sm:$0xff]  ;;  %v3149_v25 = vld [vmem:[#allocation2 + $0x3fc] sm:$0xff] }
 0x1b6   :  { %1874 = vmatprep.mubr.f32.mxu0 %v960_v26  ;;  %7683 = vmatpush1.bf16.msra.mxu0 %v7682_v29  ;;  %v3085_v26 = vld [vmem:[#allocation2 + $0x1d4] sm:$0xff]  ;;  %v968_v29 = vld [vmem:[#allocation2 + $0x42a] sm:$0xff] }
 0x1b7   :  { %7684 = vmatprep.subr.bf16.mxu0 %v8886_v0  ;;  %v79_v17 = vld [vmem:[%s12971_s0 + $0x1a8] sm:$0xff] }
 0x1b8   :  { %4062 = vmatmul.mubr.f32.gmra.mrb[10].mxu1 %v3079_v13  ;;  %v970_v13 = vld [vmem:[#allocation2 + $0x45a] sm:$0xff]  ;;  %752 = vst [vmem:[#allocation2 + $0xdf8] sm:$0xff] %v79_v17  ;;  %v918_v17 = vld [vmem:[#allocation2 + $0x466] sm:$0xff] }
 0x1b9   :  { %1875 = vmatmul.mubr.f32.gmra.mrb[8].mxu0 %v896_v35  ;;  %4066 = vmatprep.mubr.f32.mxu1 %v10103_v61  ;;  %v3081_v61 = vld [vmem:[#allocation2 + $0x174] sm:$0xff]  ;;  %v3527_v35 = vld [vmem:[%s12970_s4 + $0x220] sm:$0xff] }
 0x1ba   :  { %1879 = vmatprep.mubr.f32.mxu0 %v961_v40  ;;  %7686 = vmatpush1.bf16.msra.mxu0 %v7685_v34  ;;  %v7871_v40 = vpack.c.bf16 %v3528_v36, %v3527_v35  ;;  %v3151_v34 = vld [vmem:[#allocation2 + $0x42c] sm:$0xff]  ;;  %v1368_v35 = vld [vmem:[%s12969_s3 + $0x2d8] sm:$0xff]  ;;  %v3095_v36 = vld [vmem:[#allocation2 + $0x2c4] sm:$0xff] }
 0x1bb   :  { %7687 = vmatprep.subr.bf16.mxu0 %v8886_v0 }
 0x1bc   :  { %4067 = vmatmul.mubr.f32.gmra.mrb[12].mxu1 %v3080_v54  ;;  %v3153_v54 = vld [vmem:[#allocation2 + $0x45c] sm:$0xff] }
 0x1bd   :  { %1880 = vmatmul.mubr.f32.gmra.mrb[10].mxu0 %v897_v15  ;;  %4071 = vmatprep.mubr.f32.mxu1 %v10116_v5  ;;  %v3525_v5 = vld [vmem:[%s12970_s4 + $0x210] sm:$0xff]  ;;  %v3087_v15 = vld [vmem:[#allocation2 + $0x204] sm:$0xff] }
 0x1be   :  { %1884 = vmatprep.mubr.f32.mxu0 %v962_v45  ;;  %7689 = vmatpush1.bf16.msra.mxu0 %v7688_v46  ;;  %v7868_v8 = vpack.c.bf16 %v3526_v3, %v3525_v5  ;;  %v7706_v45 = vpack.c.bf16 %v1364_v44, %v1363_v1  ;;  %v3152_v46 = vld [vmem:[#allocation2 + $0x454] sm:$0xff]  ;;  %v1365_v5 = vld [vmem:[%s12969_s3 + $0x2c0] sm:$0xff]  ;;  %v1366_v3 = vld [vmem:[%s12969_s3 + $0x2c8] sm:$0xff] }
 0x1bf   :  { %7690 = vmatprep.subr.bf16.mxu0 %v8886_v0  ;;  %v81_v44 = vld [vmem:[%s12971_s0 + $0x1b8] sm:$0xff] }
 0x1c0   :  { %4072 = vmatmul.mubr.f32.gmra.mrb[14].mxu1 %v3081_v61  ;;  %v3529_v61 = vld [vmem:[%s12970_s4 + $0x230] sm:$0xff]  ;;  %754 = vst [vmem:[#allocation2 + $0xe28] sm:$0xff] %v81_v44 }
 0x1c1   :  { %1885 = vmatmul.mubr.f32.gmra.mrb[12].mxu0 %v898_v53  ;;  %4076 = vmatprep.mubr.f32.mxu1 %v3146_v63  ;;  %v971_v53 = vld [vmem:[#allocation2 + $0x462] sm:$0xff]  ;;  %v973_v63 = vld [vmem:[#allocation2 + $0x492] sm:$0xff] }
 0x1c2   :  { %1889 = vmatprep.mubr.f32.mxu0 %v963_v32  ;;  %7692 = vmatpush1.bf16.msra.mxu0 %v7691_v22  ;;  %v907_v32 = vld [vmem:[#allocation2 + $0x34e] sm:$0xff] }
 0x1c3   :  { %7693 = vmatprep.subr.bf16.mxu0 %v8886_v0  ;;  %7869 = vmatpush1.bf16.msra.mxu1 %v7868_v8  ;;  %v3089_v22 = vld [vmem:[#allocation2 + $0x234] sm:$0xff]  ;;  %v10508_v44 = vld [vmem:[#allocation2 + $0x5ac] sm:$0xff] }
 0x1c4   :  { %4077 = vmatmul.mubr.f32.gmra.mrb[16].mxu1 %v3082_v59  ;;  %7870 = vmatprep.subr.bf16.mxu1 %v8886_v0  ;;  %v3091_v59 = vld [vmem:[#allocation2 + $0x264] sm:$0xff]  ;;  %v3156_v8 = vld [vmem:[#allocation2 + $0x4b4] sm:$0xff] }
 0x1c5   :  { %1890 = vmatmul.mubr.f32.gmra.mrb[14].mxu0 %v899_v49  ;;  %4081 = vmatprep.mubr.f32.mxu1 %v3147_v14  ;;  %v908_v49 = vld [vmem:[#allocation2 + $0x376] sm:$0xff]  ;;  %v910_v14 = vld [vmem:[#allocation2 + $0x3a6] sm:$0xff] }
 0x1c6   :  { %1894 = vmatprep.mubr.f32.mxu0 %v964_v60  ;;  %7695 = vmatpush1.bf16.msra.mxu0 %v7694_v52  ;;  %v3530_v60 = vld [vmem:[%s12970_s4 + $0x238] sm:$0xff] }
 0x1c7   :  { %7696 = vmatprep.subr.bf16.mxu0 %v8886_v0  ;;  %7872 = vmatpush1.bf16.msra.mxu1 %v7871_v40  ;;  %v3090_v52 = vld [vmem:[#allocation2 + $0x25c] sm:$0xff]  ;;  %v7874_v55 = vpack.c.bf16 %v3530_v60, %v3529_v61  ;;  %v3160_v40 = vld [vmem:[#allocation2 + $0x514] sm:$0xff]  ;;  %v83_v60 = vld [vmem:[%s12971_s0 + $0x1c8] sm:$0xff] }
 0x1c8   :  { %4082 = vmatmul.mubr.f32.gmra.mrb[18].mxu1 %v3083_v24  ;;  %7873 = vmatprep.subr.bf16.mxu1 %v8886_v0  ;;  %v78_v24 = vld [vmem:[%s12971_s0 + $0x1a0] sm:$0xff]  ;;  %v3538_v61 = vld [vmem:[%s12970_s4 + $0x278] sm:$0xff]  ;;  %756 = vst [vmem:[#allocation2 + $0xe58] sm:$0xff] %v83_v60 }
 0x1c9   :  { %1895 = vmatmul.mubr.f32.gmra.mrb[16].mxu0 %v900_v47  ;;  %4086 = vmatprep.mubr.f32.mxu1 %v3148_v12  ;;  %v909_v47 = vld [vmem:[#allocation2 + $0x37e] sm:$0xff]  ;;  %751 = vst [vmem:[#allocation2 + $0xdf0] sm:$0xff] %v78_v24  ;;  %v976_v12 = vld [vmem:[#allocation2 + $0x4ea] sm:$0xff]  ;;  %v10459_v24 = vld [vmem:[#allocation2 + $0x574] sm:$0xff] }
 0x1ca   :  { %1899 = vmatprep.mubr.f32.mxu0 %v965_v7  ;;  %7698 = vmatpush1.bf16.msra.mxu0 %v7697_v62  ;;  %v974_v7 = vld [vmem:[#allocation2 + $0x4ba] sm:$0xff]  ;;  %v7709_v62 = vpack.c.bf16 %v1366_v3, %v1365_v5  ;;  %v3540_v3 = vld [vmem:[%s12970_s4 + $0x288] sm:$0xff] }
 0x1cb   :  { %7699 = vmatprep.subr.bf16.mxu0 %v8886_v0  ;;  %7875 = vmatpush1.bf16.msra.mxu1 %v7874_v55  ;;  %v10435_v55 = vld [vmem:[#allocation2 + $0x31c] sm:$0xff] }
 0x1cc   :  { %4087 = vmatmul.mubr.f32.gmra.mrb[20].mxu1 %v3084_v20  ;;  %7876 = vmatprep.subr.bf16.mxu1 %v8886_v0  ;;  %v3531_v20 = vld [vmem:[%s12970_s4 + $0x240] sm:$0xff] }
 0x1cd   :  { %1900 = vmatmul.mubr.f32.gmra.mrb[18].mxu0 %v901_v6  ;;  %4091 = vmatprep.mubr.f32.mxu1 %v3149_v25  ;;  %v3157_v6 = vld [vmem:[#allocation2 + $0x4bc] sm:$0xff]  ;;  %v977_v25 = vld [vmem:[#allocation2 + $0x4f2] sm:$0xff] }
 0x1ce   :  { %1904 = vmatprep.mubr.f32.mxu0 %v966_v4  ;;  %7701 = vmatpush1.bf16.msra.mxu0 %v7700_v56  ;;  %v911_v4 = vld [vmem:[#allocation2 + $0x3ae] sm:$0xff]  ;;  %v3539_v5 = vld [vmem:[%s12970_s4 + $0x280] sm:$0xff] }
 0x1cf   :  { %7702 = vmatprep.subr.bf16.mxu0 %v8886_v0  ;;  %v3093_v56 = vld [vmem:[#allocation2 + $0x294] sm:$0xff] }
 0x1d0   :  { %4092 = vmatmul.mubr.f32.gmra.mrb[22].mxu1 %v3085_v26  ;;  %v3159_v26 = vld [vmem:[#allocation2 + $0x4ec] sm:$0xff] }
 0x1d1   :  { %1905 = vmatmul.mubr.f32.gmra.mrb[20].mxu0 %v902_v16  ;;  %4096 = vmatprep.mubr.f32.mxu1 %v3150_v33  ;;  %v912_v16 = vld [vmem:[#allocation2 + $0x3d6] sm:$0xff]  ;;  %v913_v33 = vld [vmem:[#allocation2 + $0x3de] sm:$0xff] }
 0x1d2   :  { %1909 = vmatprep.mubr.f32.mxu0 %v967_v30  ;;  %7704 = vmatpush1.bf16.msra.mxu0 %v7703_v21  ;;  %v3532_v30 = vld [vmem:[%s12970_s4 + $0x248] sm:$0xff]  ;;  %v3094_v21 = vld [vmem:[#allocation2 + $0x2bc] sm:$0xff] }
 0x1d3   :  { %7705 = vmatprep.subr.bf16.mxu0 %v8886_v0 }
 0x1d4   :  { %4097 = vmatmul.mubr.f32.gmra.mrb[24].mxu1 %v3086_v39  ;;  %v978_v39 = vld [vmem:[#allocation2 + $0x51a] sm:$0xff] }
 0x1d5   :  { %1910 = vmatmul.mubr.f32.gmra.mrb[22].mxu0 %v903_v28  ;;  %4101 = vmatprep.mubr.f32.mxu1 %v3151_v34  ;;  %v7877_v28 = vpack.c.bf16 %v3532_v30, %v3531_v20  ;;  %v3533_v34 = vld [vmem:[%s12970_s4 + $0x250] sm:$0xff]  ;;  %v983_v20 = vld [vmem:[#allocation2 + $0x582] sm:$0xff] }
 0x1d6   :  { %1914 = vmatprep.mubr.f32.mxu0 %v968_v29  ;;  %7707 = vmatpush1.bf16.msra.mxu0 %v7706_v45  ;;  %v80_v29 = vld [vmem:[%s12971_s0 + $0x1b0] sm:$0xff]  ;;  %v979_v45 = vld [vmem:[#allocation2 + $0x522] sm:$0xff] }
 0x1d7   :  { %7708 = vmatprep.subr.bf16.mxu0 %v8886_v0  ;;  %7878 = vmatpush1.bf16.msra.mxu1 %v7877_v28  ;;  %753 = vst [vmem:[#allocation2 + $0xe20] sm:$0xff] %v80_v29  ;;  %v10475_v30 = vld [vmem:[#allocation2 + $0x57c] sm:$0xff]  ;;  %v919_v29 = vld [vmem:[#allocation2 + $0x46e] sm:$0xff] }
 0x1d8   :  { %4102 = vmatmul.mubr.f32.gmra.mrb[26].mxu1 %v3087_v15  ;;  %7879 = vmatprep.subr.bf16.mxu1 %v8886_v0  ;;  %v914_v15 = vld [vmem:[#allocation2 + $0x406] sm:$0xff] }
 0x1d9   :  { %1915 = vmatmul.mubr.f32.gmra.mrb[24].mxu0 %v904_v31  ;;  %4106 = vmatprep.mubr.f32.mxu1 %v3152_v46  ;;  %v1367_v31 = vld [vmem:[%s12969_s3 + $0x2d0] sm:$0xff]  ;;  %v3161_v46 = vld [vmem:[#allocation2 + $0x51c] sm:$0xff] }
 0x1da   :  { %1919 = vmatprep.mubr.f32.mxu0 %v969_v18  ;;  %7710 = vmatpush1.bf16.msra.mxu0 %v7709_v62  ;;  %v7712_v18 = vpack.c.bf16 %v1368_v35, %v1367_v31  ;;  %v917_v62 = vld [vmem:[#allocation2 + $0x43e] sm:$0xff]  ;;  %v984_v31 = vld [vmem:[#allocation2 + $0x5aa] sm:$0xff] }
 0x1db   :  { %7711 = vmatprep.subr.bf16.mxu0 %v8886_v0  ;;  %v10492_v35 = vld [vmem:[#allocation2 + $0x5a4] sm:$0xff] }
 0x1dc   :  { %4107 = vmatmul.mubr.f32.gmra.mrb[28].mxu1 %v3088_v27  ;;  %v3536_v27 = vld [vmem:[%s12970_s4 + $0x268] sm:$0xff] }
 0x1dd   :  { %1920 = vmatmul.mubr.f32.gmra.mrb[26].mxu0 %v905_v23  ;;  %4111 = vmatprep.mubr.f32.mxu1 %v3153_v54  ;;  %v3534_v23 = vld [vmem:[%s12970_s4 + $0x258] sm:$0xff]  ;;  %v82_v54 = vld [vmem:[%s12971_s0 + $0x1c0] sm:$0xff] }
 0x1de   :  { %1924 = vmatprep.mubr.f32.mxu0 %v970_v13  ;;  %v7880_v1 = vpack.c.bf16 %v3534_v23, %v3533_v34  ;;  %v3096_v13 = vld [vmem:[#allocation2 + $0x2ec] sm:$0xff]  ;;  %7713 = vmatpush1.bf16.msra.mxu0 %v7712_v18  ;;  %755 = vst [vmem:[#allocation2 + $0xe50] sm:$0xff] %v82_v54  ;;  %v920_v34 = vld [vmem:[#allocation2 + $0x496] sm:$0xff]  ;;  %v10528_v54 = vld [vmem:[#allocation2 + $0x384] sm:$0xff] }
 0x1df   :  { %7714 = vmatprep.subr.bf16.mxu0 %v8886_v0  ;;  %v87_v18 = vld [vmem:[%s12971_s0 + $0x1e8] sm:$0xff]  ;;  %v10506_v23 = vld [vmem:[#allocation2 + $0x37c] sm:$0xff] }
 0x1e0   :  { %4112 = vmatmul.mubr.f32.gmra.mrb[30].mxu1 %v3089_v22  ;;  %v3097_v22 = vld [vmem:[#allocation2 + $0x2f4] sm:$0xff]  ;;  %760 = vst [vmem:[#allocation2 + $0xeb8] sm:$0xff] %v87_v18 }
 0x1e1   :  { %1925 = vmatmul.mubr.f32.gmra.mrb[28].mxu0 %v906_v48  ;;  %4116 = vmatprep.mubr.f32.mxu1 %v3154_v10  ;;  %v3535_v48 = vld [vmem:[%s12970_s4 + $0x260] sm:$0xff]  ;;  %v993_v18 = vld [vmem:[#allocation2 + $0xc72] sm:$0xff] }
 0x1e2   :  { %1929 = vmatprep.mubr.f32.mxu0 %v971_v53  ;;  %7881 = vmatpush1.bf16.msra.mxu1 %v7880_v1  ;;  %v7883_v53 = vpack.c.bf16 %v3536_v27, %v3535_v48  ;;  %v10422_v10 = vld [vmem:[#allocation2 + $0x544] sm:$0xff]  ;;  %v985_v1 = vld [vmem:[#allocation2 + $0x5b2] sm:$0xff] }
 0x1e3   :  { %7882 = vmatprep.subr.bf16.mxu1 %v8886_v0  ;;  %v921_v48 = vld [vmem:[#allocation2 + $0x49e] sm:$0xff]  ;;  %v1371_v27 = vld [vmem:[%s12969_s3 + $0x2f0] sm:$0xff] }
 0x1e4   :  { %4117 = vmatmul.mubr.f32.gmra.mrb[32].mxu1 %v3090_v52 }
 0x1e5   :  { %1930 = vmatmul.mubr.f32.gmra.mrb[30].mxu0 %v907_v32  ;;  %4121 = vmatprep.mubr.f32.mxu1 %v3155_v58  ;;  %v915_v32 = vld [vmem:[#allocation2 + $0x40e] sm:$0xff] }
 0x1e6   :  { %1934 = vmatprep.mubr.f32.mxu0 %v972_v42  ;;  %v980_v42 = vld [vmem:[#allocation2 + $0x54a] sm:$0xff]  ;;  %7884 = vmatpush1.bf16.msra.mxu1 %v7883_v53  ;;  %v981_v58 = vld [vmem:[#allocation2 + $0x552] sm:$0xff] }
 0x1e7   :  { %7885 = vmatprep.subr.bf16.mxu1 %v8886_v0  ;;  %v1372_v53 = vld [vmem:[%s12969_s3 + $0x2f8] sm:$0xff] }
 0x1e8   :  { %4122 = vmatmul.mubr.f32.gmra.mrb[34].mxu1 %v3091_v59  ;;  %v84_v59 = vld [vmem:[%s12971_s0 + $0x1d0] sm:$0xff] }
 0x1e9   :  { %1935 = vmatmul.mubr.f32.gmra.mrb[32].mxu0 %v908_v49  ;;  %4126 = vmatprep.mubr.f32.mxu1 %v3156_v8  ;;  %v3537_v49 = vld [vmem:[%s12970_s4 + $0x270] sm:$0xff]  ;;  %757 = vst [vmem:[#allocation2 + $0xe80] sm:$0xff] %v84_v59  ;;  %v1369_v8 = vld [vmem:[%s12969_s3 + $0x2e0] sm:$0xff] }
 0x1ea   :  { %1939 = vmatprep.mubr.f32.mxu0 %v973_v63  ;;  %v7886_v52 = vpack.c.bf16 %v3538_v61, %v3537_v49  ;;  %v916_v63 = vld [vmem:[#allocation2 + $0x436] sm:$0xff]  ;;  %v3551_v59 = vld [vmem:[%s12970_s4 + $0x2e0] sm:$0xff] }
 0x1eb   :  { %v3549_v49 = vld [vmem:[%s12970_s4 + $0x2d0] sm:$0xff]  ;;  %v3550_v61 = vld [vmem:[%s12970_s4 + $0x2d8] sm:$0xff] }
 0x1ec   :  { %4127 = vmatmul.mubr.f32.gmra.mrb[36].mxu1 %v3092_v41  ;;  %v10457_v41 = vld [vmem:[#allocation2 + $0x324] sm:$0xff]  ;;  %v7904_v60 = vpack.c.bf16 %v3550_v61, %v3549_v49  ;;  %v3180_v49 = vld [vmem:[#allocation2 + $0xcf4] sm:$0xff]  ;;  %v3116_v61 = vld [vmem:[#allocation2 + $0xacc] sm:$0xff] }
 0x1ed   :  { %1940 = vmatmul.mubr.f32.gmra.mrb[34].mxu0 %v909_v47  ;;  %4131 = vmatprep.mubr.f32.mxu1 %v3157_v6  ;;  %v10437_v47 = vld [vmem:[#allocation2 + $0x54c] sm:$0xff] }
 0x1ee   :  { %1944 = vmatprep.mubr.f32.mxu0 %v974_v7  ;;  %7887 = vmatpush1.bf16.msra.mxu1 %v7886_v52  ;;  %v7889_v7 = vpack.c.bf16 %v3540_v3, %v3539_v5  ;;  %v89_v52 = vld [vmem:[%s12971_s0 + $0x1f8] sm:$0xff]  ;;  %v987_v5 = vld [vmem:[#allocation2 + $0x5e2] sm:$0xff] }
 0x1ef   :  { %7888 = vmatprep.subr.bf16.mxu1 %v8886_v0  ;;  %762 = vst [vmem:[#allocation2 + $0xee8] sm:$0xff] %v89_v52  ;;  %v10546_v3 = vld [vmem:[#allocation2 + $0x5dc] sm:$0xff] }
 0x1f0   :  { %4132 = vmatmul.mubr.f32.gmra.mrb[38].mxu1 %v3093_v56  ;;  %v3542_v56 = vld [vmem:[%s12970_s4 + $0x298] sm:$0xff] }
 0x1f1   :  { %1945 = vmatmul.mubr.f32.gmra.mrb[36].mxu0 %v910_v14  ;;  %4136 = vmatprep.mubr.f32.mxu1 %v3158_v11  ;;  %v1370_v14 = vld [vmem:[%s12969_s3 + $0x2e8] sm:$0xff]  ;;  %v85_v11 = vld [vmem:[%s12971_s0 + $0x1d8] sm:$0xff] }
 0x1f2   :  { %1949 = vmatprep.mubr.f32.mxu0 %v975_v9  ;;  %v982_v9 = vld [vmem:[#allocation2 + $0x57a] sm:$0xff]  ;;  %v7715_v6 = vpack.c.bf16 %v1370_v14, %v1369_v8  ;;  %7890 = vmatpush1.bf16.msra.mxu1 %v7889_v7  ;;  %758 = vst [vmem:[#allocation2 + $0xe88] sm:$0xff] %v85_v11  ;;  %v3552_v7 = vld [vmem:[%s12970_s4 + $0x2e8] sm:$0xff] }
 0x1f3   :  { %7891 = vmatprep.subr.bf16.mxu1 %v8886_v0  ;;  %v923_v8 = vld [vmem:[#allocation2 + $0x4ce] sm:$0xff]  ;;  %v3106_v11 = vld [vmem:[#allocation2 + $0x9dc] sm:$0xff] }
 0x1f4   :  { %4137 = vmatmul.mubr.f32.gmra.mrb[40].mxu1 %v3094_v21  ;;  %7716 = vmatpush1.bf16.msra.mxu0 %v7715_v6  ;;  %v3543_v21 = vld [vmem:[%s12970_s4 + $0x2a0] sm:$0xff]  ;;  %v10558_v14 = vld [vmem:[#allocation2 + $0x3b4] sm:$0xff] }
 0x1f5   :  { %1950 = vmatmul.mubr.f32.gmra.mrb[38].mxu0 %v911_v4  ;;  %4141 = vmatprep.mubr.f32.mxu1 %v3159_v26  ;;  %v3541_v4 = vld [vmem:[%s12970_s4 + $0x290] sm:$0xff]  ;;  %v86_v26 = vld [vmem:[%s12971_s0 + $0x1e0] sm:$0xff] }
 0x1f6   :  { %1954 = vmatprep.mubr.f32.mxu0 %v976_v12  ;;  %v7892_v12 = vpack.c.bf16 %v3542_v56, %v3541_v4  ;;  %7717 = vmatprep.subr.bf16.mxu0 %v8886_v0  ;;  %759 = vst [vmem:[#allocation2 + $0xeb0] sm:$0xff] %v86_v26  ;;  %v3553_v6 = vld [vmem:[%s12970_s4 + $0x2f0] sm:$0xff]  ;;  %v3554_v4 = vld [vmem:[%s12970_s4 + $0x2f8] sm:$0xff]  ;;  %v991_v26 = vld [vmem:[#allocation2 + $0xc42] sm:$0xff] }
 0x1f7   :  { %v7910_v56 = vpack.c.bf16 %v3554_v4, %v3553_v6  ;;  %v3181_v52 = vld [vmem:[#allocation2 + $0xcfc] sm:$0xff]  ;;  %v3183_v6 = vld [vmem:[#allocation2 + $0xd2c] sm:$0xff] }
 0x1f8   :  { %4142 = vmatmul.mubr.f32.gmra.mrb[42].mxu1 %v3095_v36  ;;  %v3545_v36 = vld [vmem:[%s12970_s4 + $0x2b0] sm:$0xff]  ;;  %v937_v4 = vld [vmem:[#allocation2 + $0xc1e] sm:$0xff] }
 0x1f9   :  { %1955 = vmatmul.mubr.f32.gmra.mrb[40].mxu0 %v912_v16  ;;  %4146 = vmatprep.mubr.f32.mxu1 %v3160_v40  ;;  %v10473_v16 = vld [vmem:[#allocation2 + $0x34c] sm:$0xff] }
 0x1fa   :  { %1959 = vmatprep.mubr.f32.mxu0 %v977_v25  ;;  %7893 = vmatpush1.bf16.msra.mxu1 %v7892_v12  ;;  %v3544_v25 = vld [vmem:[%s12970_s4 + $0x2a8] sm:$0xff]  ;;  %v924_v12 = vld [vmem:[#allocation2 + $0xaf6] sm:$0xff] }
 0x1fb   :  { %7894 = vmatprep.subr.bf16.mxu1 %v8886_v0  ;;  %v7895_v28 = vpack.c.bf16 %v3544_v25, %v3543_v21  ;;  %v3107_v21 = vld [vmem:[#allocation2 + $0x9e4] sm:$0xff]  ;;  %v990_v25 = vld [vmem:[#allocation2 + $0xc3a] sm:$0xff] }
 0x1fc   :  { %4147 = vmatmul.mubr.f32.gmra.mrb[44].mxu1 %v3096_v13  ;;  %v3548_v13 = vld [vmem:[%s12970_s4 + $0x2c8] sm:$0xff] }
 0x1fd   :  { %1960 = vmatmul.mubr.f32.gmra.mrb[42].mxu0 %v913_v33  ;;  %4151 = vmatprep.mubr.f32.mxu1 %v3161_v46  ;;  %v10490_v33 = vld [vmem:[#allocation2 + $0x354] sm:$0xff] }
 0x1fe   :  { %1964 = vmatprep.mubr.f32.mxu0 %v978_v39  ;;  %7896 = vmatpush1.bf16.msra.mxu1 %v7895_v28  ;;  %v3546_v39 = vld [vmem:[%s12970_s4 + $0x2b8] sm:$0xff]  ;;  %v926_v28 = vld [vmem:[#allocation2 + $0xb26] sm:$0xff] }
 0x1ff   :  { %7897 = vmatprep.subr.bf16.mxu1 %v8886_v0  ;;  %v7898_v40 = vpack.c.bf16 %v3546_v39, %v3545_v36  ;;  %v992_v36 = vld [vmem:[#allocation2 + $0xc6a] sm:$0xff]  ;;  %v3110_v39 = vld [vmem:[#allocation2 + $0xa3c] sm:$0xff] }
 0x200   :  { %4152 = vmatmul.mubr.f32.gmra.mrb[46].mxu1 %v3097_v22  ;;  %v7718_v22 = vpack.c.bf16 %v1372_v53, %v1371_v27  ;;  %v997_v27 = vld [vmem:[#allocation2 + $0xcd2] sm:$0xff] }
 0x201   :  { %1965 = vmatmul.mubr.f32.gmra.mrb[44].mxu0 %v914_v15  ;;  %4156 = vmatprep.mubr.f32.mxu1 %v10422_v10  ;;  %v3547_v15 = vld [vmem:[%s12970_s4 + $0x2c0] sm:$0xff]  ;;  %v3179_v53 = vld [vmem:[#allocation2 + $0xccc] sm:$0xff] }
 0x202   :  { %1969 = vmatprep.mubr.f32.mxu0 %v979_v45  ;;  %7899 = vmatpush1.bf16.msra.mxu1 %v7898_v40  ;;  %v88_v45 = vld [vmem:[%s12971_s0 + $0x1f0] sm:$0xff]  ;;  %v7901_v46 = vpack.c.bf16 %v3548_v13, %v3547_v15  ;;  %v3111_v40 = vld [vmem:[#allocation2 + $0xa44] sm:$0xff] }
 0x203   :  { %7900 = vmatprep.subr.bf16.mxu1 %v8886_v0  ;;  %761 = vst [vmem:[#allocation2 + $0xee0] sm:$0xff] %v88_v45  ;;  %7719 = vmatpush1.bf16.msra.mxu0 %v7718_v22  ;;  %v995_v15 = vld [vmem:[#allocation2 + $0xca2] sm:$0xff]  ;;  %v3113_v13 = vld [vmem:[#allocation2 + $0xa74] sm:$0xff]  ;;  %v996_v45 = vld [vmem:[#allocation2 + $0xcca] sm:$0xff] }
 0x204   :  { %4157 = vmatmul.mubr.f32.gmra.mrb[48].mxu1 %v10435_v55  ;;  %7720 = vmatprep.subr.bf16.mxu0 %v8886_v0  ;;  %v998_v22 = vld [vmem:[#allocation2 + $0xcfa] sm:$0xff] }
 0x205   :  { %1970 = vmatmul.mubr.f32.gmra.mrb[46].mxu0 %v915_v32  ;;  %4161 = vmatprep.mubr.f32.mxu1 %v10437_v47  ;;  %v986_v32 = vld [vmem:[#allocation2 + $0x5da] sm:$0xff] }
 0x206   :  { %1974 = vmatprep.mubr.f32.mxu0 %v980_v42  ;;  %v10530_v42 = vld [vmem:[#allocation2 + $0x5d4] sm:$0xff]  ;;  %7902 = vmatpush1.bf16.msra.mxu1 %v7901_v46  ;;  %v3178_v46 = vld [vmem:[#allocation2 + $0xcc4] sm:$0xff] }
 0x207   :  { %7903 = vmatprep.subr.bf16.mxu1 %v8886_v0 }
 0x208   :  { %4162 = vmatmul.mubr.f32.gmra.mrb[50].mxu1 %v10457_v41 }
 0x209   :  { %1975 = vmatmul.mubr.f32.gmra.mrb[48].mxu0 %v916_v63  ;;  %4166 = vmatprep.mubr.f32.mxu1 %v10459_v24  ;;  %v922_v63 = vld [vmem:[#allocation2 + $0x4c6] sm:$0xff] }
 0x20a   :  { %1979 = vmatprep.mubr.f32.mxu0 %v981_v58  ;;  %v10544_v58 = vld [vmem:[#allocation2 + $0x3ac] sm:$0xff]  ;;  %7905 = vmatpush1.bf16.msra.mxu1 %v7904_v60  ;;  %v999_v60 = vld [vmem:[#allocation2 + $0xd02] sm:$0xff] }
 0x20b   :  { %7906 = vmatprep.subr.bf16.mxu1 %v8886_v0 }
 0x20c   :  { %4167 = vmatmul.mubr.f32.gmra.mrb[52].mxu1 %v10473_v16 }
 0x20d   :  { %1980 = vmatmul.mubr.f32.gmra.mrb[50].mxu0 %v917_v62  ;;  %4171 = vmatprep.mubr.f32.mxu1 %v10475_v30  ;;  %v7907_v62 = vpack.c.bf16 %v3552_v7, %v3551_v59  ;;  %v1000_v59 = vld [vmem:[#allocation2 + $0xd2a] sm:$0xff] }
 0x20e   :  { %1984 = vmatprep.mubr.f32.mxu0 %v982_v9  ;;  %v988_v9 = vld [vmem:[#allocation2 + $0xc0a] sm:$0xff] }
 0x20f   :  { %7908 = vmatpush1.bf16.msra.mxu1 %v7907_v62  ;;  %v3182_v7 = vld [vmem:[#allocation2 + $0xd24] sm:$0xff]  ;;  %v936_v62 = vld [vmem:[#allocation2 + $0xc16] sm:$0xff] }
 0x210   :  { %4172 = vmatmul.mubr.f32.gmra.mrb[54].mxu1 %v10490_v33  ;;  %7909 = vmatprep.subr.bf16.mxu1 %v8886_v0 }
 0x211   :  { %1985 = vmatmul.mubr.f32.gmra.mrb[52].mxu0 %v918_v17  ;;  %4176 = vmatprep.mubr.f32.mxu1 %v10492_v35  ;;  %v989_v17 = vld [vmem:[#allocation2 + $0xc12] sm:$0xff] }
 0x212   :  { %1989 = vmatprep.mubr.f32.mxu0 %v983_v20  ;;  %v925_v20 = vld [vmem:[#allocation2 + $0xafe] sm:$0xff] }
 0x213   :  { %7911 = vmatpush1.bf16.msra.mxu1 %v7910_v56  ;;  %v3119_v56 = vld [vmem:[#allocation2 + $0xb04] sm:$0xff] }
 0x214   :  { %4177 = vmatmul.mubr.f32.gmra.mrb[56].mxu1 %v10506_v23  ;;  %7912 = vmatprep.subr.bf16.mxu1 %v8886_v0 }
 0x215   :  { %1990 = vmatmul.mubr.f32.gmra.mrb[54].mxu0 %v919_v29  ;;  %4181 = vmatprep.mubr.f32.mxu1 %v10508_v44  ;;  %v927_v29 = vld [vmem:[#allocation2 + $0xb2e] sm:$0xff] }
 0x216   :  { %1994 = vmatprep.mubr.f32.mxu0 %v984_v31  ;;  %v3109_v31 = vld [vmem:[#allocation2 + $0xa14] sm:$0xff] }
 0x218   :  { %4182 = vmatmul.mubr.f32.gmra.mrb[58].mxu1 %v10528_v54 }
 0x219   :  { %1995 = vmatmul.mubr.f32.gmra.mrb[56].mxu0 %v920_v34  ;;  %4186 = vmatprep.mubr.f32.mxu1 %v10530_v42  ;;  %v994_v34 = vld [vmem:[#allocation2 + $0xc9a] sm:$0xff] }
 0x21a   :  { %1999 = vmatprep.mubr.f32.mxu0 %v985_v1  ;;  %v3112_v1 = vld [vmem:[#allocation2 + $0xa6c] sm:$0xff] }
 0x21c   :  { %4187 = vmatmul.mubr.f32.gmra.mrb[60].mxu1 %v10544_v58 }
 0x21d   :  { %2000 = vmatmul.mubr.f32.gmra.mrb[58].mxu0 %v921_v48  ;;  %4191 = vmatprep.mubr.f32.mxu1 %v10546_v3  ;;  %v3114_v48 = vld [vmem:[#allocation2 + $0xa9c] sm:$0xff] }
 0x21e   :  { %2004 = vmatprep.mubr.f32.mxu0 %v986_v32  ;;  %v3115_v32 = vld [vmem:[#allocation2 + $0xaa4] sm:$0xff] }
 0x220   :  { %4192 = vmatmul.mubr.f32.gmra.mrb[62].mxu1 %v10558_v14 }
 0x221   :  { %2005 = vmatmul.mubr.f32.gmra.mrb[60].mxu0 %v922_v63  ;;  %4196 = vmatprep.mubr.f32.mxu1 %v10197_v37  ;;  %v3108_v37 = vld [vmem:[#allocation2 + $0xa0c] sm:$0xff] }
 0x222   :  { %2009 = vmatprep.mubr.f32.mxu0 %v987_v5  ;;  %v935_v63 = vld [vmem:[#allocation2 + $0xbee] sm:$0xff] }
 0x223   :  { %v3117_v5 = vld [vmem:[#allocation2 + $0xad4] sm:$0xff] }
 0x224   :  { %4197 = vmatmul.mubr.f32.gmra.mrb[64].mxu1 %v3106_v11  ;;  %v3184_v11 = vld [vmem:[#allocation2 + $0xd54] sm:$0xff] }
 0x225   :  { %2010 = vmatmul.mubr.f32.gmra.mrb[62].mxu0 %v923_v8  ;;  %4201 = vmatprep.mubr.f32.mxu1 %v10205_v2  ;;  %v928_v2 = vld [vmem:[#allocation2 + $0xb56] sm:$0xff] }
 0x226   :  { %2014 = vmatprep.mubr.f32.mxu0 %v988_v9  ;;  %v3118_v8 = vld [vmem:[#allocation2 + $0xafc] sm:$0xff]  ;;  %v1001_v9 = vld [vmem:[#allocation2 + $0xd32] sm:$0xff] }
 0x228   :  { %4202 = vmatmul.mubr.f32.gmra.mrb[66].mxu1 %v3107_v21  ;;  %v1003_v21 = vld [vmem:[#allocation2 + $0xd62] sm:$0xff] }
 0x229   :  { %2015 = vmatmul.mubr.f32.gmra.mrb[64].mxu0 %v924_v12  ;;  %4206 = vmatprep.mubr.f32.mxu1 %v10213_v50  ;;  %v929_v50 = vld [vmem:[#allocation2 + $0xb5e] sm:$0xff] }
 0x22a   :  { %2019 = vmatprep.mubr.f32.mxu0 %v989_v17  ;;  %v1002_v12 = vld [vmem:[#allocation2 + $0xd5a] sm:$0xff]  ;;  %v938_v17 = vld [vmem:[#allocation2 + $0xc46] sm:$0xff] }
 0x22c   :  { %4207 = vmatmul.mubr.f32.gmra.mrb[68].mxu1 %v3108_v37  ;;  %v3121_v37 = vld [vmem:[#allocation2 + $0xb34] sm:$0xff] }
 0x22d   :  { %2020 = vmatmul.mubr.f32.gmra.mrb[66].mxu0 %v925_v20  ;;  %4211 = vmatprep.mubr.f32.mxu1 %v10221_v51  ;;  %v930_v51 = vld [vmem:[#allocation2 + $0xb86] sm:$0xff] }
 0x22e   :  { %2024 = vmatprep.mubr.f32.mxu0 %v990_v25  ;;  %v3120_v20 = vld [vmem:[#allocation2 + $0xb2c] sm:$0xff]  ;;  %v3185_v25 = vld [vmem:[#allocation2 + $0xd5c] sm:$0xff] }
 0x230   :  { %4212 = vmatmul.mubr.f32.gmra.mrb[70].mxu1 %v3109_v31  ;;  %v940_v31 = vld [vmem:[#allocation2 + $0xc76] sm:$0xff] }
 0x231   :  { %2025 = vmatmul.mubr.f32.gmra.mrb[68].mxu0 %v926_v28  ;;  %4216 = vmatprep.mubr.f32.mxu1 %v10229_v19  ;;  %v931_v19 = vld [vmem:[#allocation2 + $0xb8e] sm:$0xff] }
 0x232   :  { %2029 = vmatprep.mubr.f32.mxu0 %v991_v26  ;;  %v939_v28 = vld [vmem:[#allocation2 + $0xc4e] sm:$0xff] }
 0x233   :  { %v1004_v26 = vld [vmem:[#allocation2 + $0xd8a] sm:$0xff] }
 0x234   :  { %4217 = vmatmul.mubr.f32.gmra.mrb[72].mxu1 %v3110_v39  ;;  %v3187_v39 = vld [vmem:[#allocation2 + $0xd8c] sm:$0xff] }
 0x235   :  { %2030 = vmatmul.mubr.f32.gmra.mrb[70].mxu0 %v927_v29  ;;  %4221 = vmatprep.mubr.f32.mxu1 %v10237_v38  ;;  %v932_v38 = vld [vmem:[#allocation2 + $0xbb6] sm:$0xff]  ;;  %v3186_v29 = vld [vmem:[#allocation2 + $0xd84] sm:$0xff] }
 0x236   :  { %2034 = vmatprep.mubr.f32.mxu0 %v992_v36  ;;  %v3122_v36 = vld [vmem:[#allocation2 + $0xb5c] sm:$0xff] }
 0x238   :  { %4222 = vmatmul.mubr.f32.gmra.mrb[74].mxu1 %v3111_v40  ;;  %v1006_v40 = vld [vmem:[#allocation2 + $0xdba] sm:$0xff] }
 0x239   :  { %2035 = vmatmul.mubr.f32.gmra.mrb[72].mxu0 %v928_v2  ;;  %4226 = vmatprep.mubr.f32.mxu1 %v10245_v57  ;;  %v933_v57 = vld [vmem:[#allocation2 + $0xbbe] sm:$0xff]  ;;  %v1005_v2 = vld [vmem:[#allocation2 + $0xd92] sm:$0xff] }
 0x23a   :  { %2039 = vmatprep.mubr.f32.mxu0 %v993_v18  ;;  %v941_v18 = vld [vmem:[#allocation2 + $0xc7e] sm:$0xff] }
 0x23c   :  { %4227 = vmatmul.mubr.f32.gmra.mrb[76].mxu1 %v3112_v1  ;;  %v3124_v1 = vld [vmem:[#allocation2 + $0xb8c] sm:$0xff] }
 0x23d   :  { %2040 = vmatmul.mubr.f32.gmra.mrb[74].mxu0 %v929_v50  ;;  %4231 = vmatprep.mubr.f32.mxu1 %v10249_v43  ;;  %v934_v43 = vld [vmem:[#allocation2 + $0xbe6] sm:$0xff] }
 0x23e   :  { %2044 = vmatprep.mubr.f32.mxu0 %v994_v34  ;;  %v3123_v50 = vld [vmem:[#allocation2 + $0xb64] sm:$0xff]  ;;  %v3188_v34 = vld [vmem:[#allocation2 + $0xdb4] sm:$0xff] }
 0x240   :  { %4232 = vmatmul.mubr.f32.gmra.mrb[78].mxu1 %v3113_v13  ;;  %v943_v13 = vld [vmem:[#allocation2 + $0xcae] sm:$0xff] }
 0x241   :  { %2045 = vmatmul.mubr.f32.gmra.mrb[76].mxu0 %v930_v51  ;;  %4236 = vmatprep.mubr.f32.mxu1 %v3178_v46  ;;  %v942_v51 = vld [vmem:[#allocation2 + $0xca6] sm:$0xff] }
 0x242   :  { %2049 = vmatprep.mubr.f32.mxu0 %v995_v15  ;;  %v1007_v15 = vld [vmem:[#allocation2 + $0xdc2] sm:$0xff]  ;;  %v1008_v46 = vld [vmem:[#allocation2 + $0xdea] sm:$0xff] }
 0x244   :  { %4237 = vmatmul.mubr.f32.gmra.mrb[80].mxu1 %v3114_v48  ;;  %v944_v48 = vld [vmem:[#allocation2 + $0xcd6] sm:$0xff] }
 0x245   :  { %2050 = vmatmul.mubr.f32.gmra.mrb[78].mxu0 %v931_v19  ;;  %4241 = vmatprep.mubr.f32.mxu1 %v3179_v53  ;;  %v3189_v19 = vld [vmem:[#allocation2 + $0xdbc] sm:$0xff]  ;;  %v1009_v53 = vld [vmem:[#allocation2 + $0xdf2] sm:$0xff] }
 0x246   :  { %2054 = vmatprep.mubr.f32.mxu0 %v996_v45  ;;  %v3125_v45 = vld [vmem:[#allocation2 + $0xb94] sm:$0xff] }
 0x248   :  { %4242 = vmatmul.mubr.f32.gmra.mrb[82].mxu1 %v3115_v32  ;;  %v945_v32 = vld [vmem:[#allocation2 + $0xcde] sm:$0xff] }
 0x249   :  { %2055 = vmatmul.mubr.f32.gmra.mrb[80].mxu0 %v932_v38  ;;  %4246 = vmatprep.mubr.f32.mxu1 %v3180_v49  ;;  %v3190_v38 = vld [vmem:[#allocation2 + $0xde4] sm:$0xff]  ;;  %v1010_v49 = vld [vmem:[#allocation2 + $0xe1a] sm:$0xff] }
 0x24a   :  { %2059 = vmatprep.mubr.f32.mxu0 %v997_v27  ;;  %v3126_v27 = vld [vmem:[#allocation2 + $0xbbc] sm:$0xff] }
 0x24c   :  { %4247 = vmatmul.mubr.f32.gmra.mrb[84].mxu1 %v3116_v61  ;;  %v946_v61 = vld [vmem:[#allocation2 + $0xd06] sm:$0xff] }
 0x24d   :  { %2060 = vmatmul.mubr.f32.gmra.mrb[82].mxu0 %v933_v57  ;;  %4251 = vmatprep.mubr.f32.mxu1 %v3181_v52  ;;  %v3191_v57 = vld [vmem:[#allocation2 + $0xdec] sm:$0xff]  ;;  %v1011_v52 = vld [vmem:[#allocation2 + $0xe22] sm:$0xff] }
 0x24e   :  { %2064 = vmatprep.mubr.f32.mxu0 %v998_v22  ;;  %v3127_v22 = vld [vmem:[#allocation2 + $0xbc4] sm:$0xff] }
 0x250   :  { %4252 = vmatmul.mubr.f32.gmra.mrb[86].mxu1 %v3117_v5  ;;  %v947_v5 = vld [vmem:[#allocation2 + $0xd0e] sm:$0xff] }
 0x251   :  { %2065 = vmatmul.mubr.f32.gmra.mrb[84].mxu0 %v934_v43  ;;  %4256 = vmatprep.mubr.f32.mxu1 %v3182_v7  ;;  %v3192_v43 = vld [vmem:[#allocation2 + $0xe14] sm:$0xff]  ;;  %v1012_v7 = vld [vmem:[#allocation2 + $0xe4a] sm:$0xff] }
 0x252   :  { %2069 = vmatprep.mubr.f32.mxu0 %v999_v60  ;;  %v3128_v60 = vld [vmem:[#allocation2 + $0xbec] sm:$0xff] }
 0x254   :  { %4257 = vmatmul.mubr.f32.gmra.mrb[88].mxu1 %v3118_v8  ;;  %v948_v8 = vld [vmem:[#allocation2 + $0xd36] sm:$0xff] }
 0x255   :  { %2070 = vmatmul.mubr.f32.gmra.mrb[86].mxu0 %v935_v63  ;;  %4261 = vmatprep.mubr.f32.mxu1 %v3183_v6  ;;  %v3193_v63 = vld [vmem:[#allocation2 + $0xe1c] sm:$0xff]  ;;  %v1013_v6 = vld [vmem:[#allocation2 + $0xe52] sm:$0xff] }
 0x256   :  { %2074 = vmatprep.mubr.f32.mxu0 %v1000_v59  ;;  %v3129_v59 = vld [vmem:[#allocation2 + $0xbf4] sm:$0xff] }
 0x258   :  { %4262 = vmatmul.mubr.f32.gmra.mrb[90].mxu1 %v3119_v56  ;;  %v949_v56 = vld [vmem:[#allocation2 + $0xd3e] sm:$0xff] }
 0x259   :  { %2075 = vmatmul.mubr.f32.gmra.mrb[88].mxu0 %v936_v62  ;;  %4266 = vmatprep.mubr.f32.mxu1 %v3184_v11  ;;  %v10577_v62 = vld [vmem:[#allocation2 + $0xe44] sm:$0xff]  ;;  %v1014_v11 = vld [vmem:[#allocation2 + $0xe7a] sm:$0xff] }
 0x25a   :  { %2079 = vmatprep.mubr.f32.mxu0 %v1001_v9  ;;  %v10580_v9 = vld [vmem:[#allocation2 + $0xc1c] sm:$0xff] }
 0x25c   :  { %4267 = vmatmul.mubr.f32.gmra.mrb[92].mxu1 %v3120_v20  ;;  %v950_v20 = vld [vmem:[#allocation2 + $0xd66] sm:$0xff] }
 0x25d   :  { %2080 = vmatmul.mubr.f32.gmra.mrb[90].mxu0 %v937_v4  ;;  %4271 = vmatprep.mubr.f32.mxu1 %v3185_v25  ;;  %v10582_v4 = vld [vmem:[#allocation2 + $0xe4c] sm:$0xff]  ;;  %v1015_v25 = vld [vmem:[#allocation2 + $0xe82] sm:$0xff] }
 0x25e   :  { %2084 = vmatprep.mubr.f32.mxu0 %v1002_v12  ;;  %v10586_v12 = vld [vmem:[#allocation2 + $0xc24] sm:$0xff] }
 0x260   :  { %4272 = vmatmul.mubr.f32.gmra.mrb[94].mxu1 %v3121_v37  ;;  %v951_v37 = vld [vmem:[#allocation2 + $0xd6e] sm:$0xff] }
 0x261   :  { %2085 = vmatmul.mubr.f32.gmra.mrb[92].mxu0 %v938_v17  ;;  %4276 = vmatprep.mubr.f32.mxu1 %v3186_v29  ;;  %v10588_v17 = vld [vmem:[#allocation2 + $0xe74] sm:$0xff]  ;;  %v1016_v29 = vld [vmem:[#allocation2 + $0xeaa] sm:$0xff] }
 0x262   :  { %2089 = vmatprep.mubr.f32.mxu0 %v1003_v21  ;;  %v10592_v21 = vld [vmem:[#allocation2 + $0xc4c] sm:$0xff] }
 0x264   :  { %4277 = vmatmul.mubr.f32.gmra.mrb[96].mxu1 %v3122_v36  ;;  %v952_v36 = vld [vmem:[#allocation2 + $0xd96] sm:$0xff] }
 0x265   :  { %2090 = vmatmul.mubr.f32.gmra.mrb[94].mxu0 %v939_v28  ;;  %4281 = vmatprep.mubr.f32.mxu1 %v3187_v39  ;;  %v10594_v28 = vld [vmem:[#allocation2 + $0xe7c] sm:$0xff]  ;;  %v1017_v39 = vld [vmem:[#allocation2 + $0xeb2] sm:$0xff] }
 0x266   :  { %2094 = vmatprep.mubr.f32.mxu0 %v1004_v26  ;;  %v10598_v26 = vld [vmem:[#allocation2 + $0xc54] sm:$0xff] }
 0x268   :  { %4282 = vmatmul.mubr.f32.gmra.mrb[98].mxu1 %v3123_v50  ;;  %v953_v50 = vld [vmem:[#allocation2 + $0xd9e] sm:$0xff] }
 0x269   :  { %2095 = vmatmul.mubr.f32.gmra.mrb[96].mxu0 %v940_v31  ;;  %4286 = vmatprep.mubr.f32.mxu1 %v3188_v34  ;;  %v10600_v31 = vld [vmem:[#allocation2 + $0xea4] sm:$0xff]  ;;  %v1018_v34 = vld [vmem:[#allocation2 + $0xeda] sm:$0xff] }
 0x26a   :  { %2099 = vmatprep.mubr.f32.mxu0 %v1005_v2  ;;  %v10604_v2 = vld [vmem:[#allocation2 + $0xc7c] sm:$0xff] }
 0x26c   :  { %4287 = vmatmul.mubr.f32.gmra.mrb[100].mxu1 %v3124_v1  ;;  %v954_v1 = vld [vmem:[#allocation2 + $0xdc6] sm:$0xff] }
 0x26d   :  { %2100 = vmatmul.mubr.f32.gmra.mrb[98].mxu0 %v941_v18  ;;  %4291 = vmatprep.mubr.f32.mxu1 %v3189_v19  ;;  %v10606_v18 = vld [vmem:[#allocation2 + $0xeac] sm:$0xff]  ;;  %v1019_v19 = vld [vmem:[#allocation2 + $0xee2] sm:$0xff] }
 0x26e   :  { %2104 = vmatprep.mubr.f32.mxu0 %v1006_v40  ;;  %v10610_v40 = vld [vmem:[#allocation2 + $0xc84] sm:$0xff] }
 0x270   :  { %4292 = vmatmul.mubr.f32.gmra.mrb[102].mxu1 %v3125_v45  ;;  %v955_v45 = vld [vmem:[#allocation2 + $0xdce] sm:$0xff] }
 0x271   :  { %2105 = vmatmul.mubr.f32.gmra.mrb[100].mxu0 %v942_v51  ;;  %4296 = vmatprep.mubr.f32.mxu1 %v3190_v38  ;;  %v10612_v51 = vld [vmem:[#allocation2 + $0xed4] sm:$0xff]  ;;  %v1085_v38 = vld [vmem:[#allocation2 + $0x42a] sm:$0xff] }
 0x272   :  { %2109 = vmatprep.mubr.f32.mxu0 %v1007_v15  ;;  %v10616_v15 = vld [vmem:[#allocation2 + $0xcac] sm:$0xff] }
 0x274   :  { %4297 = vmatmul.mubr.f32.gmra.mrb[104].mxu1 %v3126_v27  ;;  %v1374_v27 = vld [vmem:[%s12969_s3 + $0x308] sm:$0xff] }
 0x275   :  { %2110 = vmatmul.mubr.f32.gmra.mrb[102].mxu0 %v943_v13  ;;  %4301 = vmatprep.mubr.f32.mxu1 %v3191_v57  ;;  %v10618_v13 = vld [vmem:[#allocation2 + $0xedc] sm:$0xff] }
 0x276   :  { %2114 = vmatprep.mubr.f32.mxu0 %v1008_v46  ;;  %v10621_v46 = vld [vmem:[#allocation2 + $0xcb4] sm:$0xff] }
 0x278   :  { %4302 = vmatmul.mubr.f32.gmra.mrb[106].mxu1 %v3127_v22  ;;  %v1375_v22 = vld [vmem:[%s12969_s3 + $0x310] sm:$0xff] }
 0x279   :  { %2115 = vmatmul.mubr.f32.gmra.mrb[104].mxu0 %v944_v48  ;;  %4306 = vmatprep.mubr.f32.mxu1 %v3192_v43  ;;  %v1373_v48 = vld [vmem:[%s12969_s3 + $0x300] sm:$0xff] }
 0x27a   :  { %2119 = vmatprep.mubr.f32.mxu0 %v1009_v53  ;;  %v1020_v53 = vld [vmem:[#allocation2 + $0x316] sm:$0xff]  ;;  %v7721_v57 = vpack.c.bf16 %v1374_v27, %v1373_v48  ;;  %v1021_v43 = vld [vmem:[#allocation2 + $0x31e] sm:$0xff]  ;;  %v1390_v27 = vld [vmem:[%s12969_s3 + $0x388] sm:$0xff] }
 0x27b   :  { %v1389_v48 = vld [vmem:[%s12969_s3 + $0x380] sm:$0xff] }
 0x27c   :  { %4307 = vmatmul.mubr.f32.gmra.mrb[108].mxu1 %v3128_v60 }
 0x27d   :  { %2120 = vmatmul.mubr.f32.gmra.mrb[106].mxu0 %v945_v32  ;;  %4311 = vmatprep.mubr.f32.mxu1 %v3193_v63  ;;  %v1086_v32 = vld [vmem:[#allocation2 + $0x432] sm:$0xff] }
 0x27e   :  { %2124 = vmatprep.mubr.f32.mxu0 %v1010_v49  ;;  %v1376_v49 = vld [vmem:[%s12969_s3 + $0x318] sm:$0xff] }
 0x27f   :  { %v7724_v60 = vpack.c.bf16 %v1376_v49, %v1375_v22  ;;  %v7745_v22 = vpack.c.bf16 %v1390_v27, %v1389_v48  ;;  %v3217_v48 = vld [vmem:[#allocation2 + $0x474] sm:$0xff]  ;;  %v1101_v27 = vld [vmem:[#allocation2 + $0x5aa] sm:$0xff] }
 0x280   :  { %4312 = vmatmul.mubr.f32.gmra.mrb[110].mxu1 %v3129_v59  ;;  %v1380_v59 = vld [vmem:[%s12969_s3 + $0x338] sm:$0xff] }
 0x281   :  { %2125 = vmatmul.mubr.f32.gmra.mrb[108].mxu0 %v946_v61  ;;  %4316 = vmatprep.mubr.f32.mxu1 %v10577_v62  ;;  %v1087_v61 = vld [vmem:[#allocation2 + $0x45a] sm:$0xff] }
 0x282   :  { %2129 = vmatprep.mubr.f32.mxu0 %v1011_v52  ;;  %v1378_v52 = vld [vmem:[%s12969_s3 + $0x328] sm:$0xff] }
 0x284   :  { %4317 = vmatmul.mubr.f32.gmra.mrb[112].mxu1 %v10580_v9 }
 0x285   :  { %2130 = vmatmul.mubr.f32.gmra.mrb[110].mxu0 %v947_v5  ;;  %4321 = vmatprep.mubr.f32.mxu1 %v10582_v4  ;;  %v1379_v5 = vld [vmem:[%s12969_s3 + $0x330] sm:$0xff] }
 0x286   :  { %2134 = vmatprep.mubr.f32.mxu0 %v1012_v7  ;;  %v7730_v7 = vpack.c.bf16 %v1380_v59, %v1379_v5  ;;  %v1394_v5 = vld [vmem:[%s12969_s3 + $0x3a8] sm:$0xff] }
 0x287   :  { %v1030_v59 = vld [vmem:[#allocation2 + $0x406] sm:$0xff] }
 0x288   :  { %4322 = vmatmul.mubr.f32.gmra.mrb[114].mxu1 %v10586_v12 }
 0x289   :  { %2135 = vmatmul.mubr.f32.gmra.mrb[112].mxu0 %v948_v8  ;;  %4326 = vmatprep.mubr.f32.mxu1 %v10588_v17  ;;  %v1381_v8 = vld [vmem:[%s12969_s3 + $0x340] sm:$0xff] }
 0x28a   :  { %2139 = vmatprep.mubr.f32.mxu0 %v1013_v6  ;;  %v1382_v6 = vld [vmem:[%s12969_s3 + $0x348] sm:$0xff] }
 0x28c   :  { %4327 = vmatmul.mubr.f32.gmra.mrb[116].mxu1 %v10592_v21 }
 0x28d   :  { %2140 = vmatmul.mubr.f32.gmra.mrb[114].mxu0 %v949_v56  ;;  %4331 = vmatprep.mubr.f32.mxu1 %v10594_v28  ;;  %v3556_v56 = vld [vmem:[%s12970_s4 + $0x308] sm:$0xff] }
 0x28e   :  { %2144 = vmatprep.mubr.f32.mxu0 %v1014_v11  ;;  %v1090_v11 = vld [vmem:[#allocation2 + $0x492] sm:$0xff] }
 0x290   :  { %4332 = vmatmul.mubr.f32.gmra.mrb[118].mxu1 %v10598_v26 }
 0x291   :  { %2145 = vmatmul.mubr.f32.gmra.mrb[116].mxu0 %v950_v20  ;;  %4336 = vmatprep.mubr.f32.mxu1 %v10600_v31  ;;  %v7733_v20 = vpack.c.bf16 %v1382_v6, %v1381_v8  ;;  %v3278_v8 = vld [vmem:[#allocation2 + $0x63c] sm:$0xff]  ;;  %v1031_v6 = vld [vmem:[#allocation2 + $0x40e] sm:$0xff] }
 0x292   :  { %2149 = vmatprep.mubr.f32.mxu0 %v1015_v25 }
 0x294   :  { %4337 = vmatmul.mubr.f32.gmra.mrb[120].mxu1 %v10604_v2 }
 0x295   :  { %2150 = vmatmul.mubr.f32.gmra.mrb[118].mxu0 %v951_v37  ;;  %4341 = vmatprep.mubr.f32.mxu1 %v10606_v18  ;;  %v1384_v37 = vld [vmem:[%s12969_s3 + $0x358] sm:$0xff] }
 0x296   :  { %2154 = vmatprep.mubr.f32.mxu0 %v1016_v29  ;;  %v1091_v29 = vld [vmem:[#allocation2 + $0x4ba] sm:$0xff] }
 0x298   :  { %4342 = vmatmul.mubr.f32.gmra.mrb[122].mxu1 %v10610_v40 }
 0x299   :  { %2155 = vmatmul.mubr.f32.gmra.mrb[120].mxu0 %v952_v36  ;;  %4346 = vmatprep.mubr.f32.mxu1 %v10612_v51 }
 0x29a   :  { %2159 = vmatprep.mubr.f32.mxu0 %v1017_v39  ;;  %v1385_v39 = vld [vmem:[%s12969_s3 + $0x360] sm:$0xff] }
 0x29c   :  { %4347 = vmatmul.mubr.f32.gmra.mrb[124].mxu1 %v10616_v15 }
 0x29d   :  { %2160 = vmatmul.mubr.f32.gmra.mrb[122].mxu0 %v953_v50  ;;  %4351 = vmatprep.mubr.f32.mxu1 %v10618_v13  ;;  %v1386_v50 = vld [vmem:[%s12969_s3 + $0x368] sm:$0xff] }
 0x29e   :  { %2164 = vmatprep.mubr.f32.mxu0 %v1018_v34  ;;  %v7739_v34 = vpack.c.bf16 %v1386_v50, %v1385_v39  ;;  %v1395_v39 = vld [vmem:[%s12969_s3 + $0x3b0] sm:$0xff]  ;;  %v1396_v50 = vld [vmem:[%s12969_s3 + $0x3b8] sm:$0xff] }
 0x2a0   :  { %4352 = vmatmul.mubr.f32.gmra.mrb[126].mxu1 %v10621_v46 }
 0x2a1   :  { %2165 = vmatmul.mubr.f32.gmra.mrb[124].mxu0 %v954_v1  ;;  %4421 = vmatprep.mubr.f32.mxu1 %v10422_v10  ;;  %v1377_v10 = vld [vmem:[%s12969_s3 + $0x320] sm:$0xff]  ;;  %v1387_v1 = vld [vmem:[%s12969_s3 + $0x370] sm:$0xff] }
 0x2a2   :  { %2169 = vmatprep.mubr.f32.mxu0 %v1019_v19  ;;  %v7727_v63 = vpack.c.bf16 %v1378_v52, %v1377_v10  ;;  %v1388_v19 = vld [vmem:[%s12969_s3 + $0x378] sm:$0xff]  ;;  %v3211_v10 = vld [vmem:[#allocation2 + $0x3e4] sm:$0xff] }
 0x2a3   :  { %v1095_v52 = vld [vmem:[#allocation2 + $0x51a] sm:$0xff] }
 0x2a4   :  { %4422 = vmatmul.mubr.f32.vlgmr.msra.gmra.mrb[0].mxu1 %v10435_v55  ;;  %v1022_v55 = vld [vmem:[#allocation2 + $0x346] sm:$0xff] }
 0x2a5   :  { %2170 = vmatmul.mubr.f32.gmra.mrb[126].mxu0 %v955_v45  ;;  %4426 = vmatprep.mubr.f32.mxu1 %v10437_v47  ;;  %v1088_v47 = vld [vmem:[#allocation2 + $0x462] sm:$0xff]  ;;  %v7742_v45 = vpack.c.bf16 %v1388_v19, %v1387_v1  ;;  %v3281_v1 = vld [vmem:[#allocation2 + $0x694] sm:$0xff] }
 0x2a6   :  { %2239 = vmatprep.mubr.f32.mxu0 %v1085_v38  ;;  %v3275_v38 = vld [vmem:[#allocation2 + $0x604] sm:$0xff] }
 0x2a7   :  { %v1034_v19 = vld [vmem:[#allocation2 + $0x466] sm:$0xff] }
 0x2a8   :  { %4427 = vmatmul.mubr.f32.gmra.mrb[2].mxu1 %v10457_v41  ;;  %v1023_v41 = vld [vmem:[#allocation2 + $0x34e] sm:$0xff] }
 0x2a9   :  { %2240 = vmatmul.mubr.f32.vlgmr.msra.gmra.mrb[0].mxu0 %v1020_v53  ;;  %4431 = vmatprep.mubr.f32.mxu1 %v10459_v24  ;;  %v1089_v24 = vld [vmem:[#allocation2 + $0x48a] sm:$0xff]  ;;  %v3558_v53 = vld [vmem:[%s12970_s4 + $0x318] sm:$0xff] }
 0x2aa   :  { %7722 = vmatpush1.bf16.msra.mxu0 %v7721_v57  ;;  %2244 = vmatprep.mubr.f32.mxu0 %v1086_v32  ;;  %v3210_v57 = vld [vmem:[#allocation2 + $0x3dc] sm:$0xff]  ;;  %v1094_v32 = vld [vmem:[#allocation2 + $0x4f2] sm:$0xff] }
 0x2ab   :  { %7723 = vmatprep.subr.bf16.mxu0 %v8886_v0 }
 0x2ac   :  { %4432 = vmatmul.mubr.f32.gmra.mrb[4].mxu1 %v10473_v16  ;;  %v1024_v16 = vld [vmem:[#allocation2 + $0x376] sm:$0xff] }
 0x2ad   :  { %2245 = vmatmul.mubr.f32.gmra.mrb[2].mxu0 %v1021_v43  ;;  %4436 = vmatprep.mubr.f32.mxu1 %v10475_v30  ;;  %v3555_v30 = vld [vmem:[%s12970_s4 + $0x300] sm:$0xff]  ;;  %v3276_v43 = vld [vmem:[#allocation2 + $0x60c] sm:$0xff] }
 0x2ae   :  { %2249 = vmatprep.mubr.f32.mxu0 %v1087_v61  ;;  %7725 = vmatpush1.bf16.msra.mxu0 %v7724_v60  ;;  %v7913_v25 = vpack.c.bf16 %v3556_v56, %v3555_v30  ;;  %v1392_v61 = vld [vmem:[%s12969_s3 + $0x398] sm:$0xff]  ;;  %v1097_v30 = vld [vmem:[#allocation2 + $0x54a] sm:$0xff] }
 0x2af   :  { %7726 = vmatprep.subr.bf16.mxu0 %v8886_v0  ;;  %v1029_v60 = vld [vmem:[#allocation2 + $0x3de] sm:$0xff] }
 0x2b0   :  { %4437 = vmatmul.mubr.f32.gmra.mrb[6].mxu1 %v10490_v33  ;;  %v1383_v33 = vld [vmem:[%s12969_s3 + $0x350] sm:$0xff]  ;;  %v3279_v56 = vld [vmem:[#allocation2 + $0x664] sm:$0xff] }
 0x2b1   :  { %2250 = vmatmul.mubr.f32.gmra.mrb[4].mxu0 %v1022_v55  ;;  %4441 = vmatprep.mubr.f32.mxu1 %v10492_v35  ;;  %v1025_v35 = vld [vmem:[#allocation2 + $0x37e] sm:$0xff]  ;;  %v7736_v36 = vpack.c.bf16 %v1384_v37, %v1383_v33  ;;  %v1098_v37 = vld [vmem:[#allocation2 + $0x552] sm:$0xff] }
 0x2b2   :  { %2254 = vmatprep.mubr.f32.mxu0 %v1088_v47  ;;  %7728 = vmatpush1.bf16.msra.mxu0 %v7727_v63  ;;  %v3277_v47 = vld [vmem:[#allocation2 + $0x634] sm:$0xff]  ;;  %v1393_v63 = vld [vmem:[%s12969_s3 + $0x3a0] sm:$0xff] }
 0x2b3   :  { %7729 = vmatprep.subr.bf16.mxu0 %v8886_v0  ;;  %7914 = vmatpush1.bf16.msra.mxu1 %v7913_v25  ;;  %v3560_v25 = vld [vmem:[%s12970_s4 + $0x328] sm:$0xff]  ;;  %v3214_v33 = vld [vmem:[#allocation2 + $0x43c] sm:$0xff] }
 0x2b4   :  { %4442 = vmatmul.mubr.f32.gmra.mrb[8].mxu1 %v10506_v23  ;;  %7915 = vmatprep.subr.bf16.mxu1 %v8886_v0  ;;  %v1026_v23 = vld [vmem:[#allocation2 + $0x3a6] sm:$0xff] }
 0x2b5   :  { %2255 = vmatmul.mubr.f32.gmra.mrb[6].mxu0 %v1023_v41  ;;  %4446 = vmatprep.mubr.f32.mxu1 %v10508_v44  ;;  %v1092_v44 = vld [vmem:[#allocation2 + $0x4c2] sm:$0xff]  ;;  %v3212_v41 = vld [vmem:[#allocation2 + $0x40c] sm:$0xff] }
 0x2b6   :  { %2259 = vmatprep.mubr.f32.mxu0 %v1089_v24  ;;  %7731 = vmatpush1.bf16.msra.mxu0 %v7730_v7  ;;  %v1096_v24 = vld [vmem:[#allocation2 + $0x522] sm:$0xff]  ;;  %v7751_v7 = vpack.c.bf16 %v1394_v5, %v1393_v63  ;;  %v3220_v5 = vld [vmem:[#allocation2 + $0x4cc] sm:$0xff] }
 0x2b7   :  { %7732 = vmatprep.subr.bf16.mxu0 %v8886_v0  ;;  %v1038_v63 = vld [vmem:[#allocation2 + $0x4c6] sm:$0xff] }
 0x2b8   :  { %4447 = vmatmul.mubr.f32.gmra.mrb[10].mxu1 %v10528_v54  ;;  %v1027_v54 = vld [vmem:[#allocation2 + $0x3ae] sm:$0xff] }
 0x2b9   :  { %2260 = vmatmul.mubr.f32.gmra.mrb[8].mxu0 %v1024_v16  ;;  %4451 = vmatprep.mubr.f32.mxu1 %v10530_v42  ;;  %v1093_v42 = vld [vmem:[#allocation2 + $0x4ea] sm:$0xff]  ;;  %v3213_v16 = vld [vmem:[#allocation2 + $0x414] sm:$0xff] }
 0x2ba   :  { %2264 = vmatprep.mubr.f32.mxu0 %v1090_v11  ;;  %7734 = vmatpush1.bf16.msra.mxu0 %v7733_v20  ;;  %v1032_v11 = vld [vmem:[#allocation2 + $0x436] sm:$0xff]  ;;  %v3559_v20 = vld [vmem:[%s12970_s4 + $0x320] sm:$0xff] }
 0x2bb   :  { %7735 = vmatprep.subr.bf16.mxu0 %v8886_v0 }
 0x2bc   :  { %4452 = vmatmul.mubr.f32.gmra.mrb[12].mxu1 %v10544_v58  ;;  %v1028_v58 = vld [vmem:[#allocation2 + $0x3d6] sm:$0xff] }
 0x2bd   :  { %2265 = vmatmul.mubr.f32.gmra.mrb[10].mxu0 %v1025_v35  ;;  %4456 = vmatprep.mubr.f32.mxu1 %v10546_v3  ;;  %v3557_v3 = vld [vmem:[%s12970_s4 + $0x310] sm:$0xff]  ;;  %v7919_v35 = vpack.c.bf16 %v3560_v25, %v3559_v20 }
 0x2be   :  { %2269 = vmatprep.mubr.f32.mxu0 %v1091_v29  ;;  %7737 = vmatpush1.bf16.msra.mxu0 %v7736_v36  ;;  %v7916_v49 = vpack.c.bf16 %v3558_v53, %v3557_v3  ;;  %v3280_v29 = vld [vmem:[#allocation2 + $0x66c] sm:$0xff]  ;;  %v1033_v36 = vld [vmem:[#allocation2 + $0x43e] sm:$0xff]  ;;  %v1036_v3 = vld [vmem:[#allocation2 + $0x496] sm:$0xff] }
 0x2bf   :  { %7738 = vmatprep.subr.bf16.mxu0 %v8886_v0  ;;  %v3561_v53 = vld [vmem:[%s12970_s4 + $0x330] sm:$0xff] }
 0x2c0   :  { %4457 = vmatmul.mubr.f32.gmra.mrb[14].mxu1 %v10558_v14  ;;  %v1391_v14 = vld [vmem:[%s12969_s3 + $0x390] sm:$0xff] }
 0x2c1   :  { %2270 = vmatmul.mubr.f32.gmra.mrb[12].mxu0 %v1026_v23  ;;  %4461 = vmatprep.mubr.f32.mxu1 %v3275_v38  ;;  %v7748_v55 = vpack.c.bf16 %v1392_v61, %v1391_v14  ;;  %v3215_v23 = vld [vmem:[#allocation2 + $0x444] sm:$0xff]  ;;  %v1035_v38 = vld [vmem:[#allocation2 + $0x46e] sm:$0xff] }
 0x2c2   :  { %2274 = vmatprep.mubr.f32.mxu0 %v1092_v44  ;;  %7740 = vmatpush1.bf16.msra.mxu0 %v7739_v34  ;;  %v1099_v44 = vld [vmem:[#allocation2 + $0x57a] sm:$0xff]  ;;  %v7754_v34 = vpack.c.bf16 %v1396_v50, %v1395_v39  ;;  %v1106_v20 = vld [vmem:[#allocation2 + $0x612] sm:$0xff] }
 0x2c3   :  { %7741 = vmatprep.subr.bf16.mxu0 %v8886_v0  ;;  %7917 = vmatpush1.bf16.msra.mxu1 %v7916_v49  ;;  %v1037_v14 = vld [vmem:[#allocation2 + $0x49e] sm:$0xff] }
 0x2c4   :  { %4462 = vmatmul.mubr.f32.gmra.mrb[16].mxu1 %v3210_v57  ;;  %7918 = vmatprep.subr.bf16.mxu1 %v8886_v0  ;;  %v3562_v57 = vld [vmem:[%s12970_s4 + $0x338] sm:$0xff]  ;;  %v1397_v61 = vld [vmem:[%s12969_s3 + $0x3c0] sm:$0xff] }
 0x2c5   :  { %2275 = vmatmul.mubr.f32.gmra.mrb[14].mxu0 %v1027_v54  ;;  %4466 = vmatprep.mubr.f32.mxu1 %v3276_v43  ;;  %v3216_v54 = vld [vmem:[#allocation2 + $0x46c] sm:$0xff]  ;;  %v7922_v49 = vpack.c.bf16 %v3562_v57, %v3561_v53  ;;  %v1107_v39 = vld [vmem:[#allocation2 + $0x63a] sm:$0xff]  ;;  %v3291_v57 = vld [vmem:[#allocation2 + $0x784] sm:$0xff] }
 0x2c6   :  { %2279 = vmatprep.mubr.f32.mxu0 %v1093_v42  ;;  %7743 = vmatpush1.bf16.msra.mxu0 %v7742_v45  ;;  %v1100_v42 = vld [vmem:[#allocation2 + $0x582] sm:$0xff]  ;;  %v3284_v43 = vld [vmem:[#allocation2 + $0x6cc] sm:$0xff] }
 0x2c7   :  { %7744 = vmatprep.subr.bf16.mxu0 %v8886_v0  ;;  %7920 = vmatpush1.bf16.msra.mxu1 %v7919_v35  ;;  %v3282_v45 = vld [vmem:[#allocation2 + $0x69c] sm:$0xff]  ;;  %v1399_v35 = vld [vmem:[%s12969_s3 + $0x3d0] sm:$0xff] }
 0x2c8   :  { %4467 = vmatmul.mubr.f32.gmra.mrb[18].mxu1 %v3211_v10  ;;  %7921 = vmatprep.subr.bf16.mxu1 %v8886_v0  ;;  %v3219_v10 = vld [vmem:[#allocation2 + $0x4a4] sm:$0xff] }
 0x2c9   :  { %2280 = vmatmul.mubr.f32.gmra.mrb[16].mxu0 %v1028_v58  ;;  %4471 = vmatprep.mubr.f32.mxu1 %v3277_v47  ;;  %v3283_v58 = vld [vmem:[#allocation2 + $0x6c4] sm:$0xff]  ;;  %v3285_v47 = vld [vmem:[#allocation2 + $0x6f4] sm:$0xff] }
 0x2ca   :  { %2284 = vmatprep.mubr.f32.mxu0 %v1094_v32  ;;  %7746 = vmatpush1.bf16.msra.mxu0 %v7745_v22  ;;  %v3218_v32 = vld [vmem:[#allocation2 + $0x49c] sm:$0xff]  ;;  %v1102_v22 = vld [vmem:[#allocation2 + $0x5b2] sm:$0xff]  ;;  %v1109_v53 = vld [vmem:[#allocation2 + $0x66a] sm:$0xff] }
 0x2cb   :  { %7747 = vmatprep.subr.bf16.mxu0 %v8886_v0  ;;  %7923 = vmatpush1.bf16.msra.mxu1 %v7922_v49 }
 0x2cc   :  { %4472 = vmatmul.mubr.f32.gmra.mrb[20].mxu1 %v3212_v41  ;;  %7924 = vmatprep.subr.bf16.mxu1 %v8886_v0  ;;  %v3286_v41 = vld [vmem:[#allocation2 + $0x6fc] sm:$0xff] }
 0x2cd   :  { %2285 = vmatmul.mubr.f32.gmra.mrb[18].mxu0 %v1029_v60  ;;  %4476 = vmatprep.mubr.f32.mxu1 %v3278_v8  ;;  %v1398_v60 = vld [vmem:[%s12969_s3 + $0x3c8] sm:$0xff] }
 0x2ce   :  { %2289 = vmatprep.mubr.f32.mxu0 %v1095_v52  ;;  %7749 = vmatpush1.bf16.msra.mxu0 %v7748_v55  ;;  %v1103_v52 = vld [vmem:[#allocation2 + $0x5da] sm:$0xff]  ;;  %v7757_v55 = vpack.c.bf16 %v1398_v60, %v1397_v61  ;;  %v1105_v8 = vld [vmem:[#allocation2 + $0x60a] sm:$0xff]  ;;  %v1110_v61 = vld [vmem:[#allocation2 + $0x672] sm:$0xff] }
 0x2cf   :  { %7750 = vmatprep.subr.bf16.mxu0 %v8886_v0  ;;  %v3292_v60 = vld [vmem:[#allocation2 + $0x78c] sm:$0xff] }
 0x2d0   :  { %4477 = vmatmul.mubr.f32.gmra.mrb[22].mxu1 %v3213_v16  ;;  %v1040_v16 = vld [vmem:[#allocation2 + $0x4f6] sm:$0xff] }
 0x2d1   :  { %2290 = vmatmul.mubr.f32.gmra.mrb[20].mxu0 %v1030_v59  ;;  %4481 = vmatprep.mubr.f32.mxu1 %v3279_v56  ;;  %v1104_v59 = vld [vmem:[#allocation2 + $0x5e2] sm:$0xff] }
 0x2d2   :  { %2294 = vmatprep.mubr.f32.mxu0 %v1096_v24  ;;  %7752 = vmatpush1.bf16.msra.mxu0 %v7751_v7  ;;  %v1039_v24 = vld [vmem:[#allocation2 + $0x4ce] sm:$0xff] }
 0x2d3   :  { %7753 = vmatprep.subr.bf16.mxu0 %v8886_v0  ;;  %v3221_v7 = vld [vmem:[#allocation2 + $0x4d4] sm:$0xff]  ;;  %v3564_v56 = vld [vmem:[%s12970_s4 + $0x348] sm:$0xff] }
 0x2d4   :  { %4482 = vmatmul.mubr.f32.gmra.mrb[24].mxu1 %v3214_v33  ;;  %v3288_v33 = vld [vmem:[#allocation2 + $0x72c] sm:$0xff] }
 0x2d5   :  { %2295 = vmatmul.mubr.f32.gmra.mrb[22].mxu0 %v1031_v6  ;;  %4486 = vmatprep.mubr.f32.mxu1 %v3280_v29  ;;  %v3287_v6 = vld [vmem:[#allocation2 + $0x724] sm:$0xff]  ;;  %v1400_v29 = vld [vmem:[%s12969_s3 + $0x3d8] sm:$0xff] }
 0x2d6   :  { %2299 = vmatprep.mubr.f32.mxu0 %v1097_v30  ;;  %7755 = vmatpush1.bf16.msra.mxu0 %v7754_v34  ;;  %v3563_v30 = vld [vmem:[%s12970_s4 + $0x340] sm:$0xff]  ;;  %v7760_v50 = vpack.c.bf16 %v1400_v29, %v1399_v35  ;;  %v3566_v34 = vld [vmem:[%s12970_s4 + $0x358] sm:$0xff]  ;;  %v1047_v35 = vld [vmem:[#allocation2 + $0x58e] sm:$0xff] }
 0x2d7   :  { %7756 = vmatprep.subr.bf16.mxu0 %v8886_v0  ;;  %v7925_v25 = vpack.c.bf16 %v3564_v56, %v3563_v30  ;;  %v1046_v30 = vld [vmem:[#allocation2 + $0x586] sm:$0xff]  ;;  %v10831_v29 = vld [vmem:[#allocation2 + $0x594] sm:$0xff] }
 0x2d8   :  { %4487 = vmatmul.mubr.f32.gmra.mrb[26].mxu1 %v3215_v23  ;;  %v3289_v23 = vld [vmem:[#allocation2 + $0x754] sm:$0xff]  ;;  %v10820_v56 = vld [vmem:[#allocation2 + $0x58c] sm:$0xff] }
 0x2d9   :  { %2300 = vmatmul.mubr.f32.gmra.mrb[24].mxu0 %v1032_v11  ;;  %4491 = vmatprep.mubr.f32.mxu1 %v3281_v1  ;;  %v3222_v11 = vld [vmem:[#allocation2 + $0x4fc] sm:$0xff] }
 0x2da   :  { %2304 = vmatprep.mubr.f32.mxu0 %v1098_v37  ;;  %7758 = vmatpush1.bf16.msra.mxu0 %v7757_v55  ;;  %v1041_v37 = vld [vmem:[#allocation2 + $0x4fe] sm:$0xff] }
 0x2db   :  { %7759 = vmatprep.subr.bf16.mxu0 %v8886_v0  ;;  %7926 = vmatpush1.bf16.msra.mxu1 %v7925_v25  ;;  %v3575_v25 = vld [vmem:[%s12970_s4 + $0x3a0] sm:$0xff] }
 0x2dc   :  { %4492 = vmatmul.mubr.f32.gmra.mrb[28].mxu1 %v3216_v54  ;;  %7927 = vmatprep.subr.bf16.mxu1 %v8886_v0  ;;  %v3224_v54 = vld [vmem:[#allocation2 + $0x52c] sm:$0xff] }
 0x2dd   :  { %2305 = vmatmul.mubr.f32.gmra.mrb[26].mxu0 %v1033_v36  ;;  %4496 = vmatprep.mubr.f32.mxu1 %v3282_v45  ;;  %v3223_v36 = vld [vmem:[#allocation2 + $0x504] sm:$0xff]  ;;  %v3290_v45 = vld [vmem:[#allocation2 + $0x75c] sm:$0xff] }
 0x2de   :  { %2309 = vmatprep.mubr.f32.mxu0 %v1099_v44  ;;  %v3565_v44 = vld [vmem:[%s12970_s4 + $0x350] sm:$0xff]  ;;  %7761 = vmatpush1.bf16.msra.mxu0 %v7760_v50 }
 0x2df   :  { %v7928_v1 = vpack.c.bf16 %v3566_v34, %v3565_v44  ;;  %7762 = vmatprep.subr.bf16.mxu0 %v8886_v0  ;;  %v3577_v50 = vld [vmem:[%s12970_s4 + $0x3b0] sm:$0xff] }
 0x2e0   :  { %4497 = vmatmul.mubr.f32.gmra.mrb[30].mxu1 %v3217_v48  ;;  %v3568_v48 = vld [vmem:[%s12970_s4 + $0x368] sm:$0xff]  ;;  %v1048_v34 = vld [vmem:[#allocation2 + $0x5b6] sm:$0xff] }
 0x2e1   :  { %2310 = vmatmul.mubr.f32.gmra.mrb[28].mxu0 %v1034_v19  ;;  %4501 = vmatprep.mubr.f32.mxu1 %v3283_v58  ;;  %v1042_v19 = vld [vmem:[#allocation2 + $0x526] sm:$0xff]  ;;  %v1043_v58 = vld [vmem:[#allocation2 + $0x52e] sm:$0xff] }
 0x2e2   :  { %2314 = vmatprep.mubr.f32.mxu0 %v1100_v42  ;;  %v1108_v42 = vld [vmem:[#allocation2 + $0x642] sm:$0xff]  ;;  %7929 = vmatpush1.bf16.msra.mxu1 %v7928_v1 }
 0x2e3   :  { %7930 = vmatprep.subr.bf16.mxu1 %v8886_v0  ;;  %v10841_v1 = vld [vmem:[#allocation2 + $0x5bc] sm:$0xff] }
 0x2e4   :  { %4502 = vmatmul.mubr.f32.gmra.mrb[32].mxu1 %v3218_v32  ;;  %v3569_v32 = vld [vmem:[%s12970_s4 + $0x370] sm:$0xff] }
 0x2e5   :  { %2315 = vmatmul.mubr.f32.gmra.mrb[30].mxu0 %v1035_v38  ;;  %4506 = vmatprep.mubr.f32.mxu1 %v3284_v43  ;;  %v3567_v38 = vld [vmem:[%s12970_s4 + $0x360] sm:$0xff]  ;;  %v1044_v43 = vld [vmem:[#allocation2 + $0x556] sm:$0xff] }
 0x2e6   :  { %2319 = vmatprep.mubr.f32.mxu0 %v1101_v27  ;;  %v7931_v27 = vpack.c.bf16 %v3568_v48, %v3567_v38  ;;  %v1049_v48 = vld [vmem:[#allocation2 + $0x5be] sm:$0xff] }
 0x2e8   :  { %4507 = vmatmul.mubr.f32.gmra.mrb[34].mxu1 %v3219_v10  ;;  %v3571_v10 = vld [vmem:[%s12970_s4 + $0x380] sm:$0xff] }
 0x2e9   :  { %2320 = vmatmul.mubr.f32.gmra.mrb[32].mxu0 %v1036_v3  ;;  %4511 = vmatprep.mubr.f32.mxu1 %v3285_v47  ;;  %v3225_v3 = vld [vmem:[#allocation2 + $0x534] sm:$0xff]  ;;  %v1045_v47 = vld [vmem:[#allocation2 + $0x55e] sm:$0xff] }
 0x2ea   :  { %2324 = vmatprep.mubr.f32.mxu0 %v1102_v22  ;;  %7932 = vmatpush1.bf16.msra.mxu1 %v7931_v27  ;;  %v3570_v22 = vld [vmem:[%s12970_s4 + $0x378] sm:$0xff]  ;;  %v1403_v27 = vld [vmem:[%s12969_s3 + $0x3f0] sm:$0xff] }
 0x2eb   :  { %7933 = vmatprep.subr.bf16.mxu1 %v8886_v0  ;;  %v7934_v49 = vpack.c.bf16 %v3570_v22, %v3569_v32  ;;  %v3297_v32 = vld [vmem:[#allocation2 + $0x814] sm:$0xff] }
 0x2ec   :  { %4512 = vmatmul.mubr.f32.gmra.mrb[36].mxu1 %v3220_v5  ;;  %v1402_v5 = vld [vmem:[%s12969_s3 + $0x3e8] sm:$0xff]  ;;  %v3581_v22 = vld [vmem:[%s12970_s4 + $0x3d0] sm:$0xff] }
 0x2ed   :  { %2325 = vmatmul.mubr.f32.gmra.mrb[34].mxu0 %v1037_v14  ;;  %4516 = vmatprep.mubr.f32.mxu1 %v3286_v41  ;;  %v10794_v14 = vld [vmem:[#allocation2 + $0x55c] sm:$0xff] }
 0x2ee   :  { %2329 = vmatprep.mubr.f32.mxu0 %v1103_v52  ;;  %7935 = vmatpush1.bf16.msra.mxu1 %v7934_v49  ;;  %v3572_v52 = vld [vmem:[%s12970_s4 + $0x388] sm:$0xff]  ;;  %v1111_v41 = vld [vmem:[#allocation2 + $0x69a] sm:$0xff] }
 0x2ef   :  { %7936 = vmatprep.subr.bf16.mxu1 %v8886_v0  ;;  %v7937_v55 = vpack.c.bf16 %v3572_v52, %v3571_v10  ;;  %v3582_v49 = vld [vmem:[%s12970_s4 + $0x3d8] sm:$0xff]  ;;  %v1116_v10 = vld [vmem:[#allocation2 + $0x702] sm:$0xff] }
 0x2f0   :  { %4517 = vmatmul.mubr.f32.gmra.mrb[38].mxu1 %v3221_v7  ;;  %v3293_v7 = vld [vmem:[#allocation2 + $0x7b4] sm:$0xff]  ;;  %v3298_v52 = vld [vmem:[#allocation2 + $0x81c] sm:$0xff] }
 0x2f1   :  { %2330 = vmatmul.mubr.f32.gmra.mrb[36].mxu0 %v1038_v63  ;;  %4521 = vmatprep.mubr.f32.mxu1 %v3287_v6  ;;  %v1401_v63 = vld [vmem:[%s12969_s3 + $0x3e0] sm:$0xff]  ;;  %v3574_v6 = vld [vmem:[%s12970_s4 + $0x398] sm:$0xff] }
 0x2f2   :  { %2334 = vmatprep.mubr.f32.mxu0 %v1104_v59  ;;  %v10810_v59 = vld [vmem:[#allocation2 + $0x564] sm:$0xff]  ;;  %7938 = vmatpush1.bf16.msra.mxu1 %v7937_v55 }
 0x2f3   :  { %7939 = vmatprep.subr.bf16.mxu1 %v8886_v0  ;;  %v3583_v55 = vld [vmem:[%s12970_s4 + $0x3e0] sm:$0xff] }
 0x2f4   :  { %4522 = vmatmul.mubr.f32.gmra.mrb[40].mxu1 %v3222_v11  ;;  %v1112_v11 = vld [vmem:[#allocation2 + $0x6a2] sm:$0xff] }
 0x2f5   :  { %2335 = vmatmul.mubr.f32.gmra.mrb[38].mxu0 %v1039_v24  ;;  %4526 = vmatprep.mubr.f32.mxu1 %v3288_v33  ;;  %v7763_v24 = vpack.c.bf16 %v1402_v5, %v1401_v63  ;;  %v3576_v33 = vld [vmem:[%s12970_s4 + $0x3a8] sm:$0xff] }
 0x2f6   :  { %2339 = vmatprep.mubr.f32.mxu0 %v1105_v8  ;;  %v3573_v8 = vld [vmem:[%s12970_s4 + $0x390] sm:$0xff] }
 0x2f7   :  { %7764 = vmatpush1.bf16.msra.mxu0 %v7763_v24  ;;  %v1051_v5 = vld [vmem:[#allocation2 + $0x5ee] sm:$0xff] }
 0x2f8   :  { %4527 = vmatmul.mubr.f32.gmra.mrb[42].mxu1 %v3223_v36  ;;  %7765 = vmatprep.subr.bf16.mxu0 %v8886_v0  ;;  %v1113_v36 = vld [vmem:[#allocation2 + $0x6ca] sm:$0xff] }
 0x2f9   :  { %2340 = vmatmul.mubr.f32.gmra.mrb[40].mxu0 %v1040_v16  ;;  %4531 = vmatprep.mubr.f32.mxu1 %v3289_v23  ;;  %v7940_v16 = vpack.c.bf16 %v3574_v6, %v3573_v8  ;;  %v3578_v23 = vld [vmem:[%s12970_s4 + $0x3b8] sm:$0xff]  ;;  %v1117_v24 = vld [vmem:[#allocation2 + $0xd2a] sm:$0xff] }
 0x2fa   :  { %2344 = vmatprep.mubr.f32.mxu0 %v1106_v20  ;;  %v3294_v20 = vld [vmem:[#allocation2 + $0x7bc] sm:$0xff]  ;;  %v7946_v44 = vpack.c.bf16 %v3578_v23, %v3577_v50  ;;  %v3308_v50 = vld [vmem:[#allocation2 + $0xf0c] sm:$0xff] }
 0x2fb   :  { %7941 = vmatpush1.bf16.msra.mxu1 %v7940_v16  ;;  %v3586_v8 = vld [vmem:[%s12970_s4 + $0x3f8] sm:$0xff] }
 0x2fc   :  { %4532 = vmatmul.mubr.f32.gmra.mrb[44].mxu1 %v3224_v54  ;;  %7942 = vmatprep.subr.bf16.mxu1 %v8886_v0  ;;  %v3296_v54 = vld [vmem:[#allocation2 + $0x7ec] sm:$0xff]  ;;  %v1052_v16 = vld [vmem:[#allocation2 + $0xc16] sm:$0xff] }
 0x2fd   :  { %2345 = vmatmul.mubr.f32.gmra.mrb[42].mxu0 %v1041_v37  ;;  %4536 = vmatprep.mubr.f32.mxu1 %v3290_v45  ;;  %v7943_v37 = vpack.c.bf16 %v3576_v33, %v3575_v25  ;;  %v3580_v45 = vld [vmem:[%s12970_s4 + $0x3c8] sm:$0xff]  ;;  %v93_v25 = vld [vmem:[%s12972_s1 + $0x18] sm:$0xff] }
 0x2fe   :  { %2349 = vmatprep.mubr.f32.mxu0 %v1107_v39  ;;  %v3295_v39 = vld [vmem:[#allocation2 + $0x7e4] sm:$0xff]  ;;  %v1127_v23 = vld [vmem:[#allocation2 + $0xe1a] sm:$0xff] }
 0x2ff   :  { %7944 = vmatpush1.bf16.msra.mxu1 %v7943_v37  ;;  %v1121_v37 = vld [vmem:[#allocation2 + $0xd8a] sm:$0xff] }
 0x300   :  { %4537 = vmatmul.mubr.f32.gmra.mrb[46].mxu1 %v3225_v3  ;;  %7945 = vmatprep.subr.bf16.mxu1 %v8886_v0  ;;  %v10857_v3 = vld [vmem:[#allocation2 + $0x5c4] sm:$0xff] }
 0x301   :  { %2350 = vmatmul.mubr.f32.gmra.mrb[44].mxu0 %v1042_v19  ;;  %4541 = vmatprep.mubr.f32.mxu1 %v3291_v57  ;;  %v1114_v19 = vld [vmem:[#allocation2 + $0x6d2] sm:$0xff] }
 0x302   :  { %2354 = vmatprep.mubr.f32.mxu0 %v1108_v42  ;;  %v3579_v42 = vld [vmem:[%s12970_s4 + $0x3c0] sm:$0xff] }
 0x303   :  { %7947 = vmatpush1.bf16.msra.mxu1 %v7946_v44  ;;  %v7949_v38 = vpack.c.bf16 %v3580_v45, %v3579_v42  ;;  %v3309_v44 = vld [vmem:[#allocation2 + $0xf34] sm:$0xff]  ;;  %v1129_v45 = vld [vmem:[#allocation2 + $0xe4a] sm:$0xff] }
 0x304   :  { %4542 = vmatmul.mubr.f32.gmra.mrb[48].mxu1 %v10794_v14  ;;  %7948 = vmatprep.subr.bf16.mxu1 %v8886_v0  ;;  %v3245_v42 = vld [vmem:[#allocation2 + $0xd14] sm:$0xff] }
 0x305   :  { %2355 = vmatmul.mubr.f32.gmra.mrb[46].mxu0 %v1043_v58  ;;  %4546 = vmatprep.mubr.f32.mxu1 %v3292_v60  ;;  %v1404_v58 = vld [vmem:[%s12969_s3 + $0x3f8] sm:$0xff]  ;;  %v10867_v60 = vld [vmem:[#allocation2 + $0x5ec] sm:$0xff] }
 0x306   :  { %2359 = vmatprep.mubr.f32.mxu0 %v1109_v53  ;;  %v1115_v53 = vld [vmem:[#allocation2 + $0x6fa] sm:$0xff]  ;;  %v7766_v57 = vpack.c.bf16 %v1404_v58, %v1403_v27  ;;  %v1130_v58 = vld [vmem:[#allocation2 + $0xe52] sm:$0xff] }
 0x307   :  { %7950 = vmatpush1.bf16.msra.mxu1 %v7949_v38  ;;  %v3311_v38 = vld [vmem:[#allocation2 + $0xf64] sm:$0xff]  ;;  %v3246_v27 = vld [vmem:[#allocation2 + $0xd3c] sm:$0xff] }
 0x308   :  { %4547 = vmatmul.mubr.f32.gmra.mrb[50].mxu1 %v10810_v59  ;;  %7951 = vmatprep.subr.bf16.mxu1 %v8886_v0 }
 0x309   :  { %2360 = vmatmul.mubr.f32.gmra.mrb[48].mxu0 %v1044_v43  ;;  %4551 = vmatprep.mubr.f32.mxu1 %v3293_v7  ;;  %v7952_v43 = vpack.c.bf16 %v3582_v49, %v3581_v22  ;;  %v3585_v7 = vld [vmem:[%s12970_s4 + $0x3f0] sm:$0xff]  ;;  %v1131_v22 = vld [vmem:[#allocation2 + $0xe7a] sm:$0xff] }
 0x30a   :  { %2364 = vmatprep.mubr.f32.mxu0 %v1110_v61  ;;  %v1050_v61 = vld [vmem:[#allocation2 + $0x5e6] sm:$0xff]  ;;  %7767 = vmatpush1.bf16.msra.mxu0 %v7766_v57  ;;  %v7958_v6 = vpack.c.bf16 %v3586_v8, %v3585_v7  ;;  %v1065_v57 = vld [vmem:[#allocation2 + $0xd3e] sm:$0xff]  ;;  %v3313_v49 = vld [vmem:[#allocation2 + $0xf94] sm:$0xff] }
 0x30b   :  { %7953 = vmatpush1.bf16.msra.mxu1 %v7952_v43  ;;  %v1066_v43 = vld [vmem:[#allocation2 + $0xd66] sm:$0xff]  ;;  %v3250_v7 = vld [vmem:[#allocation2 + $0xd9c] sm:$0xff]  ;;  %v1134_v8 = vld [vmem:[#allocation2 + $0xeb2] sm:$0xff] }
 0x30c   :  { %4552 = vmatmul.mubr.f32.gmra.mrb[52].mxu1 %v10820_v56  ;;  %7954 = vmatprep.subr.bf16.mxu1 %v8886_v0 }
 0x30d   :  { %2365 = vmatmul.mubr.f32.gmra.mrb[50].mxu0 %v1045_v47  ;;  %4556 = vmatprep.mubr.f32.mxu1 %v3294_v20  ;;  %v3584_v47 = vld [vmem:[%s12970_s4 + $0x3e8] sm:$0xff]  ;;  %v1119_v20 = vld [vmem:[#allocation2 + $0xd5a] sm:$0xff] }
 0x30e   :  { %2369 = vmatprep.mubr.f32.mxu0 %v1111_v41  ;;  %v7955_v63 = vpack.c.bf16 %v3584_v47, %v3583_v55  ;;  %v10877_v41 = vld [vmem:[#allocation2 + $0x5f4] sm:$0xff] }
 0x30f   :  { %v1067_v55 = vld [vmem:[#allocation2 + $0xd6e] sm:$0xff] }
 0x310   :  { %4557 = vmatmul.mubr.f32.gmra.mrb[54].mxu1 %v10831_v29  ;;  %v3249_v47 = vld [vmem:[#allocation2 + $0xd74] sm:$0xff] }
 0x311   :  { %2370 = vmatmul.mubr.f32.gmra.mrb[52].mxu0 %v1046_v30  ;;  %4561 = vmatprep.mubr.f32.mxu1 %v3295_v39  ;;  %v1118_v30 = vld [vmem:[#allocation2 + $0xd32] sm:$0xff] }
 0x312   :  { %2374 = vmatprep.mubr.f32.mxu0 %v1112_v11  ;;  %7956 = vmatpush1.bf16.msra.mxu1 %v7955_v63  ;;  %v1053_v11 = vld [vmem:[#allocation2 + $0xc1e] sm:$0xff]  ;;  %v1126_v39 = vld [vmem:[#allocation2 + $0xdf2] sm:$0xff]  ;;  %v1133_v63 = vld [vmem:[#allocation2 + $0xeaa] sm:$0xff] }
 0x313   :  { %7957 = vmatprep.subr.bf16.mxu1 %v8886_v0  ;;  %v91_v0 = vld [vmem:[%s12972_s1 + $0x8] sm:$0xff] }
 0x314   :  { %4562 = vmatmul.mubr.f32.gmra.mrb[56].mxu1 %v10841_v1  ;;  %v7960_v33 = vpack.c.bf16 %v93_v25, %v91_v0  ;;  %v1070_v0 = vld [vmem:[#allocation2 + $0xdc6] sm:$0xff] }
 0x315   :  { %2375 = vmatmul.mubr.f32.gmra.mrb[54].mxu0 %v1047_v35  ;;  %4566 = vmatprep.mubr.f32.mxu1 %v3296_v54  ;;  %v1056_v35 = vld [vmem:[#allocation2 + $0xc76] sm:$0xff]  ;;  %v1063_v54 = vld [vmem:[#allocation2 + $0xd0e] sm:$0xff] }
 0x316   :  { %2379 = vmatprep.mubr.f32.mxu0 %v1113_v36  ;;  %7959 = vmatpush1.bf16.msra.mxu1 %v7958_v6  ;;  %v3307_v36 = vld [vmem:[#allocation2 + $0xf04] sm:$0xff]  ;;  %v3316_v6 = vld [vmem:[#allocation2 + $0xfcc] sm:$0xff] }
 0x317   :  { %7961 = vmatprep.subr.bf16.mxu0 %v7960_v33  ;;  %v3252_v25 = vld [vmem:[#allocation2 + $0xdcc] sm:$0xff]  ;;  %v3318_v33 = vld [vmem:[#allocation2 + $0xffc] sm:$0xff] }
 0x318   :  { %4567 = vmatmul.mubr.f32.gmra.mrb[58].mxu1 %v10857_v3 }
 0x319   :  { %2380 = vmatmul.mubr.f32.gmra.mrb[56].mxu0 %v1048_v34  ;;  %4571 = vmatprep.mubr.f32.mxu1 %v3297_v32  ;;  %v1128_v34 = vld [vmem:[#allocation2 + $0xe22] sm:$0xff] }
 0x31a   :  { %2384 = vmatprep.mubr.f32.mxu0 %v1114_v19  ;;  %v3310_v19 = vld [vmem:[#allocation2 + $0xf3c] sm:$0xff]  ;;  %v3247_v32 = vld [vmem:[#allocation2 + $0xd44] sm:$0xff] }
 0x31c   :  { %4572 = vmatmul.mubr.f32.gmra.mrb[60].mxu1 %v10867_v60 }
 0x31d   :  { %2385 = vmatmul.mubr.f32.gmra.mrb[58].mxu0 %v1049_v48  ;;  %4576 = vmatprep.mubr.f32.mxu1 %v3298_v52  ;;  %v1064_v48 = vld [vmem:[#allocation2 + $0xd36] sm:$0xff] }
 0x31e   :  { %2389 = vmatprep.mubr.f32.mxu0 %v1115_v53  ;;  %v3312_v53 = vld [vmem:[#allocation2 + $0xf6c] sm:$0xff]  ;;  %v3314_v52 = vld [vmem:[#allocation2 + $0xf9c] sm:$0xff] }
 0x320   :  { %4577 = vmatmul.mubr.f32.gmra.mrb[62].mxu1 %v10877_v41 }
 0x321   :  { %2390 = vmatmul.mubr.f32.gmra.mrb[60].mxu0 %v1050_v61  ;;  %4581 = vmatprep.mubr.f32.mxu1 %v10577_v62  ;;  %v1054_v62 = vld [vmem:[#allocation2 + $0xc46] sm:$0xff] }
 0x322   :  { %2394 = vmatprep.mubr.f32.mxu0 %v1116_v10  ;;  %v3248_v61 = vld [vmem:[#allocation2 + $0xd6c] sm:$0xff]  ;;  %v1132_v10 = vld [vmem:[#allocation2 + $0xe82] sm:$0xff] }
 0x324   :  { %4582 = vmatmul.mubr.f32.gmra.mrb[64].mxu1 %v10580_v9  ;;  %v1120_v9 = vld [vmem:[#allocation2 + $0xd62] sm:$0xff] }
 0x325   :  { %2395 = vmatmul.mubr.f32.gmra.mrb[62].mxu0 %v1051_v5  ;;  %4586 = vmatprep.mubr.f32.mxu1 %v10582_v4  ;;  %v1055_v4 = vld [vmem:[#allocation2 + $0xc4e] sm:$0xff]  ;;  %v3315_v5 = vld [vmem:[#allocation2 + $0xfc4] sm:$0xff] }
 0x326   :  { %2399 = vmatprep.mubr.f32.mxu0 %v1117_v24  ;;  %v1068_v24 = vld [vmem:[#allocation2 + $0xd96] sm:$0xff] }
 0x328   :  { %4587 = vmatmul.mubr.f32.gmra.mrb[66].mxu1 %v10586_v12  ;;  %v1122_v12 = vld [vmem:[#allocation2 + $0xd92] sm:$0xff] }
 0x329   :  { %2400 = vmatmul.mubr.f32.gmra.mrb[64].mxu0 %v1052_v16  ;;  %4591 = vmatprep.mubr.f32.mxu1 %v10588_v17  ;;  %v1057_v17 = vld [vmem:[#allocation2 + $0xc7e] sm:$0xff] }
 0x32a   :  { %2404 = vmatprep.mubr.f32.mxu0 %v1118_v30  ;;  %v1069_v16 = vld [vmem:[#allocation2 + $0xd9e] sm:$0xff] }
 0x32b   :  { %v3251_v30 = vld [vmem:[#allocation2 + $0xda4] sm:$0xff] }
 0x32c   :  { %4592 = vmatmul.mubr.f32.gmra.mrb[68].mxu1 %v10592_v21  ;;  %v1123_v21 = vld [vmem:[#allocation2 + $0xdba] sm:$0xff] }
 0x32d   :  { %2405 = vmatmul.mubr.f32.gmra.mrb[66].mxu0 %v1053_v11  ;;  %4596 = vmatprep.mubr.f32.mxu1 %v10594_v28  ;;  %v1058_v28 = vld [vmem:[#allocation2 + $0xca6] sm:$0xff]  ;;  %v1135_v11 = vld [vmem:[#allocation2 + $0xeda] sm:$0xff] }
 0x32e   :  { %2409 = vmatprep.mubr.f32.mxu0 %v1119_v20  ;;  %v3317_v20 = vld [vmem:[#allocation2 + $0xff4] sm:$0xff] }
 0x330   :  { %4597 = vmatmul.mubr.f32.gmra.mrb[70].mxu1 %v10598_v26  ;;  %v1124_v26 = vld [vmem:[#allocation2 + $0xdc2] sm:$0xff] }
 0x331   :  { %2410 = vmatmul.mubr.f32.gmra.mrb[68].mxu0 %v1054_v62  ;;  %4601 = vmatprep.mubr.f32.mxu1 %v10600_v31  ;;  %v1059_v31 = vld [vmem:[#allocation2 + $0xcae] sm:$0xff]  ;;  %v8817_v62 = vld [vmem:[#allocation2 + $0xee2] sm:$0xff] }
 0x332   :  { %2414 = vmatprep.mubr.f32.mxu0 %v1120_v9  ;;  %v3253_v9 = vld [vmem:[#allocation2 + $0xdd4] sm:$0xff] }
 0x334   :  { %4602 = vmatmul.mubr.f32.gmra.mrb[72].mxu1 %v10604_v2  ;;  %v1125_v2 = vld [vmem:[#allocation2 + $0xdea] sm:$0xff] }
 0x335   :  { %2415 = vmatmul.mubr.f32.gmra.mrb[70].mxu0 %v1055_v4  ;;  %4606 = vmatprep.mubr.f32.mxu1 %v10606_v18  ;;  %v1060_v18 = vld [vmem:[#allocation2 + $0xcd6] sm:$0xff]  ;;  %v1137_v4 = vld [vmem:[#allocation2 + $0xf0a] sm:$0xff] }
 0x336   :  { %2419 = vmatprep.mubr.f32.mxu0 %v1121_v37  ;;  %v3319_v37 = vld [vmem:[#allocation2 + $0x1024] sm:$0xff] }
 0x338   :  { %4607 = vmatmul.mubr.f32.gmra.mrb[74].mxu1 %v10610_v40  ;;  %v3242_v40 = vld [vmem:[#allocation2 + $0xcdc] sm:$0xff] }
 0x339   :  { %2420 = vmatmul.mubr.f32.gmra.mrb[72].mxu0 %v1056_v35  ;;  %4611 = vmatprep.mubr.f32.mxu1 %v10612_v51  ;;  %v1061_v51 = vld [vmem:[#allocation2 + $0xcde] sm:$0xff]  ;;  %v8818_v35 = vld [vmem:[#allocation2 + $0xdce] sm:$0xff] }
 0x33a   :  { %2424 = vmatprep.mubr.f32.mxu0 %v1122_v12  ;;  %v1072_v12 = vld [vmem:[#allocation2 + $0xdf6] sm:$0xff] }
 0x33c   :  { %4612 = vmatmul.mubr.f32.gmra.mrb[76].mxu1 %v10616_v15  ;;  %v3243_v15 = vld [vmem:[#allocation2 + $0xce4] sm:$0xff] }
 0x33d   :  { %2425 = vmatmul.mubr.f32.gmra.mrb[74].mxu0 %v1057_v17  ;;  %4616 = vmatprep.mubr.f32.mxu1 %v10618_v13  ;;  %v1062_v13 = vld [vmem:[#allocation2 + $0xd06] sm:$0xff]  ;;  %v3254_v17 = vld [vmem:[#allocation2 + $0xdfc] sm:$0xff] }
 0x33e   :  { %2429 = vmatprep.mubr.f32.mxu0 %v1123_v21  ;;  %v1138_v21 = vld [vmem:[#allocation2 + $0xf12] sm:$0xff] }
 0x340   :  { %4617 = vmatmul.mubr.f32.gmra.mrb[78].mxu1 %v10621_v46  ;;  %v3244_v46 = vld [vmem:[#allocation2 + $0xd0c] sm:$0xff] }
 0x341   :  { %2430 = vmatmul.mubr.f32.gmra.mrb[76].mxu0 %v1058_v28  ;;  %4621 = vmatprep.mubr.f32.mxu1 %v3307_v36  ;;  %v3320_v28 = vld [vmem:[#allocation2 + $0x102c] sm:$0xff]  ;;  %v3321_v36 = vld [vmem:[#allocation2 + $0x1054] sm:$0xff] }
 0x342   :  { %2434 = vmatprep.mubr.f32.mxu0 %v1124_v26  ;;  %v1073_v26 = vld [vmem:[#allocation2 + $0xdfe] sm:$0xff] }
 0x344   :  { %4622 = vmatmul.mubr.f32.gmra.mrb[80].mxu1 %v3242_v40  ;;  %v3256_v40 = vld [vmem:[#allocation2 + $0xe2c] sm:$0xff] }
 0x345   :  { %2435 = vmatmul.mubr.f32.gmra.mrb[78].mxu0 %v1059_v31  ;;  %4626 = vmatprep.mubr.f32.mxu1 %v3308_v50  ;;  %v3255_v31 = vld [vmem:[#allocation2 + $0xe04] sm:$0xff]  ;;  %v3322_v50 = vld [vmem:[#allocation2 + $0x105c] sm:$0xff] }
 0x346   :  { %2439 = vmatprep.mubr.f32.mxu0 %v1125_v2  ;;  %v1139_v2 = vld [vmem:[#allocation2 + $0xf3a] sm:$0xff] }
 0x348   :  { %4627 = vmatmul.mubr.f32.gmra.mrb[82].mxu1 %v3243_v15  ;;  %v3257_v15 = vld [vmem:[#allocation2 + $0xe34] sm:$0xff] }
 0x349   :  { %2440 = vmatmul.mubr.f32.gmra.mrb[80].mxu0 %v1060_v18  ;;  %4631 = vmatprep.mubr.f32.mxu1 %v3309_v44  ;;  %v1074_v18 = vld [vmem:[#allocation2 + $0xe26] sm:$0xff] }
 0x34a   :  { %2444 = vmatprep.mubr.f32.mxu0 %v1126_v39  ;;  %v1140_v39 = vld [vmem:[#allocation2 + $0xf42] sm:$0xff] }
 0x34b   :  { %v3323_v44 = vld [vmem:[#allocation2 + $0x1084] sm:$0xff] }
 0x34c   :  { %4632 = vmatmul.mubr.f32.gmra.mrb[84].mxu1 %v3244_v46  ;;  %v10911_v46 = vld [vmem:[#allocation2 + $0xe5c] sm:$0xff] }
 0x34d   :  { %2445 = vmatmul.mubr.f32.gmra.mrb[82].mxu0 %v1061_v51  ;;  %4636 = vmatprep.mubr.f32.mxu1 %v3310_v19  ;;  %v1075_v51 = vld [vmem:[#allocation2 + $0xe2e] sm:$0xff] }
 0x34e   :  { %2449 = vmatprep.mubr.f32.mxu0 %v1127_v23  ;;  %v1141_v23 = vld [vmem:[#allocation2 + $0xf6a] sm:$0xff] }
 0x34f   :  { %v3324_v19 = vld [vmem:[#allocation2 + $0x108c] sm:$0xff] }
 0x350   :  { %4637 = vmatmul.mubr.f32.gmra.mrb[86].mxu1 %v3245_v42  ;;  %v10917_v42 = vld [vmem:[#allocation2 + $0xe64] sm:$0xff] }
 0x351   :  { %2450 = vmatmul.mubr.f32.gmra.mrb[84].mxu0 %v1062_v13  ;;  %4641 = vmatprep.mubr.f32.mxu1 %v3311_v38  ;;  %v10909_v13 = vld [vmem:[#allocation2 + $0xe56] sm:$0xff] }
 0x352   :  { %2454 = vmatprep.mubr.f32.mxu0 %v1128_v34  ;;  %v1142_v34 = vld [vmem:[#allocation2 + $0xf72] sm:$0xff] }
 0x353   :  { %v3325_v38 = vld [vmem:[#allocation2 + $0x10b4] sm:$0xff] }
 0x354   :  { %4642 = vmatmul.mubr.f32.gmra.mrb[88].mxu1 %v3246_v27  ;;  %v10923_v27 = vld [vmem:[#allocation2 + $0xe8c] sm:$0xff] }
 0x355   :  { %2455 = vmatmul.mubr.f32.gmra.mrb[86].mxu0 %v1063_v54  ;;  %4646 = vmatprep.mubr.f32.mxu1 %v3312_v53  ;;  %v10915_v54 = vld [vmem:[#allocation2 + $0xe5e] sm:$0xff] }
 0x356   :  { %2459 = vmatprep.mubr.f32.mxu0 %v1129_v45  ;;  %v1143_v45 = vld [vmem:[#allocation2 + $0xf9a] sm:$0xff] }
 0x357   :  { %v3326_v53 = vld [vmem:[#allocation2 + $0x10bc] sm:$0xff] }
 0x358   :  { %4647 = vmatmul.mubr.f32.gmra.mrb[90].mxu1 %v3247_v32  ;;  %v10929_v32 = vld [vmem:[#allocation2 + $0xe94] sm:$0xff] }
 0x359   :  { %2460 = vmatmul.mubr.f32.gmra.mrb[88].mxu0 %v1064_v48  ;;  %4651 = vmatprep.mubr.f32.mxu1 %v3313_v49  ;;  %v10921_v48 = vld [vmem:[#allocation2 + $0xe86] sm:$0xff] }
 0x35a   :  { %2464 = vmatprep.mubr.f32.mxu0 %v1130_v58  ;;  %v1144_v58 = vld [vmem:[#allocation2 + $0xfa2] sm:$0xff] }
 0x35b   :  { %v3327_v49 = vld [vmem:[#allocation2 + $0x10e4] sm:$0xff] }
 0x35c   :  { %4652 = vmatmul.mubr.f32.gmra.mrb[92].mxu1 %v3248_v61  ;;  %v10935_v61 = vld [vmem:[#allocation2 + $0xebc] sm:$0xff] }
 0x35d   :  { %2465 = vmatmul.mubr.f32.gmra.mrb[90].mxu0 %v1065_v57  ;;  %4656 = vmatprep.mubr.f32.mxu1 %v3314_v52  ;;  %v10927_v57 = vld [vmem:[#allocation2 + $0xe8e] sm:$0xff] }
 0x35e   :  { %2469 = vmatprep.mubr.f32.mxu0 %v1131_v22  ;;  %v1145_v22 = vld [vmem:[#allocation2 + $0xfca] sm:$0xff] }
 0x35f   :  { %v3328_v52 = vld [vmem:[#allocation2 + $0x10ec] sm:$0xff] }
 0x360   :  { %4657 = vmatmul.mubr.f32.gmra.mrb[94].mxu1 %v3249_v47  ;;  %v10941_v47 = vld [vmem:[#allocation2 + $0xec4] sm:$0xff] }
 0x361   :  { %2470 = vmatmul.mubr.f32.gmra.mrb[92].mxu0 %v1066_v43  ;;  %4661 = vmatprep.mubr.f32.mxu1 %v3315_v5  ;;  %v10933_v43 = vld [vmem:[#allocation2 + $0xeb6] sm:$0xff] }
 0x362   :  { %2474 = vmatprep.mubr.f32.mxu0 %v1132_v10  ;;  %v1146_v10 = vld [vmem:[#allocation2 + $0xfd2] sm:$0xff] }
 0x363   :  { %v3329_v5 = vld [vmem:[#allocation2 + $0x1114] sm:$0xff] }
 0x364   :  { %4662 = vmatmul.mubr.f32.gmra.mrb[96].mxu1 %v3250_v7  ;;  %v10947_v7 = vld [vmem:[#allocation2 + $0xeec] sm:$0xff] }
 0x365   :  { %2475 = vmatmul.mubr.f32.gmra.mrb[94].mxu0 %v1067_v55  ;;  %4666 = vmatprep.mubr.f32.mxu1 %v3316_v6  ;;  %v10939_v55 = vld [vmem:[#allocation2 + $0xebe] sm:$0xff] }
 0x366   :  { %2479 = vmatprep.mubr.f32.mxu0 %v1133_v63  ;;  %v1147_v63 = vld [vmem:[#allocation2 + $0xffa] sm:$0xff] }
 0x367   :  { %v3330_v6 = vld [vmem:[#allocation2 + $0x111c] sm:$0xff] }
 0x368   :  { %4667 = vmatmul.mubr.f32.gmra.mrb[98].mxu1 %v3251_v30  ;;  %v10953_v30 = vld [vmem:[#allocation2 + $0xef4] sm:$0xff] }
 0x369   :  { %2480 = vmatmul.mubr.f32.gmra.mrb[96].mxu0 %v1068_v24  ;;  %4671 = vmatprep.mubr.f32.mxu1 %v3317_v20  ;;  %v10945_v24 = vld [vmem:[#allocation2 + $0xee6] sm:$0xff] }
 0x36a   :  { %2484 = vmatprep.mubr.f32.mxu0 %v1134_v8  ;;  %v1148_v8 = vld [vmem:[#allocation2 + $0x1002] sm:$0xff] }
 0x36b   :  { %v90_v20 = vld [vmem:[%s12972_s1] sm:$0xff] }
 0x36c   :  { %4672 = vmatmul.mubr.f32.gmra.mrb[100].mxu1 %v3252_v25  ;;  %v95_v25 = vld [vmem:[%s12972_s1 + $0x28] sm:$0xff] }
 0x36d   :  { %2485 = vmatmul.mubr.f32.gmra.mrb[98].mxu0 %v1069_v16  ;;  %4676 = vmatprep.mubr.f32.mxu1 %v3318_v33  ;;  %v10951_v16 = vld [vmem:[#allocation2 + $0xeee] sm:$0xff]  ;;  %v97_v33 = vld [vmem:[%s12972_s1 + $0x38] sm:$0xff] }
 0x36e   :  { %2489 = vmatprep.mubr.f32.mxu0 %v1135_v11  ;;  %v1213_v11 = vld [vmem:[#allocation2 + $0x436] sm:$0xff] }
 0x370   :  { %4677 = vmatmul.mubr.f32.gmra.mrb[102].mxu1 %v3253_v9 }
 0x371   :  { %2490 = vmatmul.mubr.f32.gmra.mrb[100].mxu0 %v1070_v0  ;;  %4681 = vmatprep.mubr.f32.mxu1 %v3319_v37  ;;  %v92_v0 = vld [vmem:[%s12972_s1 + $0x10] sm:$0xff]  ;;  %v1214_v37 = vld [vmem:[#allocation2 + $0x43e] sm:$0xff] }
 0x372   :  { %2494 = vmatprep.mubr.f32.mxu0 %v8817_v62  ;;  %v1149_v62 = vld [vmem:[#allocation2 + $0x430] sm:$0xff]  ;;  %v7962_v9 = vpack.c.bf16 %v92_v0, %v90_v20  ;;  %v1219_v20 = vld [vmem:[#allocation2 + $0x4c6] sm:$0xff] }
 0x373   :  { %v11036_v0 = vld [vmem:[#allocation2 + $0x5e0] sm:$0xff] }
 0x374   :  { %4682 = vmatmul.mubr.f32.gmra.mrb[104].mxu1 %v3254_v17  ;;  %v96_v17 = vld [vmem:[%s12972_s1 + $0x30] sm:$0xff] }
 0x375   :  { %2495 = vmatmul.mubr.f32.gmra.mrb[102].mxu0 %v8818_v35  ;;  %4686 = vmatprep.mubr.f32.mxu1 %v3320_v28  ;;  %v7964_v35 = vpack.c.bf16 %v97_v33, %v95_v25  ;;  %v1150_v28 = vld [vmem:[#allocation2 + $0x438] sm:$0xff]  ;;  %v1220_v25 = vld [vmem:[#allocation2 + $0x4ce] sm:$0xff] }
 0x376   :  { %2499 = vmatprep.mubr.f32.mxu0 %v1137_v4  ;;  %v10970_v4 = vld [vmem:[#allocation2 + $0x550] sm:$0xff]  ;;  %v1156_v33 = vld [vmem:[#allocation2 + $0x4c8] sm:$0xff] }
 0x378   :  { %4687 = vmatmul.mubr.f32.gmra.mrb[106].mxu1 %v3255_v31  ;;  %v1215_v31 = vld [vmem:[#allocation2 + $0x466] sm:$0xff] }
 0x379   :  { %2500 = vmatmul.mubr.f32.gmra.mrb[104].mxu0 %v1072_v12  ;;  %4691 = vmatprep.mubr.f32.mxu1 %v3321_v36  ;;  %v94_v12 = vld [vmem:[%s12972_s1 + $0x20] sm:$0xff] }
 0x37a   :  { %2504 = vmatprep.mubr.f32.mxu0 %v1138_v21  ;;  %v99_v21 = vld [vmem:[%s12972_s1 + $0x48] sm:$0xff] }
 0x37c   :  { %4692 = vmatmul.mubr.f32.gmra.mrb[108].mxu1 %v3256_v40  ;;  %v100_v40 = vld [vmem:[%s12972_s1 + $0x50] sm:$0xff] }
 0x37d   :  { %2505 = vmatmul.mubr.f32.gmra.mrb[106].mxu0 %v1073_v26  ;;  %4696 = vmatprep.mubr.f32.mxu1 %v3322_v50  ;;  %v10986_v26 = vld [vmem:[#allocation2 + $0x558] sm:$0xff]  ;;  %v1151_v50 = vld [vmem:[#allocation2 + $0x460] sm:$0xff] }
 0x37e   :  { %2509 = vmatprep.mubr.f32.mxu0 %v1139_v2  ;;  %v7966_v2 = vpack.c.bf16 %v96_v17, %v94_v12  ;;  %v1158_v12 = vld [vmem:[#allocation2 + $0x4f8] sm:$0xff]  ;;  %v11043_v17 = vld [vmem:[#allocation2] sm:$0xff] }
 0x380   :  { %4697 = vmatmul.mubr.f32.gmra.mrb[110].mxu1 %v3257_v15  ;;  %v1216_v15 = vld [vmem:[#allocation2 + $0x46e] sm:$0xff] }
 0x381   :  { %2510 = vmatmul.mubr.f32.gmra.mrb[108].mxu0 %v1074_v18  ;;  %4701 = vmatprep.mubr.f32.mxu1 %v3323_v44  ;;  %v98_v18 = vld [vmem:[%s12972_s1 + $0x40] sm:$0xff] }
 0x382   :  { %2514 = vmatprep.mubr.f32.mxu0 %v1140_v39  ;;  %v103_v39 = vld [vmem:[%s12972_s1 + $0x68] sm:$0xff] }
 0x384   :  { %4702 = vmatmul.mubr.f32.gmra.mrb[112].mxu1 %v10911_v46 }
 0x385   :  { %2515 = vmatmul.mubr.f32.gmra.mrb[110].mxu0 %v1075_v51  ;;  %4706 = vmatprep.mubr.f32.mxu1 %v3324_v19  ;;  %v11002_v51 = vld [vmem:[#allocation2 + $0x580] sm:$0xff]  ;;  %v104_v19 = vld [vmem:[%s12972_s1 + $0x70] sm:$0xff] }
 0x386   :  { %2519 = vmatprep.mubr.f32.mxu0 %v1141_v23  ;;  %v7970_v23 = vpack.c.bf16 %v100_v40, %v98_v18  ;;  %v1159_v40 = vld [vmem:[#allocation2 + $0x520] sm:$0xff] }
 0x388   :  { %4707 = vmatmul.mubr.f32.gmra.mrb[114].mxu1 %v10917_v42 }
 0x389   :  { %2520 = vmatmul.mubr.f32.gmra.mrb[112].mxu0 %v10909_v13  ;;  %4711 = vmatprep.mubr.f32.mxu1 %v3325_v38  ;;  %v1152_v38 = vld [vmem:[#allocation2 + $0x468] sm:$0xff] }
 0x38a   :  { %2524 = vmatprep.mubr.f32.mxu0 %v1142_v34  ;;  %v102_v34 = vld [vmem:[%s12972_s1 + $0x60] sm:$0xff] }
 0x38c   :  { %4712 = vmatmul.mubr.f32.gmra.mrb[116].mxu1 %v10923_v27 }
 0x38d   :  { %2525 = vmatmul.mubr.f32.gmra.mrb[114].mxu0 %v10915_v54  ;;  %4716 = vmatprep.mubr.f32.mxu1 %v3326_v53  ;;  %v1217_v53 = vld [vmem:[#allocation2 + $0x496] sm:$0xff] }
 0x38e   :  { %2529 = vmatprep.mubr.f32.mxu0 %v1143_v45  ;;  %v109_v45 = vld [vmem:[%s12972_s1 + $0x98] sm:$0xff] }
 0x390   :  { %4717 = vmatmul.mubr.f32.gmra.mrb[118].mxu1 %v10929_v32 }
 0x391   :  { %2530 = vmatmul.mubr.f32.gmra.mrb[116].mxu0 %v10921_v48  ;;  %4721 = vmatprep.mubr.f32.mxu1 %v3327_v49 }
 0x392   :  { %2534 = vmatprep.mubr.f32.mxu0 %v1144_v58  ;;  %v11018_v58 = vld [vmem:[#allocation2 + $0x588] sm:$0xff] }
 0x394   :  { %4722 = vmatmul.mubr.f32.gmra.mrb[120].mxu1 %v10935_v61 }
 0x395   :  { %2535 = vmatmul.mubr.f32.gmra.mrb[118].mxu0 %v10927_v57  ;;  %4726 = vmatprep.mubr.f32.mxu1 %v3328_v52  ;;  %v108_v52 = vld [vmem:[%s12972_s1 + $0x90] sm:$0xff] }
 0x396   :  { %2539 = vmatprep.mubr.f32.mxu0 %v1145_v22  ;;  %v7974_v22 = vpack.c.bf16 %v104_v19, %v102_v34  ;;  %v3408_v34 = vld [vmem:[#allocation2 + $0x684] sm:$0xff] }
 0x397   :  { %v1227_v19 = vld [vmem:[#allocation2 + $0x586] sm:$0xff] }
 0x398   :  { %4727 = vmatmul.mubr.f32.gmra.mrb[122].mxu1 %v10941_v47 }
 0x399   :  { %2540 = vmatmul.mubr.f32.gmra.mrb[120].mxu0 %v10933_v43  ;;  %4731 = vmatprep.mubr.f32.mxu1 %v3329_v5  ;;  %v1218_v5 = vld [vmem:[#allocation2 + $0x49e] sm:$0xff] }
 0x39a   :  { %2544 = vmatprep.mubr.f32.mxu0 %v1146_v10  ;;  %v106_v10 = vld [vmem:[%s12972_s1 + $0x80] sm:$0xff] }
 0x39c   :  { %4732 = vmatmul.mubr.f32.gmra.mrb[124].mxu1 %v10947_v7 }
 0x39d   :  { %2545 = vmatmul.mubr.f32.gmra.mrb[122].mxu0 %v10939_v55  ;;  %4736 = vmatprep.mubr.f32.mxu1 %v3330_v6  ;;  %v1154_v6 = vld [vmem:[#allocation2 + $0x498] sm:$0xff] }
 0x39e   :  { %2549 = vmatprep.mubr.f32.mxu0 %v1147_v63  ;;  %v11028_v63 = vld [vmem:[#allocation2 + $0x5b0] sm:$0xff] }
 0x3a0   :  { %4737 = vmatmul.mubr.f32.gmra.mrb[126].mxu1 %v10953_v30 }
 0x3a1   :  { %2550 = vmatmul.mubr.f32.gmra.mrb[124].mxu0 %v10945_v24  ;;  %4806 = vmatprep.mubr.f32.mxu1 %v10794_v14  ;;  %v101_v14 = vld [vmem:[%s12972_s1 + $0x58] sm:$0xff] }
 0x3a2   :  { %2554 = vmatprep.mubr.f32.mxu0 %v1148_v8  ;;  %v7968_v36 = vpack.c.bf16 %v101_v14, %v99_v21  ;;  %v7978_v8 = vpack.c.bf16 %v108_v52, %v106_v10  ;;  %v113_v21 = vld [vmem:[%s12972_s1 + $0xb8] sm:$0xff]  ;;  %v110_v14 = vld [vmem:[%s12972_s1 + $0xa0] sm:$0xff] }
 0x3a3   :  { %v1231_v10 = vld [vmem:[#allocation2 + $0x5e6] sm:$0xff] }
 0x3a4   :  { %4807 = vmatmul.mubr.f32.vlgmr.msra.gmra.mrb[0].mxu1 %v10970_v4 }
 0x3a5   :  { %2555 = vmatmul.mubr.f32.gmra.mrb[126].mxu0 %v10951_v16  ;;  %4811 = vmatprep.mubr.f32.mxu1 %v10810_v59  ;;  %v105_v59 = vld [vmem:[%s12972_s1 + $0x78] sm:$0xff] }
 0x3a6   :  { %2624 = vmatprep.mubr.f32.mxu0 %v1213_v11  ;;  %v7972_v44 = vpack.c.bf16 %v105_v59, %v103_v39  ;;  %v11032_v11 = vld [vmem:[#allocation2 + $0x5b8] sm:$0xff]  ;;  %v1224_v39 = vld [vmem:[#allocation2 + $0x52e] sm:$0xff] }
 0x3a7   :  { %v3406_v59 = vld [vmem:[#allocation2 + $0x654] sm:$0xff] }
 0x3a8   :  { %4812 = vmatmul.mubr.f32.gmra.mrb[2].mxu1 %v10986_v26 }
 0x3a9   :  { %2625 = vmatmul.mubr.f32.vlgmr.msra.gmra.mrb[0].mxu0 %v1149_v62  ;;  %4816 = vmatprep.mubr.f32.mxu1 %v10820_v56  ;;  %v107_v56 = vld [vmem:[%s12972_s1 + $0x88] sm:$0xff]  ;;  %v1221_v62 = vld [vmem:[#allocation2 + $0x4f6] sm:$0xff] }
 0x3aa   :  { %7963 = vmatpush1.bf16.msra.mxu0 %v7962_v9  ;;  %2629 = vmatprep.mubr.f32.mxu0 %v1214_v37  ;;  %v7976_v49 = vpack.c.bf16 %v109_v45, %v107_v56  ;;  %v3403_v9 = vld [vmem:[#allocation2 + $0x61c] sm:$0xff]  ;;  %v1157_v37 = vld [vmem:[#allocation2 + $0x4f0] sm:$0xff] }
 0x3ab   :  { %7965 = vmatprep.subr.bf16.mxu0 %v7964_v35  ;;  %v3404_v35 = vld [vmem:[#allocation2 + $0x624] sm:$0xff]  ;;  %v3409_v56 = vld [vmem:[#allocation2 + $0x6ac] sm:$0xff] }
 0x3ac   :  { %4817 = vmatmul.mubr.f32.gmra.mrb[4].mxu1 %v11002_v51  ;;  %v1228_v45 = vld [vmem:[#allocation2 + $0x58e] sm:$0xff] }
 0x3ad   :  { %2630 = vmatmul.mubr.f32.gmra.mrb[2].mxu0 %v1150_v28  ;;  %4821 = vmatprep.mubr.f32.mxu1 %v10831_v29  ;;  %v1153_v29 = vld [vmem:[#allocation2 + $0x490] sm:$0xff]  ;;  %v1223_v28 = vld [vmem:[#allocation2 + $0x526] sm:$0xff] }
 0x3ae   :  { %2634 = vmatprep.mubr.f32.mxu0 %v1215_v31  ;;  %7967 = vmatpush1.bf16.msra.mxu0 %v7966_v2  ;;  %v112_v2 = vld [vmem:[%s12972_s1 + $0xb0] sm:$0xff] }
 0x3af   :  { %7969 = vmatprep.subr.bf16.mxu0 %v7968_v36  ;;  %v3405_v36 = vld [vmem:[#allocation2 + $0x64c] sm:$0xff]  ;;  %v7982_v18 = vpack.c.bf16 %v112_v2, %v110_v14 }
 0x3b0   :  { %4822 = vmatmul.mubr.f32.gmra.mrb[6].mxu1 %v11018_v58  ;;  %v119_v2 = vld [vmem:[%s12972_s1 + $0xe8] sm:$0xff] }
 0x3b1   :  { %2635 = vmatmul.mubr.f32.gmra.mrb[4].mxu0 %v1151_v50  ;;  %4826 = vmatprep.mubr.f32.mxu1 %v10841_v1  ;;  %v1155_v1 = vld [vmem:[#allocation2 + $0x4c0] sm:$0xff]  ;;  %v1160_v50 = vld [vmem:[#allocation2 + $0x528] sm:$0xff] }
 0x3b2   :  { %2639 = vmatprep.mubr.f32.mxu0 %v1216_v15  ;;  %7971 = vmatpush1.bf16.msra.mxu0 %v7970_v23  ;;  %v1225_v15 = vld [vmem:[#allocation2 + $0x556] sm:$0xff] }
 0x3b3   :  { %7973 = vmatprep.subr.bf16.mxu0 %v7972_v44  ;;  %v3407_v23 = vld [vmem:[#allocation2 + $0x67c] sm:$0xff] }
 0x3b4   :  { %4827 = vmatmul.mubr.f32.gmra.mrb[8].mxu1 %v11028_v63  ;;  %v1226_v44 = vld [vmem:[#allocation2 + $0x55e] sm:$0xff] }
 0x3b5   :  { %2640 = vmatmul.mubr.f32.gmra.mrb[6].mxu0 %v1152_v38  ;;  %4831 = vmatprep.mubr.f32.mxu1 %v10857_v3  ;;  %v11040_v3 = vld [vmem:[#allocation2 + $0x5e8] sm:$0xff]  ;;  %v3410_v38 = vld [vmem:[#allocation2 + $0x6b4] sm:$0xff] }
 0x3b6   :  { %2644 = vmatprep.mubr.f32.mxu0 %v1217_v53  ;;  %7975 = vmatpush1.bf16.msra.mxu0 %v7974_v22  ;;  %v3411_v53 = vld [vmem:[#allocation2 + $0x6dc] sm:$0xff]  ;;  %v3412_v22 = vld [vmem:[#allocation2 + $0x6e4] sm:$0xff] }
 0x3b7   :  { %7977 = vmatprep.subr.bf16.mxu0 %v7976_v49  ;;  %v117_v49 = vld [vmem:[%s12972_s1 + $0xd8] sm:$0xff] }
 0x3b8   :  { %4832 = vmatmul.mubr.f32.gmra.mrb[10].mxu1 %v11032_v11 }
 0x3b9   :  { %2645 = vmatmul.mubr.f32.gmra.mrb[8].mxu0 %v1153_v29  ;;  %4836 = vmatprep.mubr.f32.mxu1 %v10867_v60  ;;  %v1222_v60 = vld [vmem:[#allocation2 + $0x4fe] sm:$0xff]  ;;  %v116_v29 = vld [vmem:[%s12972_s1 + $0xd0] sm:$0xff] }
 0x3ba   :  { %2649 = vmatprep.mubr.f32.mxu0 %v1218_v5  ;;  %7979 = vmatpush1.bf16.msra.mxu0 %v7978_v8  ;;  %v1232_v8 = vld [vmem:[#allocation2 + $0x5ee] sm:$0xff] }
 0x3bc   :  { %4837 = vmatmul.mubr.f32.gmra.mrb[12].mxu1 %v11036_v0 }
 0x3bd   :  { %2650 = vmatmul.mubr.f32.gmra.mrb[10].mxu0 %v1154_v6  ;;  %4841 = vmatprep.mubr.f32.mxu1 %v10877_v41  ;;  %v111_v41 = vld [vmem:[%s12972_s1 + $0xa8] sm:$0xff]  ;;  %v3414_v6 = vld [vmem:[#allocation2 + $0x714] sm:$0xff] }
 0x3be   :  { %2654 = vmatprep.mubr.f32.mxu0 %v1219_v20  ;;  %v7980_v31 = vpack.c.bf16 %v113_v21, %v111_v41  ;;  %v1233_v20 = vld [vmem:[#allocation2 + $0x616] sm:$0xff]  ;;  %v6551_v41 = vld [vmem:[%s12973_s5] sm:$0xff] }
 0x3bf   :  { %v3420_v21 = vld [vmem:[#allocation2 + $0x7a4] sm:$0xff] }
 0x3c0   :  { %4842 = vmatmul.mubr.f32.gmra.mrb[14].mxu1 %v11040_v3  ;;  %7981 = vmatprep.subr.bf16.mxu0 %v7980_v31 }
 0x3c1   :  { %2655 = vmatmul.mubr.f32.gmra.mrb[12].mxu0 %v1155_v1  ;;  %4846 = vmatprep.mubr.f32.mxu1 %v3403_v9  ;;  %v3415_v1 = vld [vmem:[#allocation2 + $0x73c] sm:$0xff] }
 0x3c2   :  { %2659 = vmatprep.mubr.f32.mxu0 %v1220_v25  ;;  %7983 = vmatpush1.bf16.msra.mxu0 %v7982_v18  ;;  %v3416_v25 = vld [vmem:[#allocation2 + $0x744] sm:$0xff]  ;;  %v1237_v9 = vld [vmem:[#allocation2 + $0x676] sm:$0xff] }
 0x3c3   :  { %v118_v18 = vld [vmem:[%s12972_s1 + $0xe0] sm:$0xff] }
 0x3c4   :  { %4847 = vmatmul.mubr.f32.gmra.mrb[16].mxu1 %v11043_v17 }
 0x3c5   :  { %2660 = vmatmul.mubr.f32.gmra.mrb[14].mxu0 %v1156_v33  ;;  %4851 = vmatprep.mubr.f32.mxu1 %v3404_v35  ;;  %v3417_v33 = vld [vmem:[#allocation2 + $0x76c] sm:$0xff] }
 0x3c6   :  { %2664 = vmatprep.mubr.f32.mxu0 %v1221_v62  ;;  %v3418_v62 = vld [vmem:[#allocation2 + $0x774] sm:$0xff]  ;;  %v6552_v35 = vld [vmem:[%s12973_s5 + $0x8] sm:$0xff] }
 0x3c8   :  { %4852 = vmatmul.mubr.f32.gmra.mrb[18].mxu1 %v11043_v17 }
 0x3c9   :  { %2665 = vmatmul.mubr.f32.gmra.mrb[16].mxu0 %v1157_v37  ;;  %4856 = vmatprep.mubr.f32.mxu1 %v3405_v36  ;;  %v3419_v37 = vld [vmem:[#allocation2 + $0x79c] sm:$0xff] }
 0x3ca   :  { %2669 = vmatprep.mubr.f32.mxu0 %v1222_v60  ;;  %v1238_v60 = vld [vmem:[#allocation2 + $0x67e] sm:$0xff] }
 0x3cb   :  { %v121_v36 = vld [vmem:[%s12972_s1 + $0xf8] sm:$0xff] }
 0x3cc   :  { %4857 = vmatmul.mubr.f32.gmra.mrb[20].mxu1 %v11043_v17 }
 0x3cd   :  { %2670 = vmatmul.mubr.f32.gmra.mrb[18].mxu0 %v1158_v12  ;;  %4861 = vmatprep.mubr.f32.mxu1 %v3406_v59  ;;  %v6554_v12 = vld [vmem:[%s12973_s5 + $0x18] sm:$0xff]  ;;  %v120_v59 = vld [vmem:[%s12972_s1 + $0xf0] sm:$0xff] }
 0x3ce   :  { %2674 = vmatprep.mubr.f32.mxu0 %v1223_v28  ;;  %v7992_v14 = vpack.c.bf16 %v6554_v12, %v6552_v35  ;;  %v6553_v28 = vld [vmem:[%s12973_s5 + $0x10] sm:$0xff] }
 0x3cf   :  { %v7994_v31 = vpack.c.bf16 %v6553_v28, %v6551_v41  ;;  %v1185_v35 = vld [vmem:[#allocation2 + $0xd90] sm:$0xff]  ;;  %v1250_v41 = vld [vmem:[#allocation2 + $0xd9e] sm:$0xff] }
 0x3d0   :  { %4862 = vmatmul.mubr.f32.gmra.mrb[22].mxu1 %v11043_v17  ;;  %7993 = vmatprep.subr.bf16.mxu1 %v7992_v14  ;;  %v11178_v12 = vld [vmem:[#allocation2 + $0xeb0] sm:$0xff]  ;;  %v1251_v14 = vld [vmem:[#allocation2 + $0xdc6] sm:$0xff] }
 0x3d1   :  { %2675 = vmatmul.mubr.f32.gmra.mrb[20].mxu0 %v1159_v40  ;;  %4866 = vmatprep.mubr.f32.mxu1 %v3407_v23  ;;  %v1239_v40 = vld [vmem:[#allocation2 + $0x6a6] sm:$0xff]  ;;  %v1240_v23 = vld [vmem:[#allocation2 + $0x6ae] sm:$0xff] }
 0x3d2   :  { %2679 = vmatprep.mubr.f32.mxu0 %v1224_v39  ;;  %v7988_v39 = vpack.c.bf16 %v121_v36, %v119_v2  ;;  %7995 = vmatpush1.bf16.msra.mxu1 %v7994_v31  ;;  %v1187_v28 = vld [vmem:[#allocation2 + $0xdc0] sm:$0xff]  ;;  %v1252_v31 = vld [vmem:[#allocation2 + $0xdce] sm:$0xff]  ;;  %v1253_v36 = vld [vmem:[#allocation2 + $0xdf6] sm:$0xff] }
 0x3d3   :  { %v1188_v2 = vld [vmem:[#allocation2 + $0xdc8] sm:$0xff] }
 0x3d4   :  { %4867 = vmatmul.mubr.f32.gmra.mrb[24].mxu1 %v11043_v17 }
 0x3d5   :  { %2680 = vmatmul.mubr.f32.gmra.mrb[22].mxu0 %v1160_v50  ;;  %4871 = vmatprep.mubr.f32.mxu1 %v3408_v34  ;;  %v3421_v50 = vld [vmem:[#allocation2 + $0x7cc] sm:$0xff]  ;;  %v1241_v34 = vld [vmem:[#allocation2 + $0x6d6] sm:$0xff] }
 0x3d6   :  { %2684 = vmatprep.mubr.f32.mxu0 %v1225_v15  ;;  %v7990_v15 = vpack.c.bf16 %v120_v59, %v118_v18  ;;  %v3435_v18 = vld [vmem:[#allocation2 + $0xf1c] sm:$0xff] }
 0x3d7   :  { %v1254_v59 = vld [vmem:[#allocation2 + $0xdfe] sm:$0xff] }
 0x3d8   :  { %4872 = vmatmul.mubr.f32.gmra.mrb[26].mxu1 %v11043_v17 }
 0x3d9   :  { %2685 = vmatmul.mubr.f32.gmra.mrb[24].mxu0 %v10970_v4  ;;  %4876 = vmatprep.mubr.f32.mxu1 %v3409_v56  ;;  %v1229_v4 = vld [vmem:[#allocation2 + $0x5b6] sm:$0xff]  ;;  %v1242_v56 = vld [vmem:[#allocation2 + $0x6de] sm:$0xff] }
 0x3da   :  { %2689 = vmatprep.mubr.f32.mxu0 %v1226_v44  ;;  %v3422_v44 = vld [vmem:[#allocation2 + $0x7d4] sm:$0xff] }
 0x3dc   :  { %4877 = vmatmul.mubr.f32.gmra.mrb[28].mxu1 %v11043_v17 }
 0x3dd   :  { %2690 = vmatmul.mubr.f32.gmra.mrb[26].mxu0 %v10986_v26  ;;  %4881 = vmatprep.mubr.f32.mxu1 %v3410_v38  ;;  %v1230_v26 = vld [vmem:[#allocation2 + $0x5be] sm:$0xff]  ;;  %v6556_v38 = vld [vmem:[%s12973_s5 + $0x28] sm:$0xff] }
 0x3de   :  { %2694 = vmatprep.mubr.f32.mxu0 %v1227_v19  ;;  %v3423_v19 = vld [vmem:[#allocation2 + $0x7fc] sm:$0xff] }
 0x3e0   :  { %4882 = vmatmul.mubr.f32.gmra.mrb[30].mxu1 %v11043_v17 }
 0x3e1   :  { %2695 = vmatmul.mubr.f32.gmra.mrb[28].mxu0 %v11002_v51  ;;  %4886 = vmatprep.mubr.f32.mxu1 %v3411_v53  ;;  %v115_v51 = vld [vmem:[%s12972_s1 + $0xc8] sm:$0xff] }
 0x3e2   :  { %2699 = vmatprep.mubr.f32.mxu0 %v1228_v45  ;;  %v7984_v52 = vpack.c.bf16 %v117_v49, %v115_v51  ;;  %v3424_v45 = vld [vmem:[#allocation2 + $0x804] sm:$0xff]  ;;  %v6557_v49 = vld [vmem:[%s12973_s5 + $0x30] sm:$0xff] }
 0x3e3   :  { %v1243_v53 = vld [vmem:[#allocation2 + $0x706] sm:$0xff] }
 0x3e4   :  { %4887 = vmatmul.mubr.f32.gmra.mrb[32].mxu1 %v11043_v17  ;;  %7985 = vmatprep.subr.bf16.mxu0 %v7984_v52  ;;  %v6555_v51 = vld [vmem:[%s12973_s5 + $0x20] sm:$0xff]  ;;  %v3426_v52 = vld [vmem:[#allocation2 + $0x834] sm:$0xff] }
 0x3e5   :  { %2700 = vmatmul.mubr.f32.gmra.mrb[30].mxu0 %v11018_v58  ;;  %v114_v58 = vld [vmem:[%s12972_s1 + $0xc0] sm:$0xff]  ;;  %4891 = vmatprep.mubr.f32.mxu1 %v3412_v22  ;;  %v3425_v22 = vld [vmem:[#allocation2 + $0x82c] sm:$0xff] }
 0x3e6   :  { %2704 = vmatprep.mubr.f32.mxu0 %v1229_v4  ;;  %v7986_v5 = vpack.c.bf16 %v116_v29, %v114_v58  ;;  %v6558_v4 = vld [vmem:[%s12973_s5 + $0x38] sm:$0xff]  ;;  %v7998_v58 = vpack.c.bf16 %v6557_v49, %v6555_v51  ;;  %v6568_v51 = vld [vmem:[%s12973_s5 + $0x88] sm:$0xff] }
 0x3e7   :  { %v1245_v29 = vld [vmem:[#allocation2 + $0xd36] sm:$0xff] }
 0x3e8   :  { %4892 = vmatmul.mubr.f32.gmra.mrb[34].mxu1 %v11043_v17  ;;  %7987 = vmatpush1.bf16.msra.mxu0 %v7986_v5  ;;  %v11150_v5 = vld [vmem:[#allocation2 + $0xe50] sm:$0xff]  ;;  %v6570_v49 = vld [vmem:[%s12973_s5 + $0x98] sm:$0xff] }
 0x3e9   :  { %2705 = vmatmul.mubr.f32.gmra.mrb[32].mxu0 %v11028_v63  ;;  %v3413_v63 = vld [vmem:[#allocation2 + $0x70c] sm:$0xff]  ;;  %7989 = vmatprep.subr.bf16.mxu0 %v7988_v39  ;;  %v6566_v39 = vld [vmem:[%s12973_s5 + $0x78] sm:$0xff] }
 0x3ea   :  { %2709 = vmatprep.mubr.f32.mxu0 %v1230_v26  ;;  %4896 = vmatprep.mubr.f32.mxu1 %v3413_v63  ;;  %v7996_v26 = vpack.c.bf16 %v6558_v4, %v6556_v38  ;;  %v1181_v63 = vld [vmem:[#allocation2 + $0xd30] sm:$0xff] }
 0x3eb   :  { %v1256_v38 = vld [vmem:[#allocation2 + $0xe2e] sm:$0xff] }
 0x3ec   :  { %4897 = vmatmul.mubr.f32.gmra.mrb[36].mxu1 %v11043_v17  ;;  %7991 = vmatpush1.bf16.msra.mxu0 %v7990_v15  ;;  %v6565_v15 = vld [vmem:[%s12973_s5 + $0x70] sm:$0xff] }
 0x3ed   :  { %2710 = vmatmul.mubr.f32.gmra.mrb[34].mxu0 %v11032_v11  ;;  %4901 = vmatprep.mubr.f32.mxu1 %v3414_v6  ;;  %v1234_v11 = vld [vmem:[#allocation2 + $0x61e] sm:$0xff]  ;;  %v3438_v4 = vld [vmem:[#allocation2 + $0xf54] sm:$0xff] }
 0x3ee   :  { %2714 = vmatprep.mubr.f32.mxu0 %v1231_v10  ;;  %7997 = vmatprep.subr.bf16.mxu1 %v7996_v26  ;;  %v1244_v10 = vld [vmem:[#allocation2 + $0x70e] sm:$0xff]  ;;  %v1182_v6 = vld [vmem:[#allocation2 + $0xd38] sm:$0xff] }
 0x3ef   :  { %7999 = vmatpush1.bf16.msra.mxu1 %v7998_v58  ;;  %v3439_v26 = vld [vmem:[#allocation2 + $0xf7c] sm:$0xff]  ;;  %v8008_v58 = vpack.c.bf16 %v6570_v49, %v6568_v51 }
 0x3f0   :  { %4902 = vmatmul.mubr.f32.gmra.mrb[38].mxu1 %v11043_v17 }
 0x3f1   :  { %2715 = vmatmul.mubr.f32.gmra.mrb[36].mxu0 %v11036_v0  ;;  %4906 = vmatprep.mubr.f32.mxu1 %v3415_v1  ;;  %v1235_v0 = vld [vmem:[#allocation2 + $0x646] sm:$0xff] }
 0x3f2   :  { %2719 = vmatprep.mubr.f32.mxu0 %v1232_v8  ;;  %v1246_v8 = vld [vmem:[#allocation2 + $0xd3e] sm:$0xff]  ;;  %v1247_v1 = vld [vmem:[#allocation2 + $0xd66] sm:$0xff] }
 0x3f4   :  { %4907 = vmatmul.mubr.f32.gmra.mrb[40].mxu1 %v11043_v17 }
 0x3f5   :  { %2720 = vmatmul.mubr.f32.gmra.mrb[38].mxu0 %v11040_v3  ;;  %4911 = vmatprep.mubr.f32.mxu1 %v3416_v25  ;;  %v1236_v3 = vld [vmem:[#allocation2 + $0x64e] sm:$0xff] }
 0x3f6   :  { %2724 = vmatprep.mubr.f32.mxu0 %v1233_v20  ;;  %v11154_v20 = vld [vmem:[#allocation2 + $0xe58] sm:$0xff]  ;;  %v1248_v25 = vld [vmem:[#allocation2 + $0xd6e] sm:$0xff] }
 0x3f8   :  { %4912 = vmatmul.mubr.f32.gmra.mrb[42].mxu1 %v11043_v17 }
 0x3f9   :  { %2725 = vmatmul.mubr.f32.gmra.mrb[40].mxu0 %v11043_v17  ;;  %4916 = vmatprep.mubr.f32.mxu1 %v3417_v33  ;;  %v1184_v33 = vld [vmem:[#allocation2 + $0xd68] sm:$0xff] }
 0x3fa   :  { %2729 = vmatprep.mubr.f32.mxu0 %v1234_v11  ;;  %v1183_v11 = vld [vmem:[#allocation2 + $0xd60] sm:$0xff] }
 0x3fc   :  { %4917 = vmatmul.mubr.f32.gmra.mrb[44].mxu1 %v11043_v17 }
 0x3fd   :  { %2730 = vmatmul.mubr.f32.gmra.mrb[42].mxu0 %v11043_v17  ;;  %4921 = vmatprep.mubr.f32.mxu1 %v3418_v62  ;;  %v6561_v62 = vld [vmem:[%s12973_s5 + $0x50] sm:$0xff] }
 0x3fe   :  { %2734 = vmatprep.mubr.f32.mxu0 %v1235_v0  ;;  %v6560_v0 = vld [vmem:[%s12973_s5 + $0x48] sm:$0xff] }
 0x400   :  { %4922 = vmatmul.mubr.f32.gmra.mrb[46].mxu1 %v11043_v17 }
 0x401   :  { %2735 = vmatmul.mubr.f32.gmra.mrb[44].mxu0 %v11043_v17  ;;  %4926 = vmatprep.mubr.f32.mxu1 %v3419_v37  ;;  %v1249_v37 = vld [vmem:[#allocation2 + $0xd96] sm:$0xff] }
 0x402   :  { %2739 = vmatprep.mubr.f32.mxu0 %v1236_v3 }
 0x404   :  { %4927 = vmatmul.mubr.f32.gmra.mrb[48].mxu1 %v11043_v17 }
 0x405   :  { %2740 = vmatmul.mubr.f32.gmra.mrb[46].mxu0 %v11043_v17  ;;  %4931 = vmatprep.mubr.f32.mxu1 %v3420_v21  ;;  %v11182_v21 = vld [vmem:[#allocation2 + $0xeb8] sm:$0xff] }
 0x406   :  { %2744 = vmatprep.mubr.f32.mxu0 %v1237_v9  ;;  %v11174_v9 = vld [vmem:[#allocation2 + $0xe88] sm:$0xff] }
 0x408   :  { %4932 = vmatmul.mubr.f32.gmra.mrb[50].mxu1 %v11043_v17 }
 0x409   :  { %2745 = vmatmul.mubr.f32.gmra.mrb[48].mxu0 %v11043_v17  ;;  %4936 = vmatprep.mubr.f32.mxu1 %v3421_v50 }
 0x40a   :  { %2749 = vmatprep.mubr.f32.mxu0 %v1238_v60 }
 0x40c   :  { %4937 = vmatmul.mubr.f32.gmra.mrb[52].mxu1 %v11043_v17 }
 0x40d   :  { %2750 = vmatmul.mubr.f32.gmra.mrb[50].mxu0 %v11043_v17  ;;  %4941 = vmatprep.mubr.f32.mxu1 %v3422_v44 }
 0x40e   :  { %2754 = vmatprep.mubr.f32.mxu0 %v1239_v40  ;;  %v1189_v40 = vld [vmem:[#allocation2 + $0xdf0] sm:$0xff] }
 0x410   :  { %4942 = vmatmul.mubr.f32.gmra.mrb[54].mxu1 %v11043_v17 }
 0x411   :  { %2755 = vmatmul.mubr.f32.gmra.mrb[52].mxu0 %v11043_v17  ;;  %4946 = vmatprep.mubr.f32.mxu1 %v3423_v19  ;;  %v1255_v19 = vld [vmem:[#allocation2 + $0xe26] sm:$0xff] }
 0x412   :  { %2759 = vmatprep.mubr.f32.mxu0 %v1240_v23  ;;  %v3436_v23 = vld [vmem:[#allocation2 + $0xf24] sm:$0xff] }
 0x414   :  { %4947 = vmatmul.mubr.f32.gmra.mrb[56].mxu1 %v11043_v17 }
 0x415   :  { %2760 = vmatmul.mubr.f32.gmra.mrb[54].mxu0 %v11043_v17  ;;  %4951 = vmatprep.mubr.f32.mxu1 %v3424_v45  ;;  %v1191_v45 = vld [vmem:[#allocation2 + $0xe20] sm:$0xff] }
 0x416   :  { %2764 = vmatprep.mubr.f32.mxu0 %v1241_v34  ;;  %v1190_v34 = vld [vmem:[#allocation2 + $0xdf8] sm:$0xff] }
 0x418   :  { %4952 = vmatmul.mubr.f32.gmra.mrb[58].mxu1 %v11043_v17 }
 0x419   :  { %2765 = vmatmul.mubr.f32.gmra.mrb[56].mxu0 %v11043_v17  ;;  %4956 = vmatprep.mubr.f32.mxu1 %v3425_v22  ;;  %v3440_v22 = vld [vmem:[#allocation2 + $0xf84] sm:$0xff] }
 0x41a   :  { %2769 = vmatprep.mubr.f32.mxu0 %v1242_v56  ;;  %v3437_v56 = vld [vmem:[#allocation2 + $0xf4c] sm:$0xff] }
 0x41c   :  { %4957 = vmatmul.mubr.f32.gmra.mrb[60].mxu1 %v11043_v17 }
 0x41d   :  { %2770 = vmatmul.mubr.f32.gmra.mrb[58].mxu0 %v11043_v17  ;;  %4961 = vmatprep.mubr.f32.mxu1 %v3426_v52 }
 0x41e   :  { %2774 = vmatprep.mubr.f32.mxu0 %v1243_v53  ;;  %v1192_v53 = vld [vmem:[#allocation2 + $0xe28] sm:$0xff] }
 0x420   :  { %4962 = vmatmul.mubr.f32.gmra.mrb[62].mxu1 %v11043_v17 }
 0x421   :  { %2775 = vmatmul.mubr.f32.gmra.mrb[60].mxu0 %v11043_v17  ;;  %4966 = vmatprep.mubr.f32.mxu1 %v10911_v46  ;;  %v11158_v46 = vld [vmem:[#allocation2 + $0xe80] sm:$0xff] }
 0x422   :  { %2779 = vmatprep.mubr.f32.mxu0 %v1244_v10  ;;  %v3441_v10 = vld [vmem:[#allocation2 + $0xfac] sm:$0xff] }
 0x424   :  { %4967 = vmatmul.mubr.f32.gmra.mrb[64].mxu1 %v11150_v5 }
 0x425   :  { %2780 = vmatmul.mubr.f32.gmra.mrb[62].mxu0 %v11043_v17  ;;  %4971 = vmatprep.mubr.f32.mxu1 %v10917_v42  ;;  %v6562_v42 = vld [vmem:[%s12973_s5 + $0x58] sm:$0xff] }
 0x426   :  { %2784 = vmatprep.mubr.f32.mxu0 %v1245_v29  ;;  %v8000_v3 = vpack.c.bf16 %v6562_v42, %v6560_v0  ;;  %v3442_v29 = vld [vmem:[#allocation2 + $0xfb4] sm:$0xff]  ;;  %v3449_v42 = vld [vmem:[#allocation2 + $0x106c] sm:$0xff] }
 0x428   :  { %4972 = vmatmul.mubr.f32.gmra.mrb[66].mxu1 %v11154_v20  ;;  %8001 = vmatprep.subr.bf16.mxu1 %v8000_v3 }
 0x429   :  { %2785 = vmatmul.mubr.f32.gmra.mrb[64].mxu0 %v1181_v63  ;;  %4976 = vmatprep.mubr.f32.mxu1 %v10923_v27  ;;  %v6559_v27 = vld [vmem:[%s12973_s5 + $0x40] sm:$0xff] }
 0x42a   :  { %2789 = vmatprep.mubr.f32.mxu0 %v1246_v8  ;;  %v8002_v60 = vpack.c.bf16 %v6561_v62, %v6559_v27  ;;  %v3443_v63 = vld [vmem:[#allocation2 + $0xfdc] sm:$0xff] }
 0x42c   :  { %4977 = vmatmul.mubr.f32.gmra.mrb[68].mxu1 %v11158_v46 }
 0x42d   :  { %2790 = vmatmul.mubr.f32.gmra.mrb[66].mxu0 %v1182_v6  ;;  %4981 = vmatprep.mubr.f32.mxu1 %v10929_v32  ;;  %v1186_v32 = vld [vmem:[#allocation2 + $0xd98] sm:$0xff]  ;;  %v6573_v6 = vld [vmem:[%s12973_s5 + $0xb0] sm:$0xff] }
 0x42e   :  { %2794 = vmatprep.mubr.f32.mxu0 %v1247_v1  ;;  %8003 = vmatpush1.bf16.msra.mxu1 %v8002_v60 }
 0x430   :  { %4982 = vmatmul.mubr.f32.gmra.mrb[70].mxu1 %v11174_v9 }
 0x431   :  { %2795 = vmatmul.mubr.f32.gmra.mrb[68].mxu0 %v1183_v11  ;;  %4986 = vmatprep.mubr.f32.mxu1 %v10935_v61  ;;  %v11186_v61 = vld [vmem:[#allocation2 + $0xee0] sm:$0xff] }
 0x432   :  { %2799 = vmatprep.mubr.f32.mxu0 %v1248_v25  ;;  %v3447_v11 = vld [vmem:[#allocation2 + $0x103c] sm:$0xff]  ;;  %v1267_v25 = vld [vmem:[#allocation2 + $0xf46] sm:$0xff] }
 0x434   :  { %4987 = vmatmul.mubr.f32.gmra.mrb[72].mxu1 %v11178_v12 }
 0x435   :  { %2800 = vmatmul.mubr.f32.gmra.mrb[70].mxu0 %v1184_v33  ;;  %4991 = vmatprep.mubr.f32.mxu1 %v10941_v47  ;;  %v11190_v47 = vld [vmem:[#allocation2 + $0xee8] sm:$0xff] }
 0x436   :  { %2804 = vmatprep.mubr.f32.mxu0 %v1249_v37  ;;  %v3450_v37 = vld [vmem:[#allocation2 + $0x1074] sm:$0xff] }
 0x438   :  { %4992 = vmatmul.mubr.f32.gmra.mrb[74].mxu1 %v11182_v21 }
 0x439   :  { %2805 = vmatmul.mubr.f32.gmra.mrb[72].mxu0 %v1185_v35  ;;  %4996 = vmatprep.mubr.f32.mxu1 %v10947_v7  ;;  %v6564_v7 = vld [vmem:[%s12973_s5 + $0x68] sm:$0xff] }
 0x43a   :  { %2809 = vmatprep.mubr.f32.mxu0 %v1250_v41  ;;  %v8004_v50 = vpack.c.bf16 %v6566_v39, %v6564_v7 }
 0x43c   :  { %4997 = vmatmul.mubr.f32.gmra.mrb[76].mxu1 %v11186_v61  ;;  %8005 = vmatprep.subr.bf16.mxu1 %v8004_v50 }
 0x43d   :  { %2810 = vmatmul.mubr.f32.gmra.mrb[74].mxu0 %v1186_v32  ;;  %5001 = vmatprep.mubr.f32.mxu1 %v10953_v30  ;;  %v6563_v30 = vld [vmem:[%s12973_s5 + $0x60] sm:$0xff]  ;;  %v1269_v32 = vld [vmem:[#allocation2 + $0xf76] sm:$0xff] }
 0x43e   :  { %2814 = vmatprep.mubr.f32.mxu0 %v1251_v14  ;;  %v8006_v44 = vpack.c.bf16 %v6565_v15, %v6563_v30  ;;  %v6575_v30 = vld [vmem:[%s12973_s5 + $0xc0] sm:$0xff] }
 0x440   :  { %5002 = vmatmul.mubr.f32.gmra.mrb[78].mxu1 %v11190_v47 }
 0x441   :  { %2815 = vmatmul.mubr.f32.gmra.mrb[76].mxu0 %v1187_v28  ;;  %5006 = vmatprep.mubr.f32.mxu1 %v3435_v18  ;;  %v3452_v18 = vld [vmem:[#allocation2 + $0x10a4] sm:$0xff] }
 0x442   :  { %2819 = vmatprep.mubr.f32.mxu0 %v1252_v31  ;;  %8007 = vmatpush1.bf16.msra.mxu1 %v8006_v44  ;;  %v6576_v31 = vld [vmem:[%s12973_s5 + $0xc8] sm:$0xff] }
 0x443   :  { %8009 = vmatprep.subr.bf16.mxu1 %v8008_v58  ;;  %v3453_v44 = vld [vmem:[#allocation2 + $0x10cc] sm:$0xff]  ;;  %v1273_v58 = vld [vmem:[#allocation2 + $0xfd6] sm:$0xff] }
 0x444   :  { %5007 = vmatmul.mubr.f32.gmra.mrb[80].mxu1 %v11043_v17 }
 0x445   :  { %2820 = vmatmul.mubr.f32.gmra.mrb[78].mxu0 %v1188_v2  ;;  %5011 = vmatprep.mubr.f32.mxu1 %v3436_v23  ;;  %v6578_v2 = vld [vmem:[%s12973_s5 + $0xd8] sm:$0xff]  ;;  %v1271_v23 = vld [vmem:[#allocation2 + $0xfa6] sm:$0xff] }
 0x446   :  { %2824 = vmatprep.mubr.f32.mxu0 %v1253_v36  ;;  %v1270_v36 = vld [vmem:[#allocation2 + $0xf7e] sm:$0xff] }
 0x448   :  { %5012 = vmatmul.mubr.f32.gmra.mrb[82].mxu1 %v11043_v17 }
 0x449   :  { %2825 = vmatmul.mubr.f32.gmra.mrb[80].mxu0 %v1189_v40  ;;  %5016 = vmatprep.mubr.f32.mxu1 %v3437_v56  ;;  %v8016_v40 = vpack.c.bf16 %v6578_v2, %v6576_v31 }
 0x44a   :  { %2829 = vmatprep.mubr.f32.mxu0 %v1254_v59  ;;  %v6577_v59 = vld [vmem:[%s12973_s5 + $0xd0] sm:$0xff] }
 0x44c   :  { %5017 = vmatmul.mubr.f32.gmra.mrb[84].mxu1 %v11043_v17 }
 0x44d   :  { %2830 = vmatmul.mubr.f32.gmra.mrb[82].mxu0 %v1190_v34  ;;  %5021 = vmatprep.mubr.f32.mxu1 %v3438_v4  ;;  %v8018_v34 = vpack.c.bf16 %v6577_v59, %v6575_v30  ;;  %v1272_v4 = vld [vmem:[#allocation2 + $0xfae] sm:$0xff] }
 0x44e   :  { %2834 = vmatprep.mubr.f32.mxu0 %v1255_v19  ;;  %v6584_v59 = vld [vmem:[%s12973_s5 + $0x108] sm:$0xff] }
 0x450   :  { %5022 = vmatmul.mubr.f32.gmra.mrb[86].mxu1 %v11043_v17 }
 0x451   :  { %2835 = vmatmul.mubr.f32.gmra.mrb[84].mxu0 %v1191_v45  ;;  %5026 = vmatprep.mubr.f32.mxu1 %v3439_v26 }
 0x452   :  { %2839 = vmatprep.mubr.f32.mxu0 %v1256_v38 }
 0x454   :  { %5027 = vmatmul.mubr.f32.gmra.mrb[88].mxu1 %v11043_v17 }
 0x455   :  { %2840 = vmatmul.mubr.f32.gmra.mrb[86].mxu0 %v1192_v53  ;;  %5031 = vmatprep.mubr.f32.mxu1 %v3440_v22  ;;  %v3454_v53 = vld [vmem:[#allocation2 + $0x10d4] sm:$0xff] }
 0x456   :  { %2844 = vmatprep.mubr.f32.mxu0 %v10909_v13  ;;  %v6567_v13 = vld [vmem:[%s12973_s5 + $0x80] sm:$0xff] }
 0x458   :  { %5032 = vmatmul.mubr.f32.gmra.mrb[90].mxu1 %v11043_v17 }
 0x459   :  { %2845 = vmatmul.mubr.f32.gmra.mrb[88].mxu0 %v11150_v5  ;;  %5036 = vmatprep.mubr.f32.mxu1 %v3441_v10  ;;  %v3445_v5 = vld [vmem:[#allocation2 + $0x100c] sm:$0xff]  ;;  %v3455_v10 = vld [vmem:[#allocation2 + $0x10fc] sm:$0xff] }
 0x45a   :  { %2849 = vmatprep.mubr.f32.mxu0 %v10915_v54  ;;  %v6569_v54 = vld [vmem:[%s12973_s5 + $0x90] sm:$0xff] }
 0x45b   :  { %v8010_v52 = vpack.c.bf16 %v6569_v54, %v6567_v13 }
 0x45c   :  { %5037 = vmatmul.mubr.f32.gmra.mrb[92].mxu1 %v11043_v17 }
 0x45d   :  { %2850 = vmatmul.mubr.f32.gmra.mrb[90].mxu0 %v11154_v20  ;;  %8011 = vmatpush1.bf16.msra.mxu1 %v8010_v52  ;;  %v1265_v20 = vld [vmem:[#allocation2 + $0xf16] sm:$0xff] }
 0x45e   :  { %2854 = vmatprep.mubr.f32.mxu0 %v10921_v48  ;;  %5041 = vmatprep.mubr.f32.mxu1 %v3442_v29  ;;  %v3444_v48 = vld [vmem:[#allocation2 + $0xfe4] sm:$0xff] }
 0x460   :  { %5042 = vmatmul.mubr.f32.gmra.mrb[94].mxu1 %v11043_v17 }
 0x461   :  { %2855 = vmatmul.mubr.f32.gmra.mrb[92].mxu0 %v11158_v46  ;;  %5046 = vmatprep.mubr.f32.mxu1 %v3443_v63  ;;  %v3448_v46 = vld [vmem:[#allocation2 + $0x1044] sm:$0xff] }
 0x462   :  { %2859 = vmatprep.mubr.f32.mxu0 %v10927_v57  ;;  %v3446_v57 = vld [vmem:[#allocation2 + $0x1014] sm:$0xff]  ;;  %v1274_v63 = vld [vmem:[#allocation2 + $0xfde] sm:$0xff] }
 0x464   :  { %5047 = vmatmul.mubr.f32.gmra.mrb[96].mxu1 %v11043_v17 }
 0x465   :  { %2860 = vmatmul.mubr.f32.gmra.mrb[94].mxu0 %v11174_v9  ;;  %5051 = vmatprep.mubr.f32.mxu1 %v3444_v48  ;;  %v1268_v9 = vld [vmem:[#allocation2 + $0xf4e] sm:$0xff]  ;;  %v3456_v48 = vld [vmem:[#allocation2 + $0x1104] sm:$0xff] }
 0x466   :  { %2864 = vmatprep.mubr.f32.mxu0 %v10933_v43  ;;  %v6572_v43 = vld [vmem:[%s12973_s5 + $0xa8] sm:$0xff] }
 0x468   :  { %5052 = vmatmul.mubr.f32.gmra.mrb[98].mxu1 %v11043_v17 }
 0x469   :  { %2865 = vmatmul.mubr.f32.gmra.mrb[96].mxu0 %v11178_v12  ;;  %5056 = vmatprep.mubr.f32.mxu1 %v3445_v5 }
 0x46a   :  { %2869 = vmatprep.mubr.f32.mxu0 %v10939_v55  ;;  %v6574_v55 = vld [vmem:[%s12973_s5 + $0xb8] sm:$0xff] }
 0x46b   :  { %v8012_v8 = vpack.c.bf16 %v6574_v55, %v6572_v43  ;;  %v6580_v55 = vld [vmem:[%s12973_s5 + $0xe8] sm:$0xff] }
 0x46c   :  { %5057 = vmatmul.mubr.f32.gmra.mrb[100].mxu1 %v11043_v17 }
 0x46d   :  { %2870 = vmatmul.mubr.f32.gmra.mrb[98].mxu0 %v11182_v21  ;;  %5061 = vmatprep.mubr.f32.mxu1 %v3446_v57  ;;  %v3451_v21 = vld [vmem:[#allocation2 + $0x109c] sm:$0xff] }
 0x46e   :  { %2874 = vmatprep.mubr.f32.mxu0 %v10945_v24  ;;  %v6571_v24 = vld [vmem:[%s12973_s5 + $0xa0] sm:$0xff]  ;;  %8013 = vmatprep.subr.bf16.mxu1 %v8012_v8  ;;  %v6582_v8 = vld [vmem:[%s12973_s5 + $0xf8] sm:$0xff] }
 0x46f   :  { %v8014_v1 = vpack.c.bf16 %v6573_v6, %v6571_v24  ;;  %v1275_v6 = vld [vmem:[#allocation2 + $0x1006] sm:$0xff] }
 0x470   :  { %5062 = vmatmul.mubr.f32.gmra.mrb[102].mxu1 %v11043_v17 }
 0x471   :  { %2875 = vmatmul.mubr.f32.gmra.mrb[100].mxu0 %v11186_v61  ;;  %8015 = vmatpush1.bf16.msra.mxu1 %v8014_v1  ;;  %v8020_v1 = vpack.c.bf16 %v6582_v8, %v6580_v55 }
 0x472   :  { %2879 = vmatprep.mubr.f32.mxu0 %v10951_v16  ;;  %5066 = vmatprep.mubr.f32.mxu1 %v3447_v11  ;;  %v1266_v16 = vld [vmem:[#allocation2 + $0xf1e] sm:$0xff] }
 0x473   :  { %8017 = vmatprep.subr.bf16.mxu1 %v8016_v40 }
 0x474   :  { %5067 = vmatmul.mubr.f32.gmra.mrb[104].mxu1 %v11043_v17 }
 0x475   :  { %2880 = vmatmul.mubr.f32.gmra.mrb[102].mxu0 %v11190_v47  ;;  %5071 = vmatprep.mubr.f32.mxu1 %v3448_v46  ;;  %v6579_v46 = vld [vmem:[%s12973_s5 + $0xe0] sm:$0xff] }
 0x476   :  { %2884 = vmatprep.mubr.f32.mxu0 %v1265_v20  ;;  %8019 = vmatpush1.bf16.msra.mxu1 %v8018_v34  ;;  %v3457_v20 = vld [vmem:[#allocation2 + $0x112c] sm:$0xff] }
 0x477   :  { %v4808_v33 = vpop.f32.mrb[0].mxu1  ;;  %8021 = vmatprep.subr.bf16.mxu1 %v8020_v1  ;;  %v6585_v34 = vld [vmem:[%s12973_s5 + $0x110] sm:$0xff]  ;;  %v6588_v1 = vld [vmem:[%s12973_s5 + $0x128] sm:$0xff] }
 0x478   :  { %v4810_v27 = vpop.f32.mrb[1].mxu1  ;;  %5072 = vmatmul.mubr.f32.gmra.mrb[106].mxu1 %v11043_v17 }
 0x479   :  { %2885 = vmatmul.mubr.f32.gmra.mrb[104].mxu0 %v11043_v17  ;;  %5076 = vmatprep.mubr.f32.mxu1 %v3449_v42 }
 0x47a   :  { %2889 = vmatprep.mubr.f32.mxu0 %v1266_v16 }
 0x47b   :  { %v4813_v60 = vpop.f32.mrb[2].mxu1 }
 0x47c   :  { %v2626_v0 = vpop.f32.mrb[0].mxu0  ;;  %v4815_v12 = vpop.f32.mrb[3].mxu1  ;;  %5077 = vmatmul.mubr.f32.gmra.mrb[108].mxu1 %v11043_v17 }
 0x47d   :  { %2890 = vmatmul.mubr.f32.gmra.mrb[106].mxu0 %v11043_v17  ;;  %5191 = vrot.lane.b32.xlu0 %v2626_v0, %s8888_s18  ;;  %v2628_v3 = vpop.f32.mrb[1].mxu0 }
 0x47e   :  { %2894 = vmatprep.mubr.f32.mxu0 %v1267_v25  ;;  %5081 = vmatprep.mubr.f32.mxu1 %v3450_v37  ;;  %v6581_v25 = vld [vmem:[%s12973_s5 + $0xf0] sm:$0xff] }
 0x47f   :  { %v4818_v14 = vpop.f32.mrb[4].mxu1  ;;  %v3458_v3 = vld [vmem:[#allocation2 + $0x1134] sm:$0xff]  ;;  %v8022_v27 = vpack.c.bf16 %v6581_v25, %v6579_v46 }
 0x480   :  { %v2631_v62 = vpop.f32.mrb[2].mxu0  ;;  %v4820_v61 = vpop.f32.mrb[5].mxu1  ;;  %5082 = vmatmul.mubr.f32.gmra.mrb[110].mxu1 %v11043_v17  ;;  %v6589_v25 = vld [vmem:[%s12973_s5 + $0x130] sm:$0xff] }
 0x481   :  { %2895 = vmatmul.mubr.f32.gmra.mrb[108].mxu0 %v11043_v17  ;;  %5447 = vrot.lane.b32.xlu0 %v4808_v33, %s8889_s19  ;;  %v2633_v35 = vpop.f32.mrb[3].mxu0  ;;  %v1276_v33 = vld [vmem:[#allocation2 + $0x100e] sm:$0xff] }
 0x482   :  { %5193 = vrot.lane.b32.xlu1 %v2631_v62, %s8888_s18  ;;  %2899 = vmatprep.mubr.f32.mxu0 %v1268_v9 }
 0x483   :  { %5086 = vmatprep.mubr.f32.mxu1 %v3451_v21  ;;  %v4823_v7 = vpop.f32.mrb[6].mxu1  ;;  %8023 = vmatpush1.bf16.msra.mxu1 %v8022_v27 }
 0x484   :  { %v2636_v41 = vpop.f32.mrb[4].mxu0  ;;  %v4825_v50 = vpop.f32.mrb[7].mxu1  ;;  %5087 = vmatmul.mubr.f32.gmra.mrb[112].mxu1 %v11043_v17 }
 0x485   :  { %2900 = vmatmul.mubr.f32.gmra.mrb[110].mxu0 %v11043_v17  ;;  %5195 = vrot.lane.b32.xlu0 %v2636_v41, %s8888_s18  ;;  %v2638_v28 = vpop.f32.mrb[5].mxu0  ;;  %v6586_v50 = vld [vmem:[%s12973_s5 + $0x118] sm:$0xff] }
 0x486   :  { %5449 = vrot.lane.b32.xlu1 %v4813_v60, %s8889_s19  ;;  %2904 = vmatprep.mubr.f32.mxu0 %v1269_v32 }
 0x487   :  { %5091 = vmatprep.mubr.f32.mxu1 %v3452_v18  ;;  %v4828_v19 = vpop.f32.mrb[8].mxu1 }
 0x488   :  { %v2641_v47 = vpop.f32.mrb[6].mxu0  ;;  %v4830_v45 = vpop.f32.mrb[9].mxu1  ;;  %5092 = vmatmul.mubr.f32.gmra.mrb[114].mxu1 %v11043_v17 }
 0x489   :  { %2905 = vmatmul.mubr.f32.gmra.mrb[112].mxu0 %v11043_v17  ;;  %5197 = vrot.lane.b32.xlu0 %v2641_v47, %s8888_s18  ;;  %v2643_v39 = vpop.f32.mrb[7].mxu0  ;;  %v8821_v47 = vld [vmem:[#allocation2 + $0x318] sm:$0xff] }
 0x48a   :  { %5451 = vrot.lane.b32.xlu1 %v4818_v14, %s8889_s19  ;;  %2909 = vmatprep.mubr.f32.mxu0 %v1270_v36  ;;  %v8820_v14 = vld [vmem:[#allocation2 + $0x310] sm:$0xff]  ;;  %v8822_v39 = vld [vmem:[#allocation2 + $0x340] sm:$0xff] }
 0x48b   :  { %5096 = vmatprep.mubr.f32.mxu1 %v3453_v44  ;;  %v4833_v26 = vpop.f32.mrb[10].mxu1  ;;  %v6583_v44 = vld [vmem:[%s12973_s5 + $0x100] sm:$0xff] }
 0x48c   :  { %v2646_v15 = vpop.f32.mrb[8].mxu0  ;;  %v4835_v51 = vpop.f32.mrb[11].mxu1  ;;  %5097 = vmatmul.mubr.f32.gmra.mrb[116].mxu1 %v11043_v17 }
 0x48d   :  { %2910 = vmatmul.mubr.f32.gmra.mrb[114].mxu0 %v11043_v17  ;;  %5199 = vrot.lane.b32.xlu0 %v2646_v15, %s8888_s18  ;;  %v2648_v56 = vpop.f32.mrb[9].mxu0  ;;  %v8825_v51 = vld [vmem:[#allocation2 + $0x370] sm:$0xff] }
 0x48e   :  { %5453 = vrot.lane.b32.xlu1 %v4823_v7, %s8889_s19  ;;  %2914 = vmatprep.mubr.f32.mxu0 %v1271_v23  ;;  %v11341_v23 = vld [vmem:[#allocation2] sm:$0xff] }
 0x48f   :  { %5101 = vmatprep.mubr.f32.mxu1 %v3454_v53  ;;  %v4838_v13 = vpop.f32.mrb[12].mxu1 }
 0x490   :  { %v2651_v38 = vpop.f32.mrb[10].mxu0  ;;  %v4840_v52 = vpop.f32.mrb[13].mxu1  ;;  %5102 = vmatmul.mubr.f32.gmra.mrb[118].mxu1 %v11043_v17 }
 0x491   :  { %2915 = vmatmul.mubr.f32.gmra.mrb[116].mxu0 %v11043_v17  ;;  %5201 = vrot.lane.b32.xlu0 %v2651_v38, %s8888_s18  ;;  %v2653_v22 = vpop.f32.mrb[11].mxu0  ;;  %v8824_v38 = vld [vmem:[#allocation2 + $0x348] sm:$0xff] }
 0x492   :  { %5455 = vrot.lane.b32.xlu1 %v4828_v19, %s8889_s19  ;;  %2919 = vmatprep.mubr.f32.mxu0 %v1272_v4  ;;  %v8026_v19 = vpack.c.bf16 %v6585_v34, %v6583_v44  ;;  %v8834_v34 = vld [vmem:[#allocation2 + $0x438] sm:$0xff] }
 0x493   :  { %5106 = vmatprep.mubr.f32.mxu1 %v3455_v10  ;;  %v4843_v5 = vpop.f32.mrb[14].mxu1 }
 0x494   :  { %v2656_v49 = vpop.f32.mrb[12].mxu0  ;;  %v4845_v43 = vpop.f32.mrb[15].mxu1  ;;  %5107 = vmatmul.mubr.f32.gmra.mrb[120].mxu1 %v11043_v17 }
 0x495   :  { %2920 = vmatmul.mubr.f32.gmra.mrb[118].mxu0 %v11043_v17  ;;  %5203 = vrot.lane.b32.xlu0 %v2656_v49, %s8888_s18  ;;  %v2658_v54 = vpop.f32.mrb[13].mxu0 }
 0x496   :  { %5457 = vrot.lane.b32.xlu1 %v4833_v26, %s8889_s19  ;;  %2924 = vmatprep.mubr.f32.mxu0 %v1273_v58  ;;  %v8826_v54 = vld [vmem:[#allocation2 + $0x378] sm:$0xff] }
 0x497   :  { %5111 = vmatprep.mubr.f32.mxu1 %v3456_v48  ;;  %v4848_v11 = vpop.f32.mrb[16].mxu1 }
 0x498   :  { %v2661_v29 = vpop.f32.mrb[14].mxu0  ;;  %v4850_v0 = vpop.f32.mrb[17].mxu1  ;;  %5112 = vmatmul.mubr.f32.gmra.mrb[122].mxu1 %v11043_v17 }
 0x499   :  { %2925 = vmatmul.mubr.f32.gmra.mrb[120].mxu0 %v11043_v17  ;;  %5205 = vrot.lane.b32.xlu0 %v2661_v29, %s8888_s18  ;;  %v2663_v57 = vpop.f32.mrb[15].mxu0 }
 0x49a   :  { %5459 = vrot.lane.b32.xlu1 %v4838_v13, %s8889_s19  ;;  %2929 = vmatprep.mubr.f32.mxu0 %v1274_v63 }
 0x49b   :  { %5116 = vmatprep.mubr.f32.mxu1 %v3457_v20  ;;  %v4853_v62 = vpop.f32.mrb[18].mxu1 }
 0x49c   :  { %v2666_v24 = vpop.f32.mrb[16].mxu0  ;;  %v4855_v37 = vpop.f32.mrb[19].mxu1  ;;  %5117 = vmatmul.mubr.f32.gmra.mrb[124].mxu1 %v11043_v17 }
 0x49d   :  { %2930 = vmatmul.mubr.f32.gmra.mrb[122].mxu0 %v11043_v17  ;;  %5207 = vrot.lane.b32.xlu0 %v2666_v24, %s8888_s18  ;;  %v2668_v16 = vpop.f32.mrb[17].mxu0  ;;  %v8828_v24 = vld [vmem:[#allocation2 + $0x3a8] sm:$0xff] }
 0x49e   :  { %5461 = vrot.lane.b32.xlu1 %v4843_v5, %s8889_s19  ;;  %2934 = vmatprep.mubr.f32.mxu0 %v1275_v6  ;;  %v8827_v5 = vld [vmem:[#allocation2 + $0x3a0] sm:$0xff] }
 0x49f   :  { %5121 = vmatprep.mubr.f32.mxu1 %v3458_v3  ;;  %v4858_v35 = vpop.f32.mrb[20].mxu1  ;;  %v6587_v16 = vld [vmem:[%s12973_s5 + $0x120] sm:$0xff]  ;;  %v8829_v3 = vld [vmem:[#allocation2 + $0x3d0] sm:$0xff] }
 0x4a0   :  { %v2671_v42 = vpop.f32.mrb[18].mxu0  ;;  %v4860_v41 = vpop.f32.mrb[21].mxu1  ;;  %5122 = vmatmul.mubr.f32.gmra.mrb[126].mxu1 %v11043_v17 }
 0x4a1   :  { %2935 = vmatmul.mubr.f32.gmra.mrb[124].mxu0 %v11043_v17  ;;  %5209 = vrot.lane.b32.xlu0 %v2671_v42, %s8888_s18  ;;  %v2673_v9 = vpop.f32.mrb[19].mxu0  ;;  %v8030_v42 = vpack.c.bf16 %v6589_v25, %v6587_v16  ;;  %v8839_v16 = vld [vmem:[#allocation2 + $0x4c0] sm:$0xff]  ;;  %v6596_v25 = vld [vmem:[%s12973_s5 + $0x168] sm:$0xff] }
 0x4a2   :  { %5463 = vrot.lane.b32.xlu1 %v4848_v11, %s8889_s19  ;;  %2939 = vmatprep.mubr.f32.mxu0 %v1276_v33  ;;  %v6590_v11 = vld [vmem:[%s12973_s5 + $0x138] sm:$0xff] }
 0x4a3   :  { %v4863_v21 = vpop.f32.mrb[22].mxu1  ;;  %v8028_v46 = vpack.c.bf16 %v6590_v11, %v6588_v1 }
 0x4a4   :  { %v2676_v60 = vpop.f32.mrb[20].mxu0  ;;  %v4865_v61 = vpop.f32.mrb[23].mxu1 }
 0x4a5   :  { %2940 = vmatmul.mubr.f32.gmra.mrb[126].mxu0 %v11043_v17  ;;  %5211 = vrot.lane.b32.xlu0 %v2676_v60, %s8888_s18  ;;  %v2678_v12 = vpop.f32.mrb[21].mxu0  ;;  %v8830_v60 = vld [vmem:[#allocation2 + $0x3d8] sm:$0xff] }
 0x4a6   :  { %5465 = vrot.lane.b32.xlu1 %v4853_v62, %s8889_s19  ;;  %5898 = vmatprep.mubr.f32.mxu0 %v11043_v17 }
 0x4a7   :  { %v4868_v2 = vpop.f32.mrb[24].mxu1 }
 0x4a8   :  { %v2681_v32 = vpop.f32.mrb[22].mxu0  ;;  %v4870_v18 = vpop.f32.mrb[25].mxu1 }
 0x4a9   :  { %5899 = vmatmul.mubr.f32.vlgmr.msra.gmra.mrb[128].mxu0 %v8820_v14  ;;  %5213 = vrot.lane.b32.xlu0 %v2681_v32, %s8888_s18  ;;  %v2683_v28 = vpop.f32.mrb[23].mxu0 }
 0x4aa   :  { %5467 = vrot.lane.b32.xlu1 %v4858_v35, %s8889_s19  ;;  %5904 = vmatprep.mubr.f32.mxu0 %v11043_v17 }
 0x4ab   :  { %v4873_v7 = vpop.f32.mrb[26].mxu1 }
 0x4ac   :  { %v2686_v31 = vpop.f32.mrb[24].mxu0  ;;  %v4875_v15 = vpop.f32.mrb[27].mxu1 }
 0x4ad   :  { %5905 = vmatmul.mubr.f32.gmra.mrb[130].mxu0 %v8821_v47  ;;  %5215 = vrot.lane.b32.xlu0 %v2686_v31, %s8888_s18  ;;  %v2688_v36 = vpop.f32.mrb[25].mxu0 }
 0x4ae   :  { %5469 = vrot.lane.b32.xlu1 %v4863_v21, %s8889_s19  ;;  %5910 = vmatprep.mubr.f32.mxu0 %v11043_v17  ;;  %v8024_v17 = vpack.c.bf16 %v6586_v50, %v6584_v59  ;;  %v8831_v21 = vld [vmem:[#allocation2 + $0x400] sm:$0xff]  ;;  %v6592_v59 = vld [vmem:[%s12973_s5 + $0x148] sm:$0xff]  ;;  %v6594_v50 = vld [vmem:[%s12973_s5 + $0x158] sm:$0xff] }
 0x4af   :  { %v4878_v45 = vpop.f32.mrb[28].mxu1  ;;  %v8032_v15 = vpack.c.bf16 %v6594_v50, %v6592_v59 }
 0x4b0   :  { %v2691_v40 = vpop.f32.mrb[26].mxu0  ;;  %8025 = vmatprep.subr.bf16.mxu1 %v8024_v17  ;;  %v4880_v53 = vpop.f32.mrb[29].mxu1 }
 0x4b1   :  { %5911 = vmatmul.mubr.f32.gmra.mrb[132].mxu0 %v8822_v39  ;;  %5217 = vrot.lane.b32.xlu0 %v2691_v40, %s8888_s18  ;;  %v2693_v30 = vpop.f32.mrb[27].mxu0 }
 0x4b2   :  { %5471 = vrot.lane.b32.xlu1 %v4868_v2, %s8889_s19  ;;  %5916 = vmatprep.mubr.f32.mxu0 %v11341_v23  ;;  %v8832_v2 = vld [vmem:[#allocation2 + $0x408] sm:$0xff] }
 0x4b3   :  { %8027 = vmatpush1.bf16.msra.mxu1 %v8026_v19  ;;  %v4883_v22 = vpop.f32.mrb[30].mxu1 }
 0x4b4   :  { %v2696_v56 = vpop.f32.mrb[28].mxu0  ;;  %v4885_v58 = vpop.f32.mrb[31].mxu1  ;;  %8029 = vmatprep.subr.bf16.mxu1 %v8028_v46 }
 0x4b5   :  { %5917 = vmatmul.mubr.f32.gmra.mrb[134].mxu0 %v8824_v38  ;;  %5219 = vrot.lane.b32.xlu0 %v2696_v56, %s8888_s18  ;;  %v2698_v4 = vpop.f32.mrb[29].mxu0  ;;  %v6591_v56 = vld [vmem:[%s12973_s5 + $0x140] sm:$0xff] }
 0x4b6   :  { %5473 = vrot.lane.b32.xlu1 %v4873_v7, %s8889_s19  ;;  %5922 = vmatprep.mubr.f32.mxu0 %v11341_v23  ;;  %v8833_v7 = vld [vmem:[#allocation2 + $0x430] sm:$0xff] }
 0x4b7   :  { %v4888_v13 = vpop.f32.mrb[32].mxu1  ;;  %8031 = vmatpush1.bf16.msra.mxu1 %v8030_v42 }
 0x4b8   :  { %v2701_v26 = vpop.f32.mrb[30].mxu0  ;;  %v4890_v29 = vpop.f32.mrb[33].mxu1  ;;  %8033 = vmatprep.subr.bf16.mxu1 %v8032_v15  ;;  %v8843_v15 = vld [vmem:[#allocation2 + $0x520] sm:$0xff] }
 0x4b9   :  { %5923 = vmatmul.mubr.f32.gmra.mrb[136].mxu0 %v8825_v51  ;;  %5221 = vrot.lane.b32.xlu0 %v2701_v26, %s8888_s18  ;;  %v2703_v49 = vpop.f32.mrb[31].mxu0 }
 0x4ba   :  { %5475 = vrot.lane.b32.xlu1 %v4878_v45, %s8889_s19  ;;  %5928 = vmatprep.mubr.f32.mxu0 %v11341_v23  ;;  %v6593_v45 = vld [vmem:[%s12973_s5 + $0x150] sm:$0xff] }
 0x4bb   :  { %v4893_v48 = vpop.f32.mrb[34].mxu1  ;;  %v8034_v4 = vpack.c.bf16 %v6593_v45, %v6591_v56 }
 0x4bc   :  { %v2706_v10 = vpop.f32.mrb[32].mxu0  ;;  %v4895_v43 = vpop.f32.mrb[35].mxu1 }
 0x4bd   :  { %5929 = vmatmul.mubr.f32.gmra.mrb[138].mxu0 %v8826_v54  ;;  %5223 = vrot.lane.b32.xlu0 %v2706_v10, %s8888_s18  ;;  %v2708_v52 = vpop.f32.mrb[33].mxu0 }
 0x4be   :  { %5477 = vrot.lane.b32.xlu1 %v4883_v22, %s8889_s19  ;;  %5934 = vmatprep.mubr.f32.mxu0 %v11341_v23  ;;  %v8835_v22 = vld [vmem:[#allocation2 + $0x460] sm:$0xff] }
 0x4bf   :  { %v4898_v8 = vpop.f32.mrb[36].mxu1  ;;  %8035 = vmatpush1.bf16.msra.mxu1 %v8034_v4 }
 0x4c0   :  { %v2711_v63 = vpop.f32.mrb[34].mxu0  ;;  %v4900_v20 = vpop.f32.mrb[37].mxu1 }
 0x4c1   :  { %5935 = vmatmul.mubr.f32.gmra.mrb[140].mxu0 %v8827_v5  ;;  %5225 = vrot.lane.b32.xlu0 %v2711_v63, %s8888_s18  ;;  %v2713_v57 = vpop.f32.mrb[35].mxu0 }
 0x4c2   :  { %5479 = vrot.lane.b32.xlu1 %v4888_v13, %s8889_s19  ;;  %5940 = vmatprep.mubr.f32.mxu0 %v11341_v23  ;;  %v8836_v13 = vld [vmem:[#allocation2 + $0x468] sm:$0xff] }
 0x4c3   :  { %v4903_v33 = vpop.f32.mrb[38].mxu1 }
 0x4c4   :  { %v2716_v55 = vpop.f32.mrb[36].mxu0  ;;  %v4905_v62 = vpop.f32.mrb[39].mxu1 }
 0x4c5   :  { %5941 = vmatmul.mubr.f32.gmra.mrb[142].mxu0 %v8828_v24  ;;  %5227 = vrot.lane.b32.xlu0 %v2716_v55, %s8888_s18  ;;  %v2718_v6 = vpop.f32.mrb[37].mxu0 }
 0x4c6   :  { %5481 = vrot.lane.b32.xlu1 %v4893_v48, %s8889_s19  ;;  %5946 = vmatprep.mubr.f32.mxu0 %v11341_v23  ;;  %v8837_v48 = vld [vmem:[#allocation2 + $0x490] sm:$0xff] }
 0x4c7   :  { %v4908_v37 = vpop.f32.mrb[40].mxu1 }
 0x4c8   :  { %v2721_v0 = vpop.f32.mrb[38].mxu0  ;;  %v4910_v12 = vpop.f32.mrb[41].mxu1 }
 0x4c9   :  { %5947 = vmatmul.mubr.f32.gmra.mrb[144].mxu0 %v8829_v3  ;;  %5229 = vrot.lane.b32.xlu0 %v2721_v0, %s8888_s18  ;;  %v2723_v27 = vpop.f32.mrb[39].mxu0  ;;  %v6598_v0 = vld [vmem:[%s12973_s5 + $0x178] sm:$0xff]  ;;  %v6595_v3 = vld [vmem:[%s12973_s5 + $0x160] sm:$0xff] }
 0x4ca   :  { %5483 = vrot.lane.b32.xlu1 %v4898_v8, %s8889_s19  ;;  %5952 = vmatprep.mubr.f32.mxu0 %v11341_v23  ;;  %v8838_v8 = vld [vmem:[#allocation2 + $0x498] sm:$0xff]  ;;  %v6597_v27 = vld [vmem:[%s12973_s5 + $0x170] sm:$0xff] }
 0x4cb   :  { %v4913_v32 = vpop.f32.mrb[42].mxu1  ;;  %v8038_v62 = vpack.c.bf16 %v6597_v27, %v6595_v3  ;;  %v8849_v27 = vld [vmem:[#allocation2 + $0x5b0] sm:$0xff] }
 0x4cc   :  { %v2726_v9 = vpop.f32.mrb[40].mxu0  ;;  %v4915_v28 = vpop.f32.mrb[43].mxu1 }
 0x4cd   :  { %5953 = vmatmul.mubr.f32.gmra.mrb[146].mxu0 %v8830_v60  ;;  %5231 = vrot.lane.b32.xlu0 %v2726_v9, %s8888_s18  ;;  %v2728_v35 = vpop.f32.mrb[41].mxu0 }
 0x4ce   :  { %5485 = vrot.lane.b32.xlu1 %v4903_v33, %s8889_s19  ;;  %5958 = vmatprep.mubr.f32.mxu0 %v11341_v23  ;;  %v8036_v33 = vpack.c.bf16 %v6598_v0, %v6596_v25  ;;  %v8840_v35 = vld [vmem:[#allocation2 + $0x4c8] sm:$0xff] }
 0x4cf   :  { %v4918_v31 = vpop.f32.mrb[44].mxu1 }
 0x4d0   :  { %v2731_v41 = vpop.f32.mrb[42].mxu0  ;;  %v4920_v36 = vpop.f32.mrb[45].mxu1  ;;  %8037 = vmatprep.subr.bf16.mxu1 %v8036_v33 }
 0x4d1   :  { %5959 = vmatmul.mubr.f32.gmra.mrb[148].mxu0 %v8831_v21  ;;  %5233 = vrot.lane.b32.xlu0 %v2731_v41, %s8888_s18  ;;  %v2733_v14 = vpop.f32.mrb[43].mxu0 }
 0x4d2   :  { %5487 = vrot.lane.b32.xlu1 %v4908_v37, %s8889_s19  ;;  %5964 = vmatprep.mubr.f32.mxu0 %v11341_v23 }
 0x4d3   :  { %v4923_v40 = vpop.f32.mrb[46].mxu1  ;;  %8039 = vmatpush1.bf16.msra.mxu1 %v8038_v62 }
 0x4d4   :  { %v2736_v61 = vpop.f32.mrb[44].mxu0  ;;  %v4925_v30 = vpop.f32.mrb[47].mxu1 }
 0x4d5   :  { %5965 = vmatmul.mubr.f32.gmra.mrb[150].mxu0 %v8832_v2  ;;  %5235 = vrot.lane.b32.xlu0 %v2736_v61, %s8888_s18  ;;  %v2738_v47 = vpop.f32.mrb[45].mxu0  ;;  %v8841_v61 = vld [vmem:[#allocation2 + $0x4f0] sm:$0xff] }
 0x4d6   :  { %5489 = vrot.lane.b32.xlu1 %v4913_v32, %s8889_s19  ;;  %5970 = vmatprep.mubr.f32.mxu0 %v11341_v23 }
 0x4d7   :  { %v4928_v44 = vpop.f32.mrb[48].mxu1 }
 0x4d8   :  { %v2741_v18 = vpop.f32.mrb[46].mxu0  ;;  %v4930_v38 = vpop.f32.mrb[49].mxu1 }
 0x4d9   :  { %5971 = vmatmul.mubr.f32.gmra.mrb[152].mxu0 %v8833_v7  ;;  %5237 = vrot.lane.b32.xlu0 %v2741_v18, %s8888_s18  ;;  %v2743_v39 = vpop.f32.mrb[47].mxu0  ;;  %v8844_v38 = vld [vmem:[#allocation2 + $0x528] sm:$0xff] }
 0x4da   :  { %5491 = vrot.lane.b32.xlu1 %v4918_v31, %s8889_s19  ;;  %5976 = vmatprep.mubr.f32.mxu0 %v11341_v23 }
 0x4db   :  { %v4933_v26 = vpop.f32.mrb[50].mxu1 }
 0x4dc   :  { %v2746_v17 = vpop.f32.mrb[48].mxu0  ;;  %v4935_v49 = vpop.f32.mrb[51].mxu1 }
 0x4dd   :  { %5977 = vmatmul.mubr.f32.gmra.mrb[154].mxu0 %v8834_v34  ;;  %5239 = vrot.lane.b32.xlu0 %v2746_v17, %s8888_s18  ;;  %v2748_v19 = vpop.f32.mrb[49].mxu0  ;;  %v8845_v49 = vld [vmem:[#allocation2 + $0x550] sm:$0xff] }
 0x4de   :  { %5493 = vrot.lane.b32.xlu1 %v4923_v40, %s8889_s19  ;;  %5982 = vmatprep.mubr.f32.mxu0 %v11341_v23  ;;  %v8842_v40 = vld [vmem:[#allocation2 + $0x4f8] sm:$0xff] }
 0x4df   :  { %v4938_v10 = vpop.f32.mrb[52].mxu1 }
 0x4e0   :  { %v2751_v53 = vpop.f32.mrb[50].mxu0  ;;  %v4940_v52 = vpop.f32.mrb[53].mxu1 }
 0x4e1   :  { %5983 = vmatmul.mubr.f32.gmra.mrb[156].mxu0 %v8835_v22  ;;  %5241 = vrot.lane.b32.xlu0 %v2751_v53, %s8888_s18  ;;  %v2753_v51 = vpop.f32.mrb[51].mxu0 }
 0x4e2   :  { %5495 = vrot.lane.b32.xlu1 %v4928_v44, %s8889_s19  ;;  %5988 = vmatprep.mubr.f32.mxu0 %v11341_v23 }
 0x4e3   :  { %v4943_v63 = vpop.f32.mrb[54].mxu1 }
 0x4e4   :  { %v2756_v58 = vpop.f32.mrb[52].mxu0  ;;  %v4945_v57 = vpop.f32.mrb[55].mxu1 }
 0x4e5   :  { %5989 = vmatmul.mubr.f32.gmra.mrb[158].mxu0 %v8836_v13  ;;  %5243 = vrot.lane.b32.xlu0 %v2756_v58, %s8888_s18  ;;  %v2758_v54 = vpop.f32.mrb[53].mxu0 }
 0x4e6   :  { %5497 = vrot.lane.b32.xlu1 %v4933_v26, %s8889_s19  ;;  %5994 = vmatprep.mubr.f32.mxu0 %v11341_v23 }
 0x4e7   :  { %v4948_v55 = vpop.f32.mrb[56].mxu1 }
 0x4e8   :  { %v2761_v29 = vpop.f32.mrb[54].mxu0  ;;  %v4950_v6 = vpop.f32.mrb[57].mxu1 }
 0x4e9   :  { %5995 = vmatmul.mubr.f32.gmra.mrb[160].mxu0 %v8837_v48  ;;  %5245 = vrot.lane.b32.xlu0 %v2761_v29, %s8888_s18  ;;  %v2763_v5 = vpop.f32.mrb[55].mxu0  ;;  %v8846_v29 = vld [vmem:[#allocation2 + $0x558] sm:$0xff] }
 0x4ea   :  { %5499 = vrot.lane.b32.xlu1 %v4938_v10, %s8889_s19  ;;  %6000 = vmatprep.mubr.f32.mxu0 %v11341_v23 }
 0x4eb   :  { %v4953_v11 = vpop.f32.mrb[58].mxu1 }
 0x4ec   :  { %v2766_v43 = vpop.f32.mrb[56].mxu0  ;;  %v4955_v42 = vpop.f32.mrb[59].mxu1 }
 0x4ed   :  { %6001 = vmatmul.mubr.f32.gmra.mrb[162].mxu0 %v8838_v8  ;;  %5247 = vrot.lane.b32.xlu0 %v2766_v43, %s8888_s18  ;;  %v2768_v24 = vpop.f32.mrb[57].mxu0  ;;  %v8847_v8 = vld [vmem:[#allocation2 + $0x580] sm:$0xff] }
 0x4ee   :  { %5501 = vrot.lane.b32.xlu1 %v4943_v63, %s8889_s19  ;;  %6006 = vmatprep.mubr.f32.mxu0 %v11341_v23 }
 0x4ef   :  { %v11419_v20 = vpop.permute.xlu0 %5191  ;;  %v4958_v60 = vpop.f32.mrb[60].mxu1 }
 0x4f0   :  { %v2771_v1 = vpop.f32.mrb[58].mxu0  ;;  %v4960_v32 = vpop.f32.mrb[61].mxu1 }
 0x4f1   :  { %6007 = vmatmul.mubr.f32.gmra.mrb[164].mxu0 %v8839_v16  ;;  %5249 = vrot.lane.b32.xlu0 %v2771_v1, %s8888_s18  ;;  %v2773_v46 = vpop.f32.mrb[59].mxu0 }
 0x4f2   :  { %5503 = vrot.lane.b32.xlu1 %v4948_v55, %s8889_s19  ;;  %6012 = vmatprep.mubr.f32.mxu0 %v11341_v23  ;;  %v8848_v46 = vld [vmem:[#allocation2 + $0x588] sm:$0xff] }
 0x4f3   :  { %v11439_v41 = vpop.permute.xlu0 %5447  ;;  %v4963_v28 = vpop.f32.mrb[62].mxu1 }
 0x4f4   :  { %v11436_v9 = vpop.permute.xlu1 %5193  ;;  %v2776_v37 = vpop.f32.mrb[60].mxu0 }
 0x4f5   :  { %6013 = vmatmul.mubr.f32.gmra.mrb[166].mxu0 %v8840_v35  ;;  %5251 = vrot.lane.b32.xlu0 %v2776_v37, %s8888_s18  ;;  %v2778_v12 = vpop.f32.mrb[61].mxu0  ;;  %v4965_v2 = vpop.f32.mrb[63].mxu1 }
 0x4f6   :  { %5505 = vrot.lane.b32.xlu1 %v4953_v11, %s8889_s19  ;;  %6018 = vmatprep.mubr.f32.mxu0 %v11341_v23 }
 0x4f7   :  { %v11448_v47 = vpop.permute.xlu0 %5195  ;;  %v4968_v18 = vpop.f32.mrb[64].mxu1 }
 0x4f8   :  { %v11443_v21 = vpop.permute.xlu1 %5449  ;;  %v2781_v14 = vpop.f32.mrb[62].mxu0 }
 0x4f9   :  { %6019 = vmatmul.mubr.f32.gmra.mrb[168].mxu0 %v8841_v61  ;;  %5253 = vrot.lane.b32.xlu0 %v2781_v14, %s8888_s18  ;;  %v2783_v31 = vpop.f32.mrb[63].mxu0  ;;  %v4970_v30 = vpop.f32.mrb[65].mxu1  ;;  %v8850_v14 = vld [vmem:[#allocation2 + $0x5b8] sm:$0xff] }
 0x4fa   :  { %5507 = vrot.lane.b32.xlu1 %v4958_v60, %s8889_s19  ;;  %6024 = vmatprep.mubr.f32.mxu0 %v11341_v23 }
 0x4fb   :  { %v4973_v50 = vpop.f32.mrb[66].mxu1  ;;  %v11456_v44 = vpop.permute.xlu0 %5197 }
 0x4fc   :  { %v2786_v36 = vpop.f32.mrb[64].mxu0  ;;  %v11451_v39 = vpop.permute.xlu1 %5451 }
 0x4fd   :  { %6025 = vmatmul.mubr.f32.gmra.mrb[170].mxu0 %v8842_v40  ;;  %5255 = vrot.lane.b32.xlu0 %v2786_v36, %s8888_s18  ;;  %v2788_v7 = vpop.f32.mrb[65].mxu0  ;;  %v4975_v34 = vpop.f32.mrb[67].mxu1 }
 0x4fe   :  { %5509 = vrot.lane.b32.xlu1 %v4963_v28, %s8889_s19  ;;  %6030 = vmatprep.mubr.f32.mxu0 %v11341_v23 }
 0x4ff   :  { %v4978_v45 = vpop.f32.mrb[68].mxu1  ;;  %v11465_v26 = vpop.permute.xlu0 %5199 }
 0x500   :  { %v2791_v59 = vpop.f32.mrb[66].mxu0  ;;  %v11460_v19 = vpop.permute.xlu1 %5453 }
 0x501   :  { %6031 = vmatmul.mubr.f32.gmra.mrb[172].mxu0 %v8843_v15  ;;  %5257 = vrot.lane.b32.xlu0 %v2791_v59, %s8888_s18  ;;  %v2793_v17 = vpop.f32.mrb[67].mxu0  ;;  %v4980_v53 = vpop.f32.mrb[69].mxu1  ;;  %v8852_v15 = vld [vmem:[#allocation2 + $0x5e8] sm:$0xff] }
 0x502   :  { %5511 = vrot.lane.b32.xlu1 %v4968_v18, %s8889_s19  ;;  %6036 = vmatprep.mubr.f32.mxu0 %v11341_v23  ;;  %v8851_v18 = vld [vmem:[#allocation2 + $0x5e0] sm:$0xff]  ;;  %v8853_v53 = vld [vmem:[#allocation2 + $0xc10] sm:$0xff] }
 0x503   :  { %v4983_v51 = vpop.f32.mrb[70].mxu1  ;;  %v11473_v48 = vpop.permute.xlu0 %5201 }
 0x504   :  { %v2796_v56 = vpop.f32.mrb[68].mxu0  ;;  %v11468_v10 = vpop.permute.xlu1 %5455 }
 0x505   :  { %6037 = vmatmul.mubr.f32.gmra.mrb[174].mxu0 %v8844_v38  ;;  %5259 = vrot.lane.b32.xlu0 %v2796_v56, %s8888_s18  ;;  %v2798_v4 = vpop.f32.mrb[69].mxu0  ;;  %v4985_v13 = vpop.f32.mrb[71].mxu1 }
 0x506   :  { %5513 = vrot.lane.b32.xlu1 %v4973_v50, %s8889_s19  ;;  %6042 = vmatprep.mubr.f32.mxu0 %v11341_v23 }
 0x507   :  { %v4988_v52 = vpop.f32.mrb[72].mxu1  ;;  %v11482_v1 = vpop.permute.xlu0 %5203 }
 0x508   :  { %v2801_v22 = vpop.f32.mrb[70].mxu0  ;;  %v4990_v5 = vpop.f32.mrb[73].mxu1 }
 0x509   :  { %6043 = vmatmul.mubr.f32.gmra.mrb[176].mxu0 %v8845_v49  ;;  %5261 = vrot.lane.b32.xlu0 %v2801_v22, %s8888_s18  ;;  %v2803_v58 = vpop.f32.mrb[71].mxu0  ;;  %v11477_v57 = vpop.permute.xlu1 %5457 }
 0x50a   :  { %5515 = vrot.lane.b32.xlu1 %v4978_v45, %s8889_s19  ;;  %6048 = vmatprep.mubr.f32.mxu0 %v11341_v23 }
 0x50b   :  { %v4993_v55 = vpop.f32.mrb[74].mxu1  ;;  %v11490_v37 = vpop.permute.xlu0 %5205 }
 0x50c   :  { %v2806_v54 = vpop.f32.mrb[72].mxu0  ;;  %v4995_v6 = vpop.f32.mrb[75].mxu1 }
 0x50d   :  { %6049 = vmatmul.mubr.f32.gmra.mrb[178].mxu0 %v8846_v29  ;;  %5263 = vrot.lane.b32.xlu0 %v2806_v54, %s8888_s18  ;;  %v2808_v63 = vpop.f32.mrb[73].mxu0  ;;  %v11485_v0 = vpop.permute.xlu1 %5459  ;;  %v8854_v54 = vld [vmem:[#allocation2 + $0xc18] sm:$0xff] }
 0x50e   :  { %5517 = vrot.lane.b32.xlu1 %v4983_v51, %s8889_s19  ;;  %6054 = vmatprep.mubr.f32.mxu0 %v11341_v23 }
 0x50f   :  { %v4998_v16 = vpop.f32.mrb[76].mxu1  ;;  %v11499_v31 = vpop.permute.xlu0 %5207 }
 0x510   :  { %v2811_v43 = vpop.f32.mrb[74].mxu0  ;;  %v5000_v42 = vpop.f32.mrb[77].mxu1 }
 0x511   :  { %6055 = vmatmul.mubr.f32.gmra.mrb[180].mxu0 %v8847_v8  ;;  %5265 = vrot.lane.b32.xlu0 %v2811_v43, %s8888_s18  ;;  %v2813_v24 = vpop.f32.mrb[75].mxu0  ;;  %v11494_v35 = vpop.permute.xlu1 %5461 }
 0x512   :  { %5519 = vrot.lane.b32.xlu1 %v4988_v52, %s8889_s19  ;;  %6060 = vmatprep.mubr.f32.mxu0 %v11341_v23 }
 0x513   :  { %v5003_v3 = vpop.f32.mrb[78].mxu1  ;;  %v11507_v34 = vpop.permute.xlu0 %5209 }
 0x514   :  { %v2816_v11 = vpop.f32.mrb[76].mxu0  ;;  %v5005_v60 = vpop.f32.mrb[79].mxu1 }
 0x515   :  { %6061 = vmatmul.mubr.f32.gmra.mrb[182].mxu0 %v8848_v46  ;;  %5267 = vrot.lane.b32.xlu0 %v2816_v11, %s8888_s18  ;;  %v2818_v25 = vpop.f32.mrb[77].mxu0  ;;  %v11502_v7 = vpop.permute.xlu1 %5463  ;;  %v8857_v60 = vld [vmem:[#allocation2 + $0xc70] sm:$0xff] }
 0x516   :  { %5521 = vrot.lane.b32.xlu1 %v4993_v55, %s8889_s19  ;;  %6066 = vmatprep.mubr.f32.mxu0 %v11341_v23  ;;  %v8855_v55 = vld [vmem:[#allocation2 + $0xc40] sm:$0xff]  ;;  %v8856_v25 = vld [vmem:[#allocation2 + $0xc48] sm:$0xff] }
 0x517   :  { %v5008_v32 = vpop.f32.mrb[80].mxu1  ;;  %v11516_v49 = vpop.permute.xlu0 %5211 }
 0x518   :  { %v2821_v33 = vpop.f32.mrb[78].mxu0  ;;  %v5010_v61 = vpop.f32.mrb[81].mxu1 }
 0x519   :  { %6067 = vmatmul.mubr.f32.gmra.mrb[184].mxu0 %v8849_v27  ;;  %5269 = vrot.lane.b32.xlu0 %v2821_v33, %s8888_s18  ;;  %v2823_v62 = vpop.f32.mrb[79].mxu0  ;;  %v11511_v45 = vpop.permute.xlu1 %5465 }
 0x51a   :  { %5523 = vrot.lane.b32.xlu1 %v4998_v16, %s8889_s19  ;;  %6072 = vmatprep.mubr.f32.mxu0 %v11341_v23 }
 0x51b   :  { %v5013_v36 = vpop.f32.mrb[82].mxu1  ;;  %v11524_v24 = vpop.permute.xlu0 %5213 }
 0x51c   :  { %v2826_v12 = vpop.f32.mrb[80].mxu0  ;;  %v5015_v30 = vpop.f32.mrb[83].mxu1 }
 0x51d   :  { %6073 = vmatmul.mubr.f32.gmra.mrb[186].mxu0 %v8850_v14  ;;  %5271 = vrot.lane.b32.xlu0 %v2826_v12, %s8888_s18  ;;  %v2828_v28 = vpop.f32.mrb[81].mxu0  ;;  %v11519_v29 = vpop.permute.xlu1 %5467 }
 0x51e   :  { %5525 = vrot.lane.b32.xlu1 %v5003_v3, %s8889_s19  ;;  %6078 = vmatprep.mubr.f32.mxu0 %v11341_v23 }
 0x51f   :  { %v5018_v50 = vpop.f32.mrb[84].mxu1  ;;  %v11533_v3 = vpop.permute.xlu0 %5215 }
 0x520   :  { %v2831_v2 = vpop.f32.mrb[82].mxu0  ;;  %v5020_v56 = vpop.f32.mrb[85].mxu1 }
 0x521   :  { %6079 = vmatmul.mubr.f32.gmra.mrb[188].mxu0 %v8851_v18  ;;  %5273 = vrot.lane.b32.xlu0 %v2831_v2, %s8888_s18  ;;  %v2833_v40 = vpop.f32.mrb[83].mxu0  ;;  %v11528_v11 = vpop.permute.xlu1 %5469  ;;  %v8858_v2 = vld [vmem:[#allocation2 + $0xc78] sm:$0xff] }
 0x522   :  { %5527 = vrot.lane.b32.xlu1 %v5008_v32, %s8889_s19  ;;  %6084 = vmatprep.mubr.f32.mxu0 %v11341_v23 }
 0x523   :  { %v5023_v4 = vpop.f32.mrb[86].mxu1  ;;  %v11541_v18 = vpop.permute.xlu0 %5217 }
 0x524   :  { %v2836_v59 = vpop.f32.mrb[84].mxu0  ;;  %v5025_v51 = vpop.f32.mrb[87].mxu1 }
 0x525   :  { %6085 = vmatmul.mubr.f32.gmra.mrb[190].mxu0 %v8852_v15  ;;  %5275 = vrot.lane.b32.xlu0 %v2836_v59, %s8888_s18  ;;  %v2838_v17 = vpop.f32.mrb[85].mxu0  ;;  %v11536_v32 = vpop.permute.xlu1 %5471  ;;  %v8859_v15 = vld [vmem:[#allocation2 + $0xca0] sm:$0xff] }
 0x526   :  { %5529 = vrot.lane.b32.xlu1 %v5013_v36, %s8889_s19  ;;  %6090 = vmatprep.mubr.f32.mxu0 %v11341_v23 }
 0x527   :  { %v5028_v13 = vpop.f32.mrb[88].mxu1 }
 0x528   :  { %v2841_v38 = vpop.f32.mrb[86].mxu0  ;;  %v5030_v63 = vpop.f32.mrb[89].mxu1 }
 0x529   :  { %6091 = vmatmul.mubr.f32.gmra.mrb[192].mxu0 %v8853_v53  ;;  %5277 = vrot.lane.b32.xlu0 %v2841_v38, %s8888_s18  ;;  %v2843_v22 = vpop.f32.mrb[87].mxu0  ;;  %v11545_v30 = vpop.permute.xlu1 %5473  ;;  %v8861_v63 = vld [vmem:[#allocation2 + $0xcd0] sm:$0xff] }
 0x52a   :  { %5531 = vrot.lane.b32.xlu1 %v5018_v50, %s8889_s19  ;;  %6096 = vmatprep.mubr.f32.mxu0 %v11341_v23  ;;  %v11550_v38 = vpop.permute.xlu0 %5219  ;;  %v8860_v22 = vld [vmem:[#allocation2 + $0xca8] sm:$0xff] }
 0x52b   :  { %v5033_v43 = vpop.f32.mrb[90].mxu1 }
 0x52c   :  { %v2846_v58 = vpop.f32.mrb[88].mxu0  ;;  %v5035_v6 = vpop.f32.mrb[91].mxu1 }
 0x52d   :  { %6097 = vmatmul.mubr.f32.gmra.mrb[194].mxu0 %v8854_v54  ;;  %5279 = vrot.lane.b32.xlu0 %v2846_v58, %s8888_s18  ;;  %v2848_v52 = vpop.f32.mrb[89].mxu0  ;;  %v11553_v58 = vpop.permute.xlu1 %5475 }
 0x52e   :  { %5533 = vrot.lane.b32.xlu1 %v5023_v4, %s8889_s19  ;;  %6102 = vmatprep.mubr.f32.mxu0 %v11341_v23 }
 0x52f   :  { %v5038_v46 = vpop.f32.mrb[92].mxu1 }
 0x530   :  { %v2851_v5 = vpop.f32.mrb[90].mxu0  ;;  %v5040_v33 = vpop.f32.mrb[93].mxu1 }
 0x531   :  { %6103 = vmatmul.mubr.f32.gmra.mrb[196].mxu0 %v8855_v55  ;;  %5281 = vrot.lane.b32.xlu0 %v2851_v5, %s8888_s18  ;;  %v2853_v8 = vpop.f32.mrb[91].mxu0 }
 0x532   :  { %5535 = vrot.lane.b32.xlu1 %v5028_v13, %s8889_s19  ;;  %6108 = vmatprep.mubr.f32.mxu0 %v11341_v23  ;;  %v11562_v8 = vpop.permute.xlu1 %5477 }
 0x533   :  { %v5043_v62 = vpop.f32.mrb[94].mxu1 }
 0x534   :  { %v2856_v16 = vpop.f32.mrb[92].mxu0  ;;  %v5045_v14 = vpop.f32.mrb[95].mxu1 }
 0x535   :  { %6109 = vmatmul.mubr.f32.gmra.mrb[198].mxu0 %v8856_v25  ;;  %5283 = vrot.lane.b32.xlu0 %v2856_v16, %s8888_s18  ;;  %v2858_v42 = vpop.f32.mrb[93].mxu0 }
 0x536   :  { %5537 = vrot.lane.b32.xlu1 %v5033_v43, %s8889_s19  ;;  %6114 = vmatprep.mubr.f32.mxu0 %v11341_v23  ;;  %v11558_v43 = vpop.permute.xlu0 %5221  ;;  %v11570_v14 = vpop.permute.xlu1 %5479 }
 0x537   :  { %v5048_v61 = vpop.f32.mrb[96].mxu1 }
 0x538   :  { %v2861_v27 = vpop.f32.mrb[94].mxu0  ;;  %v5050_v40 = vpop.f32.mrb[97].mxu1 }
 0x539   :  { %6115 = vmatmul.mubr.f32.gmra.mrb[200].mxu0 %v8857_v60  ;;  %5285 = vrot.lane.b32.xlu0 %v2861_v27, %s8888_s18  ;;  %v2863_v12 = vpop.f32.mrb[95].mxu0  ;;  %v8863_v60 = vld [vmem:[#allocation2 + $0xd00] sm:$0xff] }
 0x53a   :  { %5539 = vrot.lane.b32.xlu1 %v5038_v46, %s8889_s19  ;;  %6120 = vmatprep.mubr.f32.mxu0 %v11341_v23  ;;  %v8862_v46 = vld [vmem:[#allocation2 + $0xcd8] sm:$0xff]  ;;  %v11567_v33 = vpop.permute.xlu0 %5223 }
 0x53b   :  { %v5053_v50 = vpop.f32.mrb[98].mxu1 }
 0x53c   :  { %v2866_v28 = vpop.f32.mrb[96].mxu0  ;;  %v5055_v56 = vpop.f32.mrb[99].mxu1 }
 0x53d   :  { %6121 = vmatmul.mubr.f32.gmra.mrb[202].mxu0 %v8858_v2  ;;  %5287 = vrot.lane.b32.xlu0 %v2866_v28, %s8888_s18  ;;  %v2868_v36 = vpop.f32.mrb[97].mxu0 }
 0x53e   :  { %5541 = vrot.lane.b32.xlu1 %v5043_v62, %s8889_s19  ;;  %6126 = vmatprep.mubr.f32.mxu0 %v11341_v23  ;;  %v8864_v36 = vld [vmem:[#allocation2 + $0xd08] sm:$0xff] }
 0x53f   :  { %v5058_v53 = vpop.f32.mrb[100].mxu1 }
 0x540   :  { %v2871_v59 = vpop.f32.mrb[98].mxu0  ;;  %v5060_v13 = vpop.f32.mrb[101].mxu1 }
 0x541   :  { %6127 = vmatmul.mubr.f32.gmra.mrb[204].mxu0 %v8859_v15  ;;  %5289 = vrot.lane.b32.xlu0 %v2871_v59, %s8888_s18  ;;  %v2873_v17 = vpop.f32.mrb[99].mxu0  ;;  %v11575_v59 = vpop.permute.xlu0 %5225 }
 0x542   :  { %5543 = vrot.lane.b32.xlu1 %v5048_v61, %s8889_s19  ;;  %6132 = vmatprep.mubr.f32.mxu0 %v11341_v23  ;;  %v11579_v15 = vpop.permute.xlu1 %5481 }
 0x543   :  { %v5063_v52 = vpop.f32.mrb[102].mxu1 }
 0x544   :  { %v2876_v4 = vpop.f32.mrb[100].mxu0  ;;  %v5065_v55 = vpop.f32.mrb[103].mxu1 }
 0x545   :  { %6133 = vmatmul.mubr.f32.gmra.mrb[206].mxu0 %v8860_v22  ;;  %5291 = vrot.lane.b32.xlu0 %v2876_v4, %s8888_s18  ;;  %v2878_v51 = vpop.f32.mrb[101].mxu0  ;;  %v8865_v4 = vld [vmem:[#allocation2 + $0xd30] sm:$0xff] }
 0x546   :  { %5545 = vrot.lane.b32.xlu1 %v5053_v50, %s8889_s19  ;;  %6138 = vmatprep.mubr.f32.mxu0 %v11341_v23  ;;  %v11584_v51 = vpop.permute.xlu0 %5227 }
 0x547   :  { %v5068_v16 = vpop.f32.mrb[104].mxu1 }
 0x548   :  { %v2881_v54 = vpop.f32.mrb[102].mxu0  ;;  %v5070_v42 = vpop.f32.mrb[105].mxu1 }
 0x549   :  { %6139 = vmatmul.mubr.f32.gmra.mrb[208].mxu0 %v8861_v63  ;;  %5293 = vrot.lane.b32.xlu0 %v2881_v54, %s8888_s18  ;;  %v2883_v5 = vpop.f32.mrb[103].mxu0 }
 0x54a   :  { %5547 = vrot.lane.b32.xlu1 %v5058_v53, %s8889_s19  ;;  %6144 = vmatprep.mubr.f32.mxu0 %v11341_v23  ;;  %v11587_v5 = vpop.permute.xlu1 %5483  ;;  %v11592_v42 = vpop.permute.xlu0 %5229 }
 0x54b   :  { %v5073_v62 = vpop.f32.mrb[106].mxu1 }
 0x54c   :  { %v2886_v6 = vpop.f32.mrb[104].mxu0  ;;  %v5075_v28 = vpop.f32.mrb[107].mxu1 }
 0x54d   :  { %6145 = vmatmul.mubr.f32.gmra.mrb[210].mxu0 %v8862_v46  ;;  %5295 = vrot.lane.b32.xlu0 %v2886_v6, %s8888_s18  ;;  %v2888_v25 = vpop.f32.mrb[105].mxu0  ;;  %v8867_v46 = vld [vmem:[#allocation2 + $0xd60] sm:$0xff]  ;;  %v8868_v28 = vld [vmem:[#allocation2 + $0xd68] sm:$0xff] }
 0x54e   :  { %5549 = vrot.lane.b32.xlu1 %v5063_v52, %s8889_s19  ;;  %6150 = vmatprep.mubr.f32.mxu0 %v11341_v23  ;;  %v8866_v52 = vld [vmem:[#allocation2 + $0xd38] sm:$0xff] }
 0x54f   :  { %v5078_v2 = vpop.f32.mrb[108].mxu1 }
 0x550   :  { %v2891_v27 = vpop.f32.mrb[106].mxu0  ;;  %v5080_v50 = vpop.f32.mrb[109].mxu1 }
 0x551   :  { %6151 = vmatmul.mubr.f32.gmra.mrb[212].mxu0 %v8863_v60  ;;  %5297 = vrot.lane.b32.xlu0 %v2891_v27, %s8888_s18  ;;  %v2893_v12 = vpop.f32.mrb[107].mxu0 }
 0x552   :  { %5551 = vrot.lane.b32.xlu1 %v5068_v16, %s8889_s19  ;;  %6156 = vmatprep.mubr.f32.mxu0 %v11341_v23 }
 0x553   :  { %v5083_v56 = vpop.f32.mrb[110].mxu1 }
 0x554   :  { %v2896_v61 = vpop.f32.mrb[108].mxu0  ;;  %v5085_v22 = vpop.f32.mrb[111].mxu1 }
 0x555   :  { %6157 = vmatmul.mubr.f32.gmra.mrb[214].mxu0 %v8864_v36  ;;  %5299 = vrot.lane.b32.xlu0 %v2896_v61, %s8888_s18  ;;  %v2898_v40 = vpop.f32.mrb[109].mxu0  ;;  %v11601_v36 = vpop.permute.xlu0 %5231 }
 0x556   :  { %5553 = vrot.lane.b32.xlu1 %v5073_v62, %s8889_s19  ;;  %6162 = vmatprep.mubr.f32.mxu0 %v11341_v23  ;;  %v11596_v62 = vpop.permute.xlu1 %5485 }
 0x557   :  { %v5088_v54 = vpop.f32.mrb[112].mxu1 }
 0x558   :  { %v2901_v17 = vpop.f32.mrb[110].mxu0  ;;  %v5090_v55 = vpop.f32.mrb[113].mxu1 }
 0x559   :  { %6163 = vmatmul.mubr.f32.gmra.mrb[216].mxu0 %v8865_v4  ;;  %5301 = vrot.lane.b32.xlu0 %v2901_v17, %s8888_s18  ;;  %v2903_v53 = vpop.f32.mrb[111].mxu0  ;;  %v8869_v17 = vld [vmem:[#allocation2 + $0xd90] sm:$0xff]  ;;  %v11611_v55 = vpop.permute.xlu0 %5233 }
 0x55a   :  { %5555 = vrot.lane.b32.xlu1 %v5078_v2, %s8889_s19  ;;  %6168 = vmatprep.mubr.f32.mxu0 %v11341_v23  ;;  %v11604_v4 = vpop.permute.xlu1 %5487 }
 0x55b   :  { %v5093_v16 = vpop.f32.mrb[114].mxu1 }
 0x55c   :  { %v2906_v13 = vpop.f32.mrb[112].mxu0  ;;  %v5095_v27 = vpop.f32.mrb[115].mxu1 }
 0x55d   :  { %6169 = vmatmul.mubr.f32.gmra.mrb[218].mxu0 %v8866_v52  ;;  %5303 = vrot.lane.b32.xlu0 %v2906_v13, %s8888_s18  ;;  %v2908_v63 = vpop.f32.mrb[113].mxu0  ;;  %v8871_v27 = vld [vmem:[#allocation2 + $0xdc0] sm:$0xff] }
 0x55e   :  { %5557 = vrot.lane.b32.xlu1 %v5083_v56, %s8889_s19  ;;  %6174 = vmatprep.mubr.f32.mxu0 %v11341_v23 }
 0x55f   :  { %v5098_v12 = vpop.f32.mrb[116].mxu1 }
 0x560   :  { %v2911_v6 = vpop.f32.mrb[114].mxu0  ;;  %v5100_v2 = vpop.f32.mrb[117].mxu1 }
 0x561   :  { %6175 = vmatmul.mubr.f32.gmra.mrb[220].mxu0 %v8867_v46  ;;  %5305 = vrot.lane.b32.xlu0 %v2911_v6, %s8888_s18  ;;  %v2913_v25 = vpop.f32.mrb[115].mxu0  ;;  %v6285_v6 = vlaneseq }
 0x562   :  { %5559 = vrot.lane.b32.xlu1 %v5088_v54, %s8889_s19  ;;  %6180 = vmatprep.mubr.f32.mxu0 %v11341_v23  ;;  %v8870_v54 = vld [vmem:[#allocation2 + $0xd98] sm:$0xff] }
 0x563   :  { %v5103_v50 = vpop.f32.mrb[118].mxu1 }
 0x564   :  { %v2916_v60 = vpop.f32.mrb[116].mxu0  ;;  %v5105_v53 = vpop.f32.mrb[119].mxu1 }
 0x565   :  { %6181 = vmatmul.mubr.f32.gmra.mrb[222].mxu0 %v8868_v28  ;;  %5307 = vrot.lane.b32.xlu0 %v2916_v60, %s8888_s18  ;;  %v2918_v61 = vpop.f32.mrb[117].mxu0  ;;  %v11618_v28 = vshrl.u32 %v6285_v6, 7  ;;  %v8873_v6 = vld [vmem:[#allocation2 + $0xdf0] sm:$0xff] }
 0x566   :  { %5561 = vrot.lane.b32.xlu1 %v5093_v16, %s8889_s19  ;;  %6186 = vmatprep.mubr.f32.mxu0 %v11341_v23  ;;  %v11613_v16 = vpop.permute.xlu1 %5489 }
 0x567   :  { %v5108_v13 = vpop.f32.mrb[120].mxu1  ;;  %12981 = vst [vmem:[#allocation3_spill] sm:$0xff] %v11618_v28 }
 0x568   :  { %v2921_v40 = vpop.f32.mrb[118].mxu0  ;;  %v5110_v63 = vpop.f32.mrb[121].mxu1 }
 0x569   :  { %6187 = vmatmul.mubr.f32.gmra.mrb[224].mxu0 %v8869_v17  ;;  %5309 = vrot.lane.b32.xlu0 %v2921_v40, %s8888_s18  ;;  %v2923_v56 = vpop.f32.mrb[119].mxu0  ;;  %v8872_v40 = vld [vmem:[#allocation2 + $0xdc8] sm:$0xff]  ;;  %v11621_v17 = vpop.permute.xlu0 %5235 }
 0x56a   :  { %5563 = vrot.lane.b32.xlu1 %v5098_v12, %s8889_s19  ;;  %6192 = vmatprep.mubr.f32.mxu0 %v11341_v23  ;;  %v11625_v53 = vpop.permute.xlu1 %5491 }
 0x56b   :  { %v5113_v25 = vpop.f32.mrb[122].mxu1 }
 0x56c   :  { %v2926_v22 = vpop.f32.mrb[120].mxu0  ;;  %v5115_v12 = vpop.f32.mrb[123].mxu1 }
 0x56d   :  { %6193 = vmatmul.mubr.f32.gmra.mrb[226].mxu0 %v8870_v54  ;;  %5311 = vrot.lane.b32.xlu0 %v2926_v22, %s8888_s18  ;;  %v2928_v52 = vpop.f32.mrb[121].mxu0  ;;  %v12978_v22 = vsub.s32 0, %v11618_v28  ;;  %v6283_v54 = vld [vmem:[%s12974_s2] sm:$0x3]  ;;  %v11641_v12 = vpop.permute.xlu0 %5237 }
 0x56e   :  { %5565 = vrot.lane.b32.xlu1 %v5103_v50, %s8889_s19  ;;  %6198 = vmatprep.mubr.f32.mxu0 %v11341_v23  ;;  %v12977_v52 = vsub.s32 1, %v11618_v28 }
 0x56f   :  { %v5118_v2 = vpop.f32.mrb[124].mxu1 }
 0x570   :  { %v2931_v46 = vpop.f32.mrb[122].mxu0  ;;  %v5120_v56 = vpop.f32.mrb[125].mxu1 }
 0x571   :  { %6199 = vmatmul.mubr.f32.gmra.mrb[228].mxu0 %v8871_v27  ;;  %5313 = vrot.lane.b32.xlu0 %v2931_v46, %s8888_s18  ;;  %v2933_v60 = vpop.f32.mrb[123].mxu0  ;;  %v5640_v27 = vsel %vm5639_vm0, 0.0, %v11419_v20  ;;  %v5770_v20 = vsel %vm5769_vm2, %v11439_v41, 0.0 }
 0x572   :  { %5567 = vrot.lane.b32.xlu1 %v5108_v13, %s8889_s19  ;;  %6204 = vmatprep.mubr.f32.mxu0 %v11341_v23  ;;  %v11639_v60 = vrot.slane %v6283_v54, %v12978_v22  ;;  %v8877_v22 = vld [vmem:[#allocation2 + $0xe28] sm:$0xff] }
 0x573   :  { %v5123_v63 = vpop.f32.mrb[126].mxu1 }
 0x574   :  { %v2936_v61 = vpop.f32.mrb[124].mxu0 }
 0x575   :  { %6205 = vmatmul.mubr.f32.gmra.mrb[230].mxu0 %v8872_v40  ;;  %5315 = vrot.lane.b32.xlu0 %v2936_v61, %s8888_s18  ;;  %v2938_v50 = vpop.f32.mrb[125].mxu0  ;;  %v5705_v61 = vsel %vm5704_vm1, %v5640_v27, %v11439_v41  ;;  %v5771_v41 = vsel %vm5769_vm2, %v11443_v21, 0.0 }
 0x576   :  { %5569 = vrot.lane.b32.xlu1 %v5113_v25, %s8889_s19  ;;  %6210 = vmatprep.mubr.f32.mxu0 %v11341_v23  ;;  %v5125_v25 = vpop.f32.mrb[127].mxu1  ;;  %v11647_v50 = vrot.slane %v6283_v54, %v12977_v52 }
 0x577   :  { %v5641_v25 = vsel %vm5639_vm0, 0.0, %v11436_v9  ;;  %v11665_v9 = vld [vmem:[#allocation2] sm:$0xff] }
 0x578   :  { %v2941_v13 = vpop.f32.mrb[126].mxu0 }
 0x579   :  { %6211 = vmatmul.mubr.f32.gmra.mrb[232].mxu0 %v8873_v6  ;;  %5317 = vrot.lane.b32.xlu0 %v2941_v13, %s8888_s18  ;;  %v2943_v46 = vpop.f32.mrb[127].mxu0  ;;  %v8874_v13 = vld [vmem:[#allocation2 + $0xdf8] sm:$0xff] }
 0x57a   :  { %5571 = vrot.lane.b32.xlu1 %v5118_v2, %s8889_s19  ;;  %6216 = vmatprep.mubr.f32.mxu0 %v11341_v23  ;;  %v11649_v2 = vpop.permute.xlu1 %5493 }
 0x57c   :  { %v5900_v40 = vpop.f32.mrb[128].mxu0 }
 0x57d   :  { %v5901_v56 = vadd.f32 %v5900_v40, %v5705_v61  ;;  %6217 = vmatmul.mubr.f32.gmra.mrb[234].mxu0 %v8874_v13  ;;  %v5902_v6 = vpop.f32.mrb[129].mxu0  ;;  %v5706_v61 = vsel %vm5704_vm1, %v5641_v25, %v11443_v21 }
 0x57e   :  { %5573 = vrot.lane.b32.xlu1 %v5123_v63, %s8889_s19  ;;  %v5903_v46 = vadd.f32 %v5902_v6, %v5770_v20  ;;  %6222 = vmatprep.mubr.f32.mxu0 %v11341_v23  ;;  %v8875_v63 = vld [vmem:[#allocation2 + $0xe20] sm:$0xff]  ;;  %v11663_v20 = vpop.permute.xlu0 %5239 }
 0x57f   :  { %v6295_v54 = vadd.f32 %v11639_v60, %v5901_v56  ;;  %v5642_v56 = vsel %vm5639_vm0, 0.0, %v11448_v47 }
 0x580   :  { %v6296_v27 = vadd.f32 %v11647_v50, %v5903_v46  ;;  %v5906_v40 = vpop.f32.mrb[130].mxu0  ;;  %v11670_v46 = vpop.permute.xlu1 %5495 }
 0x581   :  { %v5907_v13 = vadd.f32 %v5906_v40, %v5706_v61  ;;  %v5908_v52 = vpop.f32.mrb[131].mxu0  ;;  %6223 = vmatmul.mubr.f32.gmra.mrb[236].mxu0 %v8875_v63  ;;  %v6423_v25 = vmax.f32 %v6295_v54, 0.0  ;;  %v5707_v40 = vsel %vm5704_vm1, %v5642_v56, %v11451_v39 }
 0x582   :  { %v6424_v23 = vmax.f32 %v6296_v27, 0.0  ;;  %v5909_v6 = vadd.f32 %v5908_v52, %v5771_v41  ;;  %6228 = vmatprep.mubr.f32.mxu0 %v11665_v9  ;;  %v5772_v27 = vsel %vm5769_vm2, %v11451_v39, 0.0  ;;  %v11683_v28 = vpop.permute.xlu0 %5241 }
 0x583   :  { %v6297_v61 = vadd.f32 %v11639_v60, %v5907_v13  ;;  %v5643_v13 = vsel %vm5639_vm0, 0.0, %v11456_v44 }
 0x584   :  { %v6298_v21 = vadd.f32 %v11647_v50, %v5909_v6  ;;  %v5912_v63 = vpop.f32.mrb[132].mxu0  ;;  %7512 = vmatprep.mubr.msk.f32.mxu1 %vm5639_vm0, %v6424_v23  ;;  %v5708_v39 = vsel %vm5704_vm1, %v5643_v13, %v11460_v19 }
 0x585   :  { %v5913_v52 = vadd.f32 %v5912_v63, %v5707_v40  ;;  %v5914_v41 = vpop.f32.mrb[133].mxu0  ;;  %6229 = vmatmul.mubr.f32.gmra.mrb[238].mxu0 %v8877_v22  ;;  %6868 = vmatmul.mubr.f32.vlgmr.msra.gmra.mrb[128].mxu1 %v6423_v25  ;;  %v6425_v6 = vmax.f32 %v6297_v61, 0.0  ;;  %v11689_v22 = vpop.permute.xlu1 %5497  ;;  %v8878_v61 = vld [vmem:[#allocation2 + $0xe50] sm:$0xff] }
 0x586   :  { %v6426_v47 = vmax.f32 %v6298_v21, 0.0  ;;  %v5915_v54 = vadd.f32 %v5914_v41, %v5772_v27  ;;  %6234 = vmatprep.mubr.f32.mxu0 %v11665_v9  ;;  %v5773_v21 = vsel %vm5769_vm2, %v11460_v19, 0.0  ;;  %v5644_v27 = vsel %vm5639_vm0, 0.0, %v11465_v26  ;;  %v11703_v26 = vpop.permute.xlu0 %5243 }
 0x587   :  { %v6299_v56 = vadd.f32 %v11639_v60, %v5913_v52  ;;  %v5709_v13 = vsel %vm5704_vm1, %v5644_v27, %v11468_v10 }
 0x588   :  { %v6300_v23 = vadd.f32 %v11647_v50, %v5915_v54  ;;  %v5918_v40 = vpop.f32.mrb[134].mxu0  ;;  %7513 = vmatprep.mubr.msk.f32.mxu1 %vm5639_vm0, %v6426_v47 }
 0x589   :  { %v5919_v25 = vadd.f32 %v5918_v40, %v5708_v39  ;;  %v5920_v44 = vpop.f32.mrb[135].mxu0  ;;  %6235 = vmatmul.mubr.f32.gmra.mrb[240].mxu0 %v8878_v61  ;;  %6874 = vmatmul.mubr.f32.gmra.mrb[130].mxu1 %v6425_v6  ;;  %v6427_v41 = vmax.f32 %v6299_v56, 0.0  ;;  %v5774_v6 = vsel %vm5769_vm2, %v11468_v10, 0.0  ;;  %v8879_v40 = vld [vmem:[#allocation2 + $0xe58] sm:$0xff] }
 0x58a   :  { %v6428_v63 = vmax.f32 %v6300_v23, 0.0  ;;  %v5921_v52 = vadd.f32 %v5920_v44, %v5773_v21  ;;  %6240 = vmatprep.mubr.f32.mxu0 %v11665_v9  ;;  %v5645_v21 = vsel %vm5639_vm0, 0.0, %v11473_v48  ;;  %v11708_v44 = vpop.permute.xlu1 %5499 }
 0x58b   :  { %v6301_v47 = vadd.f32 %v11639_v60, %v5919_v25 }
 0x58c   :  { %v6302_v54 = vadd.f32 %v11647_v50, %v5921_v52  ;;  %v5924_v19 = vpop.f32.mrb[136].mxu0  ;;  %7514 = vmatprep.mubr.msk.f32.mxu1 %vm5639_vm0, %v6428_v63  ;;  %v5710_v52 = vsel %vm5704_vm1, %v5645_v21, %v11477_v57 }
 0x58d   :  { %v5925_v39 = vadd.f32 %v5924_v19, %v5709_v13  ;;  %v5926_v23 = vpop.f32.mrb[137].mxu0  ;;  %6241 = vmatmul.mubr.f32.gmra.mrb[242].mxu0 %v8879_v40  ;;  %6880 = vmatmul.mubr.f32.gmra.mrb[132].mxu1 %v6427_v41  ;;  %v6429_v61 = vmax.f32 %v6301_v47, 0.0  ;;  %v8880_v19 = vld [vmem:[#allocation2 + $0xe80] sm:$0xff]  ;;  %v11721_v40 = vpop.permute.xlu0 %5245 }
 0x58e   :  { %v6430_v56 = vmax.f32 %v6302_v54, 0.0  ;;  %v5927_v25 = vadd.f32 %v5926_v23, %v5774_v6  ;;  %6246 = vmatprep.mubr.f32.mxu0 %v11665_v9  ;;  %v5775_v54 = vsel %vm5769_vm2, %v11477_v57, 0.0  ;;  %v11727_v21 = vpop.permute.xlu1 %5501 }
 0x58f   :  { %v6303_v63 = vadd.f32 %v11639_v60, %v5925_v39  ;;  %v5646_v39 = vsel %vm5639_vm0, 0.0, %v11482_v1 }
 0x590   :  { %v6304_v10 = vadd.f32 %v11647_v50, %v5927_v25  ;;  %v5930_v27 = vpop.f32.mrb[138].mxu0  ;;  %7515 = vmatprep.mubr.msk.f32.mxu1 %vm5639_vm0, %v6430_v56  ;;  %v5711_v57 = vsel %vm5704_vm1, %v5646_v39, %v11485_v0  ;;  %v5777_v39 = vsel %vm5769_vm2, %v11494_v35, 0.0 }
 0x591   :  { %v5931_v41 = vadd.f32 %v5930_v27, %v5710_v52  ;;  %v5932_v13 = vpop.f32.mrb[139].mxu0  ;;  %6247 = vmatmul.mubr.f32.gmra.mrb[244].mxu0 %v8880_v19  ;;  %6886 = vmatmul.mubr.f32.gmra.mrb[134].mxu1 %v6429_v61  ;;  %v6431_v6 = vmax.f32 %v6303_v63, 0.0  ;;  %v8881_v63 = vld [vmem:[#allocation2 + $0xe88] sm:$0xff] }
 0x592   :  { %v6432_v48 = vmax.f32 %v6304_v10, 0.0  ;;  %v5933_v47 = vadd.f32 %v5932_v13, %v5775_v54  ;;  %6252 = vmatprep.mubr.f32.mxu0 %v11665_v9  ;;  %v5776_v10 = vsel %vm5769_vm2, %v11485_v0, 0.0 }
 0x593   :  { %v6305_v23 = vadd.f32 %v11639_v60, %v5931_v41  ;;  %v5647_v41 = vsel %vm5639_vm0, 0.0, %v11490_v37  ;;  %v11741_v37 = vpop.permute.xlu0 %5247 }
 0x594   :  { %v6306_v56 = vadd.f32 %v11647_v50, %v5933_v47  ;;  %v5936_v25 = vpop.f32.mrb[140].mxu0  ;;  %7516 = vmatprep.mubr.msk.f32.mxu1 %vm5639_vm0, %v6432_v48  ;;  %v5712_v48 = vsel %vm5704_vm1, %v5647_v41, %v11494_v35  ;;  %v5778_v41 = vsel %vm5769_vm2, %v11502_v7, 0.0 }
 0x595   :  { %v5937_v61 = vadd.f32 %v5936_v25, %v5711_v57  ;;  %v5938_v1 = vpop.f32.mrb[141].mxu0  ;;  %6253 = vmatmul.mubr.f32.gmra.mrb[246].mxu0 %v8881_v63  ;;  %6892 = vmatmul.mubr.f32.gmra.mrb[136].mxu1 %v6431_v6  ;;  %v6433_v54 = vmax.f32 %v6305_v23, 0.0  ;;  %v5648_v25 = vsel %vm5639_vm0, 0.0, %v11499_v31 }
 0x596   :  { %v6434_v52 = vmax.f32 %v6306_v56, 0.0  ;;  %v5939_v27 = vadd.f32 %v5938_v1, %v5776_v10  ;;  %6258 = vmatprep.mubr.f32.mxu0 %v11665_v9  ;;  %v8882_v56 = vld [vmem:[#allocation2 + $0xeb0] sm:$0xff]  ;;  %v5713_v63 = vsel %vm5704_vm1, %v5648_v25, %v11502_v7  ;;  %v5779_v25 = vsel %vm5769_vm2, %v11511_v45, 0.0 }
 0x597   :  { %v6307_v13 = vadd.f32 %v11639_v60, %v5937_v61  ;;  %v11746_v61 = vpop.permute.xlu1 %5503 }
 0x598   :  { %v6308_v19 = vadd.f32 %v11647_v50, %v5939_v27  ;;  %v5942_v0 = vpop.f32.mrb[142].mxu0  ;;  %7517 = vmatprep.mubr.msk.f32.mxu1 %vm5639_vm0, %v6434_v52 }
 0x599   :  { %v5943_v47 = vadd.f32 %v5942_v0, %v5712_v48  ;;  %v5944_v6 = vpop.f32.mrb[143].mxu0  ;;  %6259 = vmatmul.mubr.f32.gmra.mrb[248].mxu0 %v8882_v56  ;;  %6898 = vmatmul.mubr.f32.gmra.mrb[138].mxu1 %v6433_v54  ;;  %v6435_v10 = vmax.f32 %v6307_v13, 0.0  ;;  %v5649_v48 = vsel %vm5639_vm0, 0.0, %v11507_v34 }
 0x59a   :  { %v6436_v23 = vmax.f32 %v6308_v19, 0.0  ;;  %v5945_v57 = vadd.f32 %v5944_v6, %v5777_v39  ;;  %6264 = vmatprep.mubr.f32.mxu0 %v11665_v9  ;;  %v8883_v19 = vld [vmem:[#allocation2 + $0xeb8] sm:$0xff]  ;;  %v11759_v39 = vpop.permute.xlu0 %5249  ;;  %v5714_v7 = vsel %vm5704_vm1, %v5649_v48, %v11511_v45 }
 0x59b   :  { %v6309_v1 = vadd.f32 %v11639_v60, %v5943_v47 }
 0x59c   :  { %v6310_v35 = vadd.f32 %v11647_v50, %v5945_v57  ;;  %v5948_v52 = vpop.f32.mrb[144].mxu0  ;;  %7518 = vmatprep.mubr.msk.f32.mxu1 %vm5639_vm0, %v6436_v23  ;;  %v11765_v23 = vpop.permute.xlu1 %5505 }
 0x59d   :  { %v5949_v27 = vadd.f32 %v5948_v52, %v5713_v63  ;;  %v5950_v54 = vpop.f32.mrb[145].mxu0  ;;  %6265 = vmatmul.mubr.f32.gmra.mrb[250].mxu0 %v8883_v19  ;;  %6904 = vmatmul.mubr.f32.gmra.mrb[140].mxu1 %v6435_v10  ;;  %v6437_v0 = vmax.f32 %v6309_v1, 0.0  ;;  %v8884_v10 = vld [vmem:[#allocation2 + $0xee0] sm:$0xff]  ;;  %v5650_v63 = vsel %vm5639_vm0, 0.0, %v11516_v49 }
 0x59e   :  { %v6438_v31 = vmax.f32 %v6310_v35, 0.0  ;;  %v5951_v13 = vadd.f32 %v5950_v54, %v5778_v41  ;;  %6270 = vmatprep.mubr.f32.mxu0 %v11665_v9  ;;  %v5715_v54 = vsel %vm5704_vm1, %v5650_v63, %v11519_v29  ;;  %v11779_v49 = vpop.permute.xlu0 %5251  ;;  %v5652_v63 = vsel %vm5639_vm0, 0.0, %v11533_v3 }
 0x59f   :  { %v6311_v47 = vadd.f32 %v11639_v60, %v5949_v27 }
 0x5a0   :  { %v6312_v6 = vadd.f32 %v11647_v50, %v5951_v13  ;;  %v5954_v56 = vpop.f32.mrb[146].mxu0  ;;  %7519 = vmatprep.mubr.msk.f32.mxu1 %vm5639_vm0, %v6438_v31  ;;  %v5780_v31 = vsel %vm5769_vm2, %v11519_v29, 0.0 }
 0x5a1   :  { %v5955_v57 = vadd.f32 %v5954_v56, %v5714_v7  ;;  %v5956_v34 = vpop.f32.mrb[147].mxu0  ;;  %6271 = vmatmul.mubr.f32.gmra.mrb[252].mxu0 %v8884_v10  ;;  %6910 = vmatmul.mubr.f32.gmra.mrb[142].mxu1 %v6437_v0  ;;  %v6439_v52 = vmax.f32 %v6311_v47, 0.0  ;;  %v5651_v47 = vsel %vm5639_vm0, 0.0, %v11524_v24  ;;  %v5781_v10 = vsel %vm5769_vm2, %v11528_v11, 0.0 }
 0x5a2   :  { %v6440_v1 = vmax.f32 %v6312_v6, 0.0  ;;  %v5957_v35 = vadd.f32 %v5956_v34, %v5779_v25  ;;  %6276 = vmatprep.mubr.f32.mxu0 %v11665_v9  ;;  %v8885_v9 = vld [vmem:[#allocation2 + $0xee8] sm:$0xff]  ;;  %v11783_v6 = vpop.permute.xlu1 %5507  ;;  %v5716_v29 = vsel %vm5704_vm1, %v5651_v47, %v11528_v11 }
 0x5a3   :  { %v6313_v27 = vadd.f32 %v11639_v60, %v5955_v57 }
 0x5a4   :  { %v6314_v41 = vadd.f32 %v11647_v50, %v5957_v35  ;;  %v5960_v45 = vpop.f32.mrb[148].mxu0  ;;  %7520 = vmatprep.mubr.msk.f32.mxu1 %vm5639_vm0, %v6440_v1 }
 0x5a5   :  { %v5961_v19 = vadd.f32 %v5960_v45, %v5715_v54  ;;  %v5962_v13 = vpop.f32.mrb[149].mxu0  ;;  %6277 = vmatmul.mubr.f32.gmra.mrb[254].mxu0 %v8885_v9  ;;  %6916 = vmatmul.mubr.f32.gmra.mrb[144].mxu1 %v6439_v52  ;;  %v6441_v7 = vmax.f32 %v6313_v27, 0.0  ;;  %v5717_v45 = vsel %vm5704_vm1, %v5652_v63, %v11536_v32 }
 0x5a6   :  { %v6442_v48 = vmax.f32 %v6314_v41, 0.0  ;;  %v5963_v0 = vadd.f32 %v5962_v13, %v5780_v31  ;;  %v11795_v41 = vpop.permute.xlu0 %5253  ;;  %v11801_v11 = vpop.permute.xlu1 %5509  ;;  %v5782_v13 = vsel %vm5769_vm2, %v11536_v32, 0.0  ;;  %v5783_v32 = vsel %vm5769_vm2, %v11545_v30, 0.0 }
 0x5a7   :  { %v6315_v56 = vadd.f32 %v11639_v60, %v5961_v19 }
 0x5a8   :  { %v6316_v57 = vadd.f32 %v11647_v50, %v5963_v0  ;;  %v5966_v25 = vpop.f32.mrb[150].mxu0  ;;  %7521 = vmatprep.mubr.msk.f32.mxu1 %vm5639_vm0, %v6442_v48  ;;  %v5653_v0 = vsel %vm5639_vm0, 0.0, %v11541_v18 }
 0x5a9   :  { %v5967_v34 = vadd.f32 %v5966_v25, %v5716_v29  ;;  %v5968_v1 = vpop.f32.mrb[151].mxu0  ;;  %6922 = vmatmul.mubr.f32.gmra.mrb[146].mxu1 %v6441_v7  ;;  %v6443_v52 = vmax.f32 %v6315_v56, 0.0 }
 0x5aa   :  { %v6444_v24 = vmax.f32 %v6316_v57, 0.0  ;;  %v5969_v35 = vadd.f32 %v5968_v1, %v5781_v10  ;;  %v5718_v57 = vsel %vm5704_vm1, %v5653_v0, %v11545_v30  ;;  %v11814_v10 = vpop.permute.xlu0 %5255 }
 0x5ab   :  { %v6317_v27 = vadd.f32 %v11639_v60, %v5967_v34 }
 0x5ac   :  { %v6318_v54 = vadd.f32 %v11647_v50, %v5969_v35  ;;  %v5972_v19 = vpop.f32.mrb[152].mxu0  ;;  %7522 = vmatprep.mubr.msk.f32.mxu1 %vm5639_vm0, %v6444_v24  ;;  %v5654_v24 = vsel %vm5639_vm0, 0.0, %v11550_v38  ;;  %v11818_v35 = vpop.permute.xlu1 %5511 }
 0x5ad   :  { %v5973_v31 = vadd.f32 %v5972_v19, %v5717_v45  ;;  %v5974_v3 = vpop.f32.mrb[153].mxu0  ;;  %6928 = vmatmul.mubr.f32.gmra.mrb[148].mxu1 %v6443_v52  ;;  %v6445_v47 = vmax.f32 %v6317_v27, 0.0  ;;  %v5784_v19 = vsel %vm5769_vm2, %v11553_v58, 0.0 }
 0x5ae   :  { %v6446_v9 = vmax.f32 %v6318_v54, 0.0  ;;  %v5975_v48 = vadd.f32 %v5974_v3, %v5782_v13  ;;  %v5719_v54 = vsel %vm5704_vm1, %v5654_v24, %v11553_v58  ;;  %v5655_v3 = vsel %vm5639_vm0, 0.0, %v11558_v43  ;;  %v11830_v0 = vpop.permute.xlu0 %5257 }
 0x5af   :  { %v6319_v7 = vadd.f32 %v11639_v60, %v5973_v31 }
 0x5b0   :  { %v6320_v56 = vadd.f32 %v11647_v50, %v5975_v48  ;;  %v5978_v29 = vpop.f32.mrb[154].mxu0  ;;  %7523 = vmatprep.mubr.msk.f32.mxu1 %vm5639_vm0, %v6446_v9  ;;  %v11836_v58 = vpop.permute.xlu1 %5513 }
 0x5b1   :  { %v5979_v25 = vadd.f32 %v5978_v29, %v5718_v57  ;;  %v5980_v34 = vpop.f32.mrb[155].mxu0  ;;  %6934 = vmatmul.mubr.f32.gmra.mrb[150].mxu1 %v6445_v47  ;;  %v6447_v63 = vmax.f32 %v6319_v7, 0.0  ;;  %v5720_v7 = vsel %vm5704_vm1, %v5655_v3, %v11562_v8  ;;  %v5785_v29 = vsel %vm5769_vm2, %v11562_v8, 0.0 }
 0x5b2   :  { %v6448_v18 = vmax.f32 %v6320_v56, 0.0  ;;  %v5981_v1 = vadd.f32 %v5980_v34, %v5783_v32  ;;  %v5656_v34 = vsel %vm5639_vm0, 0.0, %v11567_v33  ;;  %v5786_v8 = vsel %vm5769_vm2, %v11570_v14, 0.0 }
 0x5b3   :  { %v6321_v52 = vadd.f32 %v11639_v60, %v5979_v25 }
 0x5b4   :  { %v6322_v27 = vadd.f32 %v11647_v50, %v5981_v1  ;;  %v5984_v30 = vpop.f32.mrb[156].mxu0  ;;  %7524 = vmatprep.mubr.msk.f32.mxu1 %vm5639_vm0, %v6448_v18 }
 0x5b5   :  { %v5985_v45 = vadd.f32 %v5984_v30, %v5719_v54  ;;  %v5986_v31 = vpop.f32.mrb[157].mxu0  ;;  %6940 = vmatmul.mubr.f32.gmra.mrb[152].mxu1 %v6447_v63  ;;  %v6449_v9 = vmax.f32 %v6321_v52, 0.0  ;;  %v5721_v63 = vsel %vm5704_vm1, %v5656_v34, %v11570_v14  ;;  %v11849_v30 = vpop.permute.xlu0 %5259 }
 0x5b6   :  { %v6450_v38 = vmax.f32 %v6322_v27, 0.0  ;;  %v5987_v13 = vadd.f32 %v5986_v31, %v5784_v19  ;;  %v5657_v19 = vsel %vm5639_vm0, 0.0, %v11575_v59  ;;  %v11853_v31 = vpop.permute.xlu1 %5515 }
 0x5b7   :  { %v6323_v48 = vadd.f32 %v11639_v60, %v5985_v45 }
 0x5b8   :  { %v6324_v47 = vadd.f32 %v11647_v50, %v5987_v13  ;;  %v5990_v56 = vpop.f32.mrb[158].mxu0  ;;  %7525 = vmatprep.mubr.msk.f32.mxu1 %vm5639_vm0, %v6450_v38 }
 0x5b9   :  { %v5991_v57 = vadd.f32 %v5990_v56, %v5720_v7  ;;  %v5992_v43 = vpop.f32.mrb[159].mxu0  ;;  %6946 = vmatmul.mubr.f32.gmra.mrb[154].mxu1 %v6449_v9  ;;  %v6451_v18 = vmax.f32 %v6323_v48, 0.0  ;;  %v5722_v9 = vsel %vm5704_vm1, %v5657_v19, %v11579_v15 }
 0x5ba   :  { %v6452_v25 = vmax.f32 %v6324_v47, 0.0  ;;  %v5993_v32 = vadd.f32 %v5992_v43, %v5785_v29  ;;  %v5787_v47 = vsel %vm5769_vm2, %v11579_v15, 0.0  ;;  %v11871_v15 = vpop.permute.xlu1 %5517 }
 0x5bb   :  { %v6325_v1 = vadd.f32 %v11639_v60, %v5991_v57  ;;  %v5658_v57 = vsel %vm5639_vm0, 0.0, %v11584_v51 }
 0x5bc   :  { %v6326_v24 = vadd.f32 %v11647_v50, %v5993_v32  ;;  %v5996_v52 = vpop.f32.mrb[160].mxu0  ;;  %7526 = vmatprep.mubr.msk.f32.mxu1 %vm5639_vm0, %v6452_v25  ;;  %v11865_v25 = vpop.permute.xlu0 %5261  ;;  %v5723_v34 = vsel %vm5704_vm1, %v5658_v57, %v11587_v5 }
 0x5bd   :  { %v5997_v27 = vadd.f32 %v5996_v52, %v5721_v63  ;;  %v5998_v54 = vpop.f32.mrb[161].mxu0  ;;  %6952 = vmatmul.mubr.f32.gmra.mrb[156].mxu1 %v6451_v18  ;;  %v6453_v38 = vmax.f32 %v6325_v1, 0.0 }
 0x5be   :  { %v6454_v33 = vmax.f32 %v6326_v24, 0.0  ;;  %v5999_v45 = vadd.f32 %v5998_v54, %v5786_v8  ;;  %v5788_v24 = vsel %vm5769_vm2, %v11587_v5, 0.0  ;;  %v5789_v5 = vsel %vm5769_vm2, %v11596_v62, 0.0 }
 0x5bf   :  { %v6327_v13 = vadd.f32 %v11639_v60, %v5997_v27  ;;  %v5659_v27 = vsel %vm5639_vm0, 0.0, %v11592_v42 }
 0x5c0   :  { %v6328_v3 = vadd.f32 %v11647_v50, %v5999_v45  ;;  %v6002_v14 = vpop.f32.mrb[162].mxu0  ;;  %7527 = vmatprep.mubr.msk.f32.mxu1 %vm5639_vm0, %v6454_v33  ;;  %v5724_v45 = vsel %vm5704_vm1, %v5659_v27, %v11596_v62 }
 0x5c1   :  { %v6003_v48 = vadd.f32 %v6002_v14, %v5722_v9  ;;  %v6004_v7 = vpop.f32.mrb[163].mxu0  ;;  %6958 = vmatmul.mubr.f32.gmra.mrb[158].mxu1 %v6453_v38  ;;  %v6455_v29 = vmax.f32 %v6327_v13, 0.0  ;;  %v5660_v14 = vsel %vm5639_vm0, 0.0, %v11601_v36 }
 0x5c2   :  { %v6456_v59 = vmax.f32 %v6328_v3, 0.0  ;;  %v6005_v56 = vadd.f32 %v6004_v7, %v5787_v47  ;;  %v11884_v3 = vpop.permute.xlu0 %5263 }
 0x5c3   :  { %v6329_v43 = vadd.f32 %v11639_v60, %v6003_v48  ;;  %v11888_v48 = vpop.permute.xlu1 %5519 }
 0x5c4   :  { %v6330_v32 = vadd.f32 %v11647_v50, %v6005_v56  ;;  %v6008_v18 = vpop.f32.mrb[164].mxu0  ;;  %7528 = vmatprep.mubr.msk.f32.mxu1 %vm5639_vm0, %v6456_v59  ;;  %v5725_v56 = vsel %vm5704_vm1, %v5660_v14, %v11604_v4 }
 0x5c5   :  { %v6009_v1 = vadd.f32 %v6008_v18, %v5723_v34  ;;  %v6010_v51 = vpop.f32.mrb[165].mxu0  ;;  %6964 = vmatmul.mubr.f32.gmra.mrb[160].mxu1 %v6455_v29  ;;  %v6457_v8 = vmax.f32 %v6329_v43, 0.0  ;;  %v5790_v29 = vsel %vm5769_vm2, %v11604_v4, 0.0  ;;  %v5661_v34 = vsel %vm5639_vm0, 0.0, %v11611_v55 }
 0x5c6   :  { %v6458_v63 = vmax.f32 %v6330_v32, 0.0  ;;  %v6011_v52 = vadd.f32 %v6010_v51, %v5788_v24  ;;  %v11900_v24 = vpop.permute.xlu0 %5265 }
 0x5c7   :  { %v6331_v54 = vadd.f32 %v11639_v60, %v6009_v1  ;;  %v11906_v4 = vpop.permute.xlu1 %5521 }
 0x5c8   :  { %v6332_v33 = vadd.f32 %v11647_v50, %v6011_v52  ;;  %v6014_v19 = vpop.f32.mrb[166].mxu0  ;;  %7529 = vmatprep.mubr.msk.f32.mxu1 %vm5639_vm0, %v6458_v63  ;;  %v5726_v63 = vsel %vm5704_vm1, %v5661_v34, %v11613_v16 }
 0x5c9   :  { %v6015_v38 = vadd.f32 %v6014_v19, %v5724_v45  ;;  %v6016_v13 = vpop.f32.mrb[167].mxu0  ;;  %6970 = vmatmul.mubr.f32.gmra.mrb[162].mxu1 %v6457_v8  ;;  %v6459_v47 = vmax.f32 %v6331_v54, 0.0  ;;  %v5791_v8 = vsel %vm5769_vm2, %v11613_v16, 0.0  ;;  %v5662_v45 = vsel %vm5639_vm0, 0.0, %v11621_v17 }
 0x5ca   :  { %v6460_v42 = vmax.f32 %v6332_v33, 0.0  ;;  %v6017_v9 = vadd.f32 %v6016_v13, %v5789_v5  ;;  %v5727_v13 = vsel %vm5704_vm1, %v5662_v45, %v11625_v53  ;;  %v5792_v16 = vsel %vm5769_vm2, %v11625_v53, 0.0 }
 0x5cb   :  { %v6333_v7 = vadd.f32 %v11639_v60, %v6015_v38 }
 0x5cc   :  { %v6334_v59 = vadd.f32 %v11647_v50, %v6017_v9  ;;  %v6020_v62 = vpop.f32.mrb[168].mxu0  ;;  %7530 = vmatprep.mubr.msk.f32.mxu1 %vm5639_vm0, %v6460_v42 }
 0x5cd   :  { %v6021_v57 = vadd.f32 %v6020_v62, %v5725_v56  ;;  %v6022_v43 = vpop.f32.mrb[169].mxu0  ;;  %6976 = vmatmul.mubr.f32.gmra.mrb[164].mxu1 %v6459_v47  ;;  %v6461_v18 = vmax.f32 %v6333_v7, 0.0  ;;  %v11919_v47 = vpop.permute.xlu0 %5267 }
 0x5ce   :  { %v6462_v36 = vmax.f32 %v6334_v59, 0.0  ;;  %v6023_v32 = vadd.f32 %v6022_v43, %v5790_v29  ;;  %v5663_v59 = vsel %vm5639_vm0, 0.0, %v11641_v12  ;;  %v11923_v56 = vpop.permute.xlu1 %5523 }
 0x5cf   :  { %v6335_v1 = vadd.f32 %v11639_v60, %v6021_v57  ;;  %v5728_v43 = vsel %vm5704_vm1, %v5663_v59, %v11649_v2 }
 0x5d0   :  { %v6336_v51 = vadd.f32 %v11647_v50, %v6023_v32  ;;  %v6026_v52 = vpop.f32.mrb[170].mxu0  ;;  %7531 = vmatprep.mubr.msk.f32.mxu1 %vm5639_vm0, %v6462_v36  ;;  %v5793_v32 = vsel %vm5769_vm2, %v11649_v2, 0.0 }
 0x5d1   :  { %v6027_v27 = vadd.f32 %v6026_v52, %v5726_v63  ;;  %v6028_v55 = vpop.f32.mrb[171].mxu0  ;;  %6982 = vmatmul.mubr.f32.gmra.mrb[166].mxu1 %v6461_v18  ;;  %v6463_v19 = vmax.f32 %v6335_v1, 0.0  ;;  %v5664_v1 = vsel %vm5639_vm0, 0.0, %v11663_v20  ;;  %v11935_v52 = vpop.permute.xlu0 %5269 }
 0x5d2   :  { %v6464_v54 = vmax.f32 %v6336_v51, 0.0  ;;  %v6029_v33 = vadd.f32 %v6028_v55, %v5791_v8  ;;  %v5729_v8 = vsel %vm5704_vm1, %v5664_v1, %v11670_v46  ;;  %v11941_v2 = vpop.permute.xlu1 %5525  ;;  %v5667_v1 = vsel %vm5639_vm0, 0.0, %v11721_v40 }
 0x5d3   :  { %v6337_v38 = vadd.f32 %v11639_v60, %v6027_v27 }
 0x5d4   :  { %v6338_v5 = vadd.f32 %v11647_v50, %v6029_v33  ;;  %v6032_v42 = vpop.f32.mrb[172].mxu0  ;;  %7532 = vmatprep.mubr.msk.f32.mxu1 %vm5639_vm0, %v6464_v54  ;;  %v5794_v33 = vsel %vm5769_vm2, %v11670_v46, 0.0  ;;  %v5795_v46 = vsel %vm5769_vm2, %v11689_v22, 0.0 }
 0x5d5   :  { %v6033_v9 = vadd.f32 %v6032_v42, %v5727_v13  ;;  %v6034_v14 = vpop.f32.mrb[173].mxu0  ;;  %6988 = vmatmul.mubr.f32.gmra.mrb[168].mxu1 %v6463_v19  ;;  %v6465_v62 = vmax.f32 %v6337_v38, 0.0  ;;  %v5665_v38 = vsel %vm5639_vm0, 0.0, %v11683_v28 }
 0x5d6   :  { %v6466_v17 = vmax.f32 %v6338_v5, 0.0  ;;  %v6035_v7 = vadd.f32 %v6034_v14, %v5792_v16 }
 0x5d7   :  { %v6339_v57 = vadd.f32 %v11639_v60, %v6033_v9  ;;  %v5730_v9 = vsel %vm5704_vm1, %v5665_v38, %v11689_v22  ;;  %v5668_v38 = vsel %vm5639_vm0, 0.0, %v11741_v37 }
 0x5d8   :  { %v6340_v29 = vadd.f32 %v11647_v50, %v6035_v7  ;;  %v6038_v53 = vpop.f32.mrb[174].mxu0  ;;  %7533 = vmatprep.mubr.msk.f32.mxu1 %vm5639_vm0, %v6466_v17  ;;  %v11954_v7 = vpop.permute.xlu0 %5271 }
 0x5d9   :  { %v6039_v36 = vadd.f32 %v6038_v53, %v5728_v43  ;;  %v6040_v34 = vpop.f32.mrb[175].mxu0  ;;  %6994 = vmatmul.mubr.f32.gmra.mrb[170].mxu1 %v6465_v62  ;;  %v6467_v51 = vmax.f32 %v6339_v57, 0.0  ;;  %v5666_v62 = vsel %vm5639_vm0, 0.0, %v11703_v26  ;;  %v11958_v57 = vpop.permute.xlu1 %5527 }
 0x5da   :  { %v6468_v12 = vmax.f32 %v6340_v29, 0.0  ;;  %v6041_v18 = vadd.f32 %v6040_v34, %v5793_v32  ;;  %v5796_v34 = vsel %vm5769_vm2, %v11708_v44, 0.0 }
 0x5db   :  { %v6341_v63 = vadd.f32 %v11639_v60, %v6039_v36  ;;  %v5731_v36 = vsel %vm5704_vm1, %v5666_v62, %v11708_v44 }
 0x5dc   :  { %v6342_v27 = vadd.f32 %v11647_v50, %v6041_v18  ;;  %v6044_v55 = vpop.f32.mrb[176].mxu0  ;;  %7534 = vmatprep.mubr.msk.f32.mxu1 %vm5639_vm0, %v6468_v12 }
 0x5dd   :  { %v6045_v54 = vadd.f32 %v6044_v55, %v5729_v8  ;;  %v6046_v20 = vpop.f32.mrb[177].mxu0  ;;  %7000 = vmatmul.mubr.f32.gmra.mrb[172].mxu1 %v6467_v51  ;;  %v6469_v5 = vmax.f32 %v6341_v63, 0.0  ;;  %v5732_v55 = vsel %vm5704_vm1, %v5667_v1, %v11727_v21  ;;  %v11976_v44 = vpop.permute.xlu1 %5529 }
 0x5de   :  { %v6470_v45 = vmax.f32 %v6342_v27, 0.0  ;;  %v6047_v19 = vadd.f32 %v6046_v20, %v5794_v33  ;;  %v11970_v27 = vpop.permute.xlu0 %5273  ;;  %v5797_v20 = vsel %vm5769_vm2, %v11727_v21, 0.0  ;;  %v5798_v21 = vsel %vm5769_vm2, %v11746_v61, 0.0 }
 0x5df   :  { %v6343_v13 = vadd.f32 %v11639_v60, %v6045_v54 }
 0x5e0   :  { %v6344_v42 = vadd.f32 %v11647_v50, %v6047_v19  ;;  %v6050_v16 = vpop.f32.mrb[178].mxu0  ;;  %7535 = vmatprep.mubr.msk.f32.mxu1 %vm5639_vm0, %v6470_v45 }
 0x5e1   :  { %v6051_v14 = vadd.f32 %v6050_v16, %v5730_v9  ;;  %v6052_v17 = vpop.f32.mrb[179].mxu0  ;;  %7006 = vmatmul.mubr.f32.gmra.mrb[174].mxu1 %v6469_v5  ;;  %v6471_v29 = vmax.f32 %v6343_v13, 0.0  ;;  %v5733_v9 = vsel %vm5704_vm1, %v5668_v38, %v11746_v61  ;;  %v11993_v62 = vpop.permute.xlu1 %5531 }
 0x5e2   :  { %v6472_v28 = vmax.f32 %v6344_v42, 0.0  ;;  %v6053_v59 = vadd.f32 %v6052_v17, %v5795_v46  ;;  %v11989_v17 = vpop.permute.xlu0 %5275 }
 0x5e3   :  { %v6345_v43 = vadd.f32 %v11639_v60, %v6051_v14 }
 0x5e4   :  { %v6346_v53 = vadd.f32 %v11647_v50, %v6053_v59  ;;  %v6056_v22 = vpop.f32.mrb[180].mxu0  ;;  %7536 = vmatprep.mubr.msk.f32.mxu1 %vm5639_vm0, %v6472_v28  ;;  %v5669_v59 = vsel %vm5639_vm0, 0.0, %v11759_v39 }
 0x5e5   :  { %v6057_v32 = vadd.f32 %v6056_v22, %v5731_v36  ;;  %v6058_v12 = vpop.f32.mrb[181].mxu0  ;;  %7012 = vmatmul.mubr.f32.gmra.mrb[176].mxu1 %v6471_v29  ;;  %v6473_v51 = vmax.f32 %v6345_v43, 0.0  ;;  %v5734_v36 = vsel %vm5704_vm1, %v5669_v59, %v11765_v23 }
 0x5e6   :  { %v6474_v26 = vmax.f32 %v6346_v53, 0.0  ;;  %v6059_v18 = vadd.f32 %v6058_v12, %v5796_v34 }
 0x5e7   :  { %v6347_v63 = vadd.f32 %v11639_v60, %v6057_v32  ;;  %v5799_v32 = vsel %vm5769_vm2, %v11765_v23, 0.0  ;;  %v12011_v23 = vpop.permute.xlu1 %5533 }
 0x5e8   :  { %v6348_v8 = vadd.f32 %v11647_v50, %v6059_v18  ;;  %v6062_v54 = vpop.f32.mrb[182].mxu0  ;;  %7537 = vmatprep.mubr.msk.f32.mxu1 %vm5639_vm0, %v6474_v26  ;;  %v5670_v26 = vsel %vm5639_vm0, 0.0, %v11779_v49 }
 0x5e9   :  { %v6063_v33 = vadd.f32 %v6062_v54, %v5732_v55  ;;  %v6064_v40 = vpop.f32.mrb[183].mxu0  ;;  %7018 = vmatmul.mubr.f32.gmra.mrb[178].mxu1 %v6473_v51  ;;  %v6475_v5 = vmax.f32 %v6347_v63, 0.0  ;;  %v12005_v51 = vpop.permute.xlu0 %5277 }
 0x5ea   :  { %v6476_v45 = vmax.f32 %v6348_v8, 0.0  ;;  %v6065_v19 = vadd.f32 %v6064_v40, %v5797_v20  ;;  %v5735_v8 = vsel %vm5704_vm1, %v5670_v26, %v11783_v6 }
 0x5eb   :  { %v6349_v13 = vadd.f32 %v11639_v60, %v6063_v33  ;;  %v5800_v33 = vsel %vm5769_vm2, %v11783_v6, 0.0  ;;  %v5801_v6 = vsel %vm5769_vm2, %v11801_v11, 0.0 }
 0x5ec   :  { %v6350_v42 = vadd.f32 %v11647_v50, %v6065_v19  ;;  %v6068_v16 = vpop.f32.mrb[184].mxu0  ;;  %7538 = vmatprep.mubr.msk.f32.mxu1 %vm5639_vm0, %v6476_v45  ;;  %v5671_v45 = vsel %vm5639_vm0, 0.0, %v11795_v41 }
 0x5ed   :  { %v6069_v14 = vadd.f32 %v6068_v16, %v5733_v9  ;;  %v6070_v46 = vpop.f32.mrb[185].mxu0  ;;  %7024 = vmatmul.mubr.f32.gmra.mrb[180].mxu1 %v6475_v5  ;;  %v6477_v29 = vmax.f32 %v6349_v13, 0.0  ;;  %v5736_v13 = vsel %vm5704_vm1, %v5671_v45, %v11801_v11 }
 0x5ee   :  { %v6478_v37 = vmax.f32 %v6350_v42, 0.0  ;;  %v6071_v28 = vadd.f32 %v6070_v46, %v5798_v21  ;;  %v5672_v46 = vsel %vm5639_vm0, 0.0, %v11814_v10 }
 0x5ef   :  { %v6351_v43 = vadd.f32 %v11639_v60, %v6069_v14  ;;  %v12024_v14 = vpop.permute.xlu0 %5279 }
 0x5f0   :  { %v6352_v53 = vadd.f32 %v11647_v50, %v6071_v28  ;;  %v6074_v61 = vpop.f32.mrb[186].mxu0  ;;  %7539 = vmatprep.mubr.msk.f32.mxu1 %vm5639_vm0, %v6478_v37  ;;  %v12028_v37 = vpop.permute.xlu1 %5535 }
 0x5f1   :  { %v6075_v22 = vadd.f32 %v6074_v61, %v5734_v36  ;;  %v6076_v34 = vpop.f32.mrb[187].mxu0  ;;  %7030 = vmatmul.mubr.f32.gmra.mrb[182].mxu1 %v6477_v29  ;;  %v6479_v18 = vmax.f32 %v6351_v43, 0.0  ;;  %v5737_v43 = vsel %vm5704_vm1, %v5672_v46, %v11818_v35  ;;  %v5802_v36 = vsel %vm5769_vm2, %v11818_v35, 0.0 }
 0x5f2   :  { %v6480_v39 = vmax.f32 %v6352_v53, 0.0  ;;  %v6077_v12 = vadd.f32 %v6076_v34, %v5799_v32  ;;  %v5673_v32 = vsel %vm5639_vm0, 0.0, %v11830_v0 }
 0x5f3   :  { %v6353_v1 = vadd.f32 %v11639_v60, %v6075_v22 }
 0x5f4   :  { %v6354_v63 = vadd.f32 %v11647_v50, %v6077_v12  ;;  %v6080_v55 = vpop.f32.mrb[188].mxu0  ;;  %7540 = vmatprep.mubr.msk.f32.mxu1 %vm5639_vm0, %v6480_v39  ;;  %v12040_v12 = vpop.permute.xlu0 %5281 }
 0x5f5   :  { %v6081_v54 = vadd.f32 %v6080_v55, %v5735_v8  ;;  %v6082_v49 = vpop.f32.mrb[189].mxu0  ;;  %7036 = vmatmul.mubr.f32.gmra.mrb[184].mxu1 %v6479_v18  ;;  %v6481_v19 = vmax.f32 %v6353_v1, 0.0  ;;  %v5738_v18 = vsel %vm5704_vm1, %v5673_v32, %v11836_v58  ;;  %v12046_v35 = vpop.permute.xlu1 %5537  ;;  %v5803_v8 = vsel %vm5769_vm2, %v11836_v58, 0.0 }
 0x5f6   :  { %v6482_v20 = vmax.f32 %v6354_v63, 0.0  ;;  %v6083_v40 = vadd.f32 %v6082_v49, %v5800_v33  ;;  %v5674_v33 = vsel %vm5639_vm0, 0.0, %v11849_v30  ;;  %v5804_v58 = vsel %vm5769_vm2, %v11853_v31, 0.0 }
 0x5f7   :  { %v6355_v38 = vadd.f32 %v11639_v60, %v6081_v54  ;;  %v5739_v45 = vsel %vm5704_vm1, %v5674_v33, %v11853_v31 }
 0x5f8   :  { %v6356_v5 = vadd.f32 %v11647_v50, %v6083_v40  ;;  %v6086_v42 = vpop.f32.mrb[190].mxu0  ;;  %7541 = vmatprep.mubr.msk.f32.mxu1 %vm5639_vm0, %v6482_v20 }
 0x5f9   :  { %v6087_v9 = vadd.f32 %v6086_v42, %v5736_v13  ;;  %v6088_v16 = vpop.f32.mrb[191].mxu0  ;;  %7042 = vmatmul.mubr.f32.gmra.mrb[186].mxu1 %v6481_v19  ;;  %v6483_v28 = vmax.f32 %v6355_v38, 0.0  ;;  %v12059_v13 = vpop.permute.xlu0 %5283 }
 0x5fa   :  { %v6484_v41 = vmax.f32 %v6356_v5, 0.0  ;;  %v6089_v21 = vadd.f32 %v6088_v16, %v5801_v6  ;;  %v12063_v6 = vpop.permute.xlu1 %5539 }
 0x5fb   :  { %v6357_v59 = vadd.f32 %v11639_v60, %v6087_v9  ;;  %v5675_v9 = vsel %vm5639_vm0, 0.0, %v11865_v25 }
 0x5fc   :  { %v6358_v29 = vadd.f32 %v11647_v50, %v6089_v21  ;;  %v6092_v11 = vpop.f32.mrb[192].mxu0  ;;  %7542 = vmatprep.mubr.msk.f32.mxu1 %vm5639_vm0, %v6484_v41  ;;  %v5740_v46 = vsel %vm5704_vm1, %v5675_v9, %v11871_v15  ;;  %v5808_v9 = vsel %vm5769_vm2, %v11923_v56, 0.0 }
 0x5fd   :  { %v6093_v53 = vadd.f32 %v6092_v11, %v5737_v43  ;;  %v6094_v61 = vpop.f32.mrb[193].mxu0  ;;  %7048 = vmatmul.mubr.f32.gmra.mrb[188].mxu1 %v6483_v28  ;;  %v6485_v34 = vmax.f32 %v6357_v59, 0.0  ;;  %v5805_v59 = vsel %vm5769_vm2, %v11871_v15, 0.0  ;;  %v5676_v11 = vsel %vm5639_vm0, 0.0, %v11884_v3 }
 0x5fe   :  { %v6486_v10 = vmax.f32 %v6358_v29, 0.0  ;;  %v6095_v22 = vadd.f32 %v6094_v61, %v5802_v36  ;;  %v12075_v61 = vpop.permute.xlu0 %5285  ;;  %v12081_v15 = vpop.permute.xlu1 %5541 }
 0x5ff   :  { %v6359_v39 = vadd.f32 %v11639_v60, %v6093_v53 }
 0x600   :  { %v6360_v26 = vadd.f32 %v11647_v50, %v6095_v22  ;;  %v6098_v1 = vpop.f32.mrb[194].mxu0  ;;  %7543 = vmatprep.mubr.msk.f32.mxu1 %vm5639_vm0, %v6486_v10  ;;  %v5741_v22 = vsel %vm5704_vm1, %v5676_v11, %v11888_v48  ;;  %v5809_v11 = vsel %vm5769_vm2, %v11941_v2, 0.0 }
 0x601   :  { %v6099_v63 = vadd.f32 %v6098_v1, %v5738_v18  ;;  %v6100_v0 = vpop.f32.mrb[195].mxu0  ;;  %7054 = vmatmul.mubr.f32.gmra.mrb[190].mxu1 %v6485_v34  ;;  %v6487_v49 = vmax.f32 %v6359_v39, 0.0  ;;  %v5806_v39 = vsel %vm5769_vm2, %v11888_v48, 0.0  ;;  %v5677_v1 = vsel %vm5639_vm0, 0.0, %v11900_v24 }
 0x602   :  { %v6488_v55 = vmax.f32 %v6360_v26, 0.0  ;;  %v6101_v54 = vadd.f32 %v6100_v0, %v5803_v8  ;;  %v5807_v48 = vsel %vm5769_vm2, %v11906_v4, 0.0 }
 0x603   :  { %v6361_v20 = vadd.f32 %v11639_v60, %v6099_v63 }
 0x604   :  { %v6362_v40 = vadd.f32 %v11647_v50, %v6101_v54  ;;  %v6104_v19 = vpop.f32.mrb[196].mxu0  ;;  %7544 = vmatprep.mubr.msk.f32.mxu1 %vm5639_vm0, %v6488_v55  ;;  %v5742_v55 = vsel %vm5704_vm1, %v5677_v1, %v11906_v4 }
 0x605   :  { %v6105_v38 = vadd.f32 %v6104_v19, %v5739_v45  ;;  %v6106_v5 = vpop.f32.mrb[197].mxu0  ;;  %7060 = vmatmul.mubr.f32.gmra.mrb[192].mxu1 %v6487_v49  ;;  %v6489_v16 = vmax.f32 %v6361_v20, 0.0  ;;  %v12094_v20 = vpop.permute.xlu0 %5287  ;;  %v5678_v45 = vsel %vm5639_vm0, 0.0, %v11919_v47 }
 0x606   :  { %v6490_v30 = vmax.f32 %v6362_v40, 0.0  ;;  %v6107_v42 = vadd.f32 %v6106_v5, %v5804_v58  ;;  %v12098_v19 = vpop.permute.xlu1 %5543 }
 0x607   :  { %v6363_v41 = vadd.f32 %v11639_v60, %v6105_v38 }
 0x608   :  { %v6364_v21 = vadd.f32 %v11647_v50, %v6107_v42  ;;  %v6110_v31 = vpop.f32.mrb[198].mxu0  ;;  %7545 = vmatprep.mubr.msk.f32.mxu1 %vm5639_vm0, %v6490_v30  ;;  %v5743_v30 = vsel %vm5704_vm1, %v5678_v45, %v11923_v56 }
 0x609   :  { %v6111_v28 = vadd.f32 %v6110_v31, %v5740_v46  ;;  %v6112_v29 = vpop.f32.mrb[199].mxu0  ;;  %7066 = vmatmul.mubr.f32.gmra.mrb[194].mxu1 %v6489_v16  ;;  %v6491_v53 = vmax.f32 %v6363_v41, 0.0 }
 0x60a   :  { %v6492_v25 = vmax.f32 %v6364_v21, 0.0  ;;  %v6113_v43 = vadd.f32 %v6112_v29, %v5805_v59  ;;  %v5679_v21 = vsel %vm5639_vm0, 0.0, %v11935_v52  ;;  %v12116_v56 = vpop.permute.xlu1 %5545 }
 0x60b   :  { %v6365_v36 = vadd.f32 %v11639_v60, %v6111_v28  ;;  %v12110_v28 = vpop.permute.xlu0 %5289  ;;  %v5744_v29 = vsel %vm5704_vm1, %v5679_v21, %v11941_v2  ;;  %v5810_v2 = vsel %vm5769_vm2, %v11958_v57, 0.0 }
 0x60c   :  { %v6366_v10 = vadd.f32 %v11647_v50, %v6113_v43  ;;  %v6116_v32 = vpop.f32.mrb[200].mxu0  ;;  %7546 = vmatprep.mubr.msk.f32.mxu1 %vm5639_vm0, %v6492_v25 }
 0x60d   :  { %v6117_v34 = vadd.f32 %v6116_v32, %v5741_v22  ;;  %v6118_v3 = vpop.f32.mrb[201].mxu0  ;;  %7072 = vmatmul.mubr.f32.gmra.mrb[196].mxu1 %v6491_v53  ;;  %v6493_v63 = vmax.f32 %v6365_v36, 0.0 }
 0x60e   :  { %v6494_v26 = vmax.f32 %v6366_v10, 0.0  ;;  %v6119_v18 = vadd.f32 %v6118_v3, %v5806_v39  ;;  %v5680_v10 = vsel %vm5639_vm0, 0.0, %v11954_v7 }
 0x60f   :  { %v6367_v8 = vadd.f32 %v11639_v60, %v6117_v34  ;;  %v5745_v39 = vsel %vm5704_vm1, %v5680_v10, %v11958_v57  ;;  %v12129_v1 = vpop.permute.xlu0 %5291  ;;  %v5684_v10 = vsel %vm5639_vm0, 0.0, %v12024_v14 }
 0x610   :  { %v6368_v0 = vadd.f32 %v11647_v50, %v6119_v18  ;;  %v6122_v54 = vpop.f32.mrb[202].mxu0  ;;  %7547 = vmatprep.mubr.msk.f32.mxu1 %vm5639_vm0, %v6494_v26 }
 0x611   :  { %v6123_v33 = vadd.f32 %v6122_v54, %v5742_v55  ;;  %v6124_v49 = vpop.f32.mrb[203].mxu0  ;;  %7078 = vmatmul.mubr.f32.gmra.mrb[198].mxu1 %v6493_v63  ;;  %v6495_v38 = vmax.f32 %v6367_v8, 0.0  ;;  %v5681_v8 = vsel %vm5639_vm0, 0.0, %v11970_v27 }
 0x612   :  { %v6496_v24 = vmax.f32 %v6368_v0, 0.0  ;;  %v6125_v40 = vadd.f32 %v6124_v49, %v5807_v48  ;;  %v12133_v0 = vpop.permute.xlu1 %5547  ;;  %v5746_v48 = vsel %vm5704_vm1, %v5681_v8, %v11976_v44 }
 0x613   :  { %v6369_v58 = vadd.f32 %v11639_v60, %v6123_v33 }
 0x614   :  { %v6370_v5 = vadd.f32 %v11647_v50, %v6125_v40  ;;  %v6128_v4 = vpop.f32.mrb[204].mxu0  ;;  %7548 = vmatprep.mubr.msk.f32.mxu1 %vm5639_vm0, %v6496_v24  ;;  %v5811_v24 = vsel %vm5769_vm2, %v11976_v44, 0.0 }
 0x615   :  { %v6129_v42 = vadd.f32 %v6128_v4, %v5743_v30  ;;  %v6130_v16 = vpop.f32.mrb[205].mxu0  ;;  %7084 = vmatmul.mubr.f32.gmra.mrb[200].mxu1 %v6495_v38  ;;  %v6497_v46 = vmax.f32 %v6369_v58, 0.0  ;;  %v5682_v38 = vsel %vm5639_vm0, 0.0, %v11989_v17  ;;  %v12145_v30 = vpop.permute.xlu0 %5293 }
 0x616   :  { %v6498_v47 = vmax.f32 %v6370_v5, 0.0  ;;  %v6131_v41 = vadd.f32 %v6130_v16, %v5808_v9  ;;  %v12151_v44 = vpop.permute.xlu1 %5549 }
 0x617   :  { %v6371_v31 = vadd.f32 %v11639_v60, %v6129_v42  ;;  %v5747_v42 = vsel %vm5704_vm1, %v5682_v38, %v11993_v62 }
 0x618   :  { %v6372_v59 = vadd.f32 %v11647_v50, %v6131_v41  ;;  %v6134_v25 = vpop.f32.mrb[206].mxu0  ;;  %7549 = vmatprep.mubr.msk.f32.mxu1 %vm5639_vm0, %v6498_v47  ;;  %v5812_v47 = vsel %vm5769_vm2, %v11993_v62, 0.0  ;;  %v5813_v62 = vsel %vm5769_vm2, %v12011_v23, 0.0 }
 0x619   :  { %v6135_v43 = vadd.f32 %v6134_v25, %v5744_v29  ;;  %v6136_v52 = vpop.f32.mrb[207].mxu0  ;;  %7090 = vmatmul.mubr.f32.gmra.mrb[202].mxu1 %v6497_v46  ;;  %v6499_v22 = vmax.f32 %v6371_v31, 0.0  ;;  %v5683_v46 = vsel %vm5639_vm0, 0.0, %v12005_v51 }
 0x61a   :  { %v6500_v53 = vmax.f32 %v6372_v59, 0.0  ;;  %v6137_v36 = vadd.f32 %v6136_v52, %v5809_v11  ;;  %v5748_v25 = vsel %vm5704_vm1, %v5683_v46, %v12011_v23 }
 0x61b   :  { %v6373_v32 = vadd.f32 %v11639_v60, %v6135_v43 }
 0x61c   :  { %v6374_v34 = vadd.f32 %v11647_v50, %v6137_v36  ;;  %v6140_v3 = vpop.f32.mrb[208].mxu0  ;;  %7550 = vmatprep.mubr.msk.f32.mxu1 %vm5639_vm0, %v6500_v53  ;;  %v12164_v53 = vpop.permute.xlu0 %5295 }
 0x61d   :  { %v6141_v26 = vadd.f32 %v6140_v3, %v5745_v39  ;;  %v6142_v18 = vpop.f32.mrb[209].mxu0  ;;  %7096 = vmatmul.mubr.f32.gmra.mrb[204].mxu1 %v6499_v22  ;;  %v6501_v55 = vmax.f32 %v6373_v32, 0.0  ;;  %v12168_v22 = vpop.permute.xlu1 %5551  ;;  %v5749_v3 = vsel %vm5704_vm1, %v5684_v10, %v12028_v37 }
 0x61e   :  { %v6502_v7 = vmax.f32 %v6374_v34, 0.0  ;;  %v6143_v63 = vadd.f32 %v6142_v18, %v5810_v2  ;;  %v5814_v2 = vsel %vm5769_vm2, %v12028_v37, 0.0 }
 0x61f   :  { %v6375_v54 = vadd.f32 %v11639_v60, %v6141_v26 }
 0x620   :  { %v6376_v33 = vadd.f32 %v11647_v50, %v6143_v63  ;;  %v6146_v57 = vpop.f32.mrb[210].mxu0  ;;  %7551 = vmatprep.mubr.msk.f32.mxu1 %vm5639_vm0, %v6502_v7  ;;  %v5685_v63 = vsel %vm5639_vm0, 0.0, %v12040_v12 }
 0x621   :  { %v6147_v49 = vadd.f32 %v6146_v57, %v5746_v48  ;;  %v6148_v40 = vpop.f32.mrb[211].mxu0  ;;  %7102 = vmatmul.mubr.f32.gmra.mrb[206].mxu1 %v6501_v55  ;;  %v6503_v58 = vmax.f32 %v6375_v54, 0.0  ;;  %v12180_v54 = vpop.permute.xlu0 %5297  ;;  %v5750_v48 = vsel %vm5704_vm1, %v5685_v63, %v12046_v35 }
 0x622   :  { %v6504_v27 = vmax.f32 %v6376_v33, 0.0  ;;  %v6149_v45 = vadd.f32 %v6148_v40, %v5811_v24  ;;  %v12186_v37 = vpop.permute.xlu1 %5553  ;;  %v5815_v24 = vsel %vm5769_vm2, %v12046_v35, 0.0  ;;  %v5816_v35 = vsel %vm5769_vm2, %v12063_v6, 0.0 }
 0x623   :  { %v6377_v5 = vadd.f32 %v11639_v60, %v6147_v49 }
 0x624   :  { %v6378_v4 = vadd.f32 %v11647_v50, %v6149_v45  ;;  %v6152_v9 = vpop.f32.mrb[212].mxu0  ;;  %7552 = vmatprep.mubr.msk.f32.mxu1 %vm5639_vm0, %v6504_v27  ;;  %v5686_v45 = vsel %vm5639_vm0, 0.0, %v12059_v13 }
 0x625   :  { %v6153_v16 = vadd.f32 %v6152_v9, %v5747_v42  ;;  %v6154_v17 = vpop.f32.mrb[213].mxu0  ;;  %7108 = vmatmul.mubr.f32.gmra.mrb[208].mxu1 %v6503_v58  ;;  %v6505_v31 = vmax.f32 %v6377_v5, 0.0 }
 0x626   :  { %v6506_v41 = vmax.f32 %v6378_v4, 0.0  ;;  %v6155_v21 = vadd.f32 %v6154_v17, %v5812_v47  ;;  %v5751_v4 = vsel %vm5704_vm1, %v5686_v45, %v12063_v6  ;;  %v12199_v47 = vpop.permute.xlu0 %5299 }
 0x627   :  { %v6379_v59 = vadd.f32 %v11639_v60, %v6153_v16 }
 0x628   :  { %v6380_v29 = vadd.f32 %v11647_v50, %v6155_v21  ;;  %v6158_v43 = vpop.f32.mrb[214].mxu0  ;;  %7553 = vmatprep.mubr.msk.f32.mxu1 %vm5639_vm0, %v6506_v41  ;;  %v5687_v41 = vsel %vm5639_vm0, 0.0, %v12075_v61  ;;  %v12203_v21 = vpop.permute.xlu1 %5555 }
 0x629   :  { %v6159_v11 = vadd.f32 %v6158_v43, %v5748_v25  ;;  %v6160_v52 = vpop.f32.mrb[215].mxu0  ;;  %7114 = vmatmul.mubr.f32.gmra.mrb[210].mxu1 %v6505_v31  ;;  %v6507_v32 = vmax.f32 %v6379_v59, 0.0  ;;  %v5817_v43 = vsel %vm5769_vm2, %v12081_v15, 0.0 }
 0x62a   :  { %v6508_v51 = vmax.f32 %v6380_v29, 0.0  ;;  %v6161_v36 = vadd.f32 %v6160_v52, %v5813_v62  ;;  %v5752_v29 = vsel %vm5704_vm1, %v5687_v41, %v12081_v15  ;;  %v5688_v52 = vsel %vm5639_vm0, 0.0, %v12094_v20  ;;  %v12215_v10 = vpop.permute.xlu0 %5301 }
 0x62b   :  { %v6381_v34 = vadd.f32 %v11639_v60, %v6159_v11 }
 0x62c   :  { %v6382_v39 = vadd.f32 %v11647_v50, %v6161_v36  ;;  %v6164_v23 = vpop.f32.mrb[216].mxu0  ;;  %7554 = vmatprep.mubr.msk.f32.mxu1 %vm5639_vm0, %v6508_v51  ;;  %v12221_v15 = vpop.permute.xlu1 %5557 }
 0x62d   :  { %v6165_v26 = vadd.f32 %v6164_v23, %v5749_v3  ;;  %v6166_v18 = vpop.f32.mrb[217].mxu0  ;;  %7120 = vmatmul.mubr.f32.gmra.mrb[212].mxu1 %v6507_v32  ;;  %v6509_v8 = vmax.f32 %v6381_v34, 0.0  ;;  %v5753_v34 = vsel %vm5704_vm1, %v5688_v52, %v12098_v19  ;;  %v5818_v23 = vsel %vm5769_vm2, %v12098_v19, 0.0 }
 0x62e   :  { %v6510_v14 = vmax.f32 %v6382_v39, 0.0  ;;  %v6167_v7 = vadd.f32 %v6166_v18, %v5814_v2  ;;  %v5689_v18 = vsel %vm5639_vm0, 0.0, %v12110_v28  ;;  %v5819_v19 = vsel %vm5769_vm2, %v12116_v56, 0.0 }
 0x62f   :  { %v6383_v55 = vadd.f32 %v11639_v60, %v6165_v26 }
 0x630   :  { %v6384_v33 = vadd.f32 %v11647_v50, %v6167_v7  ;;  %v6170_v57 = vpop.f32.mrb[218].mxu0  ;;  %7555 = vmatprep.mubr.msk.f32.mxu1 %vm5639_vm0, %v6510_v14 }
 0x631   :  { %v6171_v49 = vadd.f32 %v6170_v57, %v5750_v48  ;;  %v6172_v12 = vpop.f32.mrb[219].mxu0  ;;  %7126 = vmatmul.mubr.f32.gmra.mrb[214].mxu1 %v6509_v8  ;;  %v6511_v38 = vmax.f32 %v6383_v55, 0.0  ;;  %v5754_v8 = vsel %vm5704_vm1, %v5689_v18, %v12116_v56  ;;  %v12234_v57 = vpop.permute.xlu0 %5303 }
 0x632   :  { %v6512_v40 = vmax.f32 %v6384_v33, 0.0  ;;  %v6173_v27 = vadd.f32 %v6172_v12, %v5815_v24  ;;  %v5690_v24 = vsel %vm5639_vm0, 0.0, %v12129_v1  ;;  %v12238_v12 = vpop.permute.xlu1 %5559 }
 0x633   :  { %v6385_v58 = vadd.f32 %v11639_v60, %v6171_v49 }
 0x634   :  { %v6386_v5 = vadd.f32 %v11647_v50, %v6173_v27  ;;  %v6176_v42 = vpop.f32.mrb[220].mxu0  ;;  %7556 = vmatprep.mubr.msk.f32.mxu1 %vm5639_vm0, %v6512_v40 }
 0x635   :  { %v6177_v9 = vadd.f32 %v6176_v42, %v5751_v4  ;;  %v6178_v16 = vpop.f32.mrb[221].mxu0  ;;  %7132 = vmatmul.mubr.f32.gmra.mrb[216].mxu1 %v6511_v38  ;;  %v6513_v46 = vmax.f32 %v6385_v58, 0.0  ;;  %v5755_v38 = vsel %vm5704_vm1, %v5690_v24, %v12133_v0 }
 0x636   :  { %v6514_v13 = vmax.f32 %v6386_v5, 0.0  ;;  %v6179_v17 = vadd.f32 %v6178_v16, %v5816_v35  ;;  %v5820_v5 = vsel %vm5769_vm2, %v12133_v0, 0.0  ;;  %v12256_v0 = vpop.permute.xlu1 %5561 }
 0x637   :  { %v6387_v31 = vadd.f32 %v11639_v60, %v6177_v9  ;;  %v5691_v9 = vsel %vm5639_vm0, 0.0, %v12145_v30 }
 0x638   :  { %v6388_v59 = vadd.f32 %v11647_v50, %v6179_v17  ;;  %v6182_v6 = vpop.f32.mrb[222].mxu0  ;;  %7557 = vmatprep.mubr.msk.f32.mxu1 %vm5639_vm0, %v6514_v13  ;;  %v12250_v13 = vpop.permute.xlu0 %5305  ;;  %v5756_v41 = vsel %vm5704_vm1, %v5691_v9, %v12151_v44 }
 0x639   :  { %v6183_v25 = vadd.f32 %v6182_v6, %v5752_v29  ;;  %v6184_v11 = vpop.f32.mrb[223].mxu0  ;;  %7138 = vmatmul.mubr.f32.gmra.mrb[218].mxu1 %v6513_v46  ;;  %v6515_v51 = vmax.f32 %v6387_v31, 0.0 }
 0x63a   :  { %v6516_v61 = vmax.f32 %v6388_v59, 0.0  ;;  %v6185_v62 = vadd.f32 %v6184_v11, %v5817_v43  ;;  %v5821_v59 = vsel %vm5769_vm2, %v12151_v44, 0.0  ;;  %v5822_v44 = vsel %vm5769_vm2, %v12168_v22, 0.0 }
 0x63b   :  { %v6389_v36 = vadd.f32 %v11639_v60, %v6183_v25  ;;  %v5692_v25 = vsel %vm5639_vm0, 0.0, %v12164_v53 }
 0x63c   :  { %v6390_v32 = vadd.f32 %v11647_v50, %v6185_v62  ;;  %v6188_v39 = vpop.f32.mrb[224].mxu0  ;;  %7558 = vmatprep.mubr.msk.f32.mxu1 %vm5639_vm0, %v6516_v61  ;;  %v5757_v62 = vsel %vm5704_vm1, %v5692_v25, %v12168_v22 }
 0x63d   :  { %v6189_v3 = vadd.f32 %v6188_v39, %v5753_v34  ;;  %v6190_v20 = vpop.f32.mrb[225].mxu0  ;;  %7144 = vmatmul.mubr.f32.gmra.mrb[220].mxu1 %v6515_v51  ;;  %v6517_v14 = vmax.f32 %v6389_v36, 0.0  ;;  %v5693_v39 = vsel %vm5639_vm0, 0.0, %v12180_v54 }
 0x63e   :  { %v6518_v26 = vmax.f32 %v6390_v32, 0.0  ;;  %v6191_v2 = vadd.f32 %v6190_v20, %v5818_v23  ;;  %v12269_v32 = vpop.permute.xlu0 %5307 }
 0x63f   :  { %v6391_v7 = vadd.f32 %v11639_v60, %v6189_v3  ;;  %v12273_v3 = vpop.permute.xlu1 %5563 }
 0x640   :  { %v6392_v63 = vadd.f32 %v11647_v50, %v6191_v2  ;;  %v6194_v55 = vpop.f32.mrb[226].mxu0  ;;  %7559 = vmatprep.mubr.msk.f32.mxu1 %vm5639_vm0, %v6518_v26  ;;  %v5758_v2 = vsel %vm5704_vm1, %v5693_v39, %v12186_v37 }
 0x641   :  { %v6195_v33 = vadd.f32 %v6194_v55, %v5754_v8  ;;  %v6196_v48 = vpop.f32.mrb[227].mxu0  ;;  %7150 = vmatmul.mubr.f32.gmra.mrb[222].mxu1 %v6517_v14  ;;  %v6519_v40 = vmax.f32 %v6391_v7, 0.0  ;;  %v5823_v14 = vsel %vm5769_vm2, %v12186_v37, 0.0  ;;  %v6599_v8 = vld [vmem:[%s12975_s6] sm:$0x3]  ;;  %v5694_v55 = vsel %vm5639_vm0, 0.0, %v12199_v47 }
 0x642   :  { %v6520_v28 = vmax.f32 %v6392_v63, 0.0  ;;  %v6197_v49 = vadd.f32 %v6196_v48, %v5819_v19  ;;  %v12288_v48 = vpop.permute.xlu0 %5309  ;;  %v5759_v37 = vsel %vm5704_vm1, %v5694_v55, %v12203_v21 }
 0x643   :  { %v6393_v27 = vadd.f32 %v11639_v60, %v6195_v33  ;;  %v12294_v24 = vpop.permute.xlu1 %5565 }
 0x644   :  { %v6394_v45 = vadd.f32 %v11647_v50, %v6197_v49  ;;  %v6200_v56 = vpop.f32.mrb[228].mxu0  ;;  %7560 = vmatprep.mubr.msk.f32.mxu1 %vm5639_vm0, %v6520_v28 }
 0x645   :  { %v6201_v58 = vadd.f32 %v6200_v56, %v5755_v38  ;;  %v6202_v4 = vpop.f32.mrb[229].mxu0  ;;  %7156 = vmatmul.mubr.f32.gmra.mrb[224].mxu1 %v6519_v40  ;;  %v6521_v35 = vmax.f32 %v6393_v27, 0.0  ;;  %v5824_v27 = vsel %vm5769_vm2, %v12203_v21, 0.0 }
 0x646   :  { %v6522_v1 = vmax.f32 %v6394_v45, 0.0  ;;  %v6203_v42 = vadd.f32 %v6202_v4, %v5820_v5  ;;  %v12982_v45 = vld [vmem:[#allocation3_spill] sm:$0xff] }
 0x647   :  { %v6395_v16 = vadd.f32 %v11639_v60, %v6201_v58  ;;  %v12983_v38 = vsub.s32 0, %v12982_v45  ;;  %v12984_v4 = vsub.s32 1, %v12982_v45 }
 0x648   :  { %v6396_v17 = vadd.f32 %v11647_v50, %v6203_v42  ;;  %v6206_v46 = vpop.f32.mrb[230].mxu0  ;;  %7561 = vmatprep.mubr.msk.f32.mxu1 %vm5639_vm0, %v6522_v1  ;;  %v5695_v42 = vsel %vm5639_vm0, 0.0, %v12215_v10 }
 0x649   :  { %v6207_v31 = vadd.f32 %v6206_v46, %v5756_v41  ;;  %v6208_v30 = vpop.f32.mrb[231].mxu0  ;;  %7162 = vmatmul.mubr.f32.gmra.mrb[226].mxu1 %v6521_v35  ;;  %v6523_v43 = vmax.f32 %v6395_v16, 0.0  ;;  %v12300_v56 = vrot.slane %v6599_v8, %v12983_v38  ;;  %v12304_v1 = vrot.slane %v6599_v8, %v12984_v4 }
 0x64a   :  { %v6524_v29 = vmax.f32 %v6396_v17, 0.0  ;;  %v6209_v6 = vadd.f32 %v6208_v30, %v5821_v59  ;;  %v5760_v16 = vsel %vm5704_vm1, %v5695_v42, %v12221_v15  ;;  %v5825_v59 = vsel %vm5769_vm2, %v12221_v15, 0.0 }
 0x64b   :  { %v6397_v11 = vadd.f32 %v11639_v60, %v6207_v31  ;;  %v5698_v38 = vsel %vm5639_vm0, 0.0, %v12269_v32 }
 0x64c   :  { %v6398_v61 = vadd.f32 %v11647_v50, %v6209_v6  ;;  %v6212_v52 = vpop.f32.mrb[232].mxu0  ;;  %7562 = vmatprep.mubr.msk.f32.mxu1 %vm5639_vm0, %v6524_v29 }
 0x64d   :  { %v6213_v51 = vadd.f32 %v6212_v52, %v5757_v62  ;;  %v6214_v36 = vpop.f32.mrb[233].mxu0  ;;  %7168 = vmatmul.mubr.f32.gmra.mrb[228].mxu1 %v6523_v43  ;;  %v6525_v23 = vmax.f32 %v6397_v11, 0.0  ;;  %v5696_v43 = vsel %vm5639_vm0, 0.0, %v12234_v57  ;;  %v12319_v11 = vpop.permute.xlu0 %5311 }
 0x64e   :  { %v6526_v53 = vmax.f32 %v6398_v61, 0.0  ;;  %v6215_v34 = vadd.f32 %v6214_v36, %v5822_v44  ;;  %v12321_v61 = vpop.permute.xlu1 %5567  ;;  %v5761_v36 = vsel %vm5704_vm1, %v5696_v43, %v12238_v12 }
 0x64f   :  { %v6399_v20 = vadd.f32 %v11639_v60, %v6213_v51 }
 0x650   :  { %v6400_v26 = vadd.f32 %v11647_v50, %v6215_v34  ;;  %v6218_v22 = vpop.f32.mrb[234].mxu0  ;;  %7563 = vmatprep.mubr.msk.f32.mxu1 %vm5639_vm0, %v6526_v53 }
 0x651   :  { %v6219_v18 = vadd.f32 %v6218_v22, %v5758_v2  ;;  %v6220_v7 = vpop.f32.mrb[235].mxu0  ;;  %7174 = vmatmul.mubr.f32.gmra.mrb[230].mxu1 %v6525_v23  ;;  %v6527_v33 = vmax.f32 %v6399_v20, 0.0  ;;  %v5826_v23 = vsel %vm5769_vm2, %v12238_v12, 0.0 }
 0x652   :  { %v6528_v54 = vmax.f32 %v6400_v26, 0.0  ;;  %v6221_v63 = vadd.f32 %v6220_v7, %v5823_v14  ;;  %v5697_v14 = vsel %vm5639_vm0, 0.0, %v12250_v13 }
 0x653   :  { %v6401_v19 = vadd.f32 %v11639_v60, %v6219_v18  ;;  %v5762_v55 = vsel %vm5704_vm1, %v5697_v14, %v12256_v0 }
 0x654   :  { %v6402_v28 = vadd.f32 %v11647_v50, %v6221_v63  ;;  %v6224_v49 = vpop.f32.mrb[236].mxu0  ;;  %7564 = vmatprep.mubr.msk.f32.mxu1 %vm5639_vm0, %v6528_v54 }
 0x655   :  { %v6225_v40 = vadd.f32 %v6224_v49, %v5759_v37  ;;  %v6226_v47 = vpop.f32.mrb[237].mxu0  ;;  %7180 = vmatmul.mubr.f32.gmra.mrb[232].mxu1 %v6527_v33  ;;  %v6529_v9 = vmax.f32 %v6401_v19, 0.0  ;;  %v5827_v37 = vsel %vm5769_vm2, %v12256_v0, 0.0 }
 0x656   :  { %v6530_v58 = vmax.f32 %v6402_v28, 0.0  ;;  %v6227_v5 = vadd.f32 %v6226_v47, %v5824_v27 }
 0x657   :  { %v6403_v35 = vadd.f32 %v11639_v60, %v6225_v40 }
 0x658   :  { %v6404_v21 = vadd.f32 %v11647_v50, %v6227_v5  ;;  %v6230_v17 = vpop.f32.mrb[238].mxu0  ;;  %v6869_v41 = vpop.f32.mrb[128].mxu1  ;;  %7565 = vmatprep.mubr.msk.f32.mxu1 %vm5639_vm0, %v6530_v58 }
 0x659   :  { %v6231_v46 = vadd.f32 %v6230_v17, %v5760_v16  ;;  %v6870_v31 = vadd.f32 %v6869_v41, %v12300_v56  ;;  %v6232_v30 = vpop.f32.mrb[239].mxu0  ;;  %v6871_v10 = vpop.f32.mrb[129].mxu1  ;;  %7186 = vmatmul.mubr.f32.gmra.mrb[234].mxu1 %v6529_v9  ;;  %v6531_v62 = vmax.f32 %v6403_v35, 0.0 }
 0x65a   :  { %v6532_v29 = vmax.f32 %v6404_v21, 0.0  ;;  %v6233_v6 = vadd.f32 %v6232_v30, %v5825_v59  ;;  %v6872_v25 = vadd.f32 %v6871_v10, %v12304_v1  ;;  %v12359_v58 = vpop.permute.xlu0 %5313  ;;  %v12361_v5 = vpop.permute.xlu1 %5569  ;;  %v5763_v21 = vsel %vm5704_vm1, %v5698_v38, %v12273_v3 }
 0x65b   :  { %v6405_v52 = vadd.f32 %v11639_v60, %v6231_v46  ;;  %v7252_v51 = vmax.f32 %v6870_v31, 0.0  ;;  %v5828_v46 = vsel %vm5769_vm2, %v12273_v3, 0.0 }
 0x65c   :  { %v6406_v15 = vadd.f32 %v11647_v50, %v6233_v6  ;;  %v7253_v44 = vmax.f32 %v6872_v25, 0.0  ;;  %v6236_v53 = vpop.f32.mrb[240].mxu0  ;;  %v6875_v34 = vpop.f32.mrb[130].mxu1  ;;  %7566 = vmatprep.mubr.msk.f32.mxu1 %vm5639_vm0, %v6532_v29  ;;  %v5699_v6 = vsel %vm5639_vm0, 0.0, %v12288_v48 }
 0x65d   :  { %7380 = vst [vmem:[%s12976_s7] sm:$0xff] %v7252_v51  ;;  %v6237_v57 = vadd.f32 %v6236_v53, %v5761_v36  ;;  %v6876_v39 = vadd.f32 %v6875_v34, %v12300_v56  ;;  %v6238_v20 = vpop.f32.mrb[241].mxu0  ;;  %v6877_v26 = vpop.f32.mrb[131].mxu1  ;;  %7192 = vmatmul.mubr.f32.gmra.mrb[236].mxu1 %v6531_v62  ;;  %v6533_v7 = vmax.f32 %v6405_v52, 0.0  ;;  %v5764_v51 = vsel %vm5704_vm1, %v5699_v6, %v12294_v24 }
 0x65e   :  { %v6534_v2 = vmax.f32 %v6406_v15, 0.0  ;;  %7381 = vst.msk [vmem:[%s12976_s7 + $0x8] sm:$0xff] %vm5639_vm0, %v7253_v44  ;;  %v6239_v22 = vadd.f32 %v6238_v20, %v5826_v23  ;;  %v6878_v18 = vadd.f32 %v6877_v26, %v12304_v1  ;;  %v5829_v53 = vsel %vm5769_vm2, %v12294_v24, 0.0 }
 0x65f   :  { %v6407_v54 = vadd.f32 %v11639_v60, %v6237_v57  ;;  %v7254_v63 = vmax.f32 %v6876_v39, 0.0  ;;  %v5700_v26 = vsel %vm5639_vm0, 0.0, %v12319_v11 }
 0x660   :  { %v6408_v12 = vadd.f32 %v11647_v50, %v6239_v22  ;;  %v7255_v8 = vmax.f32 %v6878_v18, 0.0  ;;  %v6242_v33 = vpop.f32.mrb[242].mxu0  ;;  %v6881_v19 = vpop.f32.mrb[132].mxu1  ;;  %7567 = vmatprep.mubr.msk.f32.mxu1 %vm5639_vm0, %v6534_v2 }
 0x661   :  { %7382 = vst [vmem:[%s12976_s7 + $0x10] sm:$0xff] %v7254_v63  ;;  %v6243_v28 = vadd.f32 %v6242_v33, %v5762_v55  ;;  %v6882_v13 = vadd.f32 %v6881_v19, %v12300_v56  ;;  %v6244_v49 = vpop.f32.mrb[243].mxu0  ;;  %v6883_v40 = vpop.f32.mrb[133].mxu1  ;;  %7198 = vmatmul.mubr.f32.gmra.mrb[238].mxu1 %v6533_v7  ;;  %v6535_v0 = vmax.f32 %v6407_v54, 0.0  ;;  %v5765_v63 = vsel %vm5704_vm1, %v5700_v26, %v12321_v61 }
 0x662   :  { %v6536_v27 = vmax.f32 %v6408_v12, 0.0  ;;  %7383 = vst.msk [vmem:[%s12976_s7 + $0x18] sm:$0xff] %vm5639_vm0, %v7255_v8  ;;  %v6245_v47 = vadd.f32 %v6244_v49, %v5827_v37  ;;  %v6884_v45 = vadd.f32 %v6883_v40, %v12304_v1  ;;  %v5316_v2 = vpop.permute.xlu0 %5315  ;;  %v5572_v22 = vpop.permute.xlu1 %5571  ;;  %v5830_v33 = vsel %vm5769_vm2, %v12321_v61, 0.0 }
 0x663   :  { %v6409_v4 = vadd.f32 %v11639_v60, %v6243_v28  ;;  %v7256_v42 = vmax.f32 %v6882_v13, 0.0  ;;  %v5701_v40 = vsel %vm5639_vm0, 0.0, %v12359_v58 }
 0x664   :  { %v6410_v9 = vadd.f32 %v11647_v50, %v6245_v47  ;;  %v7257_v35 = vmax.f32 %v6884_v45, 0.0  ;;  %v6248_v16 = vpop.f32.mrb[244].mxu0  ;;  %v6887_v17 = vpop.f32.mrb[134].mxu1  ;;  %7568 = vmatprep.mubr.msk.f32.mxu1 %vm5639_vm0, %v6536_v27 }
 0x665   :  { %7384 = vst [vmem:[%s12976_s7 + $0x20] sm:$0xff] %v7256_v42  ;;  %v6249_v32 = vadd.f32 %v6248_v16, %v5763_v21  ;;  %v6888_v41 = vadd.f32 %v6887_v17, %v12300_v56  ;;  %v6250_v31 = vpop.f32.mrb[245].mxu0  ;;  %v6889_v59 = vpop.f32.mrb[135].mxu1  ;;  %7204 = vmatmul.mubr.f32.gmra.mrb[240].mxu1 %v6535_v0  ;;  %v6537_v25 = vmax.f32 %v6409_v4, 0.0  ;;  %v5766_v0 = vsel %vm5704_vm1, %v5701_v40, %v12361_v5 }
 0x666   :  { %v6538_v30 = vmax.f32 %v6410_v9, 0.0  ;;  %7385 = vst.msk [vmem:[%s12976_s7 + $0x28] sm:$0xff] %vm5639_vm0, %v7257_v35  ;;  %v6251_v10 = vadd.f32 %v6250_v31, %v5828_v46  ;;  %v6890_v29 = vadd.f32 %v6889_v59, %v12304_v1  ;;  %v5831_v35 = vsel %vm5769_vm2, %v12361_v5, 0.0  ;;  %v5318_v31 = vpop.permute.xlu0 %5317  ;;  %v5574_v59 = vpop.permute.xlu1 %5573 }
 0x667   :  { %v6411_v43 = vadd.f32 %v11639_v60, %v6249_v32  ;;  %v7258_v62 = vmax.f32 %v6888_v41, 0.0  ;;  %v5702_v46 = vsel %vm5639_vm0, 0.0, %v5316_v2 }
 0x668   :  { %v6412_v3 = vadd.f32 %v11647_v50, %v6251_v10  ;;  %v7259_v52 = vmax.f32 %v6890_v29, 0.0  ;;  %v6254_v15 = vpop.f32.mrb[246].mxu0  ;;  %v6893_v44 = vpop.f32.mrb[136].mxu1  ;;  %7569 = vmatprep.mubr.msk.f32.mxu1 %vm5639_vm0, %v6538_v30 }
 0x669   :  { %7386 = vst [vmem:[%s12976_s7 + $0x30] sm:$0xff] %v7258_v62  ;;  %v6255_v36 = vadd.f32 %v6254_v15, %v5764_v51  ;;  %v6894_v48 = vadd.f32 %v6893_v44, %v12300_v56  ;;  %v6256_v34 = vpop.f32.mrb[247].mxu0  ;;  %v6895_v57 = vpop.f32.mrb[137].mxu1  ;;  %7210 = vmatmul.mubr.f32.gmra.mrb[242].mxu1 %v6537_v25  ;;  %v6539_v18 = vmax.f32 %v6411_v43, 0.0  ;;  %v5767_v25 = vsel %vm5704_vm1, %v5702_v46, %v5572_v22 }
 0x66a   :  { %v6540_v39 = vmax.f32 %v6412_v3, 0.0  ;;  %7387 = vst.msk [vmem:[%s12976_s7 + $0x38] sm:$0xff] %vm5639_vm0, %v7259_v52  ;;  %v6257_v23 = vadd.f32 %v6256_v34, %v5829_v53  ;;  %v6896_v20 = vadd.f32 %v6895_v57, %v12304_v1  ;;  %v5832_v51 = vsel %vm5769_vm2, %v5572_v22, 0.0 }
 0x66b   :  { %v6413_v24 = vadd.f32 %v11639_v60, %v6255_v36  ;;  %v7260_v14 = vmax.f32 %v6894_v48, 0.0  ;;  %v5703_v34 = vsel %vm5639_vm0, 0.0, %v5318_v31 }
 0x66c   :  { %v6414_v7 = vadd.f32 %v11647_v50, %v6257_v23  ;;  %v7261_v54 = vmax.f32 %v6896_v20, 0.0  ;;  %v6260_v12 = vpop.f32.mrb[248].mxu0  ;;  %v6899_v8 = vpop.f32.mrb[138].mxu1  ;;  %7570 = vmatprep.mubr.msk.f32.mxu1 %vm5639_vm0, %v6540_v39  ;;  %v5768_v2 = vsel %vm5704_vm1, %v5703_v34, %v5574_v59 }
 0x66d   :  { %7388 = vst [vmem:[%s12976_s7 + $0x40] sm:$0xff] %v7260_v14  ;;  %v6261_v11 = vadd.f32 %v6260_v12, %v5765_v63  ;;  %v6900_v55 = vadd.f32 %v6899_v8, %v12300_v56  ;;  %v6262_v19 = vpop.f32.mrb[249].mxu0  ;;  %v6901_v28 = vpop.f32.mrb[139].mxu1  ;;  %7216 = vmatmul.mubr.f32.gmra.mrb[244].mxu1 %v6539_v18  ;;  %v6541_v27 = vmax.f32 %v6413_v24, 0.0  ;;  %v5833_v24 = vsel %vm5769_vm2, %v5574_v59, 0.0 }
 0x66e   :  { %v6542_v13 = vmax.f32 %v6414_v7, 0.0  ;;  %7389 = vst.msk [vmem:[%s12976_s7 + $0x48] sm:$0xff] %vm5639_vm0, %v7261_v54  ;;  %v6263_v37 = vadd.f32 %v6262_v19, %v5830_v33  ;;  %v6902_v49 = vadd.f32 %v6901_v28, %v12304_v1 }
 0x66f   :  { %v6415_v47 = vadd.f32 %v11639_v60, %v6261_v11  ;;  %v7262_v45 = vmax.f32 %v6900_v55, 0.0 }
 0x670   :  { %v6416_v61 = vadd.f32 %v11647_v50, %v6263_v37  ;;  %v7263_v38 = vmax.f32 %v6902_v49, 0.0  ;;  %v6266_v4 = vpop.f32.mrb[250].mxu0  ;;  %v6905_v42 = vpop.f32.mrb[140].mxu1  ;;  %7571 = vmatprep.mubr.msk.f32.mxu1 %vm5639_vm0, %v6542_v13 }
 0x671   :  { %7390 = vst [vmem:[%s12976_s7 + $0x50] sm:$0xff] %v7262_v45  ;;  %v6267_v9 = vadd.f32 %v6266_v4, %v5766_v0  ;;  %v6906_v58 = vadd.f32 %v6905_v42, %v12300_v56  ;;  %v6268_v21 = vpop.f32.mrb[251].mxu0  ;;  %v6907_v16 = vpop.f32.mrb[141].mxu1  ;;  %7222 = vmatmul.mubr.f32.gmra.mrb[246].mxu1 %v6541_v27  ;;  %v6543_v30 = vmax.f32 %v6415_v47, 0.0 }
 0x672   :  { %v6544_v17 = vmax.f32 %v6416_v61, 0.0  ;;  %7391 = vst.msk [vmem:[%s12976_s7 + $0x58] sm:$0xff] %vm5639_vm0, %v7263_v38  ;;  %v6269_v32 = vadd.f32 %v6268_v21, %v5831_v35  ;;  %v6908_v41 = vadd.f32 %v6907_v16, %v12304_v1 }
 0x673   :  { %v6417_v10 = vadd.f32 %v11639_v60, %v6267_v9  ;;  %v7264_v5 = vmax.f32 %v6906_v58, 0.0 }
 0x674   :  { %v6418_v29 = vadd.f32 %v11647_v50, %v6269_v32  ;;  %v7265_v6 = vmax.f32 %v6908_v41, 0.0  ;;  %v6272_v43 = vpop.f32.mrb[252].mxu0  ;;  %v6911_v62 = vpop.f32.mrb[142].mxu1  ;;  %7572 = vmatprep.mubr.msk.f32.mxu1 %vm5639_vm0, %v6544_v17 }
 0x675   :  { %7392 = vst [vmem:[%s12976_s7 + $0x60] sm:$0xff] %v7264_v5  ;;  %v6273_v3 = vadd.f32 %v6272_v43, %v5767_v25  ;;  %v6912_v52 = vadd.f32 %v6911_v62, %v12300_v56  ;;  %v6274_v15 = vpop.f32.mrb[253].mxu0  ;;  %v6913_v44 = vpop.f32.mrb[143].mxu1  ;;  %7228 = vmatmul.mubr.f32.gmra.mrb[248].mxu1 %v6543_v30  ;;  %v6545_v57 = vmax.f32 %v6417_v10, 0.0 }
 0x676   :  { %v6546_v36 = vmax.f32 %v6418_v29, 0.0  ;;  %7393 = vst.msk [vmem:[%s12976_s7 + $0x68] sm:$0xff] %vm5639_vm0, %v7265_v6  ;;  %v6275_v48 = vadd.f32 %v6274_v15, %v5832_v51  ;;  %v6914_v53 = vadd.f32 %v6913_v44, %v12304_v1 }
 0x677   :  { %v6419_v39 = vadd.f32 %v11639_v60, %v6273_v3  ;;  %v7266_v23 = vmax.f32 %v6912_v52, 0.0 }
 0x678   :  { %v6420_v20 = vadd.f32 %v11647_v50, %v6275_v48  ;;  %v7267_v26 = vmax.f32 %v6914_v53, 0.0  ;;  %v6278_v22 = vpop.f32.mrb[254].mxu0  ;;  %v6917_v18 = vpop.f32.mrb[144].mxu1  ;;  %7573 = vmatprep.mubr.msk.f32.mxu1 %vm5639_vm0, %v6546_v36 }
 0x679   :  { %7394 = vst [vmem:[%s12976_s7 + $0x70] sm:$0xff] %v7266_v23  ;;  %v6279_v14 = vadd.f32 %v6278_v22, %v5768_v2  ;;  %v6918_v7 = vadd.f32 %v6917_v18, %v12300_v56  ;;  %v6280_v54 = vpop.f32.mrb[255].mxu0  ;;  %v6919_v63 = vpop.f32.mrb[145].mxu1  ;;  %7234 = vmatmul.mubr.f32.gmra.mrb[250].mxu1 %v6545_v57  ;;  %v6547_v55 = vmax.f32 %v6419_v39, 0.0 }
 0x67a   :  { %v6548_v12 = vmax.f32 %v6420_v20, 0.0  ;;  %7395 = vst.msk [vmem:[%s12976_s7 + $0x78] sm:$0xff] %vm5639_vm0, %v7267_v26  ;;  %v6281_v8 = vadd.f32 %v6280_v54, %v5833_v24  ;;  %v6920_v11 = vadd.f32 %v6919_v63, %v12304_v1 }
 0x67b   :  { %v6421_v33 = vadd.f32 %v11639_v60, %v6279_v14  ;;  %v7268_v19 = vmax.f32 %v6918_v7, 0.0 }
 0x67c   :  { %v6422_v28 = vadd.f32 %v11647_v50, %v6281_v8  ;;  %v7269_v13 = vmax.f32 %v6920_v11, 0.0  ;;  %v6923_v37 = vpop.f32.mrb[146].mxu1  ;;  %7574 = vmatprep.mubr.msk.f32.mxu1 %vm5639_vm0, %v6548_v12 }
 0x67d   :  { %7396 = vst [vmem:[%s12976_s7 + $0x80] sm:$0xff] %v7268_v19  ;;  %v6924_v49 = vadd.f32 %v6923_v37, %v12300_v56  ;;  %v6925_v40 = vpop.f32.mrb[147].mxu1  ;;  %7240 = vmatmul.mubr.f32.gmra.mrb[252].mxu1 %v6547_v55  ;;  %v6549_v50 = vmax.f32 %v6421_v33, 0.0 }
 0x67e   :  { %v6550_v27 = vmax.f32 %v6422_v28, 0.0  ;;  %7397 = vst.msk [vmem:[%s12976_s7 + $0x88] sm:$0xff] %vm5639_vm0, %v7269_v13  ;;  %v6926_v60 = vadd.f32 %v6925_v40, %v12304_v1 }
 0x67f   :  { %v7270_v47 = vmax.f32 %v6924_v49, 0.0 }
 0x680   :  { %v7271_v45 = vmax.f32 %v6926_v60, 0.0  ;;  %v6929_v61 = vpop.f32.mrb[148].mxu1  ;;  %7575 = vmatprep.mubr.msk.f32.mxu1 %vm5639_vm0, %v6550_v27 }
 0x681   :  { %7398 = vst [vmem:[%s12976_s7 + $0x90] sm:$0xff] %v7270_v47  ;;  %v6930_v38 = vadd.f32 %v6929_v61, %v12300_v56  ;;  %v6931_v0 = vpop.f32.mrb[149].mxu1  ;;  %7246 = vmatmul.mubr.f32.gmra.mrb[254].mxu1 %v6549_v50 }
 0x682   :  { %7399 = vst.msk [vmem:[%s12976_s7 + $0x98] sm:$0xff] %vm5639_vm0, %v7271_v45  ;;  %v6932_v4 = vadd.f32 %v6931_v0, %v12304_v1 }
 0x683   :  { %v7272_v42 = vmax.f32 %v6930_v38, 0.0 }
 0x684   :  { %v7273_v9 = vmax.f32 %v6932_v4, 0.0  ;;  %v6935_v58 = vpop.f32.mrb[150].mxu1 }
 0x685   :  { %7400 = vst [vmem:[%s12976_s7 + $0xa0] sm:$0xff] %v7272_v42  ;;  %v6936_v35 = vadd.f32 %v6935_v58, %v12300_v56  ;;  %v6937_v21 = vpop.f32.mrb[151].mxu1 }
 0x686   :  { %7401 = vst.msk [vmem:[%s12976_s7 + $0xa8] sm:$0xff] %vm5639_vm0, %v7273_v9  ;;  %v6938_v16 = vadd.f32 %v6937_v21, %v12304_v1 }
 0x687   :  { %v7274_v17 = vmax.f32 %v6936_v35, 0.0 }
 0x688   :  { %v7275_v32 = vmax.f32 %v6938_v16, 0.0  ;;  %v6941_v41 = vpop.f32.mrb[152].mxu1 }
 0x689   :  { %7402 = vst [vmem:[%s12976_s7 + $0xb0] sm:$0xff] %v7274_v17  ;;  %v6942_v46 = vadd.f32 %v6941_v41, %v12300_v56  ;;  %v6943_v31 = vpop.f32.mrb[153].mxu1 }
 0x68a   :  { %7403 = vst.msk [vmem:[%s12976_s7 + $0xb8] sm:$0xff] %vm5639_vm0, %v7275_v32  ;;  %v6944_v59 = vadd.f32 %v6943_v31, %v12304_v1 }
 0x68b   :  { %v7276_v30 = vmax.f32 %v6942_v46, 0.0 }
 0x68c   :  { %v7277_v10 = vmax.f32 %v6944_v59, 0.0  ;;  %v6947_v5 = vpop.f32.mrb[154].mxu1 }
 0x68d   :  { %7404 = vst [vmem:[%s12976_s7 + $0xc0] sm:$0xff] %v7276_v30  ;;  %v6948_v29 = vadd.f32 %v6947_v5, %v12300_v56  ;;  %v6949_v6 = vpop.f32.mrb[155].mxu1 }
 0x68e   :  { %7405 = vst.msk [vmem:[%s12976_s7 + $0xc8] sm:$0xff] %vm5639_vm0, %v7277_v10  ;;  %v6950_v25 = vadd.f32 %v6949_v6, %v12304_v1 }
 0x68f   :  { %v7278_v43 = vmax.f32 %v6948_v29, 0.0 }
 0x690   :  { %v7279_v62 = vmax.f32 %v6950_v25, 0.0  ;;  %v6953_v3 = vpop.f32.mrb[156].mxu1 }
 0x691   :  { %7406 = vst [vmem:[%s12976_s7 + $0xd0] sm:$0xff] %v7278_v43  ;;  %v6954_v52 = vadd.f32 %v6953_v3, %v12300_v56  ;;  %v6955_v51 = vpop.f32.mrb[157].mxu1 }
 0x692   :  { %7407 = vst.msk [vmem:[%s12976_s7 + $0xd8] sm:$0xff] %vm5639_vm0, %v7279_v62  ;;  %v6956_v15 = vadd.f32 %v6955_v51, %v12304_v1 }
 0x693   :  { %v7280_v44 = vmax.f32 %v6954_v52, 0.0 }
 0x694   :  { %v7281_v36 = vmax.f32 %v6956_v15, 0.0  ;;  %v6959_v48 = vpop.f32.mrb[158].mxu1 }
 0x695   :  { %7408 = vst [vmem:[%s12976_s7 + $0xe0] sm:$0xff] %v7280_v44  ;;  %v6960_v53 = vadd.f32 %v6959_v48, %v12300_v56  ;;  %v6961_v34 = vpop.f32.mrb[159].mxu1 }
 0x696   :  { %7409 = vst.msk [vmem:[%s12976_s7 + $0xe8] sm:$0xff] %vm5639_vm0, %v7281_v36  ;;  %v6962_v57 = vadd.f32 %v6961_v34, %v12304_v1 }
 0x697   :  { %v7282_v39 = vmax.f32 %v6960_v53, 0.0 }
 0x698   :  { %v7283_v23 = vmax.f32 %v6962_v57, 0.0  ;;  %v6965_v20 = vpop.f32.mrb[160].mxu1 }
 0x699   :  { %7410 = vst [vmem:[%s12976_s7 + $0xf0] sm:$0xff] %v7282_v39  ;;  %v6966_v26 = vadd.f32 %v6965_v20, %v12300_v56  ;;  %v6967_v2 = vpop.f32.mrb[161].mxu1 }
 0x69a   :  { %7411 = vst.msk [vmem:[%s12976_s7 + $0xf8] sm:$0xff] %vm5639_vm0, %v7283_v23  ;;  %v6968_v22 = vadd.f32 %v6967_v2, %v12304_v1 }
 0x69b   :  { %v7284_v18 = vmax.f32 %v6966_v26, 0.0 }
 0x69c   :  { %v7285_v24 = vmax.f32 %v6968_v22, 0.0  ;;  %v6971_v14 = vpop.f32.mrb[162].mxu1 }
 0x69d   :  { %7412 = vst [vmem:[%s12976_s7 + $0x100] sm:$0xff] %v7284_v18  ;;  %v6972_v7 = vadd.f32 %v6971_v14, %v12300_v56  ;;  %v6973_v54 = vpop.f32.mrb[163].mxu1 }
 0x69e   :  { %7413 = vst.msk [vmem:[%s12976_s7 + $0x108] sm:$0xff] %vm5639_vm0, %v7285_v24  ;;  %v6974_v63 = vadd.f32 %v6973_v54, %v12304_v1 }
 0x69f   :  { %v7286_v12 = vmax.f32 %v6972_v7, 0.0 }
 0x6a0   :  { %v7287_v8 = vmax.f32 %v6974_v63, 0.0  ;;  %v6977_v11 = vpop.f32.mrb[164].mxu1 }
 0x6a1   :  { %7414 = vst [vmem:[%s12976_s7 + $0x110] sm:$0xff] %v7286_v12  ;;  %v6978_v55 = vadd.f32 %v6977_v11, %v12300_v56  ;;  %v6979_v33 = vpop.f32.mrb[165].mxu1 }
 0x6a2   :  { %7415 = vst.msk [vmem:[%s12976_s7 + $0x118] sm:$0xff] %vm5639_vm0, %v7287_v8  ;;  %v6980_v19 = vadd.f32 %v6979_v33, %v12304_v1 }
 0x6a3   :  { %v7288_v28 = vmax.f32 %v6978_v55, 0.0 }
 0x6a4   :  { %v7289_v13 = vmax.f32 %v6980_v19, 0.0  ;;  %v6983_v37 = vpop.f32.mrb[166].mxu1 }
 0x6a5   :  { %7416 = vst [vmem:[%s12976_s7 + $0x120] sm:$0xff] %v7288_v28  ;;  %v6984_v49 = vadd.f32 %v6983_v37, %v12300_v56  ;;  %v6985_v40 = vpop.f32.mrb[167].mxu1 }
 0x6a6   :  { %7417 = vst.msk [vmem:[%s12976_s7 + $0x128] sm:$0xff] %vm5639_vm0, %v7289_v13  ;;  %v6986_v27 = vadd.f32 %v6985_v40, %v12304_v1 }
 0x6a7   :  { %v7290_v60 = vmax.f32 %v6984_v49, 0.0 }
 0x6a8   :  { %v7291_v50 = vmax.f32 %v6986_v27, 0.0  ;;  %v6989_v47 = vpop.f32.mrb[168].mxu1 }
 0x6a9   :  { %7418 = vst [vmem:[%s12976_s7 + $0x130] sm:$0xff] %v7290_v60  ;;  %v6990_v45 = vadd.f32 %v6989_v47, %v12300_v56  ;;  %v6991_v61 = vpop.f32.mrb[169].mxu1 }
 0x6aa   :  { %7419 = vst.msk [vmem:[%s12976_s7 + $0x138] sm:$0xff] %vm5639_vm0, %v7291_v50  ;;  %v6992_v38 = vadd.f32 %v6991_v61, %v12304_v1 }
 0x6ab   :  { %v7292_v0 = vmax.f32 %v6990_v45, 0.0 }
 0x6ac   :  { %v7293_v4 = vmax.f32 %v6992_v38, 0.0  ;;  %v6995_v42 = vpop.f32.mrb[170].mxu1 }
 0x6ad   :  { %7420 = vst [vmem:[%s12976_s7 + $0x140] sm:$0xff] %v7292_v0  ;;  %v6996_v9 = vadd.f32 %v6995_v42, %v12300_v56  ;;  %v6997_v58 = vpop.f32.mrb[171].mxu1 }
 0x6ae   :  { %7421 = vst.msk [vmem:[%s12976_s7 + $0x148] sm:$0xff] %vm5639_vm0, %v7293_v4  ;;  %v6998_v35 = vadd.f32 %v6997_v58, %v12304_v1 }
 0x6af   :  { %v7294_v21 = vmax.f32 %v6996_v9, 0.0 }
 0x6b0   :  { %v7295_v16 = vmax.f32 %v6998_v35, 0.0  ;;  %v7001_v17 = vpop.f32.mrb[172].mxu1 }
 0x6b1   :  { %7422 = vst [vmem:[%s12976_s7 + $0x150] sm:$0xff] %v7294_v21  ;;  %v7002_v32 = vadd.f32 %v7001_v17, %v12300_v56  ;;  %v7003_v41 = vpop.f32.mrb[173].mxu1 }
 0x6b2   :  { %7423 = vst.msk [vmem:[%s12976_s7 + $0x158] sm:$0xff] %vm5639_vm0, %v7295_v16  ;;  %v7004_v46 = vadd.f32 %v7003_v41, %v12304_v1 }
 0x6b3   :  { %v7296_v31 = vmax.f32 %v7002_v32, 0.0 }
 0x6b4   :  { %v7297_v59 = vmax.f32 %v7004_v46, 0.0  ;;  %v7007_v30 = vpop.f32.mrb[174].mxu1 }
 0x6b5   :  { %7424 = vst [vmem:[%s12976_s7 + $0x160] sm:$0xff] %v7296_v31  ;;  %v7008_v10 = vadd.f32 %v7007_v30, %v12300_v56  ;;  %v7009_v5 = vpop.f32.mrb[175].mxu1 }
 0x6b6   :  { %7425 = vst.msk [vmem:[%s12976_s7 + $0x168] sm:$0xff] %vm5639_vm0, %v7297_v59  ;;  %v7010_v29 = vadd.f32 %v7009_v5, %v12304_v1 }
 0x6b7   :  { %v7298_v6 = vmax.f32 %v7008_v10, 0.0 }
 0x6b8   :  { %v7299_v25 = vmax.f32 %v7010_v29, 0.0  ;;  %v7013_v43 = vpop.f32.mrb[176].mxu1 }
 0x6b9   :  { %7426 = vst [vmem:[%s12976_s7 + $0x170] sm:$0xff] %v7298_v6  ;;  %v7014_v62 = vadd.f32 %v7013_v43, %v12300_v56  ;;  %v7015_v3 = vpop.f32.mrb[177].mxu1 }
 0x6ba   :  { %7427 = vst.msk [vmem:[%s12976_s7 + $0x178] sm:$0xff] %vm5639_vm0, %v7299_v25  ;;  %v7016_v52 = vadd.f32 %v7015_v3, %v12304_v1 }
 0x6bb   :  { %v7300_v51 = vmax.f32 %v7014_v62, 0.0 }
 0x6bc   :  { %v7301_v15 = vmax.f32 %v7016_v52, 0.0  ;;  %v7019_v44 = vpop.f32.mrb[178].mxu1 }
 0x6bd   :  { %7428 = vst [vmem:[%s12976_s7 + $0x180] sm:$0xff] %v7300_v51  ;;  %v7020_v36 = vadd.f32 %v7019_v44, %v12300_v56  ;;  %v7021_v48 = vpop.f32.mrb[179].mxu1 }
 0x6be   :  { %7429 = vst.msk [vmem:[%s12976_s7 + $0x188] sm:$0xff] %vm5639_vm0, %v7301_v15  ;;  %v7022_v53 = vadd.f32 %v7021_v48, %v12304_v1 }
 0x6bf   :  { %v7302_v34 = vmax.f32 %v7020_v36, 0.0 }
 0x6c0   :  { %v7303_v57 = vmax.f32 %v7022_v53, 0.0  ;;  %v7025_v39 = vpop.f32.mrb[180].mxu1 }
 0x6c1   :  { %7430 = vst [vmem:[%s12976_s7 + $0x190] sm:$0xff] %v7302_v34  ;;  %v7026_v23 = vadd.f32 %v7025_v39, %v12300_v56  ;;  %v7027_v20 = vpop.f32.mrb[181].mxu1 }
 0x6c2   :  { %7431 = vst.msk [vmem:[%s12976_s7 + $0x198] sm:$0xff] %vm5639_vm0, %v7303_v57  ;;  %v7028_v26 = vadd.f32 %v7027_v20, %v12304_v1 }
 0x6c3   :  { %v7304_v2 = vmax.f32 %v7026_v23, 0.0 }
 0x6c4   :  { %v7305_v22 = vmax.f32 %v7028_v26, 0.0  ;;  %v7031_v18 = vpop.f32.mrb[182].mxu1 }
 0x6c5   :  { %7432 = vst [vmem:[%s12976_s7 + $0x1a0] sm:$0xff] %v7304_v2  ;;  %v7032_v24 = vadd.f32 %v7031_v18, %v12300_v56  ;;  %v7033_v14 = vpop.f32.mrb[183].mxu1 }
 0x6c6   :  { %7433 = vst.msk [vmem:[%s12976_s7 + $0x1a8] sm:$0xff] %vm5639_vm0, %v7305_v22  ;;  %v7034_v7 = vadd.f32 %v7033_v14, %v12304_v1 }
 0x6c7   :  { %v7306_v54 = vmax.f32 %v7032_v24, 0.0 }
 0x6c8   :  { %v7307_v63 = vmax.f32 %v7034_v7, 0.0  ;;  %v7037_v12 = vpop.f32.mrb[184].mxu1 }
 0x6c9   :  { %7434 = vst [vmem:[%s12976_s7 + $0x1b0] sm:$0xff] %v7306_v54  ;;  %v7038_v8 = vadd.f32 %v7037_v12, %v12300_v56  ;;  %v7039_v11 = vpop.f32.mrb[185].mxu1 }
 0x6ca   :  { %7435 = vst.msk [vmem:[%s12976_s7 + $0x1b8] sm:$0xff] %vm5639_vm0, %v7307_v63  ;;  %v7040_v55 = vadd.f32 %v7039_v11, %v12304_v1 }
 0x6cb   :  { %v7308_v33 = vmax.f32 %v7038_v8, 0.0 }
 0x6cc   :  { %v7309_v19 = vmax.f32 %v7040_v55, 0.0  ;;  %v7043_v28 = vpop.f32.mrb[186].mxu1 }
 0x6cd   :  { %7436 = vst [vmem:[%s12976_s7 + $0x1c0] sm:$0xff] %v7308_v33  ;;  %v7044_v13 = vadd.f32 %v7043_v28, %v12300_v56  ;;  %v7045_v37 = vpop.f32.mrb[187].mxu1 }
 0x6ce   :  { %7437 = vst.msk [vmem:[%s12976_s7 + $0x1c8] sm:$0xff] %vm5639_vm0, %v7309_v19  ;;  %v7046_v49 = vadd.f32 %v7045_v37, %v12304_v1 }
 0x6cf   :  { %v7310_v40 = vmax.f32 %v7044_v13, 0.0 }
 0x6d0   :  { %v7311_v27 = vmax.f32 %v7046_v49, 0.0  ;;  %v7049_v60 = vpop.f32.mrb[188].mxu1 }
 0x6d1   :  { %7438 = vst [vmem:[%s12976_s7 + $0x1d0] sm:$0xff] %v7310_v40  ;;  %v7050_v50 = vadd.f32 %v7049_v60, %v12300_v56  ;;  %v7051_v47 = vpop.f32.mrb[189].mxu1 }
 0x6d2   :  { %7439 = vst.msk [vmem:[%s12976_s7 + $0x1d8] sm:$0xff] %vm5639_vm0, %v7311_v27  ;;  %v7052_v45 = vadd.f32 %v7051_v47, %v12304_v1 }
 0x6d3   :  { %v7312_v61 = vmax.f32 %v7050_v50, 0.0 }
 0x6d4   :  { %v7313_v38 = vmax.f32 %v7052_v45, 0.0  ;;  %v7055_v0 = vpop.f32.mrb[190].mxu1 }
 0x6d5   :  { %7440 = vst [vmem:[%s12976_s7 + $0x1e0] sm:$0xff] %v7312_v61  ;;  %v7056_v4 = vadd.f32 %v7055_v0, %v12300_v56  ;;  %v7057_v42 = vpop.f32.mrb[191].mxu1 }
 0x6d6   :  { %7441 = vst.msk [vmem:[%s12976_s7 + $0x1e8] sm:$0xff] %vm5639_vm0, %v7313_v38  ;;  %v7058_v9 = vadd.f32 %v7057_v42, %v12304_v1 }
 0x6d7   :  { %v7314_v58 = vmax.f32 %v7056_v4, 0.0 }
 0x6d8   :  { %v7315_v35 = vmax.f32 %v7058_v9, 0.0  ;;  %v7061_v21 = vpop.f32.mrb[192].mxu1 }
 0x6d9   :  { %7442 = vst [vmem:[%s12976_s7 + $0x1f0] sm:$0xff] %v7314_v58  ;;  %v7062_v16 = vadd.f32 %v7061_v21, %v12300_v56  ;;  %v7063_v17 = vpop.f32.mrb[193].mxu1 }
 0x6da   :  { %7443 = vst.msk [vmem:[%s12976_s7 + $0x1f8] sm:$0xff] %vm5639_vm0, %v7315_v35  ;;  %v7064_v32 = vadd.f32 %v7063_v17, %v12304_v1 }
 0x6db   :  { %v7316_v41 = vmax.f32 %v7062_v16, 0.0 }
 0x6dc   :  { %v7317_v46 = vmax.f32 %v7064_v32, 0.0  ;;  %v7067_v31 = vpop.f32.mrb[194].mxu1 }
 0x6dd   :  { %7444 = vst [vmem:[%s12976_s7 + $0x200] sm:$0xff] %v7316_v41  ;;  %v7068_v59 = vadd.f32 %v7067_v31, %v12300_v56  ;;  %v7069_v30 = vpop.f32.mrb[195].mxu1 }
 0x6de   :  { %7445 = vst.msk [vmem:[%s12976_s7 + $0x208] sm:$0xff] %vm5639_vm0, %v7317_v46  ;;  %v7070_v10 = vadd.f32 %v7069_v30, %v12304_v1 }
 0x6df   :  { %v7318_v5 = vmax.f32 %v7068_v59, 0.0 }
 0x6e0   :  { %v7319_v29 = vmax.f32 %v7070_v10, 0.0  ;;  %v7073_v6 = vpop.f32.mrb[196].mxu1 }
 0x6e1   :  { %7446 = vst [vmem:[%s12976_s7 + $0x210] sm:$0xff] %v7318_v5  ;;  %v7074_v25 = vadd.f32 %v7073_v6, %v12300_v56  ;;  %v7075_v43 = vpop.f32.mrb[197].mxu1 }
 0x6e2   :  { %7447 = vst.msk [vmem:[%s12976_s7 + $0x218] sm:$0xff] %vm5639_vm0, %v7319_v29  ;;  %v7076_v62 = vadd.f32 %v7075_v43, %v12304_v1 }
 0x6e3   :  { %v7320_v3 = vmax.f32 %v7074_v25, 0.0 }
 0x6e4   :  { %v7321_v52 = vmax.f32 %v7076_v62, 0.0  ;;  %v7079_v51 = vpop.f32.mrb[198].mxu1 }
 0x6e5   :  { %7448 = vst [vmem:[%s12976_s7 + $0x220] sm:$0xff] %v7320_v3  ;;  %v7080_v15 = vadd.f32 %v7079_v51, %v12300_v56  ;;  %v7081_v44 = vpop.f32.mrb[199].mxu1 }
 0x6e6   :  { %7449 = vst.msk [vmem:[%s12976_s7 + $0x228] sm:$0xff] %vm5639_vm0, %v7321_v52  ;;  %v7082_v36 = vadd.f32 %v7081_v44, %v12304_v1 }
 0x6e7   :  { %v7322_v48 = vmax.f32 %v7080_v15, 0.0 }
 0x6e8   :  { %v7323_v53 = vmax.f32 %v7082_v36, 0.0  ;;  %v7085_v34 = vpop.f32.mrb[200].mxu1 }
 0x6e9   :  { %7450 = vst [vmem:[%s12976_s7 + $0x230] sm:$0xff] %v7322_v48  ;;  %v7086_v57 = vadd.f32 %v7085_v34, %v12300_v56  ;;  %v7087_v39 = vpop.f32.mrb[201].mxu1 }
 0x6ea   :  { %7451 = vst.msk [vmem:[%s12976_s7 + $0x238] sm:$0xff] %vm5639_vm0, %v7323_v53  ;;  %v7088_v23 = vadd.f32 %v7087_v39, %v12304_v1 }
 0x6eb   :  { %v7324_v20 = vmax.f32 %v7086_v57, 0.0 }
 0x6ec   :  { %v7325_v26 = vmax.f32 %v7088_v23, 0.0  ;;  %v7091_v2 = vpop.f32.mrb[202].mxu1 }
 0x6ed   :  { %7452 = vst [vmem:[%s12976_s7 + $0x240] sm:$0xff] %v7324_v20  ;;  %v7092_v22 = vadd.f32 %v7091_v2, %v12300_v56  ;;  %v7093_v18 = vpop.f32.mrb[203].mxu1 }
 0x6ee   :  { %7453 = vst.msk [vmem:[%s12976_s7 + $0x248] sm:$0xff] %vm5639_vm0, %v7325_v26  ;;  %v7094_v24 = vadd.f32 %v7093_v18, %v12304_v1 }
 0x6ef   :  { %v7326_v14 = vmax.f32 %v7092_v22, 0.0 }
 0x6f0   :  { %v7327_v7 = vmax.f32 %v7094_v24, 0.0  ;;  %v7097_v54 = vpop.f32.mrb[204].mxu1 }
 0x6f1   :  { %7454 = vst [vmem:[%s12976_s7 + $0x250] sm:$0xff] %v7326_v14  ;;  %v7098_v63 = vadd.f32 %v7097_v54, %v12300_v56  ;;  %v7099_v12 = vpop.f32.mrb[205].mxu1 }
 0x6f2   :  { %7455 = vst.msk [vmem:[%s12976_s7 + $0x258] sm:$0xff] %vm5639_vm0, %v7327_v7  ;;  %v7100_v8 = vadd.f32 %v7099_v12, %v12304_v1 }
 0x6f3   :  { %v7328_v11 = vmax.f32 %v7098_v63, 0.0 }
 0x6f4   :  { %v7329_v55 = vmax.f32 %v7100_v8, 0.0  ;;  %v7103_v33 = vpop.f32.mrb[206].mxu1 }
 0x6f5   :  { %7456 = vst [vmem:[%s12976_s7 + $0x260] sm:$0xff] %v7328_v11  ;;  %v7104_v19 = vadd.f32 %v7103_v33, %v12300_v56  ;;  %v7105_v28 = vpop.f32.mrb[207].mxu1 }
 0x6f6   :  { %7457 = vst.msk [vmem:[%s12976_s7 + $0x268] sm:$0xff] %vm5639_vm0, %v7329_v55  ;;  %v7106_v13 = vadd.f32 %v7105_v28, %v12304_v1 }
 0x6f7   :  { %v7330_v37 = vmax.f32 %v7104_v19, 0.0 }
 0x6f8   :  { %v7331_v49 = vmax.f32 %v7106_v13, 0.0  ;;  %v7109_v40 = vpop.f32.mrb[208].mxu1 }
 0x6f9   :  { %7458 = vst [vmem:[%s12976_s7 + $0x270] sm:$0xff] %v7330_v37  ;;  %v7110_v27 = vadd.f32 %v7109_v40, %v12300_v56  ;;  %v7111_v60 = vpop.f32.mrb[209].mxu1 }
 0x6fa   :  { %7459 = vst.msk [vmem:[%s12976_s7 + $0x278] sm:$0xff] %vm5639_vm0, %v7331_v49  ;;  %v7112_v50 = vadd.f32 %v7111_v60, %v12304_v1 }
 0x6fb   :  { %v7332_v47 = vmax.f32 %v7110_v27, 0.0 }
 0x6fc   :  { %v7333_v45 = vmax.f32 %v7112_v50, 0.0  ;;  %v7115_v61 = vpop.f32.mrb[210].mxu1 }
 0x6fd   :  { %7460 = vst [vmem:[%s12976_s7 + $0x280] sm:$0xff] %v7332_v47  ;;  %v7116_v38 = vadd.f32 %v7115_v61, %v12300_v56  ;;  %v7117_v0 = vpop.f32.mrb[211].mxu1 }
 0x6fe   :  { %7461 = vst.msk [vmem:[%s12976_s7 + $0x288] sm:$0xff] %vm5639_vm0, %v7333_v45  ;;  %v7118_v4 = vadd.f32 %v7117_v0, %v12304_v1 }
 0x6ff   :  { %v7334_v42 = vmax.f32 %v7116_v38, 0.0 }
 0x700   :  { %v7335_v9 = vmax.f32 %v7118_v4, 0.0  ;;  %v7121_v58 = vpop.f32.mrb[212].mxu1 }
 0x701   :  { %7462 = vst [vmem:[%s12976_s7 + $0x290] sm:$0xff] %v7334_v42  ;;  %v7122_v35 = vadd.f32 %v7121_v58, %v12300_v56  ;;  %v7123_v21 = vpop.f32.mrb[213].mxu1 }
 0x702   :  { %7463 = vst.msk [vmem:[%s12976_s7 + $0x298] sm:$0xff] %vm5639_vm0, %v7335_v9  ;;  %v7124_v16 = vadd.f32 %v7123_v21, %v12304_v1 }
 0x703   :  { %v7336_v17 = vmax.f32 %v7122_v35, 0.0 }
 0x704   :  { %v7337_v32 = vmax.f32 %v7124_v16, 0.0  ;;  %v7127_v41 = vpop.f32.mrb[214].mxu1 }
 0x705   :  { %7464 = vst [vmem:[%s12976_s7 + $0x2a0] sm:$0xff] %v7336_v17  ;;  %v7128_v46 = vadd.f32 %v7127_v41, %v12300_v56  ;;  %v7129_v31 = vpop.f32.mrb[215].mxu1 }
 0x706   :  { %7465 = vst.msk [vmem:[%s12976_s7 + $0x2a8] sm:$0xff] %vm5639_vm0, %v7337_v32  ;;  %v7130_v59 = vadd.f32 %v7129_v31, %v12304_v1 }
 0x707   :  { %v7338_v30 = vmax.f32 %v7128_v46, 0.0 }
 0x708   :  { %v7339_v10 = vmax.f32 %v7130_v59, 0.0  ;;  %v7133_v5 = vpop.f32.mrb[216].mxu1 }
 0x709   :  { %7466 = vst [vmem:[%s12976_s7 + $0x2b0] sm:$0xff] %v7338_v30  ;;  %v7134_v29 = vadd.f32 %v7133_v5, %v12300_v56  ;;  %v7135_v6 = vpop.f32.mrb[217].mxu1 }
 0x70a   :  { %7467 = vst.msk [vmem:[%s12976_s7 + $0x2b8] sm:$0xff] %vm5639_vm0, %v7339_v10  ;;  %v7136_v25 = vadd.f32 %v7135_v6, %v12304_v1 }
 0x70b   :  { %v7340_v43 = vmax.f32 %v7134_v29, 0.0 }
 0x70c   :  { %v7341_v62 = vmax.f32 %v7136_v25, 0.0  ;;  %v7139_v3 = vpop.f32.mrb[218].mxu1 }
 0x70d   :  { %7468 = vst [vmem:[%s12976_s7 + $0x2c0] sm:$0xff] %v7340_v43  ;;  %v7140_v52 = vadd.f32 %v7139_v3, %v12300_v56  ;;  %v7141_v51 = vpop.f32.mrb[219].mxu1 }
 0x70e   :  { %7469 = vst.msk [vmem:[%s12976_s7 + $0x2c8] sm:$0xff] %vm5639_vm0, %v7341_v62  ;;  %v7142_v15 = vadd.f32 %v7141_v51, %v12304_v1 }
 0x70f   :  { %v7342_v44 = vmax.f32 %v7140_v52, 0.0 }
 0x710   :  { %v7343_v36 = vmax.f32 %v7142_v15, 0.0  ;;  %v7145_v48 = vpop.f32.mrb[220].mxu1 }
 0x711   :  { %7470 = vst [vmem:[%s12976_s7 + $0x2d0] sm:$0xff] %v7342_v44  ;;  %v7146_v53 = vadd.f32 %v7145_v48, %v12300_v56  ;;  %v7147_v34 = vpop.f32.mrb[221].mxu1 }
 0x712   :  { %7471 = vst.msk [vmem:[%s12976_s7 + $0x2d8] sm:$0xff] %vm5639_vm0, %v7343_v36  ;;  %v7148_v57 = vadd.f32 %v7147_v34, %v12304_v1 }
 0x713   :  { %v7344_v39 = vmax.f32 %v7146_v53, 0.0 }
 0x714   :  { %v7345_v23 = vmax.f32 %v7148_v57, 0.0  ;;  %v7151_v20 = vpop.f32.mrb[222].mxu1 }
 0x715   :  { %7472 = vst [vmem:[%s12976_s7 + $0x2e0] sm:$0xff] %v7344_v39  ;;  %v7152_v26 = vadd.f32 %v7151_v20, %v12300_v56  ;;  %v7153_v2 = vpop.f32.mrb[223].mxu1 }
 0x716   :  { %7473 = vst.msk [vmem:[%s12976_s7 + $0x2e8] sm:$0xff] %vm5639_vm0, %v7345_v23  ;;  %v7154_v22 = vadd.f32 %v7153_v2, %v12304_v1 }
 0x717   :  { %v7346_v18 = vmax.f32 %v7152_v26, 0.0 }
 0x718   :  { %v7347_v24 = vmax.f32 %v7154_v22, 0.0  ;;  %v7157_v14 = vpop.f32.mrb[224].mxu1 }
 0x719   :  { %7474 = vst [vmem:[%s12976_s7 + $0x2f0] sm:$0xff] %v7346_v18  ;;  %v7158_v7 = vadd.f32 %v7157_v14, %v12300_v56  ;;  %v7159_v54 = vpop.f32.mrb[225].mxu1 }
 0x71a   :  { %7475 = vst.msk [vmem:[%s12976_s7 + $0x2f8] sm:$0xff] %vm5639_vm0, %v7347_v24  ;;  %v7160_v63 = vadd.f32 %v7159_v54, %v12304_v1 }
 0x71b   :  { %v7348_v12 = vmax.f32 %v7158_v7, 0.0 }
 0x71c   :  { %v7349_v8 = vmax.f32 %v7160_v63, 0.0  ;;  %v7163_v11 = vpop.f32.mrb[226].mxu1 }
 0x71d   :  { %7476 = vst [vmem:[%s12976_s7 + $0x300] sm:$0xff] %v7348_v12  ;;  %v7164_v55 = vadd.f32 %v7163_v11, %v12300_v56  ;;  %v7165_v33 = vpop.f32.mrb[227].mxu1 }
 0x71e   :  { %7477 = vst.msk [vmem:[%s12976_s7 + $0x308] sm:$0xff] %vm5639_vm0, %v7349_v8  ;;  %v7166_v19 = vadd.f32 %v7165_v33, %v12304_v1 }
 0x71f   :  { %v7350_v28 = vmax.f32 %v7164_v55, 0.0 }
 0x720   :  { %v7351_v13 = vmax.f32 %v7166_v19, 0.0  ;;  %v7169_v37 = vpop.f32.mrb[228].mxu1 }
 0x721   :  { %7478 = vst [vmem:[%s12976_s7 + $0x310] sm:$0xff] %v7350_v28  ;;  %v7170_v49 = vadd.f32 %v7169_v37, %v12300_v56  ;;  %v7171_v40 = vpop.f32.mrb[229].mxu1 }
 0x722   :  { %7479 = vst.msk [vmem:[%s12976_s7 + $0x318] sm:$0xff] %vm5639_vm0, %v7351_v13  ;;  %v7172_v27 = vadd.f32 %v7171_v40, %v12304_v1 }
 0x723   :  { %v7352_v60 = vmax.f32 %v7170_v49, 0.0 }
 0x724   :  { %v7353_v50 = vmax.f32 %v7172_v27, 0.0  ;;  %v7175_v47 = vpop.f32.mrb[230].mxu1 }
 0x725   :  { %7480 = vst [vmem:[%s12976_s7 + $0x320] sm:$0xff] %v7352_v60  ;;  %v7176_v45 = vadd.f32 %v7175_v47, %v12300_v56  ;;  %v7177_v61 = vpop.f32.mrb[231].mxu1 }
 0x726   :  { %7481 = vst.msk [vmem:[%s12976_s7 + $0x328] sm:$0xff] %vm5639_vm0, %v7353_v50  ;;  %v7178_v38 = vadd.f32 %v7177_v61, %v12304_v1 }
 0x727   :  { %v7354_v0 = vmax.f32 %v7176_v45, 0.0 }
 0x728   :  { %v7355_v4 = vmax.f32 %v7178_v38, 0.0  ;;  %v7181_v42 = vpop.f32.mrb[232].mxu1 }
 0x729   :  { %7482 = vst [vmem:[%s12976_s7 + $0x330] sm:$0xff] %v7354_v0  ;;  %v7182_v9 = vadd.f32 %v7181_v42, %v12300_v56  ;;  %v7183_v58 = vpop.f32.mrb[233].mxu1 }
 0x72a   :  { %7483 = vst.msk [vmem:[%s12976_s7 + $0x338] sm:$0xff] %vm5639_vm0, %v7355_v4  ;;  %v7184_v35 = vadd.f32 %v7183_v58, %v12304_v1 }
 0x72b   :  { %v7356_v21 = vmax.f32 %v7182_v9, 0.0 }
 0x72c   :  { %v7357_v16 = vmax.f32 %v7184_v35, 0.0  ;;  %v7187_v17 = vpop.f32.mrb[234].mxu1 }
 0x72d   :  { %7484 = vst [vmem:[%s12976_s7 + $0x340] sm:$0xff] %v7356_v21  ;;  %v7188_v32 = vadd.f32 %v7187_v17, %v12300_v56  ;;  %v7189_v41 = vpop.f32.mrb[235].mxu1 }
 0x72e   :  { %7485 = vst.msk [vmem:[%s12976_s7 + $0x348] sm:$0xff] %vm5639_vm0, %v7357_v16  ;;  %v7190_v46 = vadd.f32 %v7189_v41, %v12304_v1 }
 0x72f   :  { %v7358_v31 = vmax.f32 %v7188_v32, 0.0 }
 0x730   :  { %v7359_v59 = vmax.f32 %v7190_v46, 0.0  ;;  %v7193_v30 = vpop.f32.mrb[236].mxu1 }
 0x731   :  { %7486 = vst [vmem:[%s12976_s7 + $0x350] sm:$0xff] %v7358_v31  ;;  %v7194_v10 = vadd.f32 %v7193_v30, %v12300_v56  ;;  %v7195_v5 = vpop.f32.mrb[237].mxu1 }
 0x732   :  { %7487 = vst.msk [vmem:[%s12976_s7 + $0x358] sm:$0xff] %vm5639_vm0, %v7359_v59  ;;  %v7196_v29 = vadd.f32 %v7195_v5, %v12304_v1 }
 0x733   :  { %v7360_v6 = vmax.f32 %v7194_v10, 0.0 }
 0x734   :  { %v7361_v25 = vmax.f32 %v7196_v29, 0.0  ;;  %v7199_v43 = vpop.f32.mrb[238].mxu1 }
 0x735   :  { %7488 = vst [vmem:[%s12976_s7 + $0x360] sm:$0xff] %v7360_v6  ;;  %v7200_v62 = vadd.f32 %v7199_v43, %v12300_v56  ;;  %v7201_v3 = vpop.f32.mrb[239].mxu1 }
 0x736   :  { %7489 = vst.msk [vmem:[%s12976_s7 + $0x368] sm:$0xff] %vm5639_vm0, %v7361_v25  ;;  %v7202_v52 = vadd.f32 %v7201_v3, %v12304_v1 }
 0x737   :  { %v7362_v51 = vmax.f32 %v7200_v62, 0.0 }
 0x738   :  { %v7363_v15 = vmax.f32 %v7202_v52, 0.0  ;;  %v7205_v44 = vpop.f32.mrb[240].mxu1 }
 0x739   :  { %7490 = vst [vmem:[%s12976_s7 + $0x370] sm:$0xff] %v7362_v51  ;;  %v7206_v36 = vadd.f32 %v7205_v44, %v12300_v56  ;;  %v7207_v48 = vpop.f32.mrb[241].mxu1 }
 0x73a   :  { %7491 = vst.msk [vmem:[%s12976_s7 + $0x378] sm:$0xff] %vm5639_vm0, %v7363_v15  ;;  %v7208_v53 = vadd.f32 %v7207_v48, %v12304_v1 }
 0x73b   :  { %v7364_v34 = vmax.f32 %v7206_v36, 0.0 }
 0x73c   :  { %v7365_v57 = vmax.f32 %v7208_v53, 0.0  ;;  %v7211_v39 = vpop.f32.mrb[242].mxu1 }
 0x73d   :  { %7492 = vst [vmem:[%s12976_s7 + $0x380] sm:$0xff] %v7364_v34  ;;  %v7212_v23 = vadd.f32 %v7211_v39, %v12300_v56  ;;  %v7213_v20 = vpop.f32.mrb[243].mxu1 }
 0x73e   :  { %7493 = vst.msk [vmem:[%s12976_s7 + $0x388] sm:$0xff] %vm5639_vm0, %v7365_v57  ;;  %v7214_v26 = vadd.f32 %v7213_v20, %v12304_v1 }
 0x73f   :  { %v7366_v2 = vmax.f32 %v7212_v23, 0.0 }
 0x740   :  { %v7367_v22 = vmax.f32 %v7214_v26, 0.0  ;;  %v7217_v18 = vpop.f32.mrb[244].mxu1 }
 0x741   :  { %7494 = vst [vmem:[%s12976_s7 + $0x390] sm:$0xff] %v7366_v2  ;;  %v7218_v24 = vadd.f32 %v7217_v18, %v12300_v56  ;;  %v7219_v14 = vpop.f32.mrb[245].mxu1 }
 0x742   :  { %7495 = vst.msk [vmem:[%s12976_s7 + $0x398] sm:$0xff] %vm5639_vm0, %v7367_v22  ;;  %v7220_v7 = vadd.f32 %v7219_v14, %v12304_v1 }
 0x743   :  { %v7368_v54 = vmax.f32 %v7218_v24, 0.0 }
 0x744   :  { %v7369_v63 = vmax.f32 %v7220_v7, 0.0  ;;  %v7223_v12 = vpop.f32.mrb[246].mxu1 }
 0x745   :  { %7496 = vst [vmem:[%s12976_s7 + $0x3a0] sm:$0xff] %v7368_v54  ;;  %v7224_v8 = vadd.f32 %v7223_v12, %v12300_v56  ;;  %v7225_v11 = vpop.f32.mrb[247].mxu1 }
 0x746   :  { %7497 = vst.msk [vmem:[%s12976_s7 + $0x3a8] sm:$0xff] %vm5639_vm0, %v7369_v63  ;;  %v7226_v55 = vadd.f32 %v7225_v11, %v12304_v1 }
 0x747   :  { %v7370_v33 = vmax.f32 %v7224_v8, 0.0 }
 0x748   :  { %v7371_v19 = vmax.f32 %v7226_v55, 0.0  ;;  %v7229_v28 = vpop.f32.mrb[248].mxu1 }
 0x749   :  { %7498 = vst [vmem:[%s12976_s7 + $0x3b0] sm:$0xff] %v7370_v33  ;;  %v7230_v13 = vadd.f32 %v7229_v28, %v12300_v56  ;;  %v7231_v37 = vpop.f32.mrb[249].mxu1 }
 0x74a   :  { %7499 = vst.msk [vmem:[%s12976_s7 + $0x3b8] sm:$0xff] %vm5639_vm0, %v7371_v19  ;;  %v7232_v49 = vadd.f32 %v7231_v37, %v12304_v1 }
 0x74b   :  { %v7372_v40 = vmax.f32 %v7230_v13, 0.0 }
 0x74c   :  { %v7373_v27 = vmax.f32 %v7232_v49, 0.0  ;;  %v7235_v60 = vpop.f32.mrb[250].mxu1 }
 0x74d   :  { %7500 = vst [vmem:[%s12976_s7 + $0x3c0] sm:$0xff] %v7372_v40  ;;  %v7236_v50 = vadd.f32 %v7235_v60, %v12300_v56  ;;  %v7237_v47 = vpop.f32.mrb[251].mxu1 }
 0x74e   :  { %7501 = vst.msk [vmem:[%s12976_s7 + $0x3c8] sm:$0xff] %vm5639_vm0, %v7373_v27  ;;  %v7238_v45 = vadd.f32 %v7237_v47, %v12304_v1 }
 0x74f   :  { %v7374_v61 = vmax.f32 %v7236_v50, 0.0 }
 0x750   :  { %v7375_v38 = vmax.f32 %v7238_v45, 0.0  ;;  %v7241_v0 = vpop.f32.mrb[252].mxu1 }
 0x751   :  { %7502 = vst [vmem:[%s12976_s7 + $0x3d0] sm:$0xff] %v7374_v61  ;;  %v7242_v4 = vadd.f32 %v7241_v0, %v12300_v56  ;;  %v7243_v42 = vpop.f32.mrb[253].mxu1 }
 0x752   :  { %7503 = vst.msk [vmem:[%s12976_s7 + $0x3d8] sm:$0xff] %vm5639_vm0, %v7375_v38  ;;  %v7244_v9 = vadd.f32 %v7243_v42, %v12304_v1 }
 0x753   :  { %v7376_v58 = vmax.f32 %v7242_v4, 0.0 }
 0x754   :  { %v7377_v35 = vmax.f32 %v7244_v9, 0.0  ;;  %v7247_v21 = vpop.f32.mrb[254].mxu1 }
 0x755   :  { %7504 = vst [vmem:[%s12976_s7 + $0x3e0] sm:$0xff] %v7376_v58  ;;  %v7248_v16 = vadd.f32 %v7247_v21, %v12300_v56  ;;  %v7249_v17 = vpop.f32.mrb[255].mxu1 }
 0x756   :  { %7505 = vst.msk [vmem:[%s12976_s7 + $0x3e8] sm:$0xff] %vm5639_vm0, %v7377_v35  ;;  %v7250_v32 = vadd.f32 %v7249_v17, %v12304_v1 }
 0x757   :  { %v7378_v41 = vmax.f32 %v7248_v16, 0.0 }
 0x758   :  { %v7379_v46 = vmax.f32 %v7250_v32, 0.0 }
 0x759   :  { %7506 = vst [vmem:[%s12976_s7 + $0x3f0] sm:$0xff] %v7378_v41 }
 0x75a   :  { %7507 = vst.msk [vmem:[%s12976_s7 + $0x3f8] sm:$0xff] %vm5639_vm0, %v7379_v46 }

</bundles_post_ra>
